<compile_context>
chip_gen: v7x
topology: tpu7x:2x2x1
jax: 0.10.0
libtpu: 0.0.40
codegen_flags: <defaults>
</compile_context>

<pallas_src>
import math

import jax
import jax.numpy as jnp
from jax import lax
from jax.experimental import pallas as pl
from jax.experimental.pallas import tpu as pltpu

# ----------------------------- model constants -----------------------------
INPUT_DIM = 8
HIDDEN_DIM = 32
LEN_ELEM_TO_ID = 3
OUTPUT_DIM_ID = 6          # len(class_to_id)
OUTPUT_DIM_P4 = 4
SPACE_DIM = 2
K_NEAREST = 3
NEG_SLOPE = 0.01           # nn.LeakyReLU default
LANE_PAD = 128             # lane-dense output / slab width


# --------------------------- packed weight slab -----------------------------
def _round8(r):
    return ((r + 7) // 8) * 8


def _build_layout():
    """Static layout of every parameter inside the single (R, 128) slab."""
    entries = []

    def add(name, rows, cols):
        entries.append((name, rows, cols))

    add("nn1_w0", INPUT_DIM, HIDDEN_DIM); add("nn1_b0", 1, HIDDEN_DIM)
    for i in (1, 2, 3):
        add(f"nn1_w{i}", HIDDEN_DIM, HIDDEN_DIM); add(f"nn1_b{i}", 1, HIDDEN_DIM)
    for c in (1, 2, 3):
        add(f"conv{c}_ws", HIDDEN_DIM, SPACE_DIM); add(f"conv{c}_bs", 1, SPACE_DIM)
        add(f"conv{c}_wh", HIDDEN_DIM, HIDDEN_DIM); add(f"conv{c}_bh", 1, HIDDEN_DIM)
        add(f"conv{c}_wo", 3 * HIDDEN_DIM, HIDDEN_DIM); add(f"conv{c}_bo", 1, HIDDEN_DIM)
    for i in (0, 1, 2):
        add(f"nn2_w{i}", HIDDEN_DIM, HIDDEN_DIM); add(f"nn2_b{i}", 1, HIDDEN_DIM)
    add("nn2_w3", HIDDEN_DIM, LANE_PAD)      # real width OUTPUT_DIM_ID, zero-padded
    add("nn2_b3", 1, LANE_PAD)
    add("nn3_w0h", HIDDEN_DIM, HIDDEN_DIM)   # nn3 layer0, h-part
    add("nn3_w0c", LANE_PAD, HIDDEN_DIM)     # nn3 layer0, cand_ids-part (zero-padded rows)
    add("nn3_b0", 1, HIDDEN_DIM)
    for i in (1, 2):
        add(f"nn3_w{i}", HIDDEN_DIM, HIDDEN_DIM); add(f"nn3_b{i}", 1, HIDDEN_DIM)
    add("nn3_w3", HIDDEN_DIM, LANE_PAD)      # real width OUTPUT_DIM_P4, zero-padded
    add("nn3_b3", 1, LANE_PAD)
    add("p4_sel", INPUT_DIM, LANE_PAD)       # picks x[:, 3:7] into output lanes 0..3

    layout, off = {}, 0
    for name, rows, cols in entries:
        layout[name] = (off, rows, cols)
        off += _round8(rows)                 # 8-sublane-aligned slots
    return layout, _round8(off)


_LAYOUT, _SLAB_ROWS = _build_layout()


# ------------------------------ kernel helpers -------------------------------
def _leaky_relu(x):
    # max(x, 0.01*x) == leaky_relu(x) for finite x; one VALU op cheaper than select.
    return jnp.maximum(x, NEG_SLOPE * x)


def _gravnet_block(xh, ws, bs, wh, bh, wo, bo):
    """torch_geometric GravNetConv (knn incl. self-edge) + PFNet10's leaky_relu."""
    s = jnp.dot(xh, ws, preferred_element_type=jnp.float32) + bs            # (N, S)
    h = jnp.dot(xh, wh, preferred_element_type=jnp.float32) + bh            # (N, H)

    # pairwise squared distances in learned space; Gram via dot_general (no s.T)
    sq = jnp.sum(s * s, axis=-1, keepdims=True)                             # (N, 1)
    gram = lax.dot_general(s, s, (((1,), (1,)), ((), ())),
                           preferred_element_type=jnp.float32)              # (N, N)
    d2 = jnp.maximum(sq + sq.T - 2.0 * gram, 0.0)

    n = xh.shape[0]
    col = lax.broadcasted_iota(jnp.int32, (n, n), 1)
    work = d2
    sum_agg = jnp.zeros_like(h)
    max_agg = jnp.full_like(h, -jnp.inf)

    # k iterations of "pick row-min (ties -> smallest column)" -> one-hot matmul
    # gather; only the selected distance is exponentiated (k*N exps, not N^2).
    for _ in range(K_NEAREST):
        rowmin = jnp.min(work, axis=1, keepdims=True)                       # (N, 1)
        is_min = work == rowmin
        cand = jnp.where(is_min, col, n)
        pick = jnp.min(cand, axis=1, keepdims=True)
        first = jnp.logical_and(is_min, col == pick)                        # one True/row
        onehot = first.astype(jnp.float32)                                  # (N, N)
        h_sel = jnp.dot(onehot, h, preferred_element_type=jnp.float32)      # (N, H)
        msg = jnp.exp(-10.0 * rowmin) * h_sel
        sum_agg = sum_agg + msg
        max_agg = jnp.maximum(max_agg, msg)
        work = jnp.where(first, jnp.inf, work)

    mean_agg = sum_agg * (1.0 / float(K_NEAREST))

    # lin_out(cat([x, mean, max])) as split matmuls (no concat); row order matches
    # torch_geometric's GravNetConv.  Porting trained weights must keep this order.
    out = (jnp.dot(xh, wo[:HIDDEN_DIM], preferred_element_type=jnp.float32)
           + jnp.dot(mean_agg, wo[HIDDEN_DIM:2 * HIDDEN_DIM],
                     preferred_element_type=jnp.float32)
           + jnp.dot(max_agg, wo[2 * HIDDEN_DIM:],
                     preferred_element_type=jnp.float32)
           + bo)
    return _leaky_relu(out)


# ------------------------------- fused kernel --------------------------------
def _pfnet10_fused_kernel(x_ref, slab_ref, out_ref):
    def W(name):
        off, rows, cols = _LAYOUT[name]
        blk = slab_ref[off:off + rows, :]
        return blk if cols == LANE_PAD else blk[:, :cols]

    x = x_ref[0]                                          # (N, INPUT_DIM)

    # nn1: leaky_relu after every layer (dropout rate 0 -> identity)
    h = x
    for i in range(4):
        h = _leaky_relu(jnp.dot(h, W(f"nn1_w{i}"),
                                preferred_element_type=jnp.float32) + W(f"nn1_b{i}"))

    # conv1/2/3 (+ fused leaky_relu); GravNetConv's new_edge_index is discarded
    # by PFNet10.forward so it is never materialized.
    for c in (1, 2, 3):
        h = _gravnet_block(h, W(f"conv{c}_ws"), W(f"conv{c}_bs"),
                           W(f"conv{c}_wh"), W(f"conv{c}_bh"),
                           W(f"conv{c}_wo"), W(f"conv{c}_bo"))

    # nn2: act after first three layers, none after last (last layer lane-padded)
    g = h
    for i in range(3):
        g = _leaky_relu(jnp.dot(g, W(f"nn2_w{i}"),
                                preferred_element_type=jnp.float32) + W(f"nn2_b{i}"))
    ids_pad = (jnp.dot(g, W("nn2_w3"), preferred_element_type=jnp.float32)
               + W("nn2_b3"))                             # (N, 128), cols>=6 are 0

    # nn3: first layer as split matmuls over [h, cand_ids] (no concat); the
    # cand_ids-part weight has zero-padded rows so the padded ids feed directly.
    t = _leaky_relu(
        jnp.dot(h, W("nn3_w0h"), preferred_element_type=jnp.float32)
        + jnp.dot(ids_pad, W("nn3_w0c"), preferred_element_type=jnp.float32)
        + W("nn3_b0"))
    for i in (1, 2):
        t = _leaky_relu(jnp.dot(t, W(f"nn3_w{i}"),
                                preferred_element_type=jnp.float32) + W(f"nn3_b{i}"))
    p4_pad = (jnp.dot(t, W("nn3_w3"), preferred_element_type=jnp.float32)
              + W("nn3_b3"))                              # (N, 128), cols>=4 are 0

    # residual: x[:, 3:7] injected via selection-matrix matmul (lane-aligned)
    p4_pad = p4_pad + jnp.dot(x, W("p4_sel"), preferred_element_type=jnp.float32)

    out_ref[0, 0, :, :] = ids_pad
    out_ref[0, 1, :, :] = p4_pad


# ------------------------------ parameters -----------------------------------
def _init_linear(key, fan_in, fan_out):
    kw, kb = jax.random.split(key)
    bound = 1.0 / math.sqrt(fan_in)
    w = jax.random.uniform(kw, (fan_in, fan_out), jnp.float32, -bound, bound)
    b = jax.random.uniform(kb, (1, fan_out), jnp.float32, -bound, bound)
    return w, b


def _pad_cols(a, width):
    out = jnp.zeros((a.shape[0], width), jnp.float32)
    return out.at[:, :a.shape[1]].set(a)


def _pad_rows(a, height):
    out = jnp.zeros((height, a.shape[1]), jnp.float32)
    return out.at[:a.shape[0], :].set(a)


def init_params(key):
    keys = jax.random.split(key, 32)
    ki = iter(keys)
    t = {}
    # nn1: in -> H -> H -> H -> H
    t["nn1_w0"], t["nn1_b0"] = _init_linear(next(ki), INPUT_DIM, HIDDEN_DIM)
    for i in (1, 2, 3):
        t[f"nn1_w{i}"], t[f"nn1_b{i}"] = _init_linear(next(ki), HIDDEN_DIM, HIDDEN_DIM)
    # three GravNet convs
    for c in (1, 2, 3):
        t[f"conv{c}_ws"], t[f"conv{c}_bs"] = _init_linear(next(ki), HIDDEN_DIM, SPACE_DIM)
        t[f"conv{c}_wh"], t[f"conv{c}_bh"] = _init_linear(next(ki), HIDDEN_DIM, HIDDEN_DIM)
        t[f"conv{c}_wo"], t[f"conv{c}_bo"] = _init_linear(next(ki), 3 * HIDDEN_DIM, HIDDEN_DIM)
    # nn2: H -> H -> H -> H -> output_dim_id (last layer lane-padded to 128)
    for i in (0, 1, 2):
        t[f"nn2_w{i}"], t[f"nn2_b{i}"] = _init_linear(next(ki), HIDDEN_DIM, HIDDEN_DIM)
    w, b = _init_linear(next(ki), HIDDEN_DIM, OUTPUT_DIM_ID)
    t["nn2_w3"], t["nn2_b3"] = _pad_cols(w, LANE_PAD), _pad_cols(b, LANE_PAD)
    # nn3: (H + output_dim_id) -> H -> H -> H -> 4
    w0, b0 = _init_linear(next(ki), HIDDEN_DIM + OUTPUT_DIM_ID, HIDDEN_DIM)
    t["nn3_w0h"] = w0[:HIDDEN_DIM]
    t["nn3_w0c"] = _pad_rows(w0[HIDDEN_DIM:], LANE_PAD)
    t["nn3_b0"] = b0
    for i in (1, 2):
        t[f"nn3_w{i}"], t[f"nn3_b{i}"] = _init_linear(next(ki), HIDDEN_DIM, HIDDEN_DIM)
    w, b = _init_linear(next(ki), HIDDEN_DIM, OUTPUT_DIM_P4)
    t["nn3_w3"], t["nn3_b3"] = _pad_cols(w, LANE_PAD), _pad_cols(b, LANE_PAD)
    # p4 residual selection matrix: picks x[:, 3:7] into output lanes 0..3
    sel = jnp.zeros((INPUT_DIM, LANE_PAD), jnp.float32)
    sel = sel.at[jnp.arange(OUTPUT_DIM_P4) + LEN_ELEM_TO_ID,
                 jnp.arange(OUTPUT_DIM_P4)].set(1.0)
    t["p4_sel"] = sel

    # pack everything into the single lane-dense slab
    slab = jnp.zeros((_SLAB_ROWS, LANE_PAD), jnp.float32)
    for name, (off, rows, cols) in _LAYOUT.items():
        slab = slab.at[off:off + rows, :cols].set(t[name])
    return {"slab": slab}


# -------------------------------- forward ------------------------------------
def _nodes_pallas_call(slab, xb):
    """xb: (B, N, INPUT_DIM) -> (B, 2, N, 128) lane-padded [cand_ids | cand_p4]."""
    b, n, _ = xb.shape
    return pl.pallas_call(
        _pfnet10_fused_kernel,
        out_shape=jax.ShapeDtypeStruct((b, 2, n, LANE_PAD), jnp.float32),
        grid=(b,),
        in_specs=[
            pl.BlockSpec((1, n, INPUT_DIM), lambda i: (i, 0, 0)),
            pl.BlockSpec((_SLAB_ROWS, LANE_PAD), lambda i: (0, 0)),  # resident slab
        ],
        out_specs=pl.BlockSpec((1, 2, n, LANE_PAD), lambda i: (i, 0, 0, 0)),
        compiler_params=pltpu.CompilerParams(
            dimension_semantics=("parallel",)),          # shards events over v7x's 2 TCs
    )(xb, slab)


def pfnet10_forward_batched(params, xb):
    out = _nodes_pallas_call(params["slab"], xb)
    cand_ids = out[:, 0, :, :OUTPUT_DIM_ID]
    cand_p4 = out[:, 1, :, :OUTPUT_DIM_P4]
    return cand_ids, cand_p4


def pfnet10_forward(params, x, edge_attr, edge_index):
    # edge_index is only used by the non-gravnet conv branches; kept for API parity.
    del edge_index
    cand_ids, cand_p4 = pfnet10_forward_batched(params, x[None])
    # data-independent edge sigmoid stays in the wrapper (XLA fuses it).
    edge_pred = jax.nn.sigmoid(edge_attr[:, 0])
    return edge_pred, cand_ids[0], cand_p4[0]


# ---------------------------------- main --------------------------------------
if __name__ == "__main__":
    key = jax.random.PRNGKey(0)
    kx, ke, kp, kb = jax.random.split(key, 4)

    N_NODES = 64
    N_EDGES = 16
    BATCH = 2

    x = jax.random.normal(kx, (N_NODES, INPUT_DIM), dtype=jnp.float32)
    edge_attr = jax.random.normal(ke, (N_EDGES, 1), dtype=jnp.float32)
    edge_index = jnp.zeros((2, N_EDGES), dtype=jnp.int32)   # unused by gravnet path
    params = init_params(kp)

    # single-event forward (original module API)
    fwd = jax.jit(pfnet10_forward)
    edge_pred, cand_ids, cand_p4 = fwd(params, x, edge_attr, edge_index)
    jax.block_until_ready((edge_pred, cand_ids, cand_p4))
    assert edge_pred.shape == (N_EDGES,)
    assert cand_ids.shape == (N_NODES, OUTPUT_DIM_ID)
    assert cand_p4.shape == (N_NODES, OUTPUT_DIM_P4)

    # batched forward: exercises the "parallel" event grid axis
    xb = jax.random.normal(kb, (BATCH, N_NODES, INPUT_DIM), dtype=jnp.float32)
    fwd_b = jax.jit(pfnet10_forward_batched)
    ids_b, p4_b = fwd_b(params, xb)
    jax.block_until_ready((ids_b, p4_b))
    assert ids_b.shape == (BATCH, N_NODES, OUTPUT_DIM_ID)
    assert p4_b.shape == (BATCH, N_NODES, OUTPUT_DIM_P4)

    print("KERNEL_OK")
</pallas_src>

<mosaic_0001>
module attributes {stable_mosaic.version = 11 : i64} {
  func.func @_pfnet10_fused_kernel(%arg0: i32, %arg1: memref<1x64x8xf32, #tpu.memory_space<vmem>>, %arg2: memref<1144x128xf32, #tpu.memory_space<vmem>>, %arg3: memref<1x2x64x128xf32, #tpu.memory_space<vmem>>) attributes {dimension_semantics = [#tpu.dimension_semantics<parallel>], iteration_bounds = array<i64: 1>, scalar_prefetch = 0 : i64, scratch_operands = 0 : i64, tpu.core_type = #tpu.core_type<tc>, window_params = [{transform_indices = @transform_0, window_bounds = array<i64: 1, 64, 8>}, {pipeline_mode = #tpu.pipeline_mode<synchronous>, transform_indices = @transform_1, window_bounds = array<i64: 1144, 128>}, {transform_indices = @transform_2, window_bounds = array<i64: 1, 2, 64, 128>}]} {
    %c0 = arith.constant 0 : index
    %c0_0 = arith.constant 0 : index
    %c0_1 = arith.constant 0 : index
    %0 = vector.load %arg1[%c0, %c0_0, %c0_1] : memref<1x64x8xf32, #tpu.memory_space<vmem>>, vector<1x64x8xf32>
    %1 = vector.shape_cast %0 : vector<1x64x8xf32> to vector<64x8xf32>
    %c0_2 = arith.constant 0 : index
    %c0_3 = arith.constant 0 : index
    %2 = vector.load %arg2[%c0_2, %c0_3] : memref<1144x128xf32, #tpu.memory_space<vmem>>, vector<8x128xf32>
    %3 = vector.extract_strided_slice %2 {offsets = [0, 0], sizes = [8, 32], strides = [1, 1]} : vector<8x128xf32> to vector<8x32xf32>
    %cst = arith.constant dense<0.000000e+00> : vector<64x32xf32>
    %4 = tpu.matmul %1, %3, %cst {dimension_numbers = #tpu.dot_dimension_numbers<[1], [0], [0], [1], [0, 0, 1, 1], [], []>} : vector<64x8xf32>, vector<8x32xf32>, vector<64x32xf32> -> vector<64x32xf32>
    %c8 = arith.constant 8 : index
    %c0_4 = arith.constant 0 : index
    %5 = vector.load %arg2[%c8, %c0_4] : memref<1144x128xf32, #tpu.memory_space<vmem>>, vector<1x128xf32>
    %6 = vector.extract_strided_slice %5 {offsets = [0, 0], sizes = [1, 32], strides = [1, 1]} : vector<1x128xf32> to vector<1x32xf32>
    %7 = vector.broadcast %6 : vector<1x32xf32> to vector<64x32xf32>
    %8 = arith.addf %4, %7 : vector<64x32xf32>
    %cst_5 = arith.constant 0.00999999977 : f32
    %9 = vector.broadcast %cst_5 : f32 to vector<64x32xf32>
    %10 = arith.mulf %9, %8 : vector<64x32xf32>
    %11 = arith.maximumf %8, %10 : vector<64x32xf32>
    %c16 = arith.constant 16 : index
    %c0_6 = arith.constant 0 : index
    %12 = vector.load %arg2[%c16, %c0_6] : memref<1144x128xf32, #tpu.memory_space<vmem>>, vector<32x128xf32>
    %13 = vector.extract_strided_slice %12 {offsets = [0, 0], sizes = [32, 32], strides = [1, 1]} : vector<32x128xf32> to vector<32x32xf32>
    %cst_7 = arith.constant dense<0.000000e+00> : vector<64x32xf32>
    %14 = tpu.matmul %11, %13, %cst_7 {dimension_numbers = #tpu.dot_dimension_numbers<[1], [0], [0], [1], [0, 0, 1, 1], [], []>} : vector<64x32xf32>, vector<32x32xf32>, vector<64x32xf32> -> vector<64x32xf32>
    %c48 = arith.constant 48 : index
    %c0_8 = arith.constant 0 : index
    %15 = vector.load %arg2[%c48, %c0_8] : memref<1144x128xf32, #tpu.memory_space<vmem>>, vector<1x128xf32>
    %16 = vector.extract_strided_slice %15 {offsets = [0, 0], sizes = [1, 32], strides = [1, 1]} : vector<1x128xf32> to vector<1x32xf32>
    %17 = vector.broadcast %16 : vector<1x32xf32> to vector<64x32xf32>
    %18 = arith.addf %14, %17 : vector<64x32xf32>
    %cst_9 = arith.constant 0.00999999977 : f32
    %19 = vector.broadcast %cst_9 : f32 to vector<64x32xf32>
    %20 = arith.mulf %19, %18 : vector<64x32xf32>
    %21 = arith.maximumf %18, %20 : vector<64x32xf32>
    %c56 = arith.constant 56 : index
    %c0_10 = arith.constant 0 : index
    %22 = vector.load %arg2[%c56, %c0_10] : memref<1144x128xf32, #tpu.memory_space<vmem>>, vector<32x128xf32>
    %23 = vector.extract_strided_slice %22 {offsets = [0, 0], sizes = [32, 32], strides = [1, 1]} : vector<32x128xf32> to vector<32x32xf32>
    %cst_11 = arith.constant dense<0.000000e+00> : vector<64x32xf32>
    %24 = tpu.matmul %21, %23, %cst_11 {dimension_numbers = #tpu.dot_dimension_numbers<[1], [0], [0], [1], [0, 0, 1, 1], [], []>} : vector<64x32xf32>, vector<32x32xf32>, vector<64x32xf32> -> vector<64x32xf32>
    %c88 = arith.constant 88 : index
    %c0_12 = arith.constant 0 : index
    %25 = vector.load %arg2[%c88, %c0_12] : memref<1144x128xf32, #tpu.memory_space<vmem>>, vector<1x128xf32>
    %26 = vector.extract_strided_slice %25 {offsets = [0, 0], sizes = [1, 32], strides = [1, 1]} : vector<1x128xf32> to vector<1x32xf32>
    %27 = vector.broadcast %26 : vector<1x32xf32> to vector<64x32xf32>
    %28 = arith.addf %24, %27 : vector<64x32xf32>
    %cst_13 = arith.constant 0.00999999977 : f32
    %29 = vector.broadcast %cst_13 : f32 to vector<64x32xf32>
    %30 = arith.mulf %29, %28 : vector<64x32xf32>
    %31 = arith.maximumf %28, %30 : vector<64x32xf32>
    %c96 = arith.constant 96 : index
    %c0_14 = arith.constant 0 : index
    %32 = vector.load %arg2[%c96, %c0_14] : memref<1144x128xf32, #tpu.memory_space<vmem>>, vector<32x128xf32>
    %33 = vector.extract_strided_slice %32 {offsets = [0, 0], sizes = [32, 32], strides = [1, 1]} : vector<32x128xf32> to vector<32x32xf32>
    %cst_15 = arith.constant dense<0.000000e+00> : vector<64x32xf32>
    %34 = tpu.matmul %31, %33, %cst_15 {dimension_numbers = #tpu.dot_dimension_numbers<[1], [0], [0], [1], [0, 0, 1, 1], [], []>} : vector<64x32xf32>, vector<32x32xf32>, vector<64x32xf32> -> vector<64x32xf32>
    %c128 = arith.constant 128 : index
    %c0_16 = arith.constant 0 : index
    %35 = vector.load %arg2[%c128, %c0_16] : memref<1144x128xf32, #tpu.memory_space<vmem>>, vector<1x128xf32>
    %36 = vector.extract_strided_slice %35 {offsets = [0, 0], sizes = [1, 32], strides = [1, 1]} : vector<1x128xf32> to vector<1x32xf32>
    %37 = vector.broadcast %36 : vector<1x32xf32> to vector<64x32xf32>
    %38 = arith.addf %34, %37 : vector<64x32xf32>
    %cst_17 = arith.constant 0.00999999977 : f32
    %39 = vector.broadcast %cst_17 : f32 to vector<64x32xf32>
    %40 = arith.mulf %39, %38 : vector<64x32xf32>
    %41 = arith.maximumf %38, %40 : vector<64x32xf32>
    %c136 = arith.constant 136 : index
    %c0_18 = arith.constant 0 : index
    %42 = vector.load %arg2[%c136, %c0_18] : memref<1144x128xf32, #tpu.memory_space<vmem>>, vector<32x128xf32>
    %43 = vector.extract_strided_slice %42 {offsets = [0, 0], sizes = [32, 2], strides = [1, 1]} : vector<32x128xf32> to vector<32x2xf32>
    %c168 = arith.constant 168 : index
    %c0_19 = arith.constant 0 : index
    %44 = vector.load %arg2[%c168, %c0_19] : memref<1144x128xf32, #tpu.memory_space<vmem>>, vector<1x128xf32>
    %45 = vector.extract_strided_slice %44 {offsets = [0, 0], sizes = [1, 2], strides = [1, 1]} : vector<1x128xf32> to vector<1x2xf32>
    %c176 = arith.constant 176 : index
    %c0_20 = arith.constant 0 : index
    %46 = vector.load %arg2[%c176, %c0_20] : memref<1144x128xf32, #tpu.memory_space<vmem>>, vector<32x128xf32>
    %47 = vector.extract_strided_slice %46 {offsets = [0, 0], sizes = [32, 32], strides = [1, 1]} : vector<32x128xf32> to vector<32x32xf32>
    %c208 = arith.constant 208 : index
    %c0_21 = arith.constant 0 : index
    %48 = vector.load %arg2[%c208, %c0_21] : memref<1144x128xf32, #tpu.memory_space<vmem>>, vector<1x128xf32>
    %49 = vector.extract_strided_slice %48 {offsets = [0, 0], sizes = [1, 32], strides = [1, 1]} : vector<1x128xf32> to vector<1x32xf32>
    %c216 = arith.constant 216 : index
    %c0_22 = arith.constant 0 : index
    %50 = vector.load %arg2[%c216, %c0_22] : memref<1144x128xf32, #tpu.memory_space<vmem>>, vector<96x128xf32>
    %51 = vector.extract_strided_slice %50 {offsets = [0, 0], sizes = [96, 32], strides = [1, 1]} : vector<96x128xf32> to vector<96x32xf32>
    %c312 = arith.constant 312 : index
    %c0_23 = arith.constant 0 : index
    %52 = vector.load %arg2[%c312, %c0_23] : memref<1144x128xf32, #tpu.memory_space<vmem>>, vector<1x128xf32>
    %53 = vector.extract_strided_slice %52 {offsets = [0, 0], sizes = [1, 32], strides = [1, 1]} : vector<1x128xf32> to vector<1x32xf32>
    %cst_24 = arith.constant dense<0.000000e+00> : vector<64x2xf32>
    %54 = tpu.matmul %41, %43, %cst_24 {dimension_numbers = #tpu.dot_dimension_numbers<[1], [0], [0], [1], [0, 0, 1, 1], [], []>} : vector<64x32xf32>, vector<32x2xf32>, vector<64x2xf32> -> vector<64x2xf32>
    %55 = vector.broadcast %45 : vector<1x2xf32> to vector<64x2xf32>
    %56 = arith.addf %54, %55 : vector<64x2xf32>
    %cst_25 = arith.constant dense<0.000000e+00> : vector<64x32xf32>
    %57 = tpu.matmul %41, %47, %cst_25 {dimension_numbers = #tpu.dot_dimension_numbers<[1], [0], [0], [1], [0, 0, 1, 1], [], []>} : vector<64x32xf32>, vector<32x32xf32>, vector<64x32xf32> -> vector<64x32xf32>
    %58 = vector.broadcast %49 : vector<1x32xf32> to vector<64x32xf32>
    %59 = arith.addf %57, %58 : vector<64x32xf32>
    %60 = arith.mulf %56, %56 : vector<64x2xf32>
    %cst_26 = arith.constant dense<0.000000e+00> : vector<64xf32>
    %61 = vector.multi_reduction <add>, %60, %cst_26 [1] : vector<64x2xf32> to vector<64xf32>
    %62 = vector.shape_cast %61 : vector<64xf32> to vector<64x1xf32>
    %cst_27 = arith.constant dense<0.000000e+00> : vector<64x64xf32>
    %63 = tpu.matmul %56, %56, %cst_27 {dimension_numbers = #tpu.dot_dimension_numbers<[1], [1], [0], [0], [0, 0, 1, 0], [], []>} : vector<64x2xf32>, vector<64x2xf32>, vector<64x64xf32> -> vector<64x64xf32>
    %64 = tpu.transpose %62, [1, 0] : vector<64x1xf32> -> vector<1x64xf32>
    %65 = vector.broadcast %62 : vector<64x1xf32> to vector<64x64xf32>
    %66 = vector.broadcast %64 : vector<1x64xf32> to vector<64x64xf32>
    %67 = arith.addf %65, %66 : vector<64x64xf32>
    %cst_28 = arith.constant 2.000000e+00 : f32
    %68 = vector.broadcast %cst_28 : f32 to vector<64x64xf32>
    %69 = arith.mulf %68, %63 : vector<64x64xf32>
    %70 = arith.subf %67, %69 : vector<64x64xf32>
    %cst_29 = arith.constant 0.000000e+00 : f32
    %71 = vector.broadcast %cst_29 : f32 to vector<64x64xf32>
    %72 = arith.maximumf %70, %71 : vector<64x64xf32>
    %73 = tpu.iota {dimensions = array<i32: 1>} : vector<64x64xi32>
    %cst_30 = arith.constant 0.000000e+00 : f32
    %74 = vector.broadcast %cst_30 : f32 to vector<64x32xf32>
    %cst_31 = arith.constant 0xFF800000 : f32
    %75 = vector.broadcast %cst_31 : f32 to vector<64x32xf32>
    %cst_32 = arith.constant dense<0x7F800000> : vector<64xf32>
    %76 = vector.multi_reduction <minimumf>, %72, %cst_32 [1] : vector<64x64xf32> to vector<64xf32>
    %77 = vector.shape_cast %76 : vector<64xf32> to vector<64x1xf32>
    %78 = vector.broadcast %77 : vector<64x1xf32> to vector<64x64xf32>
    %79 = arith.cmpf oeq, %72, %78 : vector<64x64xf32>
    %c64_i32 = arith.constant 64 : i32
    %80 = vector.broadcast %c64_i32 : i32 to vector<64x64xi32>
    %81 = arith.select %79, %73, %80 : vector<64x64xi1>, vector<64x64xi32>
    %cst_33 = arith.constant dense<2147483647> : vector<64xi32>
    %82 = vector.multi_reduction <minsi>, %81, %cst_33 [1] : vector<64x64xi32> to vector<64xi32>
    %83 = vector.shape_cast %82 : vector<64xi32> to vector<64x1xi32>
    %84 = vector.broadcast %83 : vector<64x1xi32> to vector<64x64xi32>
    %85 = arith.cmpi eq, %73, %84 : vector<64x64xi32>
    %86 = arith.andi %79, %85 : vector<64x64xi1>
    %87 = arith.extui %86 : vector<64x64xi1> to vector<64x64xi32>
    %88 = arith.sitofp %87 : vector<64x64xi32> to vector<64x64xf32>
    %cst_34 = arith.constant dense<0.000000e+00> : vector<64x32xf32>
    %89 = tpu.matmul %88, %59, %cst_34 {dimension_numbers = #tpu.dot_dimension_numbers<[1], [0], [0], [1], [0, 0, 1, 1], [], []>} : vector<64x64xf32>, vector<64x32xf32>, vector<64x32xf32> -> vector<64x32xf32>
    %cst_35 = arith.constant -1.000000e+01 : f32
    %90 = vector.broadcast %cst_35 : f32 to vector<64x1xf32>
    %91 = arith.mulf %90, %77 : vector<64x1xf32>
    %92 = math.exp %91 : vector<64x1xf32>
    %93 = vector.broadcast %92 : vector<64x1xf32> to vector<64x32xf32>
    %94 = arith.mulf %93, %89 : vector<64x32xf32>
    %95 = arith.addf %74, %94 : vector<64x32xf32>
    %96 = arith.maximumf %75, %94 : vector<64x32xf32>
    %cst_36 = arith.constant 0x7F800000 : f32
    %97 = vector.broadcast %cst_36 : f32 to vector<64x64xf32>
    %98 = arith.select %86, %97, %72 : vector<64x64xi1>, vector<64x64xf32>
    %cst_37 = arith.constant dense<0x7F800000> : vector<64xf32>
    %99 = vector.multi_reduction <minimumf>, %98, %cst_37 [1] : vector<64x64xf32> to vector<64xf32>
    %100 = vector.shape_cast %99 : vector<64xf32> to vector<64x1xf32>
    %101 = vector.broadcast %100 : vector<64x1xf32> to vector<64x64xf32>
    %102 = arith.cmpf oeq, %98, %101 : vector<64x64xf32>
    %c64_i32_38 = arith.constant 64 : i32
    %103 = vector.broadcast %c64_i32_38 : i32 to vector<64x64xi32>
    %104 = arith.select %102, %73, %103 : vector<64x64xi1>, vector<64x64xi32>
    %cst_39 = arith.constant dense<2147483647> : vector<64xi32>
    %105 = vector.multi_reduction <minsi>, %104, %cst_39 [1] : vector<64x64xi32> to vector<64xi32>
    %106 = vector.shape_cast %105 : vector<64xi32> to vector<64x1xi32>
    %107 = vector.broadcast %106 : vector<64x1xi32> to vector<64x64xi32>
    %108 = arith.cmpi eq, %73, %107 : vector<64x64xi32>
    %109 = arith.andi %102, %108 : vector<64x64xi1>
    %110 = arith.extui %109 : vector<64x64xi1> to vector<64x64xi32>
    %111 = arith.sitofp %110 : vector<64x64xi32> to vector<64x64xf32>
    %cst_40 = arith.constant dense<0.000000e+00> : vector<64x32xf32>
    %112 = tpu.matmul %111, %59, %cst_40 {dimension_numbers = #tpu.dot_dimension_numbers<[1], [0], [0], [1], [0, 0, 1, 1], [], []>} : vector<64x64xf32>, vector<64x32xf32>, vector<64x32xf32> -> vector<64x32xf32>
    %cst_41 = arith.constant -1.000000e+01 : f32
    %113 = vector.broadcast %cst_41 : f32 to vector<64x1xf32>
    %114 = arith.mulf %113, %100 : vector<64x1xf32>
    %115 = math.exp %114 : vector<64x1xf32>
    %116 = vector.broadcast %115 : vector<64x1xf32> to vector<64x32xf32>
    %117 = arith.mulf %116, %112 : vector<64x32xf32>
    %118 = arith.addf %95, %117 : vector<64x32xf32>
    %119 = arith.maximumf %96, %117 : vector<64x32xf32>
    %cst_42 = arith.constant 0x7F800000 : f32
    %120 = vector.broadcast %cst_42 : f32 to vector<64x64xf32>
    %121 = arith.select %109, %120, %98 : vector<64x64xi1>, vector<64x64xf32>
    %cst_43 = arith.constant dense<0x7F800000> : vector<64xf32>
    %122 = vector.multi_reduction <minimumf>, %121, %cst_43 [1] : vector<64x64xf32> to vector<64xf32>
    %123 = vector.shape_cast %122 : vector<64xf32> to vector<64x1xf32>
    %124 = vector.broadcast %123 : vector<64x1xf32> to vector<64x64xf32>
    %125 = arith.cmpf oeq, %121, %124 : vector<64x64xf32>
    %c64_i32_44 = arith.constant 64 : i32
    %126 = vector.broadcast %c64_i32_44 : i32 to vector<64x64xi32>
    %127 = arith.select %125, %73, %126 : vector<64x64xi1>, vector<64x64xi32>
    %cst_45 = arith.constant dense<2147483647> : vector<64xi32>
    %128 = vector.multi_reduction <minsi>, %127, %cst_45 [1] : vector<64x64xi32> to vector<64xi32>
    %129 = vector.shape_cast %128 : vector<64xi32> to vector<64x1xi32>
    %130 = vector.broadcast %129 : vector<64x1xi32> to vector<64x64xi32>
    %131 = arith.cmpi eq, %73, %130 : vector<64x64xi32>
    %132 = arith.andi %125, %131 : vector<64x64xi1>
    %133 = arith.extui %132 : vector<64x64xi1> to vector<64x64xi32>
    %134 = arith.sitofp %133 : vector<64x64xi32> to vector<64x64xf32>
    %cst_46 = arith.constant dense<0.000000e+00> : vector<64x32xf32>
    %135 = tpu.matmul %134, %59, %cst_46 {dimension_numbers = #tpu.dot_dimension_numbers<[1], [0], [0], [1], [0, 0, 1, 1], [], []>} : vector<64x64xf32>, vector<64x32xf32>, vector<64x32xf32> -> vector<64x32xf32>
    %cst_47 = arith.constant -1.000000e+01 : f32
    %136 = vector.broadcast %cst_47 : f32 to vector<64x1xf32>
    %137 = arith.mulf %136, %123 : vector<64x1xf32>
    %138 = math.exp %137 : vector<64x1xf32>
    %139 = vector.broadcast %138 : vector<64x1xf32> to vector<64x32xf32>
    %140 = arith.mulf %139, %135 : vector<64x32xf32>
    %141 = arith.addf %118, %140 : vector<64x32xf32>
    %142 = arith.maximumf %119, %140 : vector<64x32xf32>
    %cst_48 = arith.constant 0.333333343 : f32
    %143 = vector.broadcast %cst_48 : f32 to vector<64x32xf32>
    %144 = arith.mulf %141, %143 : vector<64x32xf32>
    %145 = vector.extract_strided_slice %51 {offsets = [0, 0], sizes = [32, 32], strides = [1, 1]} : vector<96x32xf32> to vector<32x32xf32>
    %cst_49 = arith.constant dense<0.000000e+00> : vector<64x32xf32>
    %146 = tpu.matmul %41, %145, %cst_49 {dimension_numbers = #tpu.dot_dimension_numbers<[1], [0], [0], [1], [0, 0, 1, 1], [], []>} : vector<64x32xf32>, vector<32x32xf32>, vector<64x32xf32> -> vector<64x32xf32>
    %147 = vector.extract_strided_slice %51 {offsets = [32, 0], sizes = [32, 32], strides = [1, 1]} : vector<96x32xf32> to vector<32x32xf32>
    %cst_50 = arith.constant dense<0.000000e+00> : vector<64x32xf32>
    %148 = tpu.matmul %144, %147, %cst_50 {dimension_numbers = #tpu.dot_dimension_numbers<[1], [0], [0], [1], [0, 0, 1, 1], [], []>} : vector<64x32xf32>, vector<32x32xf32>, vector<64x32xf32> -> vector<64x32xf32>
    %149 = arith.addf %146, %148 : vector<64x32xf32>
    %150 = vector.extract_strided_slice %51 {offsets = [64, 0], sizes = [32, 32], strides = [1, 1]} : vector<96x32xf32> to vector<32x32xf32>
    %cst_51 = arith.constant dense<0.000000e+00> : vector<64x32xf32>
    %151 = tpu.matmul %142, %150, %cst_51 {dimension_numbers = #tpu.dot_dimension_numbers<[1], [0], [0], [1], [0, 0, 1, 1], [], []>} : vector<64x32xf32>, vector<32x32xf32>, vector<64x32xf32> -> vector<64x32xf32>
    %152 = arith.addf %149, %151 : vector<64x32xf32>
    %153 = vector.broadcast %53 : vector<1x32xf32> to vector<64x32xf32>
    %154 = arith.addf %152, %153 : vector<64x32xf32>
    %cst_52 = arith.constant 0.00999999977 : f32
    %155 = vector.broadcast %cst_52 : f32 to vector<64x32xf32>
    %156 = arith.mulf %155, %154 : vector<64x32xf32>
    %157 = arith.maximumf %154, %156 : vector<64x32xf32>
    %c320 = arith.constant 320 : index
    %c0_53 = arith.constant 0 : index
    %158 = vector.load %arg2[%c320, %c0_53] : memref<1144x128xf32, #tpu.memory_space<vmem>>, vector<32x128xf32>
    %159 = vector.extract_strided_slice %158 {offsets = [0, 0], sizes = [32, 2], strides = [1, 1]} : vector<32x128xf32> to vector<32x2xf32>
    %c352 = arith.constant 352 : index
    %c0_54 = arith.constant 0 : index
    %160 = vector.load %arg2[%c352, %c0_54] : memref<1144x128xf32, #tpu.memory_space<vmem>>, vector<1x128xf32>
    %161 = vector.extract_strided_slice %160 {offsets = [0, 0], sizes = [1, 2], strides = [1, 1]} : vector<1x128xf32> to vector<1x2xf32>
    %c360 = arith.constant 360 : index
    %c0_55 = arith.constant 0 : index
    %162 = vector.load %arg2[%c360, %c0_55] : memref<1144x128xf32, #tpu.memory_space<vmem>>, vector<32x128xf32>
    %163 = vector.extract_strided_slice %162 {offsets = [0, 0], sizes = [32, 32], strides = [1, 1]} : vector<32x128xf32> to vector<32x32xf32>
    %c392 = arith.constant 392 : index
    %c0_56 = arith.constant 0 : index
    %164 = vector.load %arg2[%c392, %c0_56] : memref<1144x128xf32, #tpu.memory_space<vmem>>, vector<1x128xf32>
    %165 = vector.extract_strided_slice %164 {offsets = [0, 0], sizes = [1, 32], strides = [1, 1]} : vector<1x128xf32> to vector<1x32xf32>
    %c400 = arith.constant 400 : index
    %c0_57 = arith.constant 0 : index
    %166 = vector.load %arg2[%c400, %c0_57] : memref<1144x128xf32, #tpu.memory_space<vmem>>, vector<96x128xf32>
    %167 = vector.extract_strided_slice %166 {offsets = [0, 0], sizes = [96, 32], strides = [1, 1]} : vector<96x128xf32> to vector<96x32xf32>
    %c496 = arith.constant 496 : index
    %c0_58 = arith.constant 0 : index
    %168 = vector.load %arg2[%c496, %c0_58] : memref<1144x128xf32, #tpu.memory_space<vmem>>, vector<1x128xf32>
    %169 = vector.extract_strided_slice %168 {offsets = [0, 0], sizes = [1, 32], strides = [1, 1]} : vector<1x128xf32> to vector<1x32xf32>
    %cst_59 = arith.constant dense<0.000000e+00> : vector<64x2xf32>
    %170 = tpu.matmul %157, %159, %cst_59 {dimension_numbers = #tpu.dot_dimension_numbers<[1], [0], [0], [1], [0, 0, 1, 1], [], []>} : vector<64x32xf32>, vector<32x2xf32>, vector<64x2xf32> -> vector<64x2xf32>
    %171 = vector.broadcast %161 : vector<1x2xf32> to vector<64x2xf32>
    %172 = arith.addf %170, %171 : vector<64x2xf32>
    %cst_60 = arith.constant dense<0.000000e+00> : vector<64x32xf32>
    %173 = tpu.matmul %157, %163, %cst_60 {dimension_numbers = #tpu.dot_dimension_numbers<[1], [0], [0], [1], [0, 0, 1, 1], [], []>} : vector<64x32xf32>, vector<32x32xf32>, vector<64x32xf32> -> vector<64x32xf32>
    %174 = vector.broadcast %165 : vector<1x32xf32> to vector<64x32xf32>
    %175 = arith.addf %173, %174 : vector<64x32xf32>
    %176 = arith.mulf %172, %172 : vector<64x2xf32>
    %cst_61 = arith.constant dense<0.000000e+00> : vector<64xf32>
    %177 = vector.multi_reduction <add>, %176, %cst_61 [1] : vector<64x2xf32> to vector<64xf32>
    %178 = vector.shape_cast %177 : vector<64xf32> to vector<64x1xf32>
    %cst_62 = arith.constant dense<0.000000e+00> : vector<64x64xf32>
    %179 = tpu.matmul %172, %172, %cst_62 {dimension_numbers = #tpu.dot_dimension_numbers<[1], [1], [0], [0], [0, 0, 1, 0], [], []>} : vector<64x2xf32>, vector<64x2xf32>, vector<64x64xf32> -> vector<64x64xf32>
    %180 = tpu.transpose %178, [1, 0] : vector<64x1xf32> -> vector<1x64xf32>
    %181 = vector.broadcast %178 : vector<64x1xf32> to vector<64x64xf32>
    %182 = vector.broadcast %180 : vector<1x64xf32> to vector<64x64xf32>
    %183 = arith.addf %181, %182 : vector<64x64xf32>
    %cst_63 = arith.constant 2.000000e+00 : f32
    %184 = vector.broadcast %cst_63 : f32 to vector<64x64xf32>
    %185 = arith.mulf %184, %179 : vector<64x64xf32>
    %186 = arith.subf %183, %185 : vector<64x64xf32>
    %cst_64 = arith.constant 0.000000e+00 : f32
    %187 = vector.broadcast %cst_64 : f32 to vector<64x64xf32>
    %188 = arith.maximumf %186, %187 : vector<64x64xf32>
    %189 = tpu.iota {dimensions = array<i32: 1>} : vector<64x64xi32>
    %cst_65 = arith.constant 0.000000e+00 : f32
    %190 = vector.broadcast %cst_65 : f32 to vector<64x32xf32>
    %cst_66 = arith.constant 0xFF800000 : f32
    %191 = vector.broadcast %cst_66 : f32 to vector<64x32xf32>
    %cst_67 = arith.constant dense<0x7F800000> : vector<64xf32>
    %192 = vector.multi_reduction <minimumf>, %188, %cst_67 [1] : vector<64x64xf32> to vector<64xf32>
    %193 = vector.shape_cast %192 : vector<64xf32> to vector<64x1xf32>
    %194 = vector.broadcast %193 : vector<64x1xf32> to vector<64x64xf32>
    %195 = arith.cmpf oeq, %188, %194 : vector<64x64xf32>
    %c64_i32_68 = arith.constant 64 : i32
    %196 = vector.broadcast %c64_i32_68 : i32 to vector<64x64xi32>
    %197 = arith.select %195, %189, %196 : vector<64x64xi1>, vector<64x64xi32>
    %cst_69 = arith.constant dense<2147483647> : vector<64xi32>
    %198 = vector.multi_reduction <minsi>, %197, %cst_69 [1] : vector<64x64xi32> to vector<64xi32>
    %199 = vector.shape_cast %198 : vector<64xi32> to vector<64x1xi32>
    %200 = vector.broadcast %199 : vector<64x1xi32> to vector<64x64xi32>
    %201 = arith.cmpi eq, %189, %200 : vector<64x64xi32>
    %202 = arith.andi %195, %201 : vector<64x64xi1>
    %203 = arith.extui %202 : vector<64x64xi1> to vector<64x64xi32>
    %204 = arith.sitofp %203 : vector<64x64xi32> to vector<64x64xf32>
    %cst_70 = arith.constant dense<0.000000e+00> : vector<64x32xf32>
    %205 = tpu.matmul %204, %175, %cst_70 {dimension_numbers = #tpu.dot_dimension_numbers<[1], [0], [0], [1], [0, 0, 1, 1], [], []>} : vector<64x64xf32>, vector<64x32xf32>, vector<64x32xf32> -> vector<64x32xf32>
    %cst_71 = arith.constant -1.000000e+01 : f32
    %206 = vector.broadcast %cst_71 : f32 to vector<64x1xf32>
    %207 = arith.mulf %206, %193 : vector<64x1xf32>
    %208 = math.exp %207 : vector<64x1xf32>
    %209 = vector.broadcast %208 : vector<64x1xf32> to vector<64x32xf32>
    %210 = arith.mulf %209, %205 : vector<64x32xf32>
    %211 = arith.addf %190, %210 : vector<64x32xf32>
    %212 = arith.maximumf %191, %210 : vector<64x32xf32>
    %cst_72 = arith.constant 0x7F800000 : f32
    %213 = vector.broadcast %cst_72 : f32 to vector<64x64xf32>
    %214 = arith.select %202, %213, %188 : vector<64x64xi1>, vector<64x64xf32>
    %cst_73 = arith.constant dense<0x7F800000> : vector<64xf32>
    %215 = vector.multi_reduction <minimumf>, %214, %cst_73 [1] : vector<64x64xf32> to vector<64xf32>
    %216 = vector.shape_cast %215 : vector<64xf32> to vector<64x1xf32>
    %217 = vector.broadcast %216 : vector<64x1xf32> to vector<64x64xf32>
    %218 = arith.cmpf oeq, %214, %217 : vector<64x64xf32>
    %c64_i32_74 = arith.constant 64 : i32
    %219 = vector.broadcast %c64_i32_74 : i32 to vector<64x64xi32>
    %220 = arith.select %218, %189, %219 : vector<64x64xi1>, vector<64x64xi32>
    %cst_75 = arith.constant dense<2147483647> : vector<64xi32>
    %221 = vector.multi_reduction <minsi>, %220, %cst_75 [1] : vector<64x64xi32> to vector<64xi32>
    %222 = vector.shape_cast %221 : vector<64xi32> to vector<64x1xi32>
    %223 = vector.broadcast %222 : vector<64x1xi32> to vector<64x64xi32>
    %224 = arith.cmpi eq, %189, %223 : vector<64x64xi32>
    %225 = arith.andi %218, %224 : vector<64x64xi1>
    %226 = arith.extui %225 : vector<64x64xi1> to vector<64x64xi32>
    %227 = arith.sitofp %226 : vector<64x64xi32> to vector<64x64xf32>
    %cst_76 = arith.constant dense<0.000000e+00> : vector<64x32xf32>
    %228 = tpu.matmul %227, %175, %cst_76 {dimension_numbers = #tpu.dot_dimension_numbers<[1], [0], [0], [1], [0, 0, 1, 1], [], []>} : vector<64x64xf32>, vector<64x32xf32>, vector<64x32xf32> -> vector<64x32xf32>
    %cst_77 = arith.constant -1.000000e+01 : f32
    %229 = vector.broadcast %cst_77 : f32 to vector<64x1xf32>
    %230 = arith.mulf %229, %216 : vector<64x1xf32>
    %231 = math.exp %230 : vector<64x1xf32>
    %232 = vector.broadcast %231 : vector<64x1xf32> to vector<64x32xf32>
    %233 = arith.mulf %232, %228 : vector<64x32xf32>
    %234 = arith.addf %211, %233 : vector<64x32xf32>
    %235 = arith.maximumf %212, %233 : vector<64x32xf32>
    %cst_78 = arith.constant 0x7F800000 : f32
    %236 = vector.broadcast %cst_78 : f32 to vector<64x64xf32>
    %237 = arith.select %225, %236, %214 : vector<64x64xi1>, vector<64x64xf32>
    %cst_79 = arith.constant dense<0x7F800000> : vector<64xf32>
    %238 = vector.multi_reduction <minimumf>, %237, %cst_79 [1] : vector<64x64xf32> to vector<64xf32>
    %239 = vector.shape_cast %238 : vector<64xf32> to vector<64x1xf32>
    %240 = vector.broadcast %239 : vector<64x1xf32> to vector<64x64xf32>
    %241 = arith.cmpf oeq, %237, %240 : vector<64x64xf32>
    %c64_i32_80 = arith.constant 64 : i32
    %242 = vector.broadcast %c64_i32_80 : i32 to vector<64x64xi32>
    %243 = arith.select %241, %189, %242 : vector<64x64xi1>, vector<64x64xi32>
    %cst_81 = arith.constant dense<2147483647> : vector<64xi32>
    %244 = vector.multi_reduction <minsi>, %243, %cst_81 [1] : vector<64x64xi32> to vector<64xi32>
    %245 = vector.shape_cast %244 : vector<64xi32> to vector<64x1xi32>
    %246 = vector.broadcast %245 : vector<64x1xi32> to vector<64x64xi32>
    %247 = arith.cmpi eq, %189, %246 : vector<64x64xi32>
    %248 = arith.andi %241, %247 : vector<64x64xi1>
    %249 = arith.extui %248 : vector<64x64xi1> to vector<64x64xi32>
    %250 = arith.sitofp %249 : vector<64x64xi32> to vector<64x64xf32>
    %cst_82 = arith.constant dense<0.000000e+00> : vector<64x32xf32>
    %251 = tpu.matmul %250, %175, %cst_82 {dimension_numbers = #tpu.dot_dimension_numbers<[1], [0], [0], [1], [0, 0, 1, 1], [], []>} : vector<64x64xf32>, vector<64x32xf32>, vector<64x32xf32> -> vector<64x32xf32>
    %cst_83 = arith.constant -1.000000e+01 : f32
    %252 = vector.broadcast %cst_83 : f32 to vector<64x1xf32>
    %253 = arith.mulf %252, %239 : vector<64x1xf32>
    %254 = math.exp %253 : vector<64x1xf32>
    %255 = vector.broadcast %254 : vector<64x1xf32> to vector<64x32xf32>
    %256 = arith.mulf %255, %251 : vector<64x32xf32>
    %257 = arith.addf %234, %256 : vector<64x32xf32>
    %258 = arith.maximumf %235, %256 : vector<64x32xf32>
    %cst_84 = arith.constant 0.333333343 : f32
    %259 = vector.broadcast %cst_84 : f32 to vector<64x32xf32>
    %260 = arith.mulf %257, %259 : vector<64x32xf32>
    %261 = vector.extract_strided_slice %167 {offsets = [0, 0], sizes = [32, 32], strides = [1, 1]} : vector<96x32xf32> to vector<32x32xf32>
    %cst_85 = arith.constant dense<0.000000e+00> : vector<64x32xf32>
    %262 = tpu.matmul %157, %261, %cst_85 {dimension_numbers = #tpu.dot_dimension_numbers<[1], [0], [0], [1], [0, 0, 1, 1], [], []>} : vector<64x32xf32>, vector<32x32xf32>, vector<64x32xf32> -> vector<64x32xf32>
    %263 = vector.extract_strided_slice %167 {offsets = [32, 0], sizes = [32, 32], strides = [1, 1]} : vector<96x32xf32> to vector<32x32xf32>
    %cst_86 = arith.constant dense<0.000000e+00> : vector<64x32xf32>
    %264 = tpu.matmul %260, %263, %cst_86 {dimension_numbers = #tpu.dot_dimension_numbers<[1], [0], [0], [1], [0, 0, 1, 1], [], []>} : vector<64x32xf32>, vector<32x32xf32>, vector<64x32xf32> -> vector<64x32xf32>
    %265 = arith.addf %262, %264 : vector<64x32xf32>
    %266 = vector.extract_strided_slice %167 {offsets = [64, 0], sizes = [32, 32], strides = [1, 1]} : vector<96x32xf32> to vector<32x32xf32>
    %cst_87 = arith.constant dense<0.000000e+00> : vector<64x32xf32>
    %267 = tpu.matmul %258, %266, %cst_87 {dimension_numbers = #tpu.dot_dimension_numbers<[1], [0], [0], [1], [0, 0, 1, 1], [], []>} : vector<64x32xf32>, vector<32x32xf32>, vector<64x32xf32> -> vector<64x32xf32>
    %268 = arith.addf %265, %267 : vector<64x32xf32>
    %269 = vector.broadcast %169 : vector<1x32xf32> to vector<64x32xf32>
    %270 = arith.addf %268, %269 : vector<64x32xf32>
    %cst_88 = arith.constant 0.00999999977 : f32
    %271 = vector.broadcast %cst_88 : f32 to vector<64x32xf32>
    %272 = arith.mulf %271, %270 : vector<64x32xf32>
    %273 = arith.maximumf %270, %272 : vector<64x32xf32>
    %c504 = arith.constant 504 : index
    %c0_89 = arith.constant 0 : index
    %274 = vector.load %arg2[%c504, %c0_89] : memref<1144x128xf32, #tpu.memory_space<vmem>>, vector<32x128xf32>
    %275 = vector.extract_strided_slice %274 {offsets = [0, 0], sizes = [32, 2], strides = [1, 1]} : vector<32x128xf32> to vector<32x2xf32>
    %c536 = arith.constant 536 : index
    %c0_90 = arith.constant 0 : index
    %276 = vector.load %arg2[%c536, %c0_90] : memref<1144x128xf32, #tpu.memory_space<vmem>>, vector<1x128xf32>
    %277 = vector.extract_strided_slice %276 {offsets = [0, 0], sizes = [1, 2], strides = [1, 1]} : vector<1x128xf32> to vector<1x2xf32>
    %c544 = arith.constant 544 : index
    %c0_91 = arith.constant 0 : index
    %278 = vector.load %arg2[%c544, %c0_91] : memref<1144x128xf32, #tpu.memory_space<vmem>>, vector<32x128xf32>
    %279 = vector.extract_strided_slice %278 {offsets = [0, 0], sizes = [32, 32], strides = [1, 1]} : vector<32x128xf32> to vector<32x32xf32>
    %c576 = arith.constant 576 : index
    %c0_92 = arith.constant 0 : index
    %280 = vector.load %arg2[%c576, %c0_92] : memref<1144x128xf32, #tpu.memory_space<vmem>>, vector<1x128xf32>
    %281 = vector.extract_strided_slice %280 {offsets = [0, 0], sizes = [1, 32], strides = [1, 1]} : vector<1x128xf32> to vector<1x32xf32>
    %c584 = arith.constant 584 : index
    %c0_93 = arith.constant 0 : index
    %282 = vector.load %arg2[%c584, %c0_93] : memref<1144x128xf32, #tpu.memory_space<vmem>>, vector<96x128xf32>
    %283 = vector.extract_strided_slice %282 {offsets = [0, 0], sizes = [96, 32], strides = [1, 1]} : vector<96x128xf32> to vector<96x32xf32>
    %c680 = arith.constant 680 : index
    %c0_94 = arith.constant 0 : index
    %284 = vector.load %arg2[%c680, %c0_94] : memref<1144x128xf32, #tpu.memory_space<vmem>>, vector<1x128xf32>
    %285 = vector.extract_strided_slice %284 {offsets = [0, 0], sizes = [1, 32], strides = [1, 1]} : vector<1x128xf32> to vector<1x32xf32>
    %cst_95 = arith.constant dense<0.000000e+00> : vector<64x2xf32>
    %286 = tpu.matmul %273, %275, %cst_95 {dimension_numbers = #tpu.dot_dimension_numbers<[1], [0], [0], [1], [0, 0, 1, 1], [], []>} : vector<64x32xf32>, vector<32x2xf32>, vector<64x2xf32> -> vector<64x2xf32>
    %287 = vector.broadcast %277 : vector<1x2xf32> to vector<64x2xf32>
    %288 = arith.addf %286, %287 : vector<64x2xf32>
    %cst_96 = arith.constant dense<0.000000e+00> : vector<64x32xf32>
    %289 = tpu.matmul %273, %279, %cst_96 {dimension_numbers = #tpu.dot_dimension_numbers<[1], [0], [0], [1], [0, 0, 1, 1], [], []>} : vector<64x32xf32>, vector<32x32xf32>, vector<64x32xf32> -> vector<64x32xf32>
    %290 = vector.broadcast %281 : vector<1x32xf32> to vector<64x32xf32>
    %291 = arith.addf %289, %290 : vector<64x32xf32>
    %292 = arith.mulf %288, %288 : vector<64x2xf32>
    %cst_97 = arith.constant dense<0.000000e+00> : vector<64xf32>
    %293 = vector.multi_reduction <add>, %292, %cst_97 [1] : vector<64x2xf32> to vector<64xf32>
    %294 = vector.shape_cast %293 : vector<64xf32> to vector<64x1xf32>
    %cst_98 = arith.constant dense<0.000000e+00> : vector<64x64xf32>
    %295 = tpu.matmul %288, %288, %cst_98 {dimension_numbers = #tpu.dot_dimension_numbers<[1], [1], [0], [0], [0, 0, 1, 0], [], []>} : vector<64x2xf32>, vector<64x2xf32>, vector<64x64xf32> -> vector<64x64xf32>
    %296 = tpu.transpose %294, [1, 0] : vector<64x1xf32> -> vector<1x64xf32>
    %297 = vector.broadcast %294 : vector<64x1xf32> to vector<64x64xf32>
    %298 = vector.broadcast %296 : vector<1x64xf32> to vector<64x64xf32>
    %299 = arith.addf %297, %298 : vector<64x64xf32>
    %cst_99 = arith.constant 2.000000e+00 : f32
    %300 = vector.broadcast %cst_99 : f32 to vector<64x64xf32>
    %301 = arith.mulf %300, %295 : vector<64x64xf32>
    %302 = arith.subf %299, %301 : vector<64x64xf32>
    %cst_100 = arith.constant 0.000000e+00 : f32
    %303 = vector.broadcast %cst_100 : f32 to vector<64x64xf32>
    %304 = arith.maximumf %302, %303 : vector<64x64xf32>
    %305 = tpu.iota {dimensions = array<i32: 1>} : vector<64x64xi32>
    %cst_101 = arith.constant 0.000000e+00 : f32
    %306 = vector.broadcast %cst_101 : f32 to vector<64x32xf32>
    %cst_102 = arith.constant 0xFF800000 : f32
    %307 = vector.broadcast %cst_102 : f32 to vector<64x32xf32>
    %cst_103 = arith.constant dense<0x7F800000> : vector<64xf32>
    %308 = vector.multi_reduction <minimumf>, %304, %cst_103 [1] : vector<64x64xf32> to vector<64xf32>
    %309 = vector.shape_cast %308 : vector<64xf32> to vector<64x1xf32>
    %310 = vector.broadcast %309 : vector<64x1xf32> to vector<64x64xf32>
    %311 = arith.cmpf oeq, %304, %310 : vector<64x64xf32>
    %c64_i32_104 = arith.constant 64 : i32
    %312 = vector.broadcast %c64_i32_104 : i32 to vector<64x64xi32>
    %313 = arith.select %311, %305, %312 : vector<64x64xi1>, vector<64x64xi32>
    %cst_105 = arith.constant dense<2147483647> : vector<64xi32>
    %314 = vector.multi_reduction <minsi>, %313, %cst_105 [1] : vector<64x64xi32> to vector<64xi32>
    %315 = vector.shape_cast %314 : vector<64xi32> to vector<64x1xi32>
    %316 = vector.broadcast %315 : vector<64x1xi32> to vector<64x64xi32>
    %317 = arith.cmpi eq, %305, %316 : vector<64x64xi32>
    %318 = arith.andi %311, %317 : vector<64x64xi1>
    %319 = arith.extui %318 : vector<64x64xi1> to vector<64x64xi32>
    %320 = arith.sitofp %319 : vector<64x64xi32> to vector<64x64xf32>
    %cst_106 = arith.constant dense<0.000000e+00> : vector<64x32xf32>
    %321 = tpu.matmul %320, %291, %cst_106 {dimension_numbers = #tpu.dot_dimension_numbers<[1], [0], [0], [1], [0, 0, 1, 1], [], []>} : vector<64x64xf32>, vector<64x32xf32>, vector<64x32xf32> -> vector<64x32xf32>
    %cst_107 = arith.constant -1.000000e+01 : f32
    %322 = vector.broadcast %cst_107 : f32 to vector<64x1xf32>
    %323 = arith.mulf %322, %309 : vector<64x1xf32>
    %324 = math.exp %323 : vector<64x1xf32>
    %325 = vector.broadcast %324 : vector<64x1xf32> to vector<64x32xf32>
    %326 = arith.mulf %325, %321 : vector<64x32xf32>
    %327 = arith.addf %306, %326 : vector<64x32xf32>
    %328 = arith.maximumf %307, %326 : vector<64x32xf32>
    %cst_108 = arith.constant 0x7F800000 : f32
    %329 = vector.broadcast %cst_108 : f32 to vector<64x64xf32>
    %330 = arith.select %318, %329, %304 : vector<64x64xi1>, vector<64x64xf32>
    %cst_109 = arith.constant dense<0x7F800000> : vector<64xf32>
    %331 = vector.multi_reduction <minimumf>, %330, %cst_109 [1] : vector<64x64xf32> to vector<64xf32>
    %332 = vector.shape_cast %331 : vector<64xf32> to vector<64x1xf32>
    %333 = vector.broadcast %332 : vector<64x1xf32> to vector<64x64xf32>
    %334 = arith.cmpf oeq, %330, %333 : vector<64x64xf32>
    %c64_i32_110 = arith.constant 64 : i32
    %335 = vector.broadcast %c64_i32_110 : i32 to vector<64x64xi32>
    %336 = arith.select %334, %305, %335 : vector<64x64xi1>, vector<64x64xi32>
    %cst_111 = arith.constant dense<2147483647> : vector<64xi32>
    %337 = vector.multi_reduction <minsi>, %336, %cst_111 [1] : vector<64x64xi32> to vector<64xi32>
    %338 = vector.shape_cast %337 : vector<64xi32> to vector<64x1xi32>
    %339 = vector.broadcast %338 : vector<64x1xi32> to vector<64x64xi32>
    %340 = arith.cmpi eq, %305, %339 : vector<64x64xi32>
    %341 = arith.andi %334, %340 : vector<64x64xi1>
    %342 = arith.extui %341 : vector<64x64xi1> to vector<64x64xi32>
    %343 = arith.sitofp %342 : vector<64x64xi32> to vector<64x64xf32>
    %cst_112 = arith.constant dense<0.000000e+00> : vector<64x32xf32>
    %344 = tpu.matmul %343, %291, %cst_112 {dimension_numbers = #tpu.dot_dimension_numbers<[1], [0], [0], [1], [0, 0, 1, 1], [], []>} : vector<64x64xf32>, vector<64x32xf32>, vector<64x32xf32> -> vector<64x32xf32>
    %cst_113 = arith.constant -1.000000e+01 : f32
    %345 = vector.broadcast %cst_113 : f32 to vector<64x1xf32>
    %346 = arith.mulf %345, %332 : vector<64x1xf32>
    %347 = math.exp %346 : vector<64x1xf32>
    %348 = vector.broadcast %347 : vector<64x1xf32> to vector<64x32xf32>
    %349 = arith.mulf %348, %344 : vector<64x32xf32>
    %350 = arith.addf %327, %349 : vector<64x32xf32>
    %351 = arith.maximumf %328, %349 : vector<64x32xf32>
    %cst_114 = arith.constant 0x7F800000 : f32
    %352 = vector.broadcast %cst_114 : f32 to vector<64x64xf32>
    %353 = arith.select %341, %352, %330 : vector<64x64xi1>, vector<64x64xf32>
    %cst_115 = arith.constant dense<0x7F800000> : vector<64xf32>
    %354 = vector.multi_reduction <minimumf>, %353, %cst_115 [1] : vector<64x64xf32> to vector<64xf32>
    %355 = vector.shape_cast %354 : vector<64xf32> to vector<64x1xf32>
    %356 = vector.broadcast %355 : vector<64x1xf32> to vector<64x64xf32>
    %357 = arith.cmpf oeq, %353, %356 : vector<64x64xf32>
    %c64_i32_116 = arith.constant 64 : i32
    %358 = vector.broadcast %c64_i32_116 : i32 to vector<64x64xi32>
    %359 = arith.select %357, %305, %358 : vector<64x64xi1>, vector<64x64xi32>
    %cst_117 = arith.constant dense<2147483647> : vector<64xi32>
    %360 = vector.multi_reduction <minsi>, %359, %cst_117 [1] : vector<64x64xi32> to vector<64xi32>
    %361 = vector.shape_cast %360 : vector<64xi32> to vector<64x1xi32>
    %362 = vector.broadcast %361 : vector<64x1xi32> to vector<64x64xi32>
    %363 = arith.cmpi eq, %305, %362 : vector<64x64xi32>
    %364 = arith.andi %357, %363 : vector<64x64xi1>
    %365 = arith.extui %364 : vector<64x64xi1> to vector<64x64xi32>
    %366 = arith.sitofp %365 : vector<64x64xi32> to vector<64x64xf32>
    %cst_118 = arith.constant dense<0.000000e+00> : vector<64x32xf32>
    %367 = tpu.matmul %366, %291, %cst_118 {dimension_numbers = #tpu.dot_dimension_numbers<[1], [0], [0], [1], [0, 0, 1, 1], [], []>} : vector<64x64xf32>, vector<64x32xf32>, vector<64x32xf32> -> vector<64x32xf32>
    %cst_119 = arith.constant -1.000000e+01 : f32
    %368 = vector.broadcast %cst_119 : f32 to vector<64x1xf32>
    %369 = arith.mulf %368, %355 : vector<64x1xf32>
    %370 = math.exp %369 : vector<64x1xf32>
    %371 = vector.broadcast %370 : vector<64x1xf32> to vector<64x32xf32>
    %372 = arith.mulf %371, %367 : vector<64x32xf32>
    %373 = arith.addf %350, %372 : vector<64x32xf32>
    %374 = arith.maximumf %351, %372 : vector<64x32xf32>
    %cst_120 = arith.constant 0.333333343 : f32
    %375 = vector.broadcast %cst_120 : f32 to vector<64x32xf32>
    %376 = arith.mulf %373, %375 : vector<64x32xf32>
    %377 = vector.extract_strided_slice %283 {offsets = [0, 0], sizes = [32, 32], strides = [1, 1]} : vector<96x32xf32> to vector<32x32xf32>
    %cst_121 = arith.constant dense<0.000000e+00> : vector<64x32xf32>
    %378 = tpu.matmul %273, %377, %cst_121 {dimension_numbers = #tpu.dot_dimension_numbers<[1], [0], [0], [1], [0, 0, 1, 1], [], []>} : vector<64x32xf32>, vector<32x32xf32>, vector<64x32xf32> -> vector<64x32xf32>
    %379 = vector.extract_strided_slice %283 {offsets = [32, 0], sizes = [32, 32], strides = [1, 1]} : vector<96x32xf32> to vector<32x32xf32>
    %cst_122 = arith.constant dense<0.000000e+00> : vector<64x32xf32>
    %380 = tpu.matmul %376, %379, %cst_122 {dimension_numbers = #tpu.dot_dimension_numbers<[1], [0], [0], [1], [0, 0, 1, 1], [], []>} : vector<64x32xf32>, vector<32x32xf32>, vector<64x32xf32> -> vector<64x32xf32>
    %381 = arith.addf %378, %380 : vector<64x32xf32>
    %382 = vector.extract_strided_slice %283 {offsets = [64, 0], sizes = [32, 32], strides = [1, 1]} : vector<96x32xf32> to vector<32x32xf32>
    %cst_123 = arith.constant dense<0.000000e+00> : vector<64x32xf32>
    %383 = tpu.matmul %374, %382, %cst_123 {dimension_numbers = #tpu.dot_dimension_numbers<[1], [0], [0], [1], [0, 0, 1, 1], [], []>} : vector<64x32xf32>, vector<32x32xf32>, vector<64x32xf32> -> vector<64x32xf32>
    %384 = arith.addf %381, %383 : vector<64x32xf32>
    %385 = vector.broadcast %285 : vector<1x32xf32> to vector<64x32xf32>
    %386 = arith.addf %384, %385 : vector<64x32xf32>
    %cst_124 = arith.constant 0.00999999977 : f32
    %387 = vector.broadcast %cst_124 : f32 to vector<64x32xf32>
    %388 = arith.mulf %387, %386 : vector<64x32xf32>
    %389 = arith.maximumf %386, %388 : vector<64x32xf32>
    %c688 = arith.constant 688 : index
    %c0_125 = arith.constant 0 : index
    %390 = vector.load %arg2[%c688, %c0_125] : memref<1144x128xf32, #tpu.memory_space<vmem>>, vector<32x128xf32>
    %391 = vector.extract_strided_slice %390 {offsets = [0, 0], sizes = [32, 32], strides = [1, 1]} : vector<32x128xf32> to vector<32x32xf32>
    %cst_126 = arith.constant dense<0.000000e+00> : vector<64x32xf32>
    %392 = tpu.matmul %389, %391, %cst_126 {dimension_numbers = #tpu.dot_dimension_numbers<[1], [0], [0], [1], [0, 0, 1, 1], [], []>} : vector<64x32xf32>, vector<32x32xf32>, vector<64x32xf32> -> vector<64x32xf32>
    %c720 = arith.constant 720 : index
    %c0_127 = arith.constant 0 : index
    %393 = vector.load %arg2[%c720, %c0_127] : memref<1144x128xf32, #tpu.memory_space<vmem>>, vector<1x128xf32>
    %394 = vector.extract_strided_slice %393 {offsets = [0, 0], sizes = [1, 32], strides = [1, 1]} : vector<1x128xf32> to vector<1x32xf32>
    %395 = vector.broadcast %394 : vector<1x32xf32> to vector<64x32xf32>
    %396 = arith.addf %392, %395 : vector<64x32xf32>
    %cst_128 = arith.constant 0.00999999977 : f32
    %397 = vector.broadcast %cst_128 : f32 to vector<64x32xf32>
    %398 = arith.mulf %397, %396 : vector<64x32xf32>
    %399 = arith.maximumf %396, %398 : vector<64x32xf32>
    %c728 = arith.constant 728 : index
    %c0_129 = arith.constant 0 : index
    %400 = vector.load %arg2[%c728, %c0_129] : memref<1144x128xf32, #tpu.memory_space<vmem>>, vector<32x128xf32>
    %401 = vector.extract_strided_slice %400 {offsets = [0, 0], sizes = [32, 32], strides = [1, 1]} : vector<32x128xf32> to vector<32x32xf32>
    %cst_130 = arith.constant dense<0.000000e+00> : vector<64x32xf32>
    %402 = tpu.matmul %399, %401, %cst_130 {dimension_numbers = #tpu.dot_dimension_numbers<[1], [0], [0], [1], [0, 0, 1, 1], [], []>} : vector<64x32xf32>, vector<32x32xf32>, vector<64x32xf32> -> vector<64x32xf32>
    %c760 = arith.constant 760 : index
    %c0_131 = arith.constant 0 : index
    %403 = vector.load %arg2[%c760, %c0_131] : memref<1144x128xf32, #tpu.memory_space<vmem>>, vector<1x128xf32>
    %404 = vector.extract_strided_slice %403 {offsets = [0, 0], sizes = [1, 32], strides = [1, 1]} : vector<1x128xf32> to vector<1x32xf32>
    %405 = vector.broadcast %404 : vector<1x32xf32> to vector<64x32xf32>
    %406 = arith.addf %402, %405 : vector<64x32xf32>
    %cst_132 = arith.constant 0.00999999977 : f32
    %407 = vector.broadcast %cst_132 : f32 to vector<64x32xf32>
    %408 = arith.mulf %407, %406 : vector<64x32xf32>
    %409 = arith.maximumf %406, %408 : vector<64x32xf32>
    %c768 = arith.constant 768 : index
    %c0_133 = arith.constant 0 : index
    %410 = vector.load %arg2[%c768, %c0_133] : memref<1144x128xf32, #tpu.memory_space<vmem>>, vector<32x128xf32>
    %411 = vector.extract_strided_slice %410 {offsets = [0, 0], sizes = [32, 32], strides = [1, 1]} : vector<32x128xf32> to vector<32x32xf32>
    %cst_134 = arith.constant dense<0.000000e+00> : vector<64x32xf32>
    %412 = tpu.matmul %409, %411, %cst_134 {dimension_numbers = #tpu.dot_dimension_numbers<[1], [0], [0], [1], [0, 0, 1, 1], [], []>} : vector<64x32xf32>, vector<32x32xf32>, vector<64x32xf32> -> vector<64x32xf32>
    %c800 = arith.constant 800 : index
    %c0_135 = arith.constant 0 : index
    %413 = vector.load %arg2[%c800, %c0_135] : memref<1144x128xf32, #tpu.memory_space<vmem>>, vector<1x128xf32>
    %414 = vector.extract_strided_slice %413 {offsets = [0, 0], sizes = [1, 32], strides = [1, 1]} : vector<1x128xf32> to vector<1x32xf32>
    %415 = vector.broadcast %414 : vector<1x32xf32> to vector<64x32xf32>
    %416 = arith.addf %412, %415 : vector<64x32xf32>
    %cst_136 = arith.constant 0.00999999977 : f32
    %417 = vector.broadcast %cst_136 : f32 to vector<64x32xf32>
    %418 = arith.mulf %417, %416 : vector<64x32xf32>
    %419 = arith.maximumf %416, %418 : vector<64x32xf32>
    %c808 = arith.constant 808 : index
    %c0_137 = arith.constant 0 : index
    %420 = vector.load %arg2[%c808, %c0_137] : memref<1144x128xf32, #tpu.memory_space<vmem>>, vector<32x128xf32>
    %cst_138 = arith.constant dense<0.000000e+00> : vector<64x128xf32>
    %421 = tpu.matmul %419, %420, %cst_138 {dimension_numbers = #tpu.dot_dimension_numbers<[1], [0], [0], [1], [0, 0, 1, 1], [], []>} : vector<64x32xf32>, vector<32x128xf32>, vector<64x128xf32> -> vector<64x128xf32>
    %c840 = arith.constant 840 : index
    %c0_139 = arith.constant 0 : index
    %422 = vector.load %arg2[%c840, %c0_139] : memref<1144x128xf32, #tpu.memory_space<vmem>>, vector<1x128xf32>
    %423 = vector.broadcast %422 : vector<1x128xf32> to vector<64x128xf32>
    %424 = arith.addf %421, %423 : vector<64x128xf32>
    %c848 = arith.constant 848 : index
    %c0_140 = arith.constant 0 : index
    %425 = vector.load %arg2[%c848, %c0_140] : memref<1144x128xf32, #tpu.memory_space<vmem>>, vector<32x128xf32>
    %426 = vector.extract_strided_slice %425 {offsets = [0, 0], sizes = [32, 32], strides = [1, 1]} : vector<32x128xf32> to vector<32x32xf32>
    %cst_141 = arith.constant dense<0.000000e+00> : vector<64x32xf32>
    %427 = tpu.matmul %389, %426, %cst_141 {dimension_numbers = #tpu.dot_dimension_numbers<[1], [0], [0], [1], [0, 0, 1, 1], [], []>} : vector<64x32xf32>, vector<32x32xf32>, vector<64x32xf32> -> vector<64x32xf32>
    %c880 = arith.constant 880 : index
    %c0_142 = arith.constant 0 : index
    %428 = vector.load %arg2[%c880, %c0_142] : memref<1144x128xf32, #tpu.memory_space<vmem>>, vector<128x128xf32>
    %429 = vector.extract_strided_slice %428 {offsets = [0, 0], sizes = [128, 32], strides = [1, 1]} : vector<128x128xf32> to vector<128x32xf32>
    %cst_143 = arith.constant dense<0.000000e+00> : vector<64x32xf32>
    %430 = tpu.matmul %424, %429, %cst_143 {dimension_numbers = #tpu.dot_dimension_numbers<[1], [0], [0], [1], [0, 0, 1, 1], [], []>} : vector<64x128xf32>, vector<128x32xf32>, vector<64x32xf32> -> vector<64x32xf32>
    %431 = arith.addf %427, %430 : vector<64x32xf32>
    %c1008 = arith.constant 1008 : index
    %c0_144 = arith.constant 0 : index
    %432 = vector.load %arg2[%c1008, %c0_144] : memref<1144x128xf32, #tpu.memory_space<vmem>>, vector<1x128xf32>
    %433 = vector.extract_strided_slice %432 {offsets = [0, 0], sizes = [1, 32], strides = [1, 1]} : vector<1x128xf32> to vector<1x32xf32>
    %434 = vector.broadcast %433 : vector<1x32xf32> to vector<64x32xf32>
    %435 = arith.addf %431, %434 : vector<64x32xf32>
    %cst_145 = arith.constant 0.00999999977 : f32
    %436 = vector.broadcast %cst_145 : f32 to vector<64x32xf32>
    %437 = arith.mulf %436, %435 : vector<64x32xf32>
    %438 = arith.maximumf %435, %437 : vector<64x32xf32>
    %c1016 = arith.constant 1016 : index
    %c0_146 = arith.constant 0 : index
    %439 = vector.load %arg2[%c1016, %c0_146] : memref<1144x128xf32, #tpu.memory_space<vmem>>, vector<32x128xf32>
    %440 = vector.extract_strided_slice %439 {offsets = [0, 0], sizes = [32, 32], strides = [1, 1]} : vector<32x128xf32> to vector<32x32xf32>
    %cst_147 = arith.constant dense<0.000000e+00> : vector<64x32xf32>
    %441 = tpu.matmul %438, %440, %cst_147 {dimension_numbers = #tpu.dot_dimension_numbers<[1], [0], [0], [1], [0, 0, 1, 1], [], []>} : vector<64x32xf32>, vector<32x32xf32>, vector<64x32xf32> -> vector<64x32xf32>
    %c1048 = arith.constant 1048 : index
    %c0_148 = arith.constant 0 : index
    %442 = vector.load %arg2[%c1048, %c0_148] : memref<1144x128xf32, #tpu.memory_space<vmem>>, vector<1x128xf32>
    %443 = vector.extract_strided_slice %442 {offsets = [0, 0], sizes = [1, 32], strides = [1, 1]} : vector<1x128xf32> to vector<1x32xf32>
    %444 = vector.broadcast %443 : vector<1x32xf32> to vector<64x32xf32>
    %445 = arith.addf %441, %444 : vector<64x32xf32>
    %cst_149 = arith.constant 0.00999999977 : f32
    %446 = vector.broadcast %cst_149 : f32 to vector<64x32xf32>
    %447 = arith.mulf %446, %445 : vector<64x32xf32>
    %448 = arith.maximumf %445, %447 : vector<64x32xf32>
    %c1056 = arith.constant 1056 : index
    %c0_150 = arith.constant 0 : index
    %449 = vector.load %arg2[%c1056, %c0_150] : memref<1144x128xf32, #tpu.memory_space<vmem>>, vector<32x128xf32>
    %450 = vector.extract_strided_slice %449 {offsets = [0, 0], sizes = [32, 32], strides = [1, 1]} : vector<32x128xf32> to vector<32x32xf32>
    %cst_151 = arith.constant dense<0.000000e+00> : vector<64x32xf32>
    %451 = tpu.matmul %448, %450, %cst_151 {dimension_numbers = #tpu.dot_dimension_numbers<[1], [0], [0], [1], [0, 0, 1, 1], [], []>} : vector<64x32xf32>, vector<32x32xf32>, vector<64x32xf32> -> vector<64x32xf32>
    %c1088 = arith.constant 1088 : index
    %c0_152 = arith.constant 0 : index
    %452 = vector.load %arg2[%c1088, %c0_152] : memref<1144x128xf32, #tpu.memory_space<vmem>>, vector<1x128xf32>
    %453 = vector.extract_strided_slice %452 {offsets = [0, 0], sizes = [1, 32], strides = [1, 1]} : vector<1x128xf32> to vector<1x32xf32>
    %454 = vector.broadcast %453 : vector<1x32xf32> to vector<64x32xf32>
    %455 = arith.addf %451, %454 : vector<64x32xf32>
    %cst_153 = arith.constant 0.00999999977 : f32
    %456 = vector.broadcast %cst_153 : f32 to vector<64x32xf32>
    %457 = arith.mulf %456, %455 : vector<64x32xf32>
    %458 = arith.maximumf %455, %457 : vector<64x32xf32>
    %c1096 = arith.constant 1096 : index
    %c0_154 = arith.constant 0 : index
    %459 = vector.load %arg2[%c1096, %c0_154] : memref<1144x128xf32, #tpu.memory_space<vmem>>, vector<32x128xf32>
    %cst_155 = arith.constant dense<0.000000e+00> : vector<64x128xf32>
    %460 = tpu.matmul %458, %459, %cst_155 {dimension_numbers = #tpu.dot_dimension_numbers<[1], [0], [0], [1], [0, 0, 1, 1], [], []>} : vector<64x32xf32>, vector<32x128xf32>, vector<64x128xf32> -> vector<64x128xf32>
    %c1128 = arith.constant 1128 : index
    %c0_156 = arith.constant 0 : index
    %461 = vector.load %arg2[%c1128, %c0_156] : memref<1144x128xf32, #tpu.memory_space<vmem>>, vector<1x128xf32>
    %462 = vector.broadcast %461 : vector<1x128xf32> to vector<64x128xf32>
    %463 = arith.addf %460, %462 : vector<64x128xf32>
    %c1136 = arith.constant 1136 : index
    %c0_157 = arith.constant 0 : index
    %464 = vector.load %arg2[%c1136, %c0_157] : memref<1144x128xf32, #tpu.memory_space<vmem>>, vector<8x128xf32>
    %cst_158 = arith.constant dense<0.000000e+00> : vector<64x128xf32>
    %465 = tpu.matmul %1, %464, %cst_158 {dimension_numbers = #tpu.dot_dimension_numbers<[1], [0], [0], [1], [0, 0, 1, 1], [], []>} : vector<64x8xf32>, vector<8x128xf32>, vector<64x128xf32> -> vector<64x128xf32>
    %466 = arith.addf %463, %465 : vector<64x128xf32>
    %c0_159 = arith.constant 0 : index
    %c0_160 = arith.constant 0 : index
    %c0_161 = arith.constant 0 : index
    %c0_162 = arith.constant 0 : index
    %467 = vector.load %arg3[%c0_159, %c0_160, %c0_161, %c0_162] : memref<1x2x64x128xf32, #tpu.memory_space<vmem>>, vector<1x1x64x128xf32>
    %468 = vector.shape_cast %467 : vector<1x1x64x128xf32> to vector<64x128xf32>
    %469 = vector.shape_cast %424 : vector<64x128xf32> to vector<1x1x64x128xf32>
    tpu.vector_store %arg3[%c0_159, %c0_160, %c0_161, %c0_162], %469 {strides = array<i32>} : memref<1x2x64x128xf32, #tpu.memory_space<vmem>>, vector<1x1x64x128xf32>,
    %c0_163 = arith.constant 0 : index
    %c1 = arith.constant 1 : index
    %c0_164 = arith.constant 0 : index
    %c0_165 = arith.constant 0 : index
    %470 = vector.load %arg3[%c0_163, %c1, %c0_164, %c0_165] : memref<1x2x64x128xf32, #tpu.memory_space<vmem>>, vector<1x1x64x128xf32>
    %471 = vector.shape_cast %470 : vector<1x1x64x128xf32> to vector<64x128xf32>
    %472 = vector.shape_cast %466 : vector<64x128xf32> to vector<1x1x64x128xf32>
    tpu.vector_store %arg3[%c0_163, %c1, %c0_164, %c0_165], %472 {strides = array<i32>} : memref<1x2x64x128xf32, #tpu.memory_space<vmem>>, vector<1x1x64x128xf32>,
    return
  }
  func.func @transform_0(%arg0: i32) -> (i32, i32, i32) {
    %c0_i32 = arith.constant 0 : i32
    %c0_i32_0 = arith.constant 0 : i32
    %c0_i32_1 = arith.constant 0 : i32
    return %arg0, %c0_i32, %c0_i32_0 : i32, i32, i32
  }
  func.func @transform_1(%arg0: i32) -> (i32, i32) {
    %c0_i32 = arith.constant 0 : i32
    %c0_i32_0 = arith.constant 0 : i32
    %c0_i32_1 = arith.constant 0 : i32
    return %c0_i32, %c0_i32_0 : i32, i32
  }
  func.func @transform_2(%arg0: i32) -> (i32, i32, i32, i32) {
    %c0_i32 = arith.constant 0 : i32
    %c0_i32_0 = arith.constant 0 : i32
    %c0_i32_1 = arith.constant 0 : i32
    %c0_i32_2 = arith.constant 0 : i32
    return %arg0, %c0_i32, %c0_i32_0, %c0_i32_1 : i32, i32, i32, i32
  }
}

</mosaic_0001>

<bundles_post_ra>
// kernel: pfnet10_forward.1
= control target key start
LH: loop header
LB: loop body
LE: loop exit
PB: predicated region body
PF: predicated region fallthrough
CT: control target
= control target key end

     0   :  { %7 = vsyncpa [#allocation3], 0  ;;  %s10772_s9 = smov [#allocation2]   ;;  %s13934_s0 = inlined_call_operand.vmem [shape: f32[1,64,8], index: 0, kind: input, shape index: {}]   ;;  %s13935_s1 = inlined_call_operand.hbm [shape: f32[1144,128], index: 1, kind: input, shape index: {}]   ;;  %s13936_s2 = inlined_call_operand.vmem [shape: f32[1,2,64,128], index: 2, kind: output, shape index: {}]  }
   0x1   :  { %s15_s10 = sshll.u32 %s10772_s9, 4  ;;  %s10748_s13 = scalar_lea.hbm %s13935_s1, 18304  ;;  %s16_s10 = int_to_ptr.vmem [resolvable:$true] %s15_s10 }
   0x2   :  { %p10749_p0 = scmp.ne.s32.totalorder %s13935_s1, %s10748_s13  ;;  %p10752_p1 = scmp.lt.u32.totalorder %s10748_s13, %s13935_s1 }
   0x4   :  { %p10754_p2 = pnand %p10752_p1, %p10749_p0 }
   0x6   :  { %10757 = shalt.err (!%p10754_p2)
}
   0x7   :  { %s10758_s18 = scalar_lea.vmem %s16_s10, 18304  ;;  %p10763_p4 = scmp.lt.s32.totalorder %s16_s10, %s16_s10 }
   0x8   :  { %p10759_p3 = scmp.ne.s32.totalorder %s16_s10, %s10758_s18  ;;  %p10764_p5 = scmp.lt.s32.totalorder %s10758_s18, %s10758_s18 }
   0xa   :  { %p10765_p6 = por %p10764_p5, %p10763_p4 }
   0xc   :  { %p10766_p7 = pnand %p10765_p6, %p10759_p3 }
   0xe   :  { %10769 = shalt.err (!%p10766_p7)
}
   0xf   :  { %s10773_s19 = smov 128   ;;  %s10774_s20 = smov 8  }
  0x10   :  { %21 = dma.hbm_to_vmem [thread:$0]  %s13935_s1, 18304, %s16_s10, [#allocation3], %s10773_s19, %s10773_s19, %s10774_s20  }
  0x11   :  { %10770 = dma.done.wait [#allocation3], 18304  }
  0x12   :  { %10771 = vsyncadd [#allocation3], 4294948992  ;;  %vm13937_vm0 = vcmask 64512   ;;  %v33_v0 = vld [vmem:[#allocation2] sm:$0xff]  ;;  %v26_v2 = vld [vmem:[%s13934_s0 + $0x8] sm:$0xff]  ;;  %vm194_vm1 = vcmask 261120  }
  0x13   :  { %v25_v1 = vld [vmem:[%s13934_s0] sm:$0xff]  ;;  %9132 = vmatprep.subr.mxu0 %v33_v0  ;;  %v27_v3 = vld [vmem:[%s13934_s0 + $0x10] sm:$0xff]  ;;  %v28_v4 = vld [vmem:[%s13934_s0 + $0x18] sm:$0xff]  ;;  %vm921_vm2 = vcmask 15360   ;;  %vm1145_vm4 = vcmask 523264  }
  0x14   :  { %9134 = vmatprep.mubr.msk.f32.mxu0 %vm13937_vm0, %v25_v1  ;;  %9133 = vmatpush3.msra.mxu0 %v33_v0  ;;  %v29_v5 = vld [vmem:[%s13934_s0 + $0x20] sm:$0xff]  ;;  %v30_v6 = vld [vmem:[%s13934_s0 + $0x28] sm:$0xff]  ;;  %v31_v7 = vld [vmem:[%s13934_s0 + $0x30] sm:$0xff] }
  0x15   :  { %9135 = vmatmul.mubr.msk.f32.vlgmr.msra.gmra.mrb[0].mxu0 %vm13937_vm0, %v26_v2  ;;  %v32_v8 = vld [vmem:[%s13934_s0 + $0x38] sm:$0xff]  ;;  %v185_v9 = vld [vmem:[#allocation2 + $0x10] sm:$0xff]  ;;  %v187_v12 = vld [vmem:[#allocation2 + $0x20] sm:$0xff] }
  0x16   :  { %9137 = vmatprep.mubr.msk.f32.mxu0 %vm13937_vm0, %v27_v3  ;;  %v186_v10 = vld [vmem:[#allocation2 + $0x18] sm:$0xff]  ;;  %v188_v13 = vld [vmem:[#allocation2 + $0x28] sm:$0xff]  ;;  %v341_v16 = vld [vmem:[#allocation2 + $0x40] sm:$0xff] }
  0x17   :  { %v10060_v11 = vpack.c.bf16 %v186_v10, %v185_v9  ;;  %v10064_v14 = vpack.c.bf16 %v188_v13, %v187_v12  ;;  %v340_v15 = vld [vmem:[#allocation2 + $0x38] sm:$0xff]  ;;  %v8141_v18 = vld [vmem:[#allocation2 + $0x8] ss:$0 sm:$0xff]  ;;  %v343_v52 = vld [vmem:[#allocation2 + $0x50] sm:$0xff] }
  0x18   :  { %v10068_v17 = vpack.c.bf16 %v341_v16, %v340_v15  ;;  %v342_v51 = vld [vmem:[#allocation2 + $0x48] sm:$0xff]  ;;  %v494_v54 = vld [vmem:[#allocation2 + $0x60] sm:$0xff]  ;;  %v8150_v57 = vld [vmem:[#allocation2 + $0x30] ss:$0 sm:$0xff] }
  0x19   :  { %9138 = vmatmul.mubr.msk.f32.gmra.mrb[2].mxu0 %vm13937_vm0, %v28_v4  ;;  %10061 = vmatprep.subr.bf16.mxu1 %v10060_v11  ;;  %v10072_v53 = vpack.c.bf16 %v343_v52, %v342_v51  ;;  %v495_v55 = vld [vmem:[#allocation2 + $0x68] sm:$0xff]  ;;  %vm10911_vm3 = vmpackc.low %vm921_vm2, %vm921_vm2 }
  0x1a   :  { %9140 = vmatprep.mubr.msk.f32.mxu0 %vm13937_vm0, %v29_v5  ;;  %10063 = vmatpush3.bf16.msra.mxu1 %v10060_v11  ;;  %v10076_v56 = vpack.c.bf16 %v495_v55, %v494_v54 }
  0x1b   :  { %10065 = vmatprep.subr.bf16.mxu1 %v10064_v14  ;;  %10069 = vmatprep.subr.bf16.mxu0 %v10068_v17 }
  0x1c   :  { %10071 = vmatpush3.bf16.msra.mxu0 %v10068_v17 }
  0x1d   :  { %9141 = vmatmul.mubr.msk.f32.gmra.mrb[4].mxu0 %vm13937_vm0, %v30_v6  ;;  %10073 = vmatprep.subr.bf16.mxu0 %v10072_v53 }
  0x1e   :  { %9143 = vmatprep.mubr.msk.f32.mxu0 %vm13937_vm0, %v31_v7  ;;  %10067 = vmatpush3.bf16.msra.mxu1 %v10064_v14 }
  0x1f   :  { %10077 = vmatprep.subr.bf16.mxu1 %v10076_v56 }
  0x20   :  { %10075 = vmatpush3.bf16.msra.mxu0 %v10072_v53 }
  0x21   :  { %9144 = vmatmul.mubr.msk.f32.gmra.mrb[6].mxu0 %vm13937_vm0, %v32_v8 }
  0xe8   :  { %v9136_v19 = vpop.f32.mrb[0].mxu0 }
  0xe9   :  { %v136_v20 = vadd.f32 %v9136_v19, %v8141_v18  ;;  %v130_v21 = vpop.f32.mrb[1].mxu0 }
  0xea   :  { %v131_v22 = vadd.f32 %v8141_v18, %v130_v21 }
  0xeb   :  { %v170_v23 = vmul.f32 0.01, %v136_v20 }
  0xec   :  { %v169_v24 = vmul.f32 0.01, %v131_v22  ;;  %v9139_v25 = vpop.f32.mrb[2].mxu0 }
  0xed   :  { %v146_v26 = vadd.f32 %v9139_v25, %v8141_v18  ;;  %v140_v27 = vpop.f32.mrb[3].mxu0  ;;  %v178_v30 = vmax.f32 %v136_v20, %v170_v23 }
  0xee   :  { %v141_v28 = vadd.f32 %v8141_v18, %v140_v27  ;;  %v177_v29 = vmax.f32 %v131_v22, %v169_v24  ;;  %v497_v27 = vld [vmem:[#allocation2 + $0x78] sm:$0xff] }
  0xef   :  { %v172_v31 = vmul.f32 0.01, %v146_v26 }
  0xf0   :  { %v171_v32 = vmul.f32 0.01, %v141_v28  ;;  %v9142_v33 = vpop.f32.mrb[4].mxu0  ;;  %9154 = vmatprep.mubr.msk.f32.mxu1 %vm194_vm1, %v177_v29  ;;  %v648_v29 = vld [vmem:[#allocation2 + $0x88] sm:$0xff] }
  0xf1   :  { %v180_v34 = vmax.f32 %v146_v26, %v172_v31  ;;  %v156_v35 = vadd.f32 %v9142_v33, %v8141_v18  ;;  %v150_v36 = vpop.f32.mrb[5].mxu0  ;;  %9155 = vmatmul.mubr.msk.f32.vlgmr.msra.gmra.mrb[0].mxu1 %vm194_vm1, %v178_v30  ;;  %v496_v26 = vld [vmem:[#allocation2 + $0x70] sm:$0xff] }
  0xf2   :  { %v179_v37 = vmax.f32 %v141_v28, %v171_v32  ;;  %v151_v38 = vadd.f32 %v8141_v18, %v150_v36  ;;  %10079 = vmatpush3.bf16.msra.mxu1 %v10076_v56  ;;  %v10080_v28 = vpack.c.bf16 %v497_v27, %v496_v26  ;;  %v649_v30 = vld [vmem:[#allocation2 + $0x90] sm:$0xff]  ;;  %v8159_v32 = vld [vmem:[#allocation2 + $0x58] ss:$0 sm:$0xff] }
  0xf3   :  { %v174_v39 = vmul.f32 0.01, %v156_v35  ;;  %v10084_v31 = vpack.c.bf16 %v649_v30, %v648_v29 }
  0xf4   :  { %v173_v40 = vmul.f32 0.01, %v151_v38  ;;  %v9145_v41 = vpop.f32.mrb[6].mxu0  ;;  %9157 = vmatprep.mubr.msk.f32.mxu1 %vm194_vm1, %v179_v37  ;;  %10081 = vmatprep.subr.bf16.mxu1 %v10080_v28 }
  0xf5   :  { %v182_v42 = vmax.f32 %v156_v35, %v174_v39  ;;  %v166_v43 = vadd.f32 %v9145_v41, %v8141_v18  ;;  %v160_v44 = vpop.f32.mrb[7].mxu0  ;;  %9158 = vmatmul.mubr.msk.f32.gmra.mrb[2].mxu1 %vm194_vm1, %v180_v34  ;;  %10085 = vmatprep.subr.bf16.mxu0 %v10084_v31 }
  0xf6   :  { %v181_v45 = vmax.f32 %v151_v38, %v173_v40  ;;  %v161_v46 = vadd.f32 %v8141_v18, %v160_v44  ;;  %10083 = vmatpush3.bf16.msra.mxu1 %v10080_v28 }
  0xf7   :  { %v176_v47 = vmul.f32 0.01, %v166_v43 }
  0xf8   :  { %v175_v48 = vmul.f32 0.01, %v161_v46  ;;  %9160 = vmatprep.mubr.msk.f32.mxu1 %vm194_vm1, %v181_v45 }
  0xf9   :  { %v184_v49 = vmax.f32 %v166_v43, %v176_v47  ;;  %9161 = vmatmul.mubr.msk.f32.gmra.mrb[4].mxu1 %vm194_vm1, %v182_v42 }
  0xfa   :  { %v183_v50 = vmax.f32 %v161_v46, %v175_v48 }
  0xfc   :  { %9163 = vmatprep.mubr.msk.f32.mxu1 %vm194_vm1, %v183_v50 }
  0xfd   :  { %9164 = vmatmul.mubr.msk.f32.gmra.mrb[6].mxu1 %vm194_vm1, %v184_v49 }
 0x1c4   :  { %v9156_v58 = vpop.f32.mrb[0].mxu1 }
 0x1c5   :  { %v291_v59 = vadd.f32 %v9156_v58, %v8150_v57  ;;  %v285_v60 = vpop.f32.mrb[1].mxu1 }
 0x1c6   :  { %v286_v61 = vadd.f32 %v8150_v57, %v285_v60 }
 0x1c7   :  { %v325_v62 = vmul.f32 0.01, %v291_v59 }
 0x1c8   :  { %v324_v63 = vmul.f32 0.01, %v286_v61  ;;  %v9159_v0 = vpop.f32.mrb[2].mxu1 }
 0x1c9   :  { %v301_v1 = vadd.f32 %v9159_v0, %v8150_v57  ;;  %v295_v2 = vpop.f32.mrb[3].mxu1  ;;  %v333_v5 = vmax.f32 %v291_v59, %v325_v62 }
 0x1ca   :  { %v332_v3 = vmax.f32 %v286_v61, %v324_v63  ;;  %v296_v4 = vadd.f32 %v8150_v57, %v295_v2  ;;  %v654_v2 = vld [vmem:[#allocation2 + $0xb8] sm:$0xff] }
 0x1cb   :  { %v327_v6 = vmul.f32 0.01, %v301_v1 }
 0x1cc   :  { %v326_v7 = vmul.f32 0.01, %v296_v4  ;;  %v9162_v8 = vpop.f32.mrb[4].mxu1  ;;  %9174 = vmatprep.mubr.msk.f32.mxu0 %vm194_vm1, %v332_v3 }
 0x1cd   :  { %v311_v9 = vadd.f32 %v9162_v8, %v8150_v57  ;;  %v305_v10 = vpop.f32.mrb[5].mxu1  ;;  %9175 = vmatmul.mubr.msk.f32.vlgmr.msra.gmra.mrb[8].mxu0 %vm194_vm1, %v333_v5  ;;  %v335_v13 = vmax.f32 %v301_v1, %v327_v6  ;;  %v653_v1 = vld [vmem:[#allocation2 + $0xb0] sm:$0xff]  ;;  %v651_v5 = vld [vmem:[#allocation2 + $0xa0] sm:$0xff]  ;;  %v656_v8 = vld [vmem:[#allocation2 + $0xc8] sm:$0xff] }
 0x1ce   :  { %v334_v11 = vmax.f32 %v296_v4, %v326_v7  ;;  %v306_v12 = vadd.f32 %v8150_v57, %v305_v10  ;;  %10087 = vmatpush3.bf16.msra.mxu0 %v10084_v31  ;;  %v10092_v3 = vpack.c.bf16 %v654_v2, %v653_v1  ;;  %v650_v4 = vld [vmem:[#allocation2 + $0x98] sm:$0xff]  ;;  %v655_v6 = vld [vmem:[#allocation2 + $0xc0] sm:$0xff] }
 0x1cf   :  { %v329_v14 = vmul.f32 0.01, %v311_v9  ;;  %v10088_v7 = vpack.c.bf16 %v651_v5, %v650_v4  ;;  %v8168_v10 = vld [vmem:[#allocation2 + $0x80] ss:$0 sm:$0xff] }
 0x1d0   :  { %v328_v15 = vmul.f32 0.01, %v306_v12  ;;  %v9165_v16 = vpop.f32.mrb[6].mxu1  ;;  %9177 = vmatprep.mubr.msk.f32.mxu0 %vm194_vm1, %v334_v11  ;;  %10093 = vmatprep.subr.bf16.mxu1 %v10092_v3 }
 0x1d1   :  { %v337_v17 = vmax.f32 %v311_v9, %v329_v14  ;;  %v321_v18 = vadd.f32 %v9165_v16, %v8150_v57  ;;  %v315_v19 = vpop.f32.mrb[7].mxu1  ;;  %9178 = vmatmul.mubr.msk.f32.gmra.mrb[10].mxu0 %vm194_vm1, %v335_v13  ;;  %v10096_v9 = vpack.c.bf16 %v656_v8, %v655_v6  ;;  %10089 = vmatprep.subr.bf16.mxu0 %v10088_v7 }
 0x1d2   :  { %v336_v20 = vmax.f32 %v306_v12, %v328_v15  ;;  %v316_v21 = vadd.f32 %v8150_v57, %v315_v19  ;;  %10091 = vmatpush3.bf16.msra.mxu0 %v10088_v7 }
 0x1d3   :  { %v331_v22 = vmul.f32 0.01, %v321_v18 }
 0x1d4   :  { %v330_v23 = vmul.f32 0.01, %v316_v21  ;;  %9180 = vmatprep.mubr.msk.f32.mxu0 %vm194_vm1, %v336_v20 }
 0x1d5   :  { %v339_v24 = vmax.f32 %v321_v18, %v331_v22  ;;  %9181 = vmatmul.mubr.msk.f32.gmra.mrb[12].mxu0 %vm194_vm1, %v337_v17 }
 0x1d6   :  { %v338_v25 = vmax.f32 %v316_v21, %v330_v23 }
 0x1d8   :  { %9183 = vmatprep.mubr.msk.f32.mxu0 %vm194_vm1, %v338_v25 }
 0x1d9   :  { %9184 = vmatmul.mubr.msk.f32.gmra.mrb[14].mxu0 %vm194_vm1, %v339_v24 }
 0x2a0   :  { %v9176_v33 = vpop.f32.mrb[8].mxu0 }
 0x2a1   :  { %v445_v34 = vadd.f32 %v9176_v33, %v8159_v32  ;;  %v439_v35 = vpop.f32.mrb[9].mxu0 }
 0x2a2   :  { %v440_v36 = vadd.f32 %v8159_v32, %v439_v35 }
 0x2a3   :  { %v479_v37 = vmul.f32 0.01, %v445_v34 }
 0x2a4   :  { %v478_v38 = vmul.f32 0.01, %v440_v36  ;;  %v9179_v39 = vpop.f32.mrb[10].mxu0 }
 0x2a5   :  { %v455_v40 = vadd.f32 %v9179_v39, %v8159_v32  ;;  %v449_v41 = vpop.f32.mrb[11].mxu0  ;;  %v487_v44 = vmax.f32 %v445_v34, %v479_v37 }
 0x2a6   :  { %v486_v42 = vmax.f32 %v440_v36, %v478_v38  ;;  %v450_v43 = vadd.f32 %v8159_v32, %v449_v41 }
 0x2a7   :  { %v481_v45 = vmul.f32 0.01, %v455_v40 }
 0x2a8   :  { %v480_v46 = vmul.f32 0.01, %v450_v43  ;;  %v9182_v47 = vpop.f32.mrb[12].mxu0  ;;  %9194 = vmatprep.mubr.msk.f32.mxu1 %vm194_vm1, %v486_v42 }
 0x2a9   :  { %v465_v48 = vadd.f32 %v9182_v47, %v8159_v32  ;;  %v459_v49 = vpop.f32.mrb[13].mxu0  ;;  %9195 = vmatmul.mubr.msk.f32.vlgmr.msra.gmra.mrb[8].mxu1 %vm194_vm1, %v487_v44  ;;  %v489_v52 = vmax.f32 %v455_v40, %v481_v45  ;;  %v8186_v44 = vld [vmem:[#allocation2 + $0xd0] ss:$0 sm:$0xff] }
 0x2aa   :  { %v488_v50 = vmax.f32 %v450_v43, %v480_v46  ;;  %v460_v51 = vadd.f32 %v8159_v32, %v459_v49  ;;  %10095 = vmatpush3.bf16.msra.mxu1 %v10092_v3  ;;  %v8177_v43 = vld [vmem:[#allocation2 + $0xa8] ss:$0 sm:$0xff] }
 0x2ab   :  { %v483_v53 = vmul.f32 0.01, %v465_v48  ;;  %10097 = vmatprep.subr.bf16.mxu1 %v10096_v9 }
 0x2ac   :  { %v482_v54 = vmul.f32 0.01, %v460_v51  ;;  %v9185_v55 = vpop.f32.mrb[14].mxu0  ;;  %9197 = vmatprep.mubr.msk.f32.mxu1 %vm194_vm1, %v488_v50 }
 0x2ad   :  { %v475_v56 = vadd.f32 %v9185_v55, %v8159_v32  ;;  %v469_v57 = vpop.f32.mrb[15].mxu0  ;;  %9198 = vmatmul.mubr.msk.f32.gmra.mrb[10].mxu1 %vm194_vm1, %v489_v52  ;;  %v491_v60 = vmax.f32 %v465_v48, %v483_v53  ;;  %v13997_v53 = vmov 0 }
 0x2ae   :  { %v490_v58 = vmax.f32 %v460_v51, %v482_v54  ;;  %v470_v59 = vadd.f32 %v8159_v32, %v469_v57  ;;  %10099 = vmatpush3.bf16.msra.mxu1 %v10096_v9  ;;  %v13998_v53 = vsel %vm10911_vm3, 4294967295, %v13997_v53 }
 0x2af   :  { %v485_v61 = vmul.f32 0.01, %v475_v56  ;;  %13999 = vst [vmem:[#allocation13_spill] sm:$0xff] %v13998_v53 }
 0x2b0   :  { %v484_v62 = vmul.f32 0.01, %v470_v59  ;;  %9200 = vmatprep.mubr.msk.f32.mxu1 %vm194_vm1, %v490_v58 }
 0x2b1   :  { %v493_v63 = vmax.f32 %v475_v56, %v485_v61  ;;  %9201 = vmatmul.mubr.msk.f32.gmra.mrb[12].mxu1 %vm194_vm1, %v491_v60 }
 0x2b2   :  { %v492_v0 = vmax.f32 %v470_v59, %v484_v62 }
 0x2b4   :  { %9203 = vmatprep.mubr.msk.f32.mxu1 %vm194_vm1, %v492_v0 }
 0x2b5   :  { %9204 = vmatmul.mubr.msk.f32.gmra.mrb[14].mxu1 %vm194_vm1, %v493_v63 }
 0x37c   :  { %v9196_v11 = vpop.f32.mrb[8].mxu1 }
 0x37d   :  { %v599_v12 = vadd.f32 %v9196_v11, %v8168_v10  ;;  %v593_v13 = vpop.f32.mrb[9].mxu1 }
 0x37e   :  { %v594_v14 = vadd.f32 %v8168_v10, %v593_v13 }
 0x37f   :  { %v633_v15 = vmul.f32 0.01, %v599_v12 }
 0x380   :  { %v632_v16 = vmul.f32 0.01, %v594_v14  ;;  %v9199_v17 = vpop.f32.mrb[10].mxu1 }
 0x381   :  { %v609_v18 = vadd.f32 %v9199_v17, %v8168_v10  ;;  %v603_v19 = vpop.f32.mrb[11].mxu1  ;;  %v10861_v22 = vmax.f32 %v599_v12, %v633_v15 }
 0x382   :  { %v10859_v20 = vmax.f32 %v594_v14, %v632_v16  ;;  %v604_v21 = vadd.f32 %v8168_v10, %v603_v19 }
 0x383   :  { %13990 = vst [vmem:[#allocation6_spill] sm:$0xff] %v10861_v22  ;;  %v635_v23 = vmul.f32 0.01, %v609_v18 }
 0x384   :  { %13989 = vst [vmem:[#allocation5_spill] sm:$0xff] %v10859_v20  ;;  %v634_v24 = vmul.f32 0.01, %v604_v21  ;;  %v9202_v25 = vpop.f32.mrb[12].mxu1  ;;  %9214 = vmatprep.mubr.msk.f32.mxu0 %vm194_vm1, %v10859_v20  ;;  %9234 = vmatprep.mubr.msk.f32.mxu1 %vm194_vm1, %v10859_v20 }
 0x385   :  { %v619_v26 = vadd.f32 %v9202_v25, %v8168_v10  ;;  %v613_v27 = vpop.f32.mrb[13].mxu1  ;;  %9215 = vmatmul.mubr.msk.f32.vlgmr.msra.gmra.mrb[16].mxu0 %vm194_vm1, %v10861_v22  ;;  %9235 = vmatmul.mubr.msk.f32.vlgmr.msra.gmra.mrb[16].mxu1 %vm194_vm1, %v10861_v22  ;;  %v10873_v30 = vmax.f32 %v609_v18, %v635_v23 }
 0x386   :  { %v10871_v28 = vmax.f32 %v604_v21, %v634_v24  ;;  %v614_v29 = vadd.f32 %v8168_v10, %v613_v27 }
 0x387   :  { %13992 = vst [vmem:[#allocation8_spill] sm:$0xff] %v10873_v30  ;;  %v637_v31 = vmul.f32 0.01, %v619_v26 }
 0x388   :  { %13991 = vst [vmem:[#allocation7_spill] sm:$0xff] %v10871_v28  ;;  %v636_v32 = vmul.f32 0.01, %v614_v29  ;;  %v9205_v33 = vpop.f32.mrb[14].mxu1  ;;  %9217 = vmatprep.mubr.msk.f32.mxu0 %vm194_vm1, %v10871_v28  ;;  %9237 = vmatprep.mubr.msk.f32.mxu1 %vm194_vm1, %v10871_v28 }
 0x389   :  { %v629_v34 = vadd.f32 %v9205_v33, %v8168_v10  ;;  %v623_v35 = vpop.f32.mrb[15].mxu1  ;;  %9218 = vmatmul.mubr.msk.f32.gmra.mrb[18].mxu0 %vm194_vm1, %v10873_v30  ;;  %9238 = vmatmul.mubr.msk.f32.gmra.mrb[18].mxu1 %vm194_vm1, %v10873_v30  ;;  %v10885_v38 = vmax.f32 %v619_v26, %v637_v31 }
 0x38a   :  { %v10883_v36 = vmax.f32 %v614_v29, %v636_v32  ;;  %v624_v37 = vadd.f32 %v8168_v10, %v623_v35 }
 0x38b   :  { %13994 = vst [vmem:[#allocation10_spill] sm:$0xff] %v10885_v38  ;;  %v639_v39 = vmul.f32 0.01, %v629_v34 }
 0x38c   :  { %13993 = vst [vmem:[#allocation9_spill] sm:$0xff] %v10883_v36  ;;  %v638_v40 = vmul.f32 0.01, %v624_v37  ;;  %9220 = vmatprep.mubr.msk.f32.mxu0 %vm194_vm1, %v10883_v36  ;;  %9240 = vmatprep.mubr.msk.f32.mxu1 %vm194_vm1, %v10883_v36 }
 0x38d   :  { %9221 = vmatmul.mubr.msk.f32.gmra.mrb[20].mxu0 %vm194_vm1, %v10885_v38  ;;  %9241 = vmatmul.mubr.msk.f32.gmra.mrb[20].mxu1 %vm194_vm1, %v10885_v38  ;;  %v10897_v42 = vmax.f32 %v629_v34, %v639_v39 }
 0x38e   :  { %v10895_v41 = vmax.f32 %v624_v37, %v638_v40 }
 0x38f   :  { %13996 = vst [vmem:[#allocation12_spill] sm:$0xff] %v10897_v42 }
 0x390   :  { %13995 = vst [vmem:[#allocation11_spill] sm:$0xff] %v10895_v41  ;;  %9223 = vmatprep.mubr.msk.f32.mxu0 %vm194_vm1, %v10895_v41  ;;  %9243 = vmatprep.mubr.msk.f32.mxu1 %vm194_vm1, %v10895_v41 }
 0x391   :  { %9224 = vmatmul.mubr.msk.f32.gmra.mrb[22].mxu0 %vm194_vm1, %v10897_v42  ;;  %9244 = vmatmul.mubr.msk.f32.gmra.mrb[22].mxu1 %vm194_vm1, %v10897_v42 }
 0x458   :  { %v9216_v45 = vpop.f32.mrb[16].mxu0  ;;  %v9236_v46 = vpop.f32.mrb[16].mxu1 }
 0x459   :  { %v10907_v47 = vadd.f32 %v9216_v45, %v8177_v43  ;;  %v880_v48 = vadd.f32 %v9236_v46, %v8186_v44  ;;  %v765_v49 = vpop.f32.mrb[17].mxu0  ;;  %v874_v50 = vpop.f32.mrb[17].mxu1 }
 0x45a   :  { %v766_v51 = vadd.f32 %v8177_v43, %v765_v49  ;;  %v875_v52 = vadd.f32 %v8186_v44, %v874_v50 }
 0x45b   :  { %v914_v2 = vmul.f32 %v10907_v47, %v10907_v47 }
 0x45c   :  { %v10100_v54 = vpack.c.bf16 %v10907_v47, %v766_v51  ;;  %v10916_v55 = vpack.c.bf16 %v880_v48, %v875_v52  ;;  %v9219_v56 = vpop.f32.mrb[18].mxu0  ;;  %v9239_v57 = vpop.f32.mrb[18].mxu1  ;;  %9262 = vmatprep.mubr.msk.f32.mxu0 %vm921_vm2, %v766_v51  ;;  %v913_v58 = vmul.f32 %v766_v51, %v766_v51 }
 0x45d   :  { %v10919_v59 = vadd.f32 %v9219_v56, %v8177_v43  ;;  %v890_v60 = vadd.f32 %v9239_v57, %v8186_v44  ;;  %v775_v61 = vpop.f32.mrb[19].mxu0  ;;  %v884_v62 = vpop.f32.mrb[19].mxu1  ;;  %v925_v16 = vsel %vm921_vm2, %v914_v2, 0.0 }
 0x45e   :  { %v10921_v63 = vadd.f32 %v8177_v43, %v775_v61  ;;  %v885_v0 = vadd.f32 %v8186_v44, %v884_v62  ;;  %10102 = vmatprep.subr.msk.bf16.mxu0 %vm10911_vm3, %v10100_v54  ;;  %10125 = vmatprep.subr.bf16.mxu1 %v10916_v55  ;;  %v922_v1 = vsel %vm921_vm2, %v913_v58, 0.0 }
 0x45f   :  { %10105 = vmatpush3.bf16.xpose.msk.msra.mxu0 %vm10911_vm3, %v10100_v54  ;;  %10127 = vmatpush3.bf16.msra.mxu1 %v10916_v55  ;;  %v916_v12 = vmul.f32 %v10919_v59, %v10919_v59 }
 0x460   :  { %v10106_v3 = vpack.c.bf16 %v10919_v59, %v10921_v63  ;;  %v10934_v4 = vpack.c.bf16 %v890_v60, %v885_v0  ;;  %923 = vadd.xlane.f32.xlu0 %v922_v1  ;;  %v9222_v5 = vpop.f32.mrb[20].mxu0  ;;  %v9242_v6 = vpop.f32.mrb[20].mxu1  ;;  %v915_v7 = vmul.f32 %v10921_v63, %v10921_v63  ;;  %v1107_v0 = vlaneseq }
 0x461   :  { %v791_v8 = vadd.f32 %v9222_v5, %v8177_v43  ;;  %v900_v9 = vadd.f32 %v9242_v6, %v8186_v44  ;;  %v785_v10 = vpop.f32.mrb[21].mxu0  ;;  %v894_v11 = vpop.f32.mrb[21].mxu1  ;;  %v931_v29 = vsel %vm921_vm2, %v916_v12, 0.0 }
 0x462   :  { %v786_v13 = vadd.f32 %v8177_v43, %v785_v10  ;;  %v895_v14 = vadd.f32 %v8186_v44, %v894_v11  ;;  %10108 = vmatprep.subr.msk.bf16.mxu0 %vm10911_vm3, %v10106_v3  ;;  %10129 = vmatprep.subr.bf16.mxu1 %v10934_v4  ;;  %v928_v15 = vsel %vm921_vm2, %v915_v7, 0.0  ;;  %v1108_v1 = vshrl.u32 %v1107_v0, 7 }
 0x463   :  { %10131 = vmatpush3.bf16.msra.mxu1 %v10934_v4  ;;  %929 = vadd.xlane.f32.xlu1 %v928_v15  ;;  %v918_v34 = vmul.f32 %v791_v8, %v791_v8 }
 0x464   :  { %v10112_v17 = vpack.c.bf16 %v791_v8, %v786_v13  ;;  %v10946_v18 = vpack.c.bf16 %v900_v9, %v895_v14  ;;  %926 = vadd.xlane.f32.xlu0 %v925_v16  ;;  %v9225_v19 = vpop.f32.mrb[22].mxu0  ;;  %v9245_v21 = vpop.f32.mrb[22].mxu1  ;;  %v917_v23 = vmul.f32 %v786_v13, %v786_v13  ;;  %v10988_v2 = vsub.s32 0, %v1108_v1 }
 0x465   :  { %v801_v24 = vadd.f32 %v9225_v19, %v8177_v43  ;;  %v910_v25 = vadd.f32 %v9245_v21, %v8186_v44  ;;  %v795_v26 = vpop.f32.mrb[23].mxu0  ;;  %v904_v27 = vpop.f32.mrb[23].mxu1  ;;  %v937_v40 = vsel %vm921_vm2, %v918_v34, 0.0 }
 0x466   :  { %v796_v31 = vadd.f32 %v8177_v43, %v795_v26  ;;  %v905_v32 = vadd.f32 %v8186_v44, %v904_v27  ;;  %10133 = vmatprep.subr.bf16.mxu1 %v10946_v18  ;;  %v934_v33 = vsel %vm921_vm2, %v917_v23, 0.0  ;;  %14000 = vst [vmem:[#allocation14_spill] sm:$0xff] %v10988_v2 }
 0x467   :  { %10135 = vmatpush3.bf16.msra.mxu1 %v10946_v18  ;;  %932 = vadd.xlane.f32.xlu1 %v931_v29  ;;  %v920_v44 = vmul.f32 %v801_v24, %v801_v24 }
 0x468   :  { %v10118_v35 = vpack.c.bf16 %v801_v24, %v796_v31  ;;  %v10952_v37 = vpack.c.bf16 %v910_v25, %v905_v32  ;;  %10111 = vmatpush3.bf16.xpose.msk.msra.mxu0 %vm10911_vm3, %v10106_v3  ;;  %935 = vadd.xlane.f32.xlu0 %v934_v33  ;;  %v919_v39 = vmul.f32 %v796_v31, %v796_v31 }
 0x469   :  { %10114 = vmatprep.subr.msk.bf16.mxu0 %vm10911_vm3, %v10112_v17  ;;  %v943_v45 = vsel %vm921_vm2, %v920_v44, 0.0 }
 0x46a   :  { %10137 = vmatprep.subr.bf16.mxu1 %v10952_v37  ;;  %v940_v43 = vsel %vm921_vm2, %v919_v39, 0.0 }
 0x46b   :  { %10139 = vmatpush3.bf16.msra.mxu1 %v10952_v37  ;;  %938 = vadd.xlane.f32.xlu1 %v937_v40 }
 0x46c   :  { %941 = vadd.xlane.f32.xlu0 %v940_v43  ;;  %10141 = vmatprep.subr.bf16.mxu1 %v10916_v55 }
 0x46f   :  { %944 = vadd.xlane.f32.xlu1 %v943_v45 }
 0x470   :  { %10117 = vmatpush3.bf16.xpose.msk.msra.mxu0 %vm10911_vm3, %v10112_v17 }
 0x471   :  { %10120 = vmatprep.subr.msk.bf16.mxu0 %vm10911_vm3, %v10118_v35 }
 0x478   :  { %10123 = vmatpush3.bf16.xpose.msk.msra.mxu0 %vm10911_vm3, %v10118_v35 }
 0x479   :  { %10157 = vmatprep.subr.bf16.mxu0 %v10916_v55 }
 0x47f   :  { %9263 = vmatmul.mubr.msk.f32.vlgmr.msra.gmra.mrb[24].mxu0 %vm921_vm2, %v10907_v47 }
 0x480   :  { %9265 = vmatprep.mubr.msk.f32.mxu0 %vm921_vm2, %v10921_v63  ;;  %10159 = vmatpush3.bf16.msra.mxu0 %v10916_v55 }
 0x481   :  { %10161 = vmatprep.subr.bf16.mxu0 %v10934_v4 }
 0x483   :  { %9266 = vmatmul.mubr.msk.f32.gmra.mrb[26].mxu0 %vm921_vm2, %v10919_v59 }
 0x484   :  { %9268 = vmatprep.mubr.msk.f32.mxu0 %vm921_vm2, %v786_v13  ;;  %10163 = vmatpush3.bf16.msra.mxu0 %v10934_v4 }
 0x485   :  { %10165 = vmatprep.subr.bf16.mxu0 %v10946_v18 }
 0x487   :  { %9269 = vmatmul.mubr.msk.f32.gmra.mrb[28].mxu0 %vm921_vm2, %v791_v8 }
 0x488   :  { %9271 = vmatprep.mubr.msk.f32.mxu0 %vm921_vm2, %v796_v31  ;;  %10167 = vmatpush3.bf16.msra.mxu0 %v10946_v18 }
 0x489   :  { %10169 = vmatprep.subr.bf16.mxu0 %v10952_v37 }
 0x48b   :  { %9272 = vmatmul.mubr.msk.f32.gmra.mrb[30].mxu0 %vm921_vm2, %v801_v24 }
 0x48c   :  { %10171 = vmatpush3.bf16.msra.mxu0 %v10952_v37 }
 0x4ed   :  { %v924_v46 = vpop.xlane.xlu0 %923 }
 0x4ee   :  { %1075 = vxpose.xlu0.b32.start [1/8] (short) (narrow) %v924_v46, 8 }
 0x4f0   :  { %v930_v48 = vpop.xlane.xlu1 %929 }
 0x4f1   :  { %v927_v47 = vpop.xlane.xlu0 %926 }
 0x4f2   :  { %1076 = vxpose.xlu0.b32.cont [2/8] (short) (narrow) %v927_v47, 8 }
 0x4f4   :  { %v933_v49 = vpop.xlane.xlu1 %932 }
 0x4f5   :  { %v936_v50 = vpop.xlane.xlu0 %935 }
 0x4f6   :  { %1077 = vxpose.xlu0.b32.cont [3/8] (short) (narrow) %v930_v48, 8 }
 0x4f8   :  { %v939_v51 = vpop.xlane.xlu1 %938 }
 0x4f9   :  { %v942_v52 = vpop.xlane.xlu0 %941 }
 0x4fa   :  { %1078 = vxpose.xlu0.b32.cont [4/8] (short) (narrow) %v933_v49, 8 }
 0x4fc   :  { %v945_v54 = vpop.xlane.xlu1 %944 }
 0x4fe   :  { %1079 = vxpose.xlu0.b32.cont [5/8] (short) (narrow) %v936_v50, 8 }
 0x502   :  { %1080 = vxpose.xlu0.b32.cont [6/8] (short) (narrow) %v939_v51, 8 }
 0x506   :  { %1081 = vxpose.xlu0.b32.cont [7/8] (short) (narrow) %v942_v52, 8 }
 0x50a   :  { %1082 = vxpose.xlu0.b32.end [8/8] (short) (narrow) %v945_v54, 8 }
 0x552   :  { %v9264_v56 = vpop.f32.mrb[24].mxu0 }
 0x553   :  { %v1036_v57 = vpop.f32.mrb[25].mxu0  ;;  %v1120_v6 = vmul.f32 2.0, %v9264_v56 }
 0x554   :  { %v1119_v7 = vmul.f32 2.0, %v1036_v57 }
 0x556   :  { %v9267_v58 = vpop.f32.mrb[26].mxu0 }
 0x557   :  { %v1046_v59 = vpop.f32.mrb[27].mxu0  ;;  %v1122_v13 = vmul.f32 2.0, %v9267_v58 }
 0x558   :  { %v1121_v21 = vmul.f32 2.0, %v1046_v59 }
 0x55a   :  { %v9270_v60 = vpop.f32.mrb[28].mxu0 }
 0x55b   :  { %v1056_v61 = vpop.f32.mrb[29].mxu0  ;;  %v1124_v27 = vmul.f32 2.0, %v9270_v60 }
 0x55c   :  { %v1123_v34 = vmul.f32 2.0, %v1056_v61 }
 0x55e   :  { %v9273_v62 = vpop.f32.mrb[30].mxu0 }
 0x55f   :  { %v1066_v63 = vpop.f32.mrb[31].mxu0 }
 0x560   :  { %v1125_v44 = vmul.f32 2.0, %v1066_v63 }
 0x56e   :  { %v1091_v3 = vpop.trf.xlu0 }
 0x56f   :  { %v1110_v5 = vrot.slane %v1091_v3, %v10988_v2 }
 0x571   :  { %v1112_v8 = vadd.f32 %v1110_v5, %v927_v47  ;;  %v1111_v9 = vadd.f32 %v1110_v5, %v924_v46  ;;  %v1114_v12 = vadd.f32 %v1110_v5, %v933_v49  ;;  %v1113_v19 = vadd.f32 %v1110_v5, %v930_v48 }
 0x572   :  { %v1116_v26 = vadd.f32 %v1110_v5, %v939_v51  ;;  %v1115_v33 = vadd.f32 %v1110_v5, %v936_v50  ;;  %v1117_v43 = vadd.f32 %v1110_v5, %v942_v52  ;;  %v1118_v48 = vadd.f32 %v1110_v5, %v945_v54 }
 0x573   :  { %v1128_v10 = vsub.f32 %v1112_v8, %v1120_v6  ;;  %v1127_v11 = vsub.f32 %v1111_v9, %v1119_v7  ;;  %v1130_v17 = vsub.f32 %v1114_v12, %v1122_v13  ;;  %v1129_v25 = vsub.f32 %v1113_v19, %v1121_v21 }
 0x574   :  { %v1132_v32 = vsub.f32 %v1116_v26, %v1124_v27  ;;  %v1131_v40 = vsub.f32 %v1115_v33, %v1123_v34  ;;  %v1133_v47 = vsub.f32 %v1117_v43, %v1125_v44  ;;  %v1126_v49 = vmul.f32 2.0, %v9273_v62 }
 0x575   :  { %v10991_v14 = vmax.f32 %v1128_v10, 0.0  ;;  %v10995_v16 = vmax.f32 %v1127_v11, 0.0  ;;  %v10999_v24 = vmax.f32 %v1130_v17, 0.0  ;;  %v11003_v31 = vmax.f32 %v1129_v25, 0.0 }
 0x576   :  { %v11007_v39 = vmax.f32 %v1132_v32, 0.0  ;;  %v11011_v46 = vmax.f32 %v1131_v40, 0.0  ;;  %v11015_v51 = vmax.f32 %v1133_v47, 0.0  ;;  %v1134_v56 = vsub.f32 %v1118_v48, %v1126_v49 }
 0x577   :  { %v1149_v15 = vsel %vm1145_vm4, %v10991_v14, inf  ;;  %v1146_v23 = vsel %vm1145_vm4, %v10995_v16, inf  ;;  %v1155_v29 = vsel %vm1145_vm4, %v10999_v24, inf  ;;  %v1152_v35 = vsel %vm1145_vm4, %v11003_v31, inf }
 0x578   :  { %1150 = vmin.xlane.f32.xlu1 %v1149_v15  ;;  %v1161_v45 = vsel %vm1145_vm4, %v11007_v39, inf  ;;  %v1158_v50 = vsel %vm1145_vm4, %v11011_v46, inf  ;;  %v1164_v52 = vsel %vm1145_vm4, %v11015_v51, inf  ;;  %v11019_v57 = vmax.f32 %v1134_v56, 0.0 }
 0x579   :  { %v11023_v54 = vand.u32 127, %v1107_v0 }
 0x57a   :  { %v1167_v58 = vsel %vm1145_vm4, %v11019_v57, inf }
 0x57c   :  { %1147 = vmin.xlane.f32.xlu1 %v1146_v23 }
 0x580   :  { %1156 = vmin.xlane.f32.xlu1 %v1155_v29 }
 0x584   :  { %1153 = vmin.xlane.f32.xlu1 %v1152_v35 }
 0x588   :  { %1162 = vmin.xlane.f32.xlu1 %v1161_v45 }
 0x58c   :  { %1159 = vmin.xlane.f32.xlu1 %v1158_v50 }
 0x590   :  { %1165 = vmin.xlane.f32.xlu1 %v1164_v52 }
 0x594   :  { %1168 = vmin.xlane.f32.xlu1 %v1167_v58 }
 0x605   :  { %v11025_v59 = vpop.xlane.xlu1 %1150 }
 0x606   :  { %vm1171_vm5 = vcmp.eq.f32.partialorder %v10991_v14, %v11025_v59 }
 0x607   :  { %v1179_v60 = vsel %vm1171_vm5, %v11023_v54, 64 }
 0x608   :  { %v1201_v61 = vsel %vm1145_vm4, %v1179_v60, 2147483647 }
 0x609   :  { %v11034_v62 = vpop.xlane.xlu1 %1147  ;;  %v1203_v63 = vshra.s32 %v1201_v61, 16  ;;  %v1202_v58 = vand.u32 65535, %v1201_v61 }
 0x60a   :  { %vm1170_vm6 = vcmp.eq.f32.partialorder %v10995_v16, %v11034_v62 }
 0x60b   :  { %v1205_v0 = vcvt.s32.f32 %v1203_v63  ;;  %v1178_v1 = vsel %vm1170_vm6, %v11023_v54, 64  ;;  %v1204_v63 = vcvt.s32.f32 %v1202_v58 }
 0x60c   :  { %v1186_v3 = vsel %vm1145_vm4, %v1178_v1, 2147483647 }
 0x60d   :  { %1206 = vmin.xlane.f32.xlu1 %v1205_v0  ;;  %v11043_v5 = vpop.xlane.xlu1 %1156  ;;  %v1188_v6 = vshra.s32 %v1186_v3, 16  ;;  %v1187_v1 = vand.u32 65535, %v1186_v3 }
 0x60e   :  { %vm1173_vm7 = vcmp.eq.f32.partialorder %v10999_v24, %v11043_v5 }
 0x60f   :  { %v1190_v7 = vcvt.s32.f32 %v1188_v6  ;;  %v1181_v8 = vsel %vm1173_vm7, %v11023_v54, 64 }
 0x610   :  { %v1231_v9 = vsel %vm1145_vm4, %v1181_v8, 2147483647 }
 0x611   :  { %1191 = vmin.xlane.f32.xlu1 %v1190_v7  ;;  %v11052_v10 = vpop.xlane.xlu1 %1153  ;;  %v1233_v11 = vshra.s32 %v1231_v9, 16 }
 0x612   :  { %vm1172_vm8 = vcmp.eq.f32.partialorder %v11003_v31, %v11052_v10 }
 0x613   :  { %v1235_v12 = vcvt.s32.f32 %v1233_v11  ;;  %v1180_v13 = vsel %vm1172_vm8, %v11023_v54, 64  ;;  %v1189_v11 = vcvt.s32.f32 %v1187_v1 }
 0x614   :  { %v1216_v15 = vsel %vm1145_vm4, %v1180_v13, 2147483647  ;;  %v1232_v13 = vand.u32 65535, %v1231_v9 }
 0x615   :  { %1236 = vmin.xlane.f32.xlu1 %v1235_v12  ;;  %v11061_v17 = vpop.xlane.xlu1 %1162  ;;  %v1218_v19 = vshra.s32 %v1216_v15, 16 }
 0x616   :  { %vm1175_vm9 = vcmp.eq.f32.partialorder %v11007_v39, %v11061_v17 }
 0x617   :  { %v1220_v21 = vcvt.s32.f32 %v1218_v19  ;;  %v1183_v23 = vsel %vm1175_vm9, %v11023_v54, 64 }
 0x618   :  { %v1261_v25 = vsel %vm1145_vm4, %v1183_v23, 2147483647 }
 0x619   :  { %1221 = vmin.xlane.f32.xlu1 %v1220_v21  ;;  %v11070_v26 = vpop.xlane.xlu1 %1159  ;;  %v1263_v27 = vshra.s32 %v1261_v25, 16 }
 0x61a   :  { %vm1174_vm10 = vcmp.eq.f32.partialorder %v11011_v46, %v11070_v26 }
 0x61b   :  { %v1265_v29 = vcvt.s32.f32 %v1263_v27  ;;  %v1182_v32 = vsel %vm1174_vm10, %v11023_v54, 64  ;;  %v1234_v27 = vcvt.s32.f32 %v1232_v13 }
 0x61c   :  { %v1246_v33 = vsel %vm1145_vm4, %v1182_v32, 2147483647  ;;  %v1217_v32 = vand.u32 65535, %v1216_v15 }
 0x61d   :  { %1266 = vmin.xlane.f32.xlu1 %v1265_v29  ;;  %v11079_v34 = vpop.xlane.xlu1 %1165  ;;  %v1248_v35 = vshra.s32 %v1246_v33, 16 }
 0x61e   :  { %vm1176_vm11 = vcmp.eq.f32.partialorder %v11015_v51, %v11079_v34  ;;  %v1219_v61 = vcvt.s32.f32 %v1217_v32 }
 0x61f   :  { %v1250_v40 = vcvt.s32.f32 %v1248_v35  ;;  %v1184_v43 = vsel %vm1176_vm11, %v11023_v54, 64 }
 0x620   :  { %v1276_v44 = vsel %vm1145_vm4, %v1184_v43, 2147483647 }
 0x621   :  { %1251 = vmin.xlane.f32.xlu1 %v1250_v40  ;;  %v11088_v45 = vpop.xlane.xlu1 %1168  ;;  %v1278_v47 = vshra.s32 %v1276_v44, 16 }
 0x622   :  { %vm1177_vm12 = vcmp.eq.f32.partialorder %v11019_v57, %v11088_v45 }
 0x623   :  { %v1280_v48 = vcvt.s32.f32 %v1278_v47  ;;  %v1185_v49 = vsel %vm1177_vm12, %v11023_v54, 64  ;;  %v1262_v47 = vand.u32 65535, %v1261_v25 }
 0x624   :  { %v1291_v50 = vsel %vm1145_vm4, %v1185_v49, 2147483647 }
 0x625   :  { %1281 = vmin.xlane.f32.xlu1 %v1280_v48  ;;  %v1293_v56 = vshra.s32 %v1291_v50, 16  ;;  %v1264_v49 = vcvt.s32.f32 %v1262_v47 }
 0x627   :  { %v1295_v52 = vcvt.s32.f32 %v1293_v56  ;;  %v1247_v56 = vand.u32 65535, %v1246_v33 }
 0x629   :  { %1296 = vmin.xlane.f32.xlu1 %v1295_v52  ;;  %v1249_v15 = vcvt.s32.f32 %v1247_v56  ;;  %v13938_v56 = vmov 0.0  }
 0x69a   :  { %v1207_v60 = vpop.xlane.xlu1 %1206 }
 0x69b   :  { %vm1208_vm13 = vcmp.eq.f32.partialorder %v1205_v0, %v1207_v60 }
 0x69c   :  { %v1209_v6 = vsel %vm1208_vm13, %v1204_v63, inf  ;;  %v1292_v63 = vand.u32 65535, %v1291_v50 }
 0x69d   :  { %1210 = vmin.xlane.f32.xlu1 %v1209_v6 }
 0x69e   :  { %v1192_v8 = vpop.xlane.xlu1 %1191 }
 0x69f   :  { %vm1193_vm14 = vcmp.eq.f32.partialorder %v1190_v7, %v1192_v8  ;;  %v1198_v13 = vcvt.f32.s32 %v1192_v8 }
 0x6a0   :  { %v1194_v19 = vsel %vm1193_vm14, %v1189_v11, inf }
 0x6a1   :  { %1195 = vmin.xlane.f32.xlu1 %v1194_v19  ;;  %v1199_v50 = vshll.u32 %v1198_v13, 16 }
 0x6a2   :  { %v1237_v23 = vpop.xlane.xlu1 %1236 }
 0x6a3   :  { %vm1238_vm15 = vcmp.eq.f32.partialorder %v1235_v12, %v1237_v23  ;;  %v1277_v12 = vand.u32 65535, %v1276_v44  ;;  %v1213_v44 = vcvt.f32.s32 %v1207_v60  ;;  %v1243_v32 = vcvt.f32.s32 %v1237_v23 }
 0x6a4   :  { %v1239_v35 = vsel %vm1238_vm15, %v1234_v27, inf }
 0x6a5   :  { %1240 = vmin.xlane.f32.xlu0 %v1239_v35  ;;  %v1244_v60 = vshll.u32 %v1243_v32, 16 }
 0x6a6   :  { %v1222_v43 = vpop.xlane.xlu1 %1221 }
 0x6a7   :  { %vm1223_vm0 = vcmp.eq.f32.partialorder %v1220_v21, %v1222_v43  ;;  %v1279_v21 = vcvt.s32.f32 %v1277_v12 }
 0x6a8   :  { %v1224_v3 = vsel %vm1223_vm0, %v1219_v61, inf }
 0x6a9   :  { %1225 = vmin.xlane.f32.xlu1 %v1224_v3  ;;  %v1228_v3 = vcvt.f32.s32 %v1222_v43 }
 0x6aa   :  { %v11097_v0 = vpop.xlane.xlu1 %1266 }
 0x6ab   :  { %vm1268_vm13 = vcmp.eq.f32.partialorder %v1265_v29, %v11097_v0  ;;  %v1294_v29 = vcvt.s32.f32 %v1292_v63 }
 0x6ac   :  { %v1269_v7 = vsel %vm1268_vm13, %v1264_v49, inf }
 0x6ad   :  { %1270 = vmin.xlane.f32.xlu1 %v1269_v7 }
 0x6ae   :  { %v11100_v9 = vpop.xlane.xlu1 %1251 }
 0x6af   :  { %vm1253_vm14 = vcmp.eq.f32.partialorder %v1250_v40, %v11100_v9  ;;  %v1214_v40 = vshll.u32 %v1213_v44, 16  ;;  %v1258_v44 = vcvt.f32.s32 %v11100_v9 }
 0x6b0   :  { %v1254_v58 = vsel %vm1253_vm14, %v1249_v15, inf }
 0x6b1   :  { %1255 = vmin.xlane.f32.xlu1 %v1254_v58  ;;  %v1229_v58 = vshll.u32 %v1228_v3, 16 }
 0x6b2   :  { %v11103_v25 = vpop.xlane.xlu1 %1281 }
 0x6b3   :  { %vm1283_vm0 = vcmp.eq.f32.partialorder %v1280_v48, %v11103_v25  ;;  %v1288_v32 = vcvt.f32.s32 %v11103_v25 }
 0x6b4   :  { %v1284_v1 = vsel %vm1283_vm0, %v1279_v21, inf  ;;  %v1273_v21 = vcvt.f32.s32 %v11097_v0 }
 0x6b5   :  { %1285 = vmin.xlane.f32.xlu1 %v1284_v1 }
 0x6b6   :  { %v11106_v33 = vpop.xlane.xlu1 %1296 }
 0x6b7   :  { %vm1298_vm15 = vcmp.eq.f32.partialorder %v1295_v52, %v11106_v33 }
 0x6b8   :  { %v1299_v6 = vsel %vm1298_vm15, %v1294_v29, inf }
 0x6b9   :  { %1300 = vmin.xlane.f32.xlu1 %v1299_v6 }
 0x72a   :  { %v1211_v11 = vpop.xlane.xlu1 %1210 }
 0x72b   :  { %v1212_v19 = vcvt.f32.s32 %v1211_v11 }
 0x72d   :  { %v1215_v27 = vadd.s32 %v1214_v40, %v1212_v19 }
 0x72e   :  { %v1196_v35 = vpop.xlane.xlu1 %1195 }
 0x72f   :  { %v1197_v61 = vcvt.f32.s32 %v1196_v35  ;;  %vm1307_vm13 = vcmp.eq.s32.totalorder %v11023_v54, %v1215_v27  ;;  %v1259_v27 = vshll.u32 %v1258_v44, 16 }
 0x730   :  { %vm1315_vm14 = vmand %vm1171_vm5, %vm1307_vm13 }
 0x731   :  { %v1200_v48 = vadd.s32 %v1199_v50, %v1197_v61  ;;  %v11114_v52 = vsel %vm1315_vm14, inf, %v10991_v14  ;;  %v8212_v15 = vsel %vm1315_vm14, 1.0, %v13938_v56 }
 0x732   :  { %v1241_v47 = vpop.xlane.xlu0 %1240  ;;  %v1518_v8 = vsel %vm1145_vm4, %v11114_v52, inf }
 0x733   :  { %v1242_v23 = vcvt.f32.s32 %v1241_v47  ;;  %1519 = vmin.xlane.f32.xlu1 %v1518_v8  ;;  %vm1306_vm0 = vcmp.eq.s32.totalorder %v11023_v54, %v1200_v48 }
 0x734   :  { %vm1314_vm15 = vmand %vm1170_vm6, %vm1306_vm0 }
 0x735   :  { %v1245_v49 = vadd.s32 %v1244_v60, %v1242_v23  ;;  %v8211_v7 = vsel %vm1314_vm15, 1.0, %v13938_v56  ;;  %v11124_v14 = vsel %vm1314_vm15, inf, %v10995_v16  ;;  %v1303_v60 = vcvt.f32.s32 %v11106_v33 }
 0x736   :  { %9290 = vmatprep.mubr.msk.f32.mxu1 %vm1145_vm4, %v8211_v7  ;;  %v1226_v43 = vpop.xlane.xlu1 %1225  ;;  %v1515_v12 = vsel %vm1145_vm4, %v11124_v14, inf }
 0x737   :  { %v1227_v63 = vcvt.f32.s32 %v1226_v43  ;;  %1516 = vmin.xlane.f32.xlu1 %v1515_v12  ;;  %9291 = vmatmul.mubr.msk.f32.vlgmr.msra.gmra.mrb[24].mxu1 %vm1145_vm4, %v8212_v15  ;;  %vm1309_vm5 = vcmp.eq.s32.totalorder %v11023_v54, %v1245_v49  ;;  %v1304_v49 = vshll.u32 %v1303_v60, 16 }
 0x738   :  { %10143 = vmatpush3.bf16.msra.mxu1 %v10916_v55  ;;  %vm11137_vm6 = vmand %vm1173_vm7, %vm1309_vm5  ;;  %v1274_v55 = vshll.u32 %v1273_v21, 16 }
 0x739   :  { %v1230_v1 = vadd.s32 %v1229_v58, %v1227_v63  ;;  %10145 = vmatprep.subr.bf16.mxu1 %v10934_v4  ;;  %v11145_v0 = vsel %vm11137_vm6, inf, %v10999_v24 }
 0x73a   :  { %v1271_v29 = vpop.xlane.xlu1 %1270  ;;  %v1524_v6 = vsel %vm1145_vm4, %v11145_v0, inf }
 0x73b   :  { %v1272_v11 = vcvt.f32.s32 %v1271_v29  ;;  %1525 = vmin.xlane.f32.xlu1 %v1524_v6  ;;  %vm1308_vm7 = vcmp.eq.s32.totalorder %v11023_v54, %v1230_v1 }
 0x73c   :  { %10147 = vmatpush3.bf16.msra.mxu1 %v10934_v4  ;;  %vm1316_vm13 = vmand %vm1172_vm8, %vm1308_vm7  ;;  %v8214_v4 = vsel %vm11137_vm6, 1.0, %v13938_v56 }
 0x73d   :  { %v1275_v40 = vadd.s32 %v1274_v55, %v1272_v11  ;;  %10149 = vmatprep.subr.bf16.mxu1 %v10946_v18  ;;  %v8213_v24 = vsel %vm1316_vm13, 1.0, %v13938_v56  ;;  %v11158_v13 = vsel %vm1316_vm13, inf, %v11003_v31 }
 0x73e   :  { %9293 = vmatprep.mubr.msk.f32.mxu1 %vm1145_vm4, %v8213_v24  ;;  %v1256_v9 = vpop.xlane.xlu1 %1255  ;;  %v1521_v19 = vsel %vm1145_vm4, %v11158_v13, inf }
 0x73f   :  { %v1257_v35 = vcvt.f32.s32 %v1256_v9  ;;  %1522 = vmin.xlane.f32.xlu1 %v1521_v19  ;;  %9294 = vmatmul.mubr.msk.f32.gmra.mrb[26].mxu1 %vm1145_vm4, %v8214_v4  ;;  %vm1311_vm8 = vcmp.eq.s32.totalorder %v11023_v54, %v1275_v40 }
 0x740   :  { %10151 = vmatpush3.bf16.msra.mxu1 %v10946_v18  ;;  %vm11173_vm14 = vmand %vm1175_vm9, %vm1311_vm8  ;;  %v1289_v18 = vshll.u32 %v1288_v32, 16 }
 0x741   :  { %v1260_v50 = vadd.s32 %v1259_v27, %v1257_v35  ;;  %10153 = vmatprep.subr.bf16.mxu1 %v10952_v37  ;;  %v11181_v25 = vsel %vm11173_vm14, inf, %v11007_v39 }
 0x742   :  { %v1286_v61 = vpop.xlane.xlu1 %1285  ;;  %v1530_v48 = vsel %vm1145_vm4, %v11181_v25, inf }
 0x743   :  { %v1287_v47 = vcvt.f32.s32 %v1286_v61  ;;  %1531 = vmin.xlane.f32.xlu1 %v1530_v48  ;;  %vm1310_vm9 = vcmp.eq.s32.totalorder %v11023_v54, %v1260_v50 }
 0x744   :  { %10155 = vmatpush3.bf16.msra.mxu1 %v10952_v37  ;;  %vm1318_vm0 = vmand %vm1174_vm10, %vm1310_vm9  ;;  %v8216_v37 = vsel %vm11173_vm14, 1.0, %v13938_v56 }
 0x745   :  { %v1290_v8 = vadd.s32 %v1289_v18, %v1287_v47  ;;  %v8215_v39 = vsel %vm1318_vm0, 1.0, %v13938_v56  ;;  %v11193_v3 = vsel %vm1318_vm0, inf, %v11011_v46 }
 0x746   :  { %9296 = vmatprep.mubr.msk.f32.mxu1 %vm1145_vm4, %v8215_v39  ;;  %v1301_v23 = vpop.xlane.xlu1 %1300  ;;  %v1527_v33 = vsel %vm1145_vm4, %v11193_v3, inf }
 0x747   :  { %v1302_v7 = vcvt.f32.s32 %v1301_v23  ;;  %1528 = vmin.xlane.f32.xlu1 %v1527_v33  ;;  %9297 = vmatmul.mubr.msk.f32.gmra.mrb[28].mxu1 %vm1145_vm4, %v8216_v37  ;;  %vm1312_vm10 = vcmp.eq.s32.totalorder %v11023_v54, %v1290_v8 }
 0x748   :  { %vm1320_vm15 = vmand %vm1176_vm11, %vm1312_vm10 }
 0x749   :  { %v1305_v46 = vadd.s32 %v1304_v49, %v1302_v7  ;;  %v8217_v15 = vsel %vm1320_vm15, 1.0, %v13938_v56  ;;  %v11208_v43 = vsel %vm1320_vm15, inf, %v11015_v51 }
 0x74a   :  { %9299 = vmatprep.mubr.msk.f32.mxu1 %vm1145_vm4, %v8217_v15  ;;  %v1533_v12 = vsel %vm1145_vm4, %v11208_v43, inf }
 0x74b   :  { %1534 = vmin.xlane.f32.xlu1 %v1533_v12  ;;  %vm1313_vm5 = vcmp.eq.s32.totalorder %v11023_v54, %v1305_v46 }
 0x74c   :  { %vm1321_vm6 = vmand %vm1177_vm12, %vm1313_vm5 }
 0x74d   :  { %v8218_v58 = vsel %vm1321_vm6, 1.0, %v13938_v56  ;;  %v11219_v21 = vsel %vm1321_vm6, inf, %v11019_v57 }
 0x74e   :  { %9300 = vmatmul.mubr.msk.f32.gmra.mrb[30].mxu1 %vm1145_vm4, %v8218_v58  ;;  %v1536_v51 = vsel %vm1145_vm4, %v11219_v21, inf }
 0x74f   :  { %1537 = vmin.xlane.f32.xlu0 %v1536_v51 }
 0x7c0   :  { %v11224_v63 = vpop.xlane.xlu1 %1519 }
 0x7c1   :  { %vm1540_vm11 = vcmp.eq.f32.partialorder %v11114_v52, %v11224_v63 }
 0x7c2   :  { %v1548_v16 = vsel %vm1540_vm11, %v11023_v54, 64 }
 0x7c3   :  { %v11233_v1 = vsel %vm1145_vm4, %v1548_v16, 2147483647 }
 0x7c4   :  { %v11235_v57 = vpop.xlane.xlu1 %1516  ;;  %v1572_v29 = vshra.s32 %v11233_v1, 16 }
 0x7c5   :  { %vm1539_vm12 = vcmp.eq.f32.partialorder %v11124_v14, %v11235_v57  ;;  %v1836_v20 = vmul.f32 -10.0, %v11235_v57 }
 0x7c6   :  { %v11240_v6 = vcvt.s32.f32 %v1572_v29  ;;  %v1547_v55 = vsel %vm1539_vm12, %v11023_v54, 64 }
 0x7c7   :  { %v11247_v44 = vsel %vm1145_vm4, %v1547_v55, 2147483647 }
 0x7c8   :  { %1575 = vmin.xlane.f32.xlu0 %v11240_v6  ;;  %v11250_v11 = vpop.xlane.xlu1 %1525  ;;  %v1557_v40 = vshra.s32 %v11247_v44, 16 }
 0x7c9   :  { %vm1542_vm7 = vcmp.eq.f32.partialorder %v11145_v0, %v11250_v11 }
 0x7ca   :  { %v1559_v24 = vcvt.s32.f32 %v1557_v40  ;;  %v1550_v9 = vsel %vm1542_vm7, %v11023_v54, 64 }
 0x7cb   :  { %v1600_v19 = vsel %vm1145_vm4, %v1550_v9, 2147483647 }
 0x7cc   :  { %1560 = vmin.xlane.f32.xlu1 %v1559_v24  ;;  %v11260_v4 = vpop.xlane.xlu1 %1522  ;;  %v1602_v27 = vshra.s32 %v1600_v19, 16  ;;  %v1601_v42 = vand.u32 65535, %v1600_v19 }
 0x7cd   :  { %vm1541_vm13 = vcmp.eq.f32.partialorder %v11158_v13, %v11260_v4 }
 0x7ce   :  { %v1604_v32 = vcvt.s32.f32 %v1602_v27  ;;  %v1549_v35 = vsel %vm1541_vm13, %v11023_v54, 64  ;;  %v1603_v36 = vcvt.s32.f32 %v1601_v42 }
 0x7cf   :  { %v1585_v31 = vsel %vm1145_vm4, %v1549_v35, 2147483647 }
 0x7d0   :  { %1605 = vmin.xlane.f32.xlu0 %v1604_v32  ;;  %v11269_v50 = vpop.xlane.xlu1 %1531  ;;  %v1587_v61 = vshra.s32 %v1585_v31, 16  ;;  %v1586_v30 = vand.u32 65535, %v1585_v31 }
 0x7d1   :  { %vm1544_vm8 = vcmp.eq.f32.partialorder %v11181_v25, %v11269_v50 }
 0x7d2   :  { %v1589_v48 = vcvt.s32.f32 %v1587_v61  ;;  %v1552_v18 = vsel %vm1544_vm8, %v11023_v54, 64 }
 0x7d3   :  { %v1630_v60 = vsel %vm1145_vm4, %v1552_v18, 2147483647 }
 0x7d4   :  { %1590 = vmin.xlane.f32.xlu1 %v1589_v48  ;;  %v11278_v47 = vpop.xlane.xlu1 %1528  ;;  %v1632_v8 = vshra.s32 %v1630_v60, 16  ;;  %v1631_v22 = vand.u32 65535, %v1630_v60 }
 0x7d5   :  { %vm1543_vm14 = vcmp.eq.f32.partialorder %v11193_v3, %v11278_v47 }
 0x7d6   :  { %v1634_v39 = vcvt.s32.f32 %v1632_v8  ;;  %v1551_v23 = vsel %vm1543_vm14, %v11023_v54, 64 }
 0x7d7   :  { %v1615_v33 = vsel %vm1145_vm4, %v1551_v23, 2147483647 }
 0x7d8   :  { %1635 = vmin.xlane.f32.xlu0 %v1634_v39  ;;  %v11287_v37 = vpop.xlane.xlu1 %1534  ;;  %v1617_v49 = vshra.s32 %v1615_v33, 16 }
 0x7d9   :  { %vm1545_vm9 = vcmp.eq.f32.partialorder %v11208_v43, %v11287_v37 }
 0x7da   :  { %v1619_v7 = vcvt.s32.f32 %v1617_v49  ;;  %v1553_v46 = vsel %vm1545_vm9, %v11023_v54, 64 }
 0x7db   :  { %v1645_v15 = vsel %vm1145_vm4, %v1553_v46, 2147483647  ;;  %v1571_v46 = vand.u32 65535, %v11233_v1 }
 0x7dc   :  { %v11296_v12 = vpop.xlane.xlu0 %1537  ;;  %1620 = vmin.xlane.f32.xlu1 %v1619_v7  ;;  %v1647_v58 = vshra.s32 %v1645_v15, 16 }
 0x7dd   :  { %vm1546_vm0 = vcmp.eq.f32.partialorder %v11219_v21, %v11296_v12 }
 0x7de   :  { %v1649_v51 = vcvt.s32.f32 %v1647_v58  ;;  %v1554_v16 = vsel %vm1546_vm0, %v11023_v54, 64 }
 0x7df   :  { %v1660_v29 = vsel %vm1145_vm4, %v1554_v16, 2147483647  ;;  %v1573_v16 = vcvt.s32.f32 %v1571_v46  ;;  %v1588_v46 = vcvt.s32.f32 %v1586_v30 }
 0x7e0   :  { %1650 = vmin.xlane.f32.xlu1 %v1649_v51  ;;  %v1662_v55 = vshra.s32 %v1660_v29, 16  ;;  %v1661_v19 = vand.u32 65535, %v1660_v29 }
 0x7e2   :  { %v1664_v40 = vcvt.s32.f32 %v1662_v55  ;;  %v1556_v55 = vand.u32 65535, %v11247_v44  ;;  %v1663_v31 = vcvt.s32.f32 %v1661_v19 }
 0x7e4   :  { %1665 = vmin.xlane.f32.xlu0 %v1664_v40  ;;  %v1558_v53 = vcvt.s32.f32 %v1556_v55 }
 0x80a   :  { %v11305_v9 = vpop.f32.mrb[24].mxu1 }
 0x80b   :  { %v11307_v27 = vpop.f32.mrb[25].mxu1 }
 0x812   :  { %v11309_v35 = vpop.f32.mrb[26].mxu1 }
 0x813   :  { %v11311_v61 = vpop.f32.mrb[27].mxu1 }
 0x81a   :  { %v11313_v18 = vpop.f32.mrb[28].mxu1 }
 0x81b   :  { %v11315_v8 = vpop.f32.mrb[29].mxu1 }
 0x821   :  { %v11317_v23 = vpop.f32.mrb[30].mxu1 }
 0x822   :  { %v11319_v49 = vpop.f32.mrb[31].mxu1 }
 0x855   :  { %v1576_v58 = vpop.xlane.xlu0 %1575 }
 0x856   :  { %vm1577_vm10 = vcmp.eq.f32.partialorder %v11240_v6, %v1576_v58  ;;  %v1582_v60 = vcvt.f32.s32 %v1576_v58 }
 0x857   :  { %v1578_v56 = vsel %vm1577_vm10, %v1573_v16, inf  ;;  %v1616_v16 = vand.u32 65535, %v1615_v33 }
 0x858   :  { %1579 = vmin.xlane.f32.xlu0 %v1578_v56  ;;  %v1633_v56 = vcvt.s32.f32 %v1631_v22  ;;  %v1583_v33 = vshll.u32 %v1582_v60, 16 }
 0x859   :  { %v1561_v2 = vpop.xlane.xlu1 %1560  ;;  %v1618_v42 = vcvt.s32.f32 %v1616_v16 }
 0x85a   :  { %vm1562_vm15 = vcmp.eq.f32.partialorder %v1559_v24, %v1561_v2  ;;  %v1646_v24 = vand.u32 65535, %v1645_v15 }
 0x85b   :  { %v1563_v41 = vsel %vm1562_vm15, %v1558_v53, inf }
 0x85c   :  { %1564 = vmin.xlane.f32.xlu1 %v1563_v41 }
 0x85d   :  { %v1606_v38 = vpop.xlane.xlu0 %1605 }
 0x85e   :  { %vm1607_vm5 = vcmp.eq.f32.partialorder %v1604_v32, %v1606_v38  ;;  %v1612_v29 = vcvt.f32.s32 %v1606_v38 }
 0x85f   :  { %v1608_v28 = vsel %vm1607_vm5, %v1603_v36, inf  ;;  %v1648_v36 = vcvt.s32.f32 %v1646_v24  ;;  %v14005_v24 = vmov 0.0  }
 0x860   :  { %1609 = vmin.xlane.f32.xlu0 %v1608_v28  ;;  %v1613_v16 = vshll.u32 %v1612_v29, 16 }
 0x861   :  { %v1591_v1 = vpop.xlane.xlu1 %1590 }
 0x862   :  { %vm1592_vm6 = vcmp.eq.f32.partialorder %v1589_v48, %v1591_v1 }
 0x863   :  { %v1593_v44 = vsel %vm1592_vm6, %v1588_v46, inf }
 0x864   :  { %1594 = vmin.xlane.f32.xlu1 %v1593_v44 }
 0x865   :  { %v11324_v6 = vpop.xlane.xlu0 %1635 }
 0x866   :  { %vm1637_vm10 = vcmp.eq.f32.partialorder %v1634_v39, %v11324_v6 }
 0x867   :  { %v1638_v53 = vsel %vm1637_vm10, %v1633_v56, inf }
 0x868   :  { %1639 = vmin.xlane.f32.xlu0 %v1638_v53  ;;  %v1597_v53 = vcvt.f32.s32 %v1591_v1 }
 0x869   :  { %v11327_v41 = vpop.xlane.xlu1 %1620 }
 0x86a   :  { %vm1622_vm15 = vcmp.eq.f32.partialorder %v1619_v7, %v11327_v41  ;;  %v1567_v7 = vcvt.f32.s32 %v1561_v2 }
 0x86b   :  { %v1623_v28 = vsel %vm1622_vm15, %v1618_v42, inf }
 0x86c   :  { %1624 = vmin.xlane.f32.xlu1 %v1623_v28  ;;  %v1568_v44 = vshll.u32 %v1567_v7, 16 }
 0x86d   :  { %v11330_v30 = vpop.xlane.xlu1 %1650 }
 0x86e   :  { %vm1652_vm5 = vcmp.eq.f32.partialorder %v1649_v51, %v11330_v30 }
 0x86f   :  { %v1653_v22 = vsel %vm1652_vm5, %v1648_v36, inf }
 0x870   :  { %1654 = vmin.xlane.f32.xlu1 %v1653_v22  ;;  %v1598_v22 = vshll.u32 %v1597_v53, 16 }
 0x871   :  { %v11333_v32 = vpop.xlane.xlu0 %1665 }
 0x872   :  { %vm1667_vm6 = vcmp.eq.f32.partialorder %v1664_v40, %v11333_v32 }
 0x873   :  { %v1668_v48 = vsel %vm1667_vm6, %v1663_v31, inf  ;;  %v1642_v31 = vcvt.f32.s32 %v11324_v6 }
 0x874   :  { %1669 = vmin.xlane.f32.xlu0 %v1668_v48 }
 0x875   :  { %v1643_v7 = vshll.u32 %v1642_v31, 16 }
 0x8e5   :  { %v1580_v39 = vpop.xlane.xlu0 %1579 }
 0x8e6   :  { %v1581_v15 = vcvt.f32.s32 %v1580_v39 }
 0x8e8   :  { %v1584_v55 = vadd.s32 %v1583_v33, %v1581_v15  ;;  %v1627_v15 = vcvt.f32.s32 %v11327_v41 }
 0x8e9   :  { %v1565_v46 = vpop.xlane.xlu1 %1564 }
 0x8ea   :  { %v1566_v56 = vcvt.f32.s32 %v1565_v46  ;;  %vm1676_vm10 = vcmp.eq.s32.totalorder %v11023_v54, %v1584_v55 }
 0x8eb   :  { %vm1684_vm15 = vmand %vm1540_vm11, %vm1676_vm10 }
 0x8ec   :  { %v1569_v51 = vadd.s32 %v1568_v44, %v1566_v56  ;;  %v11341_v40 = vsel %vm1684_vm15, inf, %v11114_v52  ;;  %v8228_v36 = vsel %vm1684_vm15, 1.0, %v14005_v24 }
 0x8ed   :  { %v1610_v58 = vpop.xlane.xlu0 %1609  ;;  %v1895_v2 = vsel %vm1145_vm4, %v11341_v40, inf }
 0x8ee   :  { %v1611_v42 = vcvt.f32.s32 %v1610_v58  ;;  %1896 = vmin.xlane.f32.xlu0 %v1895_v2  ;;  %vm1675_vm5 = vcmp.eq.s32.totalorder %v11023_v54, %v1569_v51  ;;  %v1628_v51 = vshll.u32 %v1627_v15, 16  ;;  %v1657_v58 = vcvt.f32.s32 %v11330_v30 }
 0x8ef   :  { %vm1683_vm6 = vmand %vm1539_vm12, %vm1675_vm5 }
 0x8f0   :  { %v1614_v38 = vadd.s32 %v1613_v16, %v1611_v42  ;;  %v8227_v28 = vsel %vm1683_vm6, 1.0, %v14005_v24  ;;  %v11351_v52 = vsel %vm1683_vm6, inf, %v11124_v14 }
 0x8f1   :  { %9318 = vmatprep.mubr.msk.f32.mxu1 %vm1145_vm4, %v8227_v28  ;;  %v1595_v19 = vpop.xlane.xlu1 %1594  ;;  %v1892_v1 = vsel %vm1145_vm4, %v11351_v52, inf  ;;  %v1672_v28 = vcvt.f32.s32 %v11333_v32 }
 0x8f2   :  { %v1596_v48 = vcvt.f32.s32 %v1595_v19  ;;  %1893 = vmin.xlane.f32.xlu1 %v1892_v1  ;;  %9319 = vmatmul.mubr.msk.f32.vlgmr.msra.gmra.mrb[32].mxu1 %vm1145_vm4, %v8228_v36  ;;  %vm1678_vm11 = vcmp.eq.s32.totalorder %v11023_v54, %v1614_v38  ;;  %v1658_v38 = vshll.u32 %v1657_v58, 16 }
 0x8f3   :  { %vm11363_vm12 = vmand %vm1542_vm7, %vm1678_vm11 }
 0x8f4   :  { %v1599_v60 = vadd.s32 %v1598_v22, %v1596_v48  ;;  %v11370_v39 = vsel %vm11363_vm12, inf, %v11145_v0  ;;  %v8230_v56 = vsel %vm11363_vm12, 1.0, %v14005_v24  ;;  %v1673_v48 = vshll.u32 %v1672_v28, 16 }
 0x8f5   :  { %v1640_v6 = vpop.xlane.xlu0 %1639  ;;  %v1901_v33 = vsel %vm1145_vm4, %v11370_v39, inf }
 0x8f6   :  { %v1641_v55 = vcvt.f32.s32 %v1640_v6  ;;  %1902 = vmin.xlane.f32.xlu0 %v1901_v33  ;;  %vm1677_vm7 = vcmp.eq.s32.totalorder %v11023_v54, %v1599_v60 }
 0x8f7   :  { %vm1685_vm10 = vmand %vm1541_vm13, %vm1677_vm7 }
 0x8f8   :  { %v1644_v46 = vadd.s32 %v1643_v7, %v1641_v55  ;;  %v8229_v44 = vsel %vm1685_vm10, 1.0, %v14005_v24  ;;  %v11381_v0 = vsel %vm1685_vm10, inf, %v11158_v13 }
 0x8f9   :  { %9321 = vmatprep.mubr.msk.f32.mxu1 %vm1145_vm4, %v8229_v44  ;;  %v1625_v29 = vpop.xlane.xlu1 %1624  ;;  %v1898_v41 = vsel %vm1145_vm4, %v11381_v0, inf }
 0x8fa   :  { %v1626_v2 = vcvt.f32.s32 %v1625_v29  ;;  %1899 = vmin.xlane.f32.xlu1 %v1898_v41  ;;  %9322 = vmatmul.mubr.msk.f32.gmra.mrb[34].mxu1 %vm1145_vm4, %v8230_v56  ;;  %vm1680_vm13 = vcmp.eq.s32.totalorder %v11023_v54, %v1644_v46 }
 0x8fb   :  { %vm11395_vm15 = vmand %vm1544_vm8, %vm1680_vm13 }
 0x8fc   :  { %v1629_v16 = vadd.s32 %v1628_v51, %v1626_v2  ;;  %v11402_v53 = vsel %vm11395_vm15, inf, %v11181_v25  ;;  %v8232_v31 = vsel %vm11395_vm15, 1.0, %v14005_v24 }
 0x8fd   :  { %v1655_v30 = vpop.xlane.xlu1 %1654  ;;  %v1907_v42 = vsel %vm1145_vm4, %v11402_v53, inf }
 0x8fe   :  { %v1656_v36 = vcvt.f32.s32 %v1655_v30  ;;  %1908 = vmin.xlane.f32.xlu0 %v1907_v42  ;;  %vm1679_vm8 = vcmp.eq.s32.totalorder %v11023_v54, %v1629_v16 }
 0x8ff   :  { %vm1687_vm5 = vmand %vm1543_vm14, %vm1679_vm8 }
 0x900   :  { %v1659_v19 = vadd.s32 %v1658_v38, %v1656_v36  ;;  %v8231_v1 = vsel %vm1687_vm5, 1.0, %v14005_v24  ;;  %v11413_v25 = vsel %vm1687_vm5, inf, %v11193_v3 }
 0x901   :  { %14010 = vst [vmem:[#allocation15_spill] sm:$0xff] %v11413_v25  ;;  %v1670_v22 = vpop.xlane.xlu0 %1669  ;;  %9324 = vmatprep.mubr.msk.f32.mxu1 %vm1145_vm4, %v8231_v1  ;;  %v1904_v32 = vsel %vm1145_vm4, %v11413_v25, inf }
 0x902   :  { %v1671_v14 = vcvt.f32.s32 %v1670_v22  ;;  %1905 = vmin.xlane.f32.xlu1 %v1904_v32  ;;  %9325 = vmatmul.mubr.msk.f32.gmra.mrb[36].mxu1 %vm1145_vm4, %v8232_v31  ;;  %vm1681_vm14 = vcmp.eq.s32.totalorder %v11023_v54, %v1659_v19 }
 0x903   :  { %vm1689_vm6 = vmand %vm1545_vm9, %vm1681_vm14 }
 0x904   :  { %v1674_v3 = vadd.s32 %v1673_v48, %v1671_v14  ;;  %v8233_v60 = vsel %vm1689_vm6, 1.0, %v14005_v24  ;;  %v11428_v6 = vsel %vm1689_vm6, inf, %v11208_v43 }
 0x905   :  { %14011 = vst [vmem:[#allocation16_spill] sm:$0xff] %v11428_v6  ;;  %9327 = vmatprep.mubr.msk.f32.mxu1 %vm1145_vm4, %v8233_v60  ;;  %v1910_v33 = vsel %vm1145_vm4, %v11428_v6, inf }
 0x906   :  { %1911 = vmin.xlane.f32.xlu1 %v1910_v33  ;;  %vm1682_vm11 = vcmp.eq.s32.totalorder %v11023_v54, %v1674_v3 }
 0x907   :  { %vm1690_vm12 = vmand %vm1546_vm0, %vm1682_vm11 }
 0x908   :  { %v8234_v7 = vsel %vm1690_vm12, 1.0, %v14005_v24  ;;  %v11439_v15 = vsel %vm1690_vm12, inf, %v11219_v21 }
 0x909   :  { %14012 = vst [vmem:[#allocation17_spill] sm:$0xff] %v11439_v15  ;;  %9328 = vmatmul.mubr.msk.f32.gmra.mrb[38].mxu1 %vm1145_vm4, %v8234_v7  ;;  %v1913_v43 = vsel %vm1145_vm4, %v11439_v15, inf }
 0x90a   :  { %1914 = vmin.xlane.f32.xlu0 %v1913_v43 }
 0x97b   :  { %v11444_v55 = vpop.xlane.xlu0 %1896 }
 0x97c   :  { %vm1917_vm9 = vcmp.eq.f32.partialorder %v11341_v40, %v11444_v55 }
 0x97d   :  { %v1925_v46 = vsel %vm1917_vm9, %v11023_v54, 64 }
 0x97e   :  { %v11453_v44 = vsel %vm1145_vm4, %v1925_v46, 2147483647 }
 0x97f   :  { %v11455_v21 = vpop.xlane.xlu1 %1893  ;;  %v1949_v29 = vshra.s32 %v11453_v44, 16 }
 0x980   :  { %vm1916_vm0 = vcmp.eq.f32.partialorder %v11351_v52, %v11455_v21 }
 0x981   :  { %v11460_v41 = vcvt.s32.f32 %v1949_v29  ;;  %v1924_v56 = vsel %vm1916_vm0, %v11023_v54, 64 }
 0x982   :  { %v11467_v51 = vsel %vm1145_vm4, %v1924_v56, 2147483647 }
 0x983   :  { %1952 = vmin.xlane.f32.xlu0 %v11460_v41  ;;  %v11470_v58 = vpop.xlane.xlu0 %1902  ;;  %v1934_v2 = vshra.s32 %v11467_v51, 16 }
 0x984   :  { %vm1919_vm7 = vcmp.eq.f32.partialorder %v11370_v39, %v11470_v58 }
 0x985   :  { %v11475_v13 = vcvt.s32.f32 %v1934_v2  ;;  %v1927_v16 = vsel %vm1919_vm7, %v11023_v54, 64 }
 0x986   :  { %v11482_v30 = vsel %vm1145_vm4, %v1927_v16, 2147483647 }
 0x987   :  { %1937 = vmin.xlane.f32.xlu1 %v11475_v13  ;;  %v11485_v42 = vpop.xlane.xlu1 %1899  ;;  %v1979_v38 = vshra.s32 %v11482_v30, 16 }
 0x988   :  { %vm1918_vm10 = vcmp.eq.f32.partialorder %v11381_v0, %v11485_v42 }
 0x989   :  { %v11490_v28 = vcvt.s32.f32 %v1979_v38  ;;  %v1926_v36 = vsel %vm1918_vm10, %v11023_v54, 64 }
 0x98a   :  { %v11497_v19 = vsel %vm1145_vm4, %v1926_v36, 2147483647 }
 0x98b   :  { %1982 = vmin.xlane.f32.xlu0 %v11490_v28  ;;  %v11500_v1 = vpop.xlane.xlu0 %1908  ;;  %v1964_v22 = vshra.s32 %v11497_v19, 16 }
 0x98c   :  { %vm1921_vm13 = vcmp.eq.f32.partialorder %v11402_v53, %v11500_v1 }
 0x98d   :  { %v11505_v32 = vcvt.s32.f32 %v1964_v22  ;;  %v1929_v31 = vsel %vm1921_vm13, %v11023_v54, 64 }
 0x98e   :  { %v11512_v48 = vsel %vm1145_vm4, %v1929_v31, 2147483647 }
 0x98f   :  { %1967 = vmin.xlane.f32.xlu1 %v11505_v32  ;;  %v11515_v14 = vpop.xlane.xlu1 %1905  ;;  %v2009_v3 = vshra.s32 %v11512_v48, 16 }
 0x990   :  { %14013 = vst [vmem:[#allocation18_spill] sm:$0xff] %v11515_v14  ;;  %vm1920_vm15 = vcmp.eq.f32.partialorder %v11413_v25, %v11515_v14  ;;  %v1839_v14 = vmul.f32 -10.0, %v11250_v11  ;;  %v1840_v11 = vmul.f32 -10.0, %v11278_v47 }
 0x991   :  { %v11520_v60 = vcvt.s32.f32 %v2009_v3  ;;  %v1928_v33 = vsel %vm1920_vm15, %v11023_v54, 64 }
 0x992   :  { %v11527_v7 = vsel %vm1145_vm4, %v1928_v33, 2147483647  ;;  %v1850_v25 = vmul.f32 1.442695, %v1839_v14  ;;  %v1852_v47 = vmul.f32 1.442695, %v1840_v11 }
 0x993   :  { %2012 = vmin.xlane.f32.xlu0 %v11520_v60  ;;  %v11530_v43 = vpop.xlane.xlu1 %1911  ;;  %v1994_v46 = vshra.s32 %v11527_v7, 16 }
 0x994   :  { %14014 = vst [vmem:[#allocation19_spill] sm:$0xff] %v11530_v43  ;;  %vm1922_vm8 = vcmp.eq.f32.partialorder %v11428_v6, %v11530_v43  ;;  %v1844_v43 = vmul.f32 1.442695, %v1836_v20  ;;  %v1470_v6 = vmul.f32 -10.0, %v11043_v5  ;;  %v1471_v20 = vmul.f32 -10.0, %v11070_v26 }
 0x995   :  { %v1930_v29 = vsel %vm1922_vm8, %v11023_v54, 64  ;;  %v11539_v56 = vcvt.s32.f32 %v1994_v46  ;;  %v1468_v46 = vmul.f32 -10.0, %v11025_v59  ;;  %v1838_v59 = vmul.f32 -10.0, %v11260_v4 }
 0x996   :  { %v11542_v2 = vsel %vm1145_vm4, %v1930_v29, 2147483647  ;;  %v1467_v29 = vmul.f32 -10.0, %v11034_v62  ;;  %v1481_v62 = vmul.f32 1.442695, %v1470_v6 }
 0x997   :  { %v11544_v16 = vpop.xlane.xlu0 %1914  ;;  %1997 = vmin.xlane.f32.xlu1 %v11539_v56  ;;  %v2024_v38 = vshra.s32 %v11542_v2, 16  ;;  %v1848_v57 = vmul.f32 1.442695, %v1838_v59  ;;  %v1483_v14 = vmul.f32 1.442695, %v1471_v20  ;;  %v1474_v59 = vmul.f32 -10.0, %v11088_v45 }
 0x998   :  { %14015 = vst [vmem:[#allocation20_spill] sm:$0xff] %v11544_v16  ;;  %vm1923_vm5 = vcmp.eq.f32.partialorder %v11439_v15, %v11544_v16  ;;  %v1477_v16 = vmul.f32 1.442695, %v1468_v46  ;;  %v1475_v15 = vmul.f32 1.442695, %v1467_v29  ;;  %v1472_v46 = vmul.f32 -10.0, %v11061_v17 }
 0x999   :  { %v11550_v36 = vcvt.s32.f32 %v2024_v38  ;;  %v1931_v22 = vsel %vm1923_vm5, %v11023_v54, 64  ;;  %v1837_v38 = vmul.f32 -10.0, %v11224_v63 }
 0x99a   :  { %v11557_v31 = vsel %vm1145_vm4, %v1931_v22, 2147483647  ;;  %10596 = vpow2.f32 %v1477_v16  ;;  %v1485_v4 = vmul.f32 1.442695, %v1472_v46 }
 0x99b   :  { %2027 = vmin.xlane.f32.xlu1 %v11550_v36  ;;  %v2039_v3 = vshra.s32 %v11557_v31, 16  ;;  %v1846_v22 = vmul.f32 1.442695, %v1837_v38  ;;  %10598 = vpow2.f32 %v1475_v15 }
 0x99d   :  { %v11561_v33 = vcvt.s32.f32 %v2039_v3  ;;  %v1469_v3 = vmul.f32 -10.0, %v11052_v10  ;;  %10600 = vpow2.f32 %v1846_v22  ;;  %v1841_v10 = vmul.f32 -10.0, %v11269_v50 }
 0x99e   :  { %10602 = vpow2.f32 %v1844_v43  ;;  %v1473_v22 = vmul.f32 -10.0, %v11079_v34  ;;  %v1843_v34 = vmul.f32 -10.0, %v11296_v12 }
 0x99f   :  { %2042 = vmin.xlane.f32.xlu0 %v11561_v33  ;;  %v1479_v63 = vmul.f32 1.442695, %v1469_v3  ;;  %10604 = vpow2.f32 %v1481_v62  ;;  %v1854_v26 = vmul.f32 1.442695, %v1841_v10  ;;  %v1489_v10 = vmul.f32 1.442695, %v1474_v59 }
 0x9a0   :  { %v1487_v20 = vmul.f32 1.442695, %v1473_v22  ;;  %v1858_v11 = vmul.f32 1.442695, %v1843_v34 }
 0x9a1   :  { %10606 = vpow2.f32 %v1479_v63 }
 0x9a2   :  { %10608 = vpow2.f32 %v1850_v25 }
 0x9a3   :  { %10610 = vpow2.f32 %v1848_v57  ;;  %v1842_v57 = vmul.f32 -10.0, %v11287_v37 }
 0x9a4   :  { %v10597_v5 = vpop.eup %10596  ;;  %10612 = vpow2.f32 %v1485_v4 }
 0x9a5   :  { %v10599_v15 = vpop.eup %10598  ;;  %v11577_v29 = vmul.f32 %v10597_v5, %v11305_v9  ;;  %10614 = vpow2.f32 %v1483_v14 }
 0x9a6   :  { %v11582_v25 = vmul.f32 %v10599_v15, %v11307_v27  ;;  %10616 = vpow2.f32 %v1854_v26 }
 0x9a7   :  { %v10601_v43 = vpop.eup %10600  ;;  %10618 = vpow2.f32 %v1852_v47 }
 0x9a8   :  { %v10603_v16 = vpop.eup %10602  ;;  %10620 = vpow2.f32 %v1487_v20 }
 0x9a9   :  { %v10605_v63 = vpop.eup %10604  ;;  %10622 = vpow2.f32 %v1489_v10 }
 0x9aa   :  { %10624 = vpow2.f32 %v1858_v11 }
 0x9ab   :  { %v10607_v46 = vpop.eup %10606 }
 0x9ac   :  { %v10609_v5 = vpop.eup %10608  ;;  %v11608_v12 = vmul.f32 %v10607_v46, %v11311_v61 }
 0x9ad   :  { %v10611_v15 = vpop.eup %10610 }
 0x9ae   :  { %v10613_v61 = vpop.eup %10612 }
 0x9af   :  { %v10615_v22 = vpop.eup %10614 }
 0x9b0   :  { %v10617_v47 = vpop.eup %10616  ;;  %v11630_v20 = vmul.f32 %v10615_v22, %v11315_v8 }
 0x9b1   :  { %v10619_v34 = vpop.eup %10618 }
 0x9b2   :  { %v10621_v11 = vpop.eup %10620 }
 0x9c5   :  { %v9320_v6 = vpop.f32.mrb[32].mxu1 }
 0x9c6   :  { %v11579_v17 = vmul.f32 %v10601_v43, %v9320_v6  ;;  %v1797_v38 = vpop.f32.mrb[33].mxu1  ;;  %v11603_v43 = vmul.f32 %v10605_v63, %v11309_v35  ;;  %v11625_v63 = vmul.f32 %v10613_v61, %v11313_v18  ;;  %v1978_v18 = vand.u32 65535, %v11482_v30 }
 0x9c7   :  { %v11584_v50 = vmul.f32 %v10603_v16, %v1797_v38  ;;  %v1856_v16 = vmul.f32 1.442695, %v1842_v57 }
 0x9c8   :  { %v11589_v3 = vadd.f32 %v11579_v17, %v11577_v29  ;;  %v1877_v9 = vmax.f32 %v11577_v29, %v11579_v17 }
 0x9c9   :  { %v11596_v62 = vadd.f32 %v11584_v50, %v11582_v25  ;;  %10626 = vpow2.f32 %v1856_v16 }
 0x9cd   :  { %v9323_v45 = vpop.f32.mrb[34].mxu1 }
 0x9ce   :  { %v11605_v4 = vmul.f32 %v10609_v5, %v9323_v45  ;;  %v1807_v6 = vpop.f32.mrb[35].mxu1 }
 0x9cf   :  { %v11610_v14 = vmul.f32 %v10611_v15, %v1807_v6  ;;  %v10623_v6 = vpop.eup %10622 }
 0x9d0   :  { %v11614_v37 = vadd.f32 %v11605_v4, %v11603_v43  ;;  %v10625_v8 = vpop.eup %10624  ;;  %v11647_v22 = vmul.f32 %v10623_v6, %v11317_v23  ;;  %v1948_v6 = vand.u32 65535, %v11453_v44  ;;  %v1963_v23 = vand.u32 65535, %v11497_v19 }
 0x9d1   :  { %v11620_v35 = vadd.f32 %v11610_v14, %v11608_v12  ;;  %v1980_v44 = vcvt.s32.f32 %v1978_v18 }
 0x9d3   :  { %v10627_v61 = vpop.eup %10626 }
 0x9d5   :  { %v9326_v59 = vpop.f32.mrb[36].mxu1 }
 0x9d6   :  { %v11627_v57 = vmul.f32 %v10617_v47, %v9326_v59  ;;  %v1817_v46 = vpop.f32.mrb[37].mxu1 }
 0x9d7   :  { %v11632_v5 = vmul.f32 %v10619_v34, %v1817_v46  ;;  %v11652_v34 = vmul.f32 %v10621_v11, %v11319_v49  ;;  %v1933_v49 = vand.u32 65535, %v11467_v51 }
 0x9d8   :  { %v11636_v10 = vadd.f32 %v11627_v57, %v11625_v63 }
 0x9d9   :  { %v11642_v15 = vadd.f32 %v11632_v5, %v11630_v20 }
 0x9dc   :  { %v9329_v16 = vpop.f32.mrb[38].mxu1 }
 0x9dd   :  { %v11649_v47 = vmul.f32 %v10625_v8, %v9329_v16  ;;  %v1827_v59 = vpop.f32.mrb[39].mxu1  ;;  %v1950_v8 = vcvt.s32.f32 %v1948_v6 }
 0x9de   :  { %v11654_v46 = vmul.f32 %v10627_v61, %v1827_v59  ;;  %v1935_v59 = vcvt.s32.f32 %v1933_v49 }
 0x9df   :  { %v11658_v45 = vadd.f32 %v11649_v47, %v11647_v22 }
 0x9e0   :  { %v11664_v26 = vadd.f32 %v11654_v46, %v11652_v34 }
 0xa10   :  { %v1953_v11 = vpop.xlane.xlu0 %1952 }
 0xa11   :  { %vm1954_vm14 = vcmp.eq.f32.partialorder %v11460_v41, %v1953_v11  ;;  %v1965_v41 = vcvt.s32.f32 %v1963_v23 }
 0xa12   :  { %v1955_v16 = vsel %vm1954_vm14, %v1950_v8, inf  ;;  %v2008_v8 = vand.u32 65535, %v11512_v48 }
 0xa13   :  { %1956 = vmin.xlane.f32.xlu0 %v1955_v16  ;;  %v2023_v16 = vand.u32 65535, %v11542_v2  ;;  %v1959_v2 = vcvt.f32.s32 %v1953_v11 }
 0xa14   :  { %v1938_v61 = vpop.xlane.xlu1 %1937 }
 0xa15   :  { %vm1939_vm6 = vcmp.eq.f32.partialorder %v11475_v13, %v1938_v61  ;;  %v1993_v13 = vand.u32 65535, %v11527_v7 }
 0xa16   :  { %v1940_v38 = vsel %vm1939_vm6, %v1935_v59, inf  ;;  %v2038_v59 = vand.u32 65535, %v11557_v31 }
 0xa17   :  { %1941 = vmin.xlane.f32.xlu1 %v1940_v38  ;;  %v2010_v38 = vcvt.s32.f32 %v2008_v8  ;;  %v1944_v8 = vcvt.f32.s32 %v1938_v61 }
 0xa18   :  { %v1983_v27 = vpop.xlane.xlu0 %1982 }
 0xa19   :  { %vm1984_vm11 = vcmp.eq.f32.partialorder %v11490_v28, %v1983_v27  ;;  %v1995_v28 = vcvt.s32.f32 %v1993_v13  ;;  %v1945_v31 = vshll.u32 %v1944_v8, 16 }
 0xa1a   :  { %v1985_v51 = vsel %vm1984_vm11, %v1980_v44, inf }
 0xa1b   :  { %1986 = vmin.xlane.f32.xlu0 %v1985_v51 }
 0xa1c   :  { %v1968_v6 = vpop.xlane.xlu1 %1967 }
 0xa1d   :  { %vm1969_vm12 = vcmp.eq.f32.partialorder %v11505_v32, %v1968_v6  ;;  %v2025_v32 = vcvt.s32.f32 %v2023_v16 }
 0xa1e   :  { %v1970_v49 = vsel %vm1969_vm12, %v1965_v41, inf  ;;  %v1960_v41 = vshll.u32 %v1959_v2, 16 }
 0xa1f   :  { %1971 = vmin.xlane.f32.xlu1 %v1970_v49 }
 0xa20   :  { %v2013_v30 = vpop.xlane.xlu0 %2012 }
 0xa21   :  { %vm2014_vm14 = vcmp.eq.f32.partialorder %v11520_v60, %v2013_v30  ;;  %v2040_v60 = vcvt.s32.f32 %v2038_v59 }
 0xa22   :  { %v2015_v19 = vsel %vm2014_vm14, %v2010_v38, inf }
 0xa23   :  { %2016 = vmin.xlane.f32.xlu0 %v2015_v19  ;;  %v1989_v19 = vcvt.f32.s32 %v1983_v27 }
 0xa24   :  { %v1998_v18 = vpop.xlane.xlu1 %1997 }
 0xa25   :  { %vm1999_vm6 = vcmp.eq.f32.partialorder %v11539_v56, %v1998_v18  ;;  %v2004_v52 = vcvt.f32.s32 %v1998_v18 }
 0xa26   :  { %v2000_v23 = vsel %vm1999_vm6, %v1995_v28, inf }
 0xa27   :  { %2001 = vmin.xlane.f32.xlu1 %v2000_v23  ;;  %v1990_v23 = vshll.u32 %v1989_v19, 16  ;;  %v2005_v18 = vshll.u32 %v2004_v52, 16  ;;  %v664_v52 = vld [vmem:[#allocation2 + $0x108] sm:$0xff] }
 0xa28   :  { %v2028_v48 = vpop.xlane.xlu1 %2027 }
 0xa29   :  { %vm2029_vm11 = vcmp.eq.f32.partialorder %v11550_v36, %v2028_v48 }
 0xa2a   :  { %v2030_v7 = vsel %vm2029_vm11, %v2025_v32, inf  ;;  %v1974_v32 = vcvt.f32.s32 %v1968_v6 }
 0xa2b   :  { %2031 = vmin.xlane.f32.xlu1 %v2030_v7  ;;  %v2019_v7 = vcvt.f32.s32 %v2013_v30 }
 0xa2c   :  { %v11683_v44 = vpop.xlane.xlu0 %2042  ;;  %v1975_v6 = vshll.u32 %v1974_v32, 16 }
 0xa2d   :  { %vm2044_vm12 = vcmp.eq.f32.partialorder %v11561_v33, %v11683_v44  ;;  %v2020_v2 = vshll.u32 %v2019_v7, 16  ;;  %v2049_v0 = vcvt.f32.s32 %v11683_v44  ;;  %v14021_v7 = vld [vmem:[#allocation20_spill] sm:$0xff] }
 0xa2e   :  { %v2045_v51 = vsel %vm2044_vm12, %v2040_v60, inf }
 0xa2f   :  { %2046 = vmin.xlane.f32.xlu0 %v2045_v51  ;;  %v2050_v44 = vshll.u32 %v2049_v0, 16 }
 0xaa0   :  { %v1957_v56 = vpop.xlane.xlu0 %1956 }
 0xaa1   :  { %v1958_v49 = vcvt.f32.s32 %v1957_v56 }
 0xaa3   :  { %v1961_v13 = vadd.s32 %v1960_v41, %v1958_v49 }
 0xaa4   :  { %v1942_v38 = vpop.xlane.xlu1 %1941 }
 0xaa5   :  { %v1943_v36 = vcvt.f32.s32 %v1942_v38  ;;  %vm2053_vm14 = vcmp.eq.s32.totalorder %v11023_v54, %v1961_v13  ;;  %v2034_v13 = vcvt.f32.s32 %v2028_v48 }
 0xaa6   :  { %vm2061_vm6 = vmand %vm1917_vm9, %vm2053_vm14 }
 0xaa7   :  { %v1946_v28 = vadd.s32 %v1945_v31, %v1943_v36  ;;  %v8244_v61 = vsel %vm2061_vm6, 1.0, %v14005_v24  ;;  %v2035_v19 = vshll.u32 %v2034_v13, 16  ;;  %v2669_v13 = vld [vmem:[#allocation2 + $0x148] sm:$0xff] }
 0xaa8   :  { %v1987_v16 = vpop.xlane.xlu0 %1986 }
 0xaa9   :  { %v1988_v33 = vcvt.f32.s32 %v1987_v16  ;;  %vm2052_vm11 = vcmp.eq.s32.totalorder %v11023_v54, %v1946_v28  ;;  %v14017_v16 = vld [vmem:[#allocation18_spill] sm:$0xff]  ;;  %v2215_v28 = vmul.f32 -10.0, %v11485_v42 }
 0xaaa   :  { %vm2060_vm12 = vmand %vm1916_vm0, %vm2052_vm11 }
 0xaab   :  { %v1991_v11 = vadd.s32 %v1990_v23, %v1988_v33  ;;  %v8243_v27 = vsel %vm2060_vm12, 1.0, %v14005_v24 }
 0xaac   :  { %9346 = vmatprep.mubr.msk.f32.mxu0 %vm1145_vm4, %v8243_v27  ;;  %v1972_v59 = vpop.xlane.xlu1 %1971  ;;  %v14019_v27 = vld [vmem:[#allocation19_spill] sm:$0xff] }
 0xaad   :  { %v1973_v60 = vcvt.f32.s32 %v1972_v59  ;;  %9347 = vmatmul.mubr.msk.f32.vlgmr.msra.gmra.mrb[32].mxu0 %vm1145_vm4, %v8244_v61  ;;  %vm2055_vm9 = vcmp.eq.s32.totalorder %v11023_v54, %v1991_v11 }
 0xaae   :  { %vm2063_vm14 = vmand %vm1919_vm7, %vm2055_vm9 }
 0xaaf   :  { %v1976_v40 = vadd.s32 %v1975_v6, %v1973_v60  ;;  %v8246_v49 = vsel %vm2063_vm14, 1.0, %v14005_v24 }
 0xab0   :  { %v2017_v51 = vpop.xlane.xlu0 %2016 }
 0xab1   :  { %v2018_v56 = vcvt.f32.s32 %v2017_v51  ;;  %vm2054_vm0 = vcmp.eq.s32.totalorder %v11023_v54, %v1976_v40  ;;  %v662_v40 = vld [vmem:[#allocation2 + $0xf8] sm:$0xff]  ;;  %v663_v51 = vld [vmem:[#allocation2 + $0x100] sm:$0xff] }
 0xab2   :  { %vm2062_vm6 = vmand %vm1918_vm10, %vm2054_vm0 }
 0xab3   :  { %v2021_v30 = vadd.s32 %v2020_v2, %v2018_v56  ;;  %v8245_v41 = vsel %vm2062_vm6, 1.0, %v14005_v24  ;;  %v10172_v2 = vpack.c.bf16 %v663_v51, %v662_v40  ;;  %v665_v56 = vld [vmem:[#allocation2 + $0x110] sm:$0xff]  ;;  %v660_v40 = vld [vmem:[#allocation2 + $0xe8] sm:$0xff] }
 0xab4   :  { %9349 = vmatprep.mubr.msk.f32.mxu0 %vm1145_vm4, %v8245_v41  ;;  %v2002_v8 = vpop.xlane.xlu1 %2001  ;;  %v658_v41 = vld [vmem:[#allocation2 + $0xd8] sm:$0xff]  ;;  %v661_v51 = vld [vmem:[#allocation2 + $0xf0] sm:$0xff] }
 0xab5   :  { %v2003_v38 = vcvt.f32.s32 %v2002_v8  ;;  %9350 = vmatmul.mubr.msk.f32.gmra.mrb[34].mxu0 %vm1145_vm4, %v8246_v49  ;;  %vm2057_vm11 = vcmp.eq.s32.totalorder %v11023_v54, %v2021_v30  ;;  %10173 = vmatprep.subr.bf16.mxu1 %v10172_v2  ;;  %v10176_v30 = vpack.c.bf16 %v665_v56, %v664_v52  ;;  %v659_v8 = vld [vmem:[#allocation2 + $0xe0] sm:$0xff]  ;;  %v2219_v52 = vmul.f32 -10.0, %v14019_v27 }
 0xab6   :  { %vm2065_vm10 = vmand %vm1921_vm13, %vm2057_vm11  ;;  %10175 = vmatpush3.bf16.msra.mxu1 %v10172_v2  ;;  %v10180_v49 = vpack.c.bf16 %v659_v8, %v658_v41  ;;  %v2220_v2 = vmul.f32 -10.0, %v14021_v7  ;;  %v10184_v29 = vpack.c.bf16 %v661_v51, %v660_v40  ;;  %v668_v40 = vld [vmem:[#allocation2 + $0x128] sm:$0xff]  ;;  %v669_v51 = vld [vmem:[#allocation2 + $0x130] sm:$0xff] }
 0xab7   :  { %v2006_v39 = vadd.s32 %v2005_v18, %v2003_v38  ;;  %v8248_v33 = vsel %vm2065_vm10, 1.0, %v14005_v24  ;;  %10177 = vmatprep.subr.bf16.mxu1 %v10176_v30  ;;  %v2668_v18 = vld [vmem:[#allocation2 + $0x140] sm:$0xff]  ;;  %v2233_v7 = vmul.f32 1.442695, %v2219_v52  ;;  %v14035_v52 = vld [vmem:[#allocation11_spill] sm:$0xff] }
 0xab8   :  { %v2032_v31 = vpop.xlane.xlu1 %2031  ;;  %v10196_v38 = vpack.c.bf16 %v2669_v13, %v2668_v18  ;;  %v14023_v13 = vmax.f32 %v11603_v43, %v11605_v4 }
 0xab9   :  { %v2033_v36 = vcvt.f32.s32 %v2032_v31  ;;  %vm2056_vm7 = vcmp.eq.s32.totalorder %v11023_v54, %v2006_v39  ;;  %v2214_v39 = vmul.f32 -10.0, %v11444_v55  ;;  %v2213_v31 = vmul.f32 -10.0, %v11455_v21 }
 0xaba   :  { %vm2064_vm12 = vmand %vm1920_vm15, %vm2056_vm7  ;;  %10179 = vmatpush3.bf16.msra.mxu1 %v10176_v30  ;;  %10197 = vmatprep.subr.bf16.mxu0 %v10196_v38  ;;  %v667_v30 = vld [vmem:[#allocation2 + $0x120] sm:$0xff] }
 0xabb   :  { %v2036_v48 = vadd.s32 %v2035_v19, %v2033_v36  ;;  %v8247_v23 = vsel %vm2064_vm12, 1.0, %v14005_v24  ;;  %10181 = vmatprep.subr.bf16.mxu1 %v10180_v49  ;;  %10199 = vmatpush3.bf16.msra.mxu0 %v10196_v38  ;;  %v2223_v19 = vmul.f32 1.442695, %v2214_v39  ;;  %v2221_v0 = vmul.f32 1.442695, %v2213_v31 }
 0xabc   :  { %v2047_v32 = vpop.xlane.xlu0 %2046  ;;  %9352 = vmatprep.mubr.msk.f32.mxu0 %vm1145_vm4, %v8247_v23  ;;  %v2216_v36 = vmul.f32 -10.0, %v11470_v58  ;;  %v2225_v23 = vmul.f32 1.442695, %v2215_v28 }
 0xabd   :  { %v2048_v11 = vcvt.f32.s32 %v2047_v32  ;;  %9353 = vmatmul.mubr.msk.f32.gmra.mrb[36].mxu0 %vm1145_vm4, %v8248_v33  ;;  %vm2058_vm9 = vcmp.eq.s32.totalorder %v11023_v54, %v2036_v48  ;;  %10628 = vpow2.f32 %v2223_v19  ;;  %v2218_v32 = vmul.f32 -10.0, %v11500_v1 }
 0xabe   :  { %vm2066_vm13 = vmand %vm1922_vm8, %vm2058_vm9  ;;  %10630 = vpow2.f32 %v2221_v0  ;;  %v2227_v48 = vmul.f32 1.442695, %v2216_v36  ;;  %v2217_v33 = vmul.f32 -10.0, %v14017_v16  ;;  %v14022_v16 = vmax.f32 %v11582_v25, %v11584_v50 }
 0xabf   :  { %v2051_v61 = vadd.s32 %v2050_v44, %v2048_v11  ;;  %v8249_v59 = vsel %vm2066_vm13, 1.0, %v14005_v24  ;;  %v2235_v50 = vmul.f32 1.442695, %v2220_v2  ;;  %v14024_v19 = vmax.f32 %v11608_v12, %v11610_v14  ;;  %v14029_v2 = vld [vmem:[#allocation5_spill] sm:$0xff] }
 0xac0   :  { %9355 = vmatprep.mubr.msk.f32.mxu0 %vm1145_vm4, %v8249_v59  ;;  %10632 = vpow2.f32 %v2227_v48  ;;  %v2229_v6 = vmul.f32 1.442695, %v2217_v33  ;;  %v14025_v12 = vmax.f32 %v11625_v63, %v11627_v57  ;;  %v14026_v33 = vmax.f32 %v11630_v20, %v11632_v5 }
 0xac1   :  { %vm2059_vm15 = vcmp.eq.s32.totalorder %v11023_v54, %v2051_v61  ;;  %10634 = vpow2.f32 %v2225_v23  ;;  %v2231_v61 = vmul.f32 1.442695, %v2218_v32  ;;  %v14027_v57 = vmax.f32 %v11647_v22, %v11649_v47  ;;  %v14030_v22 = vld [vmem:[#allocation6_spill] sm:$0xff]  ;;  %v14032_v47 = vld [vmem:[#allocation8_spill] sm:$0xff] }
 0xac2   :  { %vm2067_vm0 = vmand %vm1923_vm5, %vm2059_vm15  ;;  %v14028_v5 = vmax.f32 %v11652_v34, %v11654_v46  ;;  %v14033_v34 = vld [vmem:[#allocation9_spill] sm:$0xff]  ;;  %v14034_v46 = vld [vmem:[#allocation10_spill] sm:$0xff] }
 0xac3   :  { %v8250_v60 = vsel %vm2067_vm0, 1.0, %v14005_v24  ;;  %10636 = vpow2.f32 %v2231_v61 }
 0xac4   :  { %9356 = vmatmul.mubr.msk.f32.gmra.mrb[38].mxu0 %vm1145_vm4, %v8250_v60  ;;  %10638 = vpow2.f32 %v2229_v6 }
 0xac5   :  { %10640 = vpow2.f32 %v2235_v50 }
 0xac6   :  { %10642 = vpow2.f32 %v2233_v7 }
 0xac7   :  { %v10629_v44 = vpop.eup %10628 }
 0xac8   :  { %v10631_v11 = vpop.eup %10630 }
 0xaca   :  { %v10633_v17 = vpop.eup %10632 }
 0xacb   :  { %v10635_v25 = vpop.eup %10634 }
 0xb80   :  { %v9348_v55 = vpop.f32.mrb[32].mxu0 }
 0xb81   :  { %v2238_v21 = vmul.f32 %v10629_v44, %v9348_v55  ;;  %v2174_v53 = vpop.f32.mrb[33].mxu0 }
 0xb82   :  { %v2237_v59 = vmul.f32 %v10631_v11, %v2174_v53 }
 0xb83   :  { %v2246_v58 = vadd.f32 %v2238_v21, %v11589_v3  ;;  %v11746_v42 = vmax.f32 %v1877_v9, %v2238_v21 }
 0xb84   :  { %v2245_v1 = vadd.f32 %v2237_v59, %v11596_v62  ;;  %v11752_v60 = vmax.f32 %v14022_v16, %v2237_v59  ;;  %v666_v62 = vld [vmem:[#allocation2 + $0x118] sm:$0xff] }
 0xb85   :  { %v2262_v56 = vmul.f32 0.33333334, %v2246_v58  ;;  %v10188_v39 = vpack.c.bf16 %v667_v30, %v666_v62  ;;  %v8283_v62 = vld [vmem:[#allocation2 + $0x138] ss:$0 sm:$0xff] }
 0xb86   :  { %v2261_v3 = vmul.f32 0.33333334, %v2245_v1 }
 0xb88   :  { %v9351_v9 = vpop.f32.mrb[34].mxu0  ;;  %9366 = vmatprep.mubr.msk.f32.mxu1 %vm194_vm1, %v2261_v3  ;;  %v14036_v3 = vld [vmem:[#allocation12_spill] sm:$0xff] }
 0xb89   :  { %v2240_v41 = vmul.f32 %v10633_v17, %v9351_v9  ;;  %v2184_v8 = vpop.f32.mrb[35].mxu0  ;;  %9367 = vmatmul.mubr.msk.f32.vlgmr.msra.gmra.mrb[40].mxu1 %vm194_vm1, %v2262_v56  ;;  %v2670_v56 = vld [vmem:[#allocation2 + $0x150] sm:$0xff] }
 0xb8a   :  { %v2239_v18 = vmul.f32 %v10635_v25, %v2184_v8  ;;  %10183 = vmatpush3.bf16.msra.mxu1 %v10180_v49  ;;  %v10637_v49 = vpop.eup %10636  ;;  %v2674_v9 = vld [vmem:[#allocation2 + $0x170] sm:$0xff] }
 0xb8b   :  { %v2248_v27 = vadd.f32 %v2240_v41, %v11614_v37  ;;  %v2256_v38 = vmax.f32 %v14023_v13, %v2240_v41  ;;  %10185 = vmatprep.subr.bf16.mxu1 %v10184_v29  ;;  %v10639_v43 = vpop.eup %10638  ;;  %v2676_v13 = vld [vmem:[#allocation2 + $0x180] sm:$0xff] }
 0xb8c   :  { %v2247_v31 = vadd.f32 %v2239_v18, %v11620_v35  ;;  %v2255_v0 = vmax.f32 %v14024_v19, %v2239_v18  ;;  %v10641_v11 = vpop.eup %10640 }
 0xb8d   :  { %v2264_v28 = vmul.f32 0.33333334, %v2248_v27  ;;  %v10643_v61 = vpop.eup %10642  ;;  %v2675_v27 = vld [vmem:[#allocation2 + $0x178] sm:$0xff] }
 0xb8e   :  { %v2263_v36 = vmul.f32 0.33333334, %v2247_v31  ;;  %10187 = vmatpush3.bf16.msra.mxu1 %v10184_v29  ;;  %v2671_v29 = vld [vmem:[#allocation2 + $0x158] sm:$0xff] }
 0xb8f   :  { %10189 = vmatprep.subr.bf16.mxu1 %v10188_v39  ;;  %v10200_v17 = vpack.c.bf16 %v2671_v29, %v2670_v56 }
 0xb90   :  { %v9354_v37 = vpop.f32.mrb[36].mxu0  ;;  %9369 = vmatprep.mubr.msk.f32.mxu1 %vm194_vm1, %v2263_v36 }
 0xb91   :  { %v2242_v4 = vmul.f32 %v10637_v49, %v9354_v37  ;;  %v2194_v48 = vpop.f32.mrb[37].mxu0  ;;  %9370 = vmatmul.mubr.msk.f32.gmra.mrb[42].mxu1 %vm194_vm1, %v2264_v28  ;;  %10201 = vmatprep.subr.bf16.mxu0 %v10200_v17  ;;  %v10208_v28 = vpack.c.bf16 %v2676_v13, %v2675_v27 }
 0xb92   :  { %v2241_v35 = vmul.f32 %v10639_v43, %v2194_v48  ;;  %10203 = vmatpush3.bf16.msra.mxu0 %v10200_v17 }
 0xb93   :  { %v2250_v23 = vadd.f32 %v2242_v4, %v11636_v10  ;;  %v2258_v14 = vmax.f32 %v14025_v12, %v2242_v4 }
 0xb94   :  { %v2249_v32 = vadd.f32 %v2241_v35, %v11642_v15  ;;  %v2257_v44 = vmax.f32 %v14026_v33, %v2241_v35 }
 0xb95   :  { %v2266_v21 = vmul.f32 0.33333334, %v2250_v23 }
 0xb96   :  { %v2265_v55 = vmul.f32 0.33333334, %v2249_v32 }
 0xb97   :  { %v9357_v53 = vpop.f32.mrb[38].mxu0 }
 0xb98   :  { %v2244_v59 = vmul.f32 %v10641_v11, %v9357_v53  ;;  %v2204_v6 = vpop.f32.mrb[39].mxu0  ;;  %9372 = vmatprep.mubr.msk.f32.mxu1 %vm194_vm1, %v2265_v55 }
 0xb99   :  { %v2243_v10 = vmul.f32 %v10643_v61, %v2204_v6  ;;  %9373 = vmatmul.mubr.msk.f32.gmra.mrb[44].mxu1 %vm194_vm1, %v2266_v21 }
 0xb9a   :  { %v2252_v63 = vadd.f32 %v2244_v59, %v11658_v45  ;;  %v2260_v15 = vmax.f32 %v14027_v57, %v2244_v59  ;;  %v10192_v45 = vpack.c.bf16 %v669_v51, %v668_v40 }
 0xb9b   :  { %v2251_v20 = vadd.f32 %v2243_v10, %v11664_v26  ;;  %v2259_v58 = vmax.f32 %v14028_v5, %v2243_v10  ;;  %v14031_v26 = vld [vmem:[#allocation7_spill] sm:$0xff]  ;;  %v8284_v10 = vld [vmem:[#allocation2 + $0x160] ss:$0 sm:$0xff] }
 0xb9c   :  { %v2268_v16 = vmul.f32 0.33333334, %v2252_v63 }
 0xb9d   :  { %v2267_v1 = vmul.f32 0.33333334, %v2251_v20 }
 0xb9f   :  { %9375 = vmatprep.mubr.msk.f32.mxu1 %vm194_vm1, %v2267_v1 }
 0xba0   :  { %9376 = vmatmul.mubr.msk.f32.gmra.mrb[46].mxu1 %vm194_vm1, %v2268_v16 }
 0xba1   :  { %9386 = vmatprep.mubr.msk.f32.mxu1 %vm194_vm1, %v14029_v2 }
 0xba4   :  { %9387 = vmatmul.mubr.msk.f32.vlgmr.msra.gmra.mrb[40].mxu1 %vm194_vm1, %v14030_v22 }
 0xba5   :  { %10191 = vmatpush3.bf16.msra.mxu1 %v10188_v39  ;;  %9389 = vmatprep.mubr.msk.f32.mxu1 %vm194_vm1, %v14031_v26 }
 0xba6   :  { %10193 = vmatprep.subr.bf16.mxu1 %v10192_v45 }
 0xba8   :  { %9390 = vmatmul.mubr.msk.f32.gmra.mrb[42].mxu1 %vm194_vm1, %v14032_v47 }
 0xba9   :  { %9392 = vmatprep.mubr.msk.f32.mxu1 %vm194_vm1, %v14033_v34  ;;  %10195 = vmatpush3.bf16.msra.mxu1 %v10192_v45 }
 0xbac   :  { %9393 = vmatmul.mubr.msk.f32.gmra.mrb[44].mxu1 %vm194_vm1, %v14034_v46 }
 0xbad   :  { %9395 = vmatprep.mubr.msk.f32.mxu1 %vm194_vm1, %v14035_v52 }
 0xbb0   :  { %9396 = vmatmul.mubr.msk.f32.gmra.mrb[46].mxu1 %vm194_vm1, %v14036_v3 }
 0xbb1   :  { %9406 = vmatprep.mubr.msk.f32.mxu1 %vm194_vm1, %v11752_v60  ;;  %v2673_v60 = vld [vmem:[#allocation2 + $0x168] sm:$0xff] }
 0xbb4   :  { %9407 = vmatmul.mubr.msk.f32.vlgmr.msra.gmra.mrb[40].mxu1 %vm194_vm1, %v11746_v42  ;;  %v10204_v42 = vpack.c.bf16 %v2674_v9, %v2673_v60 }
 0xbb5   :  { %9409 = vmatprep.mubr.msk.f32.mxu1 %vm194_vm1, %v2255_v0 }
 0xbb6   :  { %10205 = vmatprep.subr.bf16.mxu0 %v10204_v42 }
 0xbb8   :  { %9410 = vmatmul.mubr.msk.f32.gmra.mrb[42].mxu1 %vm194_vm1, %v2256_v38 }
 0xbb9   :  { %9412 = vmatprep.mubr.msk.f32.mxu1 %vm194_vm1, %v2257_v44 }
 0xbbc   :  { %9413 = vmatmul.mubr.msk.f32.gmra.mrb[44].mxu1 %vm194_vm1, %v2258_v14 }
 0xbbd   :  { %9415 = vmatprep.mubr.msk.f32.mxu1 %vm194_vm1, %v2259_v58 }
 0xbc0   :  { %9416 = vmatmul.mubr.msk.f32.gmra.mrb[46].mxu1 %vm194_vm1, %v2260_v15 }
 0xc87   :  { %v9408_v30 = vpop.f32.mrb[40].mxu1 }
 0xc88   :  { %v2645_v25 = vadd.f32 %v9408_v30, %v8283_v62  ;;  %v2593_v50 = vpop.f32.mrb[41].mxu1 }
 0xc89   :  { %v2644_v41 = vadd.f32 %v8283_v62, %v2593_v50 }
 0xc8a   :  { %v2653_v8 = vmul.f32 0.01, %v2645_v25 }
 0xc8b   :  { %v2652_v7 = vmul.f32 0.01, %v2644_v41  ;;  %v9411_v18 = vpop.f32.mrb[42].mxu1 }
 0xc8c   :  { %v2647_v38 = vadd.f32 %v9411_v18, %v8283_v62  ;;  %v2603_v39 = vpop.f32.mrb[43].mxu1  ;;  %v11816_v0 = vmax.f32 %v2645_v25, %v2653_v8  ;;  %v8293_v18 = vld [vmem:[#allocation2 + $0x188] ss:$0 sm:$0xff] }
 0xc8d   :  { %v11814_v31 = vmax.f32 %v2644_v41, %v2652_v7  ;;  %v2646_v19 = vadd.f32 %v8283_v62, %v2603_v39 }
 0xc8e   :  { %14038 = vst [vmem:[#allocation18_spill] sm:$0xff] %v11816_v0  ;;  %v2655_v36 = vmul.f32 0.01, %v2647_v38 }
 0xc8f   :  { %14037 = vst [vmem:[#allocation15_spill] sm:$0xff] %v11814_v31  ;;  %v2654_v49 = vmul.f32 0.01, %v2646_v19  ;;  %v9414_v37 = vpop.f32.mrb[44].mxu1  ;;  %9426 = vmatprep.mubr.msk.f32.mxu0 %vm194_vm1, %v11814_v31 }
 0xc90   :  { %v2649_v43 = vadd.f32 %v9414_v37, %v8283_v62  ;;  %v2613_v4 = vpop.f32.mrb[45].mxu1  ;;  %9427 = vmatmul.mubr.msk.f32.vlgmr.msra.gmra.mrb[40].mxu0 %vm194_vm1, %v11816_v0  ;;  %v11824_v23 = vmax.f32 %v2647_v38, %v2655_v36 }
 0xc91   :  { %v11822_v48 = vmax.f32 %v2646_v19, %v2654_v49  ;;  %v2648_v35 = vadd.f32 %v8283_v62, %v2613_v4  ;;  %10207 = vmatpush3.bf16.msra.mxu0 %v10204_v42 }
 0xc92   :  { %14040 = vst [vmem:[#allocation19_spill] sm:$0xff] %v11824_v23  ;;  %v2657_v12 = vmul.f32 0.01, %v2649_v43  ;;  %10209 = vmatprep.subr.bf16.mxu0 %v10208_v28 }
 0xc93   :  { %14039 = vst [vmem:[#allocation16_spill] sm:$0xff] %v11822_v48  ;;  %v2656_v14 = vmul.f32 0.01, %v2648_v35  ;;  %v9417_v32 = vpop.f32.mrb[46].mxu1  ;;  %9429 = vmatprep.mubr.msk.f32.mxu0 %vm194_vm1, %v11822_v48 }
 0xc94   :  { %v2651_v33 = vadd.f32 %v9417_v32, %v8283_v62  ;;  %v2623_v44 = vpop.f32.mrb[47].mxu1  ;;  %9430 = vmatmul.mubr.msk.f32.gmra.mrb[42].mxu0 %vm194_vm1, %v11824_v23  ;;  %v11832_v21 = vmax.f32 %v2649_v43, %v2657_v12 }
 0xc95   :  { %v11830_v55 = vmax.f32 %v2648_v35, %v2656_v14  ;;  %v2650_v11 = vadd.f32 %v8283_v62, %v2623_v44  ;;  %10211 = vmatpush3.bf16.msra.mxu0 %v10208_v28 }
 0xc96   :  { %14042 = vst [vmem:[#allocation20_spill] sm:$0xff] %v11832_v21  ;;  %v2659_v53 = vmul.f32 0.01, %v2651_v33 }
 0xc97   :  { %14041 = vst [vmem:[#allocation17_spill] sm:$0xff] %v11830_v55  ;;  %v2658_v61 = vmul.f32 0.01, %v2650_v11  ;;  %9432 = vmatprep.mubr.msk.f32.mxu0 %vm194_vm1, %v11830_v55 }
 0xc98   :  { %9433 = vmatmul.mubr.msk.f32.gmra.mrb[44].mxu0 %vm194_vm1, %v11832_v21  ;;  %v11840_v6 = vmax.f32 %v2651_v33, %v2659_v53 }
 0xc99   :  { %v11838_v59 = vmax.f32 %v2650_v11, %v2658_v61 }
 0xc9a   :  { %14044 = vst [vmem:[#allocation6_spill] sm:$0xff] %v11840_v6 }
 0xc9b   :  { %14043 = vst [vmem:[#allocation5_spill] sm:$0xff] %v11838_v59  ;;  %9435 = vmatprep.mubr.msk.f32.mxu0 %vm194_vm1, %v11838_v59 }
 0xc9c   :  { %9436 = vmatmul.mubr.msk.f32.gmra.mrb[46].mxu0 %vm194_vm1, %v11840_v6 }
 0xc9d   :  { %9446 = vmatprep.mubr.msk.f32.mxu0 %vm194_vm1, %v11814_v31 }
 0xca0   :  { %9447 = vmatmul.mubr.msk.f32.vlgmr.msra.gmra.mrb[48].mxu0 %vm194_vm1, %v11816_v0 }
 0xca1   :  { %9449 = vmatprep.mubr.msk.f32.mxu0 %vm194_vm1, %v11822_v48 }
 0xca4   :  { %9450 = vmatmul.mubr.msk.f32.gmra.mrb[50].mxu0 %vm194_vm1, %v11824_v23 }
 0xca5   :  { %9452 = vmatprep.mubr.msk.f32.mxu0 %vm194_vm1, %v11830_v55 }
 0xca8   :  { %9453 = vmatmul.mubr.msk.f32.gmra.mrb[52].mxu0 %vm194_vm1, %v11832_v21 }
 0xca9   :  { %9455 = vmatprep.mubr.msk.f32.mxu0 %vm194_vm1, %v11838_v59 }
 0xcac   :  { %9456 = vmatmul.mubr.msk.f32.gmra.mrb[54].mxu0 %vm194_vm1, %v11840_v6 }
 0xd63   :  { %v9428_v63 = vpop.f32.mrb[40].mxu0 }
 0xd64   :  { %v11862_v57 = vadd.f32 %v9428_v63, %v8284_v10  ;;  %v2785_v15 = vpop.f32.mrb[41].mxu0 }
 0xd65   :  { %v2786_v20 = vadd.f32 %v8284_v10, %v2785_v15 }
 0xd66   :  { %v2934_v5 = vmul.f32 %v11862_v57, %v11862_v57 }
 0xd67   :  { %v10212_v58 = vpack.c.bf16 %v11862_v57, %v2786_v20  ;;  %v9431_v1 = vpop.f32.mrb[42].mxu0  ;;  %9474 = vmatprep.mubr.msk.f32.mxu0 %vm921_vm2, %v2786_v20  ;;  %v2933_v16 = vmul.f32 %v2786_v20, %v2786_v20 }
 0xd68   :  { %v11868_v40 = vadd.f32 %v9431_v1, %v8284_v10  ;;  %v2795_v51 = vpop.f32.mrb[43].mxu0  ;;  %v2944_v2 = vsel %vm921_vm2, %v2934_v5, 0.0 }
 0xd69   :  { %v11871_v45 = vadd.f32 %v8284_v10, %v2795_v51  ;;  %2945 = vadd.xlane.f32.xlu0 %v2944_v2  ;;  %10214 = vmatprep.subr.msk.bf16.mxu0 %vm10911_vm3, %v10212_v58  ;;  %v2941_v26 = vsel %vm921_vm2, %v2933_v16, 0.0 }
 0xd6a   :  { %2942 = vadd.xlane.f32.xlu1 %v2941_v26  ;;  %10217 = vmatpush3.bf16.xpose.msk.msra.mxu0 %vm10911_vm3, %v10212_v58  ;;  %v2936_v47 = vmul.f32 %v11868_v40, %v11868_v40 }
 0xd6b   :  { %v10218_v34 = vpack.c.bf16 %v11868_v40, %v11871_v45  ;;  %v9434_v46 = vpop.f32.mrb[44].mxu0  ;;  %v2935_v52 = vmul.f32 %v11871_v45, %v11871_v45 }
 0xd6c   :  { %v11884_v3 = vadd.f32 %v9434_v46, %v8284_v10  ;;  %v2805_v56 = vpop.f32.mrb[45].mxu0  ;;  %v2950_v29 = vsel %vm921_vm2, %v2936_v47, 0.0 }
 0xd6d   :  { %v11887_v17 = vadd.f32 %v8284_v10, %v2805_v56  ;;  %2951 = vadd.xlane.f32.xlu0 %v2950_v29  ;;  %10220 = vmatprep.subr.msk.bf16.mxu0 %vm10911_vm3, %v10218_v34  ;;  %v2947_v60 = vsel %vm921_vm2, %v2935_v52, 0.0 }
 0xd6e   :  { %2948 = vadd.xlane.f32.xlu1 %v2947_v60  ;;  %v2938_v9 = vmul.f32 %v11884_v3, %v11884_v3  ;;  %v14046_v60 = vld [vmem:[#allocation14_spill] sm:$0xff] }
 0xd6f   :  { %v10224_v42 = vpack.c.bf16 %v11884_v3, %v11887_v17  ;;  %v9437_v62 = vpop.f32.mrb[46].mxu0  ;;  %v2937_v30 = vmul.f32 %v11887_v17, %v11887_v17 }
 0xd70   :  { %v2821_v25 = vadd.f32 %v9437_v62, %v8284_v10  ;;  %v2815_v50 = vpop.f32.mrb[47].mxu0  ;;  %v2956_v41 = vsel %vm921_vm2, %v2938_v9, 0.0 }
 0xd71   :  { %v2816_v8 = vadd.f32 %v8284_v10, %v2815_v50  ;;  %2957 = vadd.xlane.f32.xlu0 %v2956_v41  ;;  %v2953_v7 = vsel %vm921_vm2, %v2937_v30, 0.0 }
 0xd72   :  { %2954 = vadd.xlane.f32.xlu1 %v2953_v7  ;;  %10223 = vmatpush3.bf16.xpose.msk.msra.mxu0 %vm10911_vm3, %v10218_v34  ;;  %v2940_v27 = vmul.f32 %v2821_v25, %v2821_v25 }
 0xd73   :  { %v10230_v13 = vpack.c.bf16 %v2821_v25, %v2816_v8  ;;  %v9448_v38 = vpop.f32.mrb[48].mxu0  ;;  %10226 = vmatprep.subr.msk.bf16.mxu0 %vm10911_vm3, %v10224_v42  ;;  %v2939_v39 = vmul.f32 %v2816_v8, %v2816_v8 }
 0xd74   :  { %v2900_v19 = vadd.f32 %v9448_v38, %v8293_v18  ;;  %v2894_v36 = vpop.f32.mrb[49].mxu0  ;;  %v2962_v28 = vsel %vm921_vm2, %v2940_v27, 0.0 }
 0xd75   :  { %v2895_v49 = vadd.f32 %v8293_v18, %v2894_v36  ;;  %2963 = vadd.xlane.f32.xlu0 %v2962_v28  ;;  %v2959_v37 = vsel %vm921_vm2, %v2939_v39, 0.0 }
 0xd76   :  { %2960 = vadd.xlane.f32.xlu1 %v2959_v37 }
 0xd77   :  { %v11906_v43 = vpack.c.bf16 %v2900_v19, %v2895_v49  ;;  %v9451_v4 = vpop.f32.mrb[50].mxu0 }
 0xd78   :  { %v2910_v35 = vadd.f32 %v9451_v4, %v8293_v18  ;;  %v2904_v12 = vpop.f32.mrb[51].mxu0 }
 0xd79   :  { %v2905_v14 = vadd.f32 %v8293_v18, %v2904_v12  ;;  %10237 = vmatprep.subr.bf16.mxu1 %v11906_v43 }
 0xd7a   :  { %10229 = vmatpush3.bf16.xpose.msk.msra.mxu0 %vm10911_vm3, %v10224_v42  ;;  %10239 = vmatpush3.bf16.msra.mxu1 %v11906_v43 }
 0xd7b   :  { %v11912_v32 = vpack.c.bf16 %v2910_v35, %v2905_v14  ;;  %v9454_v33 = vpop.f32.mrb[52].mxu0  ;;  %10232 = vmatprep.subr.msk.bf16.mxu0 %vm10911_vm3, %v10230_v13 }
 0xd7c   :  { %v2920_v44 = vadd.f32 %v9454_v33, %v8293_v18  ;;  %v2914_v11 = vpop.f32.mrb[53].mxu0 }
 0xd7d   :  { %v2915_v53 = vadd.f32 %v8293_v18, %v2914_v11  ;;  %10241 = vmatprep.subr.bf16.mxu1 %v11912_v32 }
 0xd7e   :  { %10243 = vmatpush3.bf16.msra.mxu1 %v11912_v32 }
 0xd7f   :  { %v11918_v61 = vpack.c.bf16 %v2920_v44, %v2915_v53  ;;  %v9457_v10 = vpop.f32.mrb[54].mxu0 }
 0xd80   :  { %v2930_v63 = vadd.f32 %v9457_v10, %v8293_v18  ;;  %v2924_v15 = vpop.f32.mrb[55].mxu0 }
 0xd81   :  { %v2925_v20 = vadd.f32 %v8293_v18, %v2924_v15  ;;  %10245 = vmatprep.subr.bf16.mxu1 %v11918_v61 }
 0xd82   :  { %10235 = vmatpush3.bf16.xpose.msk.msra.mxu0 %vm10911_vm3, %v10230_v13  ;;  %10247 = vmatpush3.bf16.msra.mxu1 %v11918_v61 }
 0xd83   :  { %v11924_v5 = vpack.c.bf16 %v2930_v63, %v2925_v20  ;;  %10269 = vmatprep.subr.bf16.mxu0 %v11906_v43 }
 0xd85   :  { %10249 = vmatprep.subr.bf16.mxu1 %v11924_v5 }
 0xd86   :  { %10251 = vmatpush3.bf16.msra.mxu1 %v11924_v5 }
 0xd87   :  { %10253 = vmatprep.subr.bf16.mxu1 %v11906_v43 }
 0xd89   :  { %9475 = vmatmul.mubr.msk.f32.vlgmr.msra.gmra.mrb[56].mxu0 %vm921_vm2, %v11862_v57 }
 0xd8a   :  { %9477 = vmatprep.mubr.msk.f32.mxu0 %vm921_vm2, %v11871_v45  ;;  %10271 = vmatpush3.bf16.msra.mxu0 %v11906_v43 }
 0xd8b   :  { %10273 = vmatprep.subr.bf16.mxu0 %v11912_v32 }
 0xd8d   :  { %9478 = vmatmul.mubr.msk.f32.gmra.mrb[58].mxu0 %vm921_vm2, %v11868_v40 }
 0xd8e   :  { %9480 = vmatprep.mubr.msk.f32.mxu0 %vm921_vm2, %v11887_v17  ;;  %10275 = vmatpush3.bf16.msra.mxu0 %v11912_v32 }
 0xd8f   :  { %10277 = vmatprep.subr.bf16.mxu0 %v11918_v61 }
 0xd91   :  { %9481 = vmatmul.mubr.msk.f32.gmra.mrb[60].mxu0 %vm921_vm2, %v11884_v3 }
 0xd92   :  { %9483 = vmatprep.mubr.msk.f32.mxu0 %vm921_vm2, %v2816_v8  ;;  %10279 = vmatpush3.bf16.msra.mxu0 %v11918_v61 }
 0xd93   :  { %10281 = vmatprep.subr.bf16.mxu0 %v11924_v5 }
 0xd95   :  { %9484 = vmatmul.mubr.msk.f32.gmra.mrb[62].mxu0 %vm921_vm2, %v2821_v25 }
 0xd96   :  { %10283 = vmatpush3.bf16.msra.mxu0 %v11924_v5 }
 0xdf6   :  { %v2946_v58 = vpop.xlane.xlu0 %2945 }
 0xdf7   :  { %v2943_v57 = vpop.xlane.xlu1 %2942 }
 0xdf8   :  { %3094 = vxpose.xlu1.b32.start [1/8] (short) (narrow) %v2943_v57, 8 }
 0xdfa   :  { %v2952_v16 = vpop.xlane.xlu0 %2951 }
 0xdfb   :  { %v2949_v1 = vpop.xlane.xlu1 %2948 }
 0xdfc   :  { %3095 = vxpose.xlu1.b32.cont [2/8] (short) (narrow) %v2946_v58, 8 }
 0xdfe   :  { %v2958_v51 = vpop.xlane.xlu0 %2957 }
 0xdff   :  { %v2955_v40 = vpop.xlane.xlu1 %2954 }
 0xe00   :  { %3096 = vxpose.xlu1.b32.cont [3/8] (short) (narrow) %v2949_v1, 8 }
 0xe02   :  { %v2964_v45 = vpop.xlane.xlu0 %2963 }
 0xe03   :  { %v2961_v2 = vpop.xlane.xlu1 %2960 }
 0xe04   :  { %3097 = vxpose.xlu1.b32.cont [4/8] (short) (narrow) %v2952_v16, 8 }
 0xe08   :  { %3098 = vxpose.xlu1.b32.cont [5/8] (short) (narrow) %v2955_v40, 8 }
 0xe0c   :  { %3099 = vxpose.xlu1.b32.cont [6/8] (short) (narrow) %v2958_v51, 8 }
 0xe10   :  { %3100 = vxpose.xlu1.b32.cont [7/8] (short) (narrow) %v2961_v2, 8 }
 0xe14   :  { %3101 = vxpose.xlu1.b32.end [8/8] (short) (narrow) %v2964_v45, 8 }
 0xe5c   :  { %v9476_v26 = vpop.f32.mrb[56].mxu0 }
 0xe5d   :  { %v3055_v47 = vpop.f32.mrb[57].mxu0  ;;  %v3139_v42 = vmul.f32 2.0, %v9476_v26 }
 0xe5e   :  { %v3138_v62 = vmul.f32 2.0, %v3055_v47 }
 0xe60   :  { %v9479_v34 = vpop.f32.mrb[58].mxu0 }
 0xe61   :  { %v3065_v46 = vpop.f32.mrb[59].mxu0  ;;  %v3141_v7 = vmul.f32 2.0, %v9479_v34 }
 0xe62   :  { %v3140_v19 = vmul.f32 2.0, %v3065_v46 }
 0xe64   :  { %v9482_v52 = vpop.f32.mrb[60].mxu0 }
 0xe65   :  { %v3075_v3 = vpop.f32.mrb[61].mxu0  ;;  %v3143_v4 = vmul.f32 2.0, %v9482_v52 }
 0xe66   :  { %v3142_v44 = vmul.f32 2.0, %v3075_v3 }
 0xe68   :  { %v9485_v56 = vpop.f32.mrb[62].mxu0 }
 0xe69   :  { %v3085_v29 = vpop.f32.mrb[63].mxu0 }
 0xe6a   :  { %v3144_v15 = vmul.f32 2.0, %v3085_v29 }
 0xe78   :  { %v3110_v17 = vpop.trf.xlu1 }
 0xe79   :  { %v3129_v9 = vrot.slane %v3110_v17, %v14046_v60 }
 0xe7b   :  { %v3131_v30 = vadd.f32 %v3129_v9, %v2946_v58  ;;  %v3130_v25 = vadd.f32 %v3129_v9, %v2943_v57  ;;  %v3133_v8 = vadd.f32 %v3129_v9, %v2952_v16  ;;  %v3132_v39 = vadd.f32 %v3129_v9, %v2949_v1 }
 0xe7c   :  { %v3135_v37 = vadd.f32 %v3129_v9, %v2958_v51  ;;  %v3134_v33 = vadd.f32 %v3129_v9, %v2955_v40  ;;  %v3136_v63 = vadd.f32 %v3129_v9, %v2961_v2  ;;  %v3137_v1 = vadd.f32 %v3129_v9, %v2964_v45 }
 0xe7d   :  { %v3147_v50 = vsub.f32 %v3131_v30, %v3139_v42  ;;  %v3146_v41 = vsub.f32 %v3130_v25, %v3138_v62  ;;  %v3149_v38 = vsub.f32 %v3133_v8, %v3141_v7  ;;  %v3148_v49 = vsub.f32 %v3132_v39, %v3140_v19 }
 0xe7e   :  { %v3151_v14 = vsub.f32 %v3135_v37, %v3143_v4  ;;  %v3150_v10 = vsub.f32 %v3134_v33, %v3142_v44  ;;  %v3152_v58 = vsub.f32 %v3136_v63, %v3144_v15  ;;  %v3145_v16 = vmul.f32 2.0, %v9485_v56 }
 0xe7f   :  { %v11950_v18 = vmax.f32 %v3147_v50, 0.0  ;;  %v11954_v13 = vmax.f32 %v3146_v41, 0.0  ;;  %v11958_v28 = vmax.f32 %v3149_v38, 0.0  ;;  %v11962_v12 = vmax.f32 %v3148_v49, 0.0 }
 0xe80   :  { %v11966_v53 = vmax.f32 %v3151_v14, 0.0  ;;  %v11970_v57 = vmax.f32 %v3150_v10, 0.0  ;;  %v11974_v51 = vmax.f32 %v3152_v58, 0.0  ;;  %v3153_v26 = vsub.f32 %v3137_v1, %v3145_v16 }
 0xe81   :  { %v3165_v27 = vsel %vm1145_vm4, %v11950_v18, inf  ;;  %v3162_v36 = vsel %vm1145_vm4, %v11954_v13, inf  ;;  %v3171_v35 = vsel %vm1145_vm4, %v11958_v28, inf  ;;  %v3168_v11 = vsel %vm1145_vm4, %v11962_v12, inf }
 0xe82   :  { %3166 = vmin.xlane.f32.xlu0 %v3165_v27  ;;  %v3177_v20 = vsel %vm1145_vm4, %v11966_v53, inf  ;;  %v3174_v40 = vsel %vm1145_vm4, %v11970_v57, inf  ;;  %v3180_v2 = vsel %vm1145_vm4, %v11974_v51, inf  ;;  %v11978_v47 = vmax.f32 %v3153_v26, 0.0 }
 0xe84   :  { %v3183_v34 = vsel %vm1145_vm4, %v11978_v47, inf }
 0xe86   :  { %3163 = vmin.xlane.f32.xlu0 %v3162_v36 }
 0xe8a   :  { %3172 = vmin.xlane.f32.xlu0 %v3171_v35 }
 0xe8e   :  { %3169 = vmin.xlane.f32.xlu0 %v3168_v11 }
 0xe92   :  { %3178 = vmin.xlane.f32.xlu0 %v3177_v20 }
 0xe96   :  { %3175 = vmin.xlane.f32.xlu0 %v3174_v40 }
 0xe9a   :  { %3181 = vmin.xlane.f32.xlu0 %v3180_v2 }
 0xe9e   :  { %3184 = vmin.xlane.f32.xlu0 %v3183_v34 }
 0xf0f   :  { %v11982_v45 = vpop.xlane.xlu0 %3166 }
 0xf10   :  { %vm3187_vm8 = vcmp.eq.f32.partialorder %v11950_v18, %v11982_v45 }
 0xf11   :  { %v3195_v46 = vsel %vm3187_vm8, %v11023_v54, 64 }
 0xf12   :  { %v3217_v52 = vsel %vm1145_vm4, %v3195_v46, 2147483647 }
 0xf13   :  { %v11991_v3 = vpop.xlane.xlu0 %3163  ;;  %v3219_v56 = vshra.s32 %v3217_v52, 16  ;;  %v3218_v46 = vand.u32 65535, %v3217_v52 }
 0xf14   :  { %vm3186_vm5 = vcmp.eq.f32.partialorder %v11954_v13, %v11991_v3 }
 0xf15   :  { %v3221_v29 = vcvt.s32.f32 %v3219_v56  ;;  %v3194_v17 = vsel %vm3186_vm5, %v11023_v54, 64 }
 0xf16   :  { %v3202_v9 = vsel %vm1145_vm4, %v3194_v17, 2147483647  ;;  %v3220_v17 = vcvt.s32.f32 %v3218_v46 }
 0xf17   :  { %3222 = vmin.xlane.f32.xlu0 %v3221_v29  ;;  %v12000_v42 = vpop.xlane.xlu0 %3172  ;;  %v3204_v62 = vshra.s32 %v3202_v9, 16 }
 0xf18   :  { %vm3189_vm14 = vcmp.eq.f32.partialorder %v11958_v28, %v12000_v42 }
 0xf19   :  { %v3206_v30 = vcvt.s32.f32 %v3204_v62  ;;  %v3197_v25 = vsel %vm3189_vm14, %v11023_v54, 64  ;;  %v3203_v62 = vand.u32 65535, %v3202_v9 }
 0xf1a   :  { %v3247_v50 = vsel %vm1145_vm4, %v3197_v25, 2147483647 }
 0xf1b   :  { %3207 = vmin.xlane.f32.xlu0 %v3206_v30  ;;  %v12009_v41 = vpop.xlane.xlu0 %3169  ;;  %v3249_v8 = vshra.s32 %v3247_v50, 16 }
 0xf1c   :  { %vm3188_vm6 = vcmp.eq.f32.partialorder %v11962_v12, %v12009_v41 }
 0xf1d   :  { %v3251_v7 = vcvt.s32.f32 %v3249_v8  ;;  %v3196_v27 = vsel %vm3188_vm6, %v11023_v54, 64  ;;  %v3248_v8 = vand.u32 65535, %v3247_v50 }
 0xf1e   :  { %v3232_v38 = vsel %vm1145_vm4, %v3196_v27, 2147483647 }
 0xf1f   :  { %3252 = vmin.xlane.f32.xlu0 %v3251_v7  ;;  %v12018_v39 = vpop.xlane.xlu0 %3178  ;;  %v3234_v19 = vshra.s32 %v3232_v38, 16 }
 0xf20   :  { %vm3191_vm11 = vcmp.eq.f32.partialorder %v11966_v53, %v12018_v39 }
 0xf21   :  { %v3236_v36 = vcvt.s32.f32 %v3234_v19  ;;  %v3199_v49 = vsel %vm3191_vm11, %v11023_v54, 64  ;;  %v3205_v19 = vcvt.s32.f32 %v3203_v62 }
 0xf22   :  { %v3277_v37 = vsel %vm1145_vm4, %v3199_v49, 2147483647 }
 0xf23   :  { %3237 = vmin.xlane.f32.xlu0 %v3236_v36  ;;  %v12027_v4 = vpop.xlane.xlu0 %3175  ;;  %v3279_v35 = vshra.s32 %v3277_v37, 16 }
 0xf24   :  { %vm3190_vm7 = vcmp.eq.f32.partialorder %v11970_v57, %v12027_v4 }
 0xf25   :  { %v3281_v14 = vcvt.s32.f32 %v3279_v35  ;;  %v3198_v33 = vsel %vm3190_vm7, %v11023_v54, 64  ;;  %v3233_v35 = vand.u32 65535, %v3232_v38 }
 0xf26   :  { %v3262_v44 = vsel %vm1145_vm4, %v3198_v33, 2147483647 }
 0xf27   :  { %3282 = vmin.xlane.f32.xlu0 %v3281_v14  ;;  %v12036_v11 = vpop.xlane.xlu0 %3181  ;;  %v3264_v10 = vshra.s32 %v3262_v44, 16 }
 0xf28   :  { %vm3192_vm10 = vcmp.eq.f32.partialorder %v11974_v51, %v12036_v11 }
 0xf29   :  { %v3266_v63 = vcvt.s32.f32 %v3264_v10  ;;  %v3200_v15 = vsel %vm3192_vm10, %v11023_v54, 64  ;;  %v3250_v10 = vcvt.s32.f32 %v3248_v8 }
 0xf2a   :  { %v3292_v20 = vsel %vm1145_vm4, %v3200_v15, 2147483647 }
 0xf2b   :  { %3267 = vmin.xlane.f32.xlu0 %v3266_v63  ;;  %v12045_v58 = vpop.xlane.xlu0 %3184  ;;  %v3294_v1 = vshra.s32 %v3292_v20, 16  ;;  %v3293_v38 = vand.u32 65535, %v3292_v20 }
 0xf2c   :  { %vm3193_vm12 = vcmp.eq.f32.partialorder %v11978_v47, %v12045_v58 }
 0xf2d   :  { %v3296_v16 = vcvt.s32.f32 %v3294_v1  ;;  %v3201_v40 = vsel %vm3193_vm12, %v11023_v54, 64  ;;  %v3278_v1 = vand.u32 65535, %v3277_v37  ;;  %v3295_v62 = vcvt.s32.f32 %v3293_v38 }
 0xf2e   :  { %v3307_v26 = vsel %vm1145_vm4, %v3201_v40, 2147483647  ;;  %v3235_v40 = vcvt.s32.f32 %v3233_v35 }
 0xf2f   :  { %3297 = vmin.xlane.f32.xlu0 %v3296_v16  ;;  %v3309_v2 = vshra.s32 %v3307_v26, 16  ;;  %v3280_v50 = vcvt.s32.f32 %v3278_v1 }
 0xf31   :  { %v3311_v34 = vcvt.s32.f32 %v3309_v2 }
 0xf33   :  { %3312 = vmin.xlane.f32.xlu0 %v3311_v34 }
 0xfa4   :  { %v3223_v56 = vpop.xlane.xlu0 %3222 }
 0xfa5   :  { %vm3224_vm9 = vcmp.eq.f32.partialorder %v3221_v29, %v3223_v56  ;;  %v3263_v29 = vand.u32 65535, %v3262_v44  ;;  %v3229_v8 = vcvt.f32.s32 %v3223_v56 }
 0xfa6   :  { %v3225_v25 = vsel %vm3224_vm9, %v3220_v17, inf  ;;  %v3308_v17 = vand.u32 65535, %v3307_v26 }
 0xfa7   :  { %3226 = vmin.xlane.f32.xlu0 %v3225_v25 }
 0xfa8   :  { %v3208_v27 = vpop.xlane.xlu0 %3207 }
 0xfa9   :  { %vm3209_vm13 = vcmp.eq.f32.partialorder %v3206_v30, %v3208_v27 }
 0xfaa   :  { %v3210_v49 = vsel %vm3209_vm13, %v3205_v19, inf }
 0xfab   :  { %3211 = vmin.xlane.f32.xlu0 %v3210_v49  ;;  %v3214_v49 = vcvt.f32.s32 %v3208_v27 }
 0xfac   :  { %v3253_v33 = vpop.xlane.xlu0 %3252 }
 0xfad   :  { %vm3254_vm15 = vcmp.eq.f32.partialorder %v3251_v7, %v3253_v33  ;;  %v3265_v7 = vcvt.s32.f32 %v3263_v29  ;;  %v3259_v1 = vcvt.f32.s32 %v3253_v33 }
 0xfae   :  { %v3255_v15 = vsel %vm3254_vm15, %v3250_v10, inf }
 0xfaf   :  { %3256 = vmin.xlane.f32.xlu0 %v3255_v15  ;;  %v3215_v15 = vshll.u32 %v3214_v49, 16 }
 0xfb0   :  { %v3238_v52 = vpop.xlane.xlu0 %3237 }
 0xfb1   :  { %vm3239_vm0 = vcmp.eq.f32.partialorder %v3236_v36, %v3238_v52  ;;  %v3244_v29 = vcvt.f32.s32 %v3238_v52 }
 0xfb2   :  { %v3240_v9 = vsel %vm3239_vm0, %v3235_v40, inf }
 0xfb3   :  { %3241 = vmin.xlane.f32.xlu0 %v3240_v9  ;;  %v3260_v9 = vshll.u32 %v3259_v1, 16 }
 0xfb4   :  { %v12054_v2 = vpop.xlane.xlu0 %3282 }
 0xfb5   :  { %vm3284_vm9 = vcmp.eq.f32.partialorder %v3281_v14, %v12054_v2  ;;  %v3310_v14 = vcvt.s32.f32 %v3308_v17  ;;  %v3289_v17 = vcvt.f32.s32 %v12054_v2 }
 0xfb6   :  { %v3285_v30 = vsel %vm3284_vm9, %v3280_v50, inf }
 0xfb7   :  { %3286 = vmin.xlane.f32.xlu0 %v3285_v30 }
 0xfb8   :  { %v12057_v46 = vpop.xlane.xlu0 %3267 }
 0xfb9   :  { %vm3269_vm13 = vcmp.eq.f32.partialorder %v3266_v63, %v12057_v46  ;;  %v3230_v63 = vshll.u32 %v3229_v8, 16  ;;  %v3274_v8 = vcvt.f32.s32 %v12057_v46 }
 0xfba   :  { %v3270_v37 = vsel %vm3269_vm13, %v3265_v7, inf }
 0xfbb   :  { %3271 = vmin.xlane.f32.xlu1 %v3270_v37  ;;  %v3245_v37 = vshll.u32 %v3244_v29, 16 }
 0xfbc   :  { %v12060_v36 = vpop.xlane.xlu0 %3297 }
 0xfbd   :  { %vm3299_vm15 = vcmp.eq.f32.partialorder %v3296_v16, %v12060_v36 }
 0xfbe   :  { %v3300_v44 = vsel %vm3299_vm15, %v3295_v62, inf }
 0xfbf   :  { %3301 = vmin.xlane.f32.xlu0 %v3300_v44 }
 0xfc0   :  { %v12063_v25 = vpop.xlane.xlu0 %3312 }
 0xfc1   :  { %vm3314_vm0 = vcmp.eq.f32.partialorder %v3311_v34, %v12063_v25 }
 0xfc2   :  { %v3315_v20 = vsel %vm3314_vm0, %v3310_v14, inf }
 0xfc3   :  { %3316 = vmin.xlane.f32.xlu0 %v3315_v20 }
0x1034   :  { %v3227_v19 = vpop.xlane.xlu0 %3226 }
0x1035   :  { %v3228_v35 = vcvt.f32.s32 %v3227_v19 }
0x1037   :  { %v3231_v26 = vadd.s32 %v3230_v63, %v3228_v35 }
0x1038   :  { %v3212_v10 = vpop.xlane.xlu0 %3211 }
0x1039   :  { %vm3323_vm9 = vcmp.eq.s32.totalorder %v11023_v54, %v3231_v26  ;;  %v3213_v16 = vcvt.f32.s32 %v3212_v10  ;;  %v3275_v26 = vshll.u32 %v3274_v8, 16  ;;  %v3304_v10 = vcvt.f32.s32 %v12060_v36 }
0x103a   :  { %vm3331_vm13 = vmand %vm3187_vm8, %vm3323_vm9 }
0x103b   :  { %v3216_v40 = vadd.s32 %v3215_v15, %v3213_v16  ;;  %v12071_v34 = vsel %vm3331_vm13, inf, %v11950_v18  ;;  %v8319_v38 = vsel %vm3331_vm13, 1.0, %v14005_v24 }
0x103c   :  { %v3257_v56 = vpop.xlane.xlu0 %3256  ;;  %v3534_v27 = vsel %vm1145_vm4, %v12071_v34, inf }
0x103d   :  { %v3258_v50 = vcvt.f32.s32 %v3257_v56  ;;  %3535 = vmin.xlane.f32.xlu0 %v3534_v27  ;;  %vm3322_vm15 = vcmp.eq.s32.totalorder %v11023_v54, %v3216_v40  ;;  %v3319_v56 = vcvt.f32.s32 %v12063_v25 }
0x103e   :  { %vm3330_vm0 = vmand %vm3186_vm5, %vm3322_vm15 }
0x103f   :  { %v3261_v33 = vadd.s32 %v3260_v9, %v3258_v50  ;;  %v8318_v30 = vsel %vm3330_vm0, 1.0, %v14005_v24  ;;  %v12081_v18 = vsel %vm3330_vm0, inf, %v11954_v13 }
0x1040   :  { %9502 = vmatprep.mubr.msk.f32.mxu1 %vm1145_vm4, %v8318_v30  ;;  %v3242_v7 = vpop.xlane.xlu0 %3241  ;;  %v3531_v52 = vsel %vm1145_vm4, %v12081_v18, inf }
0x1041   :  { %vm3325_vm8 = vcmp.eq.s32.totalorder %v11023_v54, %v3261_v33  ;;  %v3243_v62 = vcvt.f32.s32 %v3242_v7  ;;  %3532 = vmin.xlane.f32.xlu0 %v3531_v52  ;;  %9503 = vmatmul.mubr.msk.f32.vlgmr.msra.gmra.mrb[48].mxu1 %vm1145_vm4, %v8319_v38  ;;  %v3320_v33 = vshll.u32 %v3319_v56, 16 }
0x1042   :  { %10255 = vmatpush3.bf16.msra.mxu1 %v11906_v43  ;;  %vm12094_vm5 = vmand %vm3189_vm14, %vm3325_vm8  ;;  %v3290_v43 = vshll.u32 %v3289_v17, 16 }
0x1043   :  { %v3246_v44 = vadd.s32 %v3245_v37, %v3243_v62  ;;  %10257 = vmatprep.subr.bf16.mxu1 %v11912_v32  ;;  %v12102_v2 = vsel %vm12094_vm5, inf, %v11958_v28 }
0x1044   :  { %v3287_v14 = vpop.xlane.xlu0 %3286  ;;  %v3540_v20 = vsel %vm1145_vm4, %v12102_v2, inf }
0x1045   :  { %v3288_v19 = vcvt.f32.s32 %v3287_v14  ;;  %3541 = vmin.xlane.f32.xlu0 %v3540_v20  ;;  %vm3324_vm14 = vcmp.eq.s32.totalorder %v11023_v54, %v3246_v44 }
0x1046   :  { %10259 = vmatpush3.bf16.msra.mxu1 %v11912_v32  ;;  %vm3332_vm9 = vmand %vm3188_vm6, %vm3324_vm14  ;;  %v8321_v32 = vsel %vm12094_vm5, 1.0, %v14005_v24 }
0x1047   :  { %v3291_v63 = vadd.s32 %v3290_v43, %v3288_v19  ;;  %10261 = vmatprep.subr.bf16.mxu1 %v11918_v61  ;;  %v8320_v28 = vsel %vm3332_vm9, 1.0, %v14005_v24  ;;  %v12115_v49 = vsel %vm3332_vm9, inf, %v11962_v12 }
0x1048   :  { %v3272_v35 = vpop.xlane.xlu1 %3271  ;;  %9505 = vmatprep.mubr.msk.f32.mxu1 %vm1145_vm4, %v8320_v28  ;;  %v3537_v46 = vsel %vm1145_vm4, %v12115_v49, inf }
0x1049   :  { %vm3327_vm6 = vcmp.eq.s32.totalorder %v11023_v54, %v3291_v63  ;;  %v3273_v15 = vcvt.f32.s32 %v3272_v35  ;;  %3538 = vmin.xlane.f32.xlu0 %v3537_v46  ;;  %9506 = vmatmul.mubr.msk.f32.gmra.mrb[50].mxu1 %vm1145_vm4, %v8321_v32 }
0x104a   :  { %10263 = vmatpush3.bf16.msra.mxu1 %v11918_v61  ;;  %vm12130_vm13 = vmand %vm3191_vm11, %vm3327_vm6  ;;  %v3305_v61 = vshll.u32 %v3304_v10, 16 }
0x104b   :  { %v3276_v1 = vadd.s32 %v3275_v26, %v3273_v15  ;;  %10265 = vmatprep.subr.bf16.mxu1 %v11924_v5  ;;  %v12138_v36 = vsel %vm12130_vm13, inf, %v11966_v53 }
0x104c   :  { %v3302_v16 = vpop.xlane.xlu0 %3301  ;;  %v3546_v40 = vsel %vm1145_vm4, %v12138_v36, inf }
0x104d   :  { %v3303_v27 = vcvt.f32.s32 %v3302_v16  ;;  %3547 = vmin.xlane.f32.xlu0 %v3546_v40  ;;  %vm3326_vm11 = vcmp.eq.s32.totalorder %v11023_v54, %v3276_v1 }
0x104e   :  { %10267 = vmatpush3.bf16.msra.mxu1 %v11924_v5  ;;  %vm3334_vm15 = vmand %vm3190_vm7, %vm3326_vm11  ;;  %v8323_v5 = vsel %vm12130_vm13, 1.0, %v14005_v24 }
0x104f   :  { %v3306_v9 = vadd.s32 %v3305_v61, %v3303_v27  ;;  %v8322_v53 = vsel %vm3334_vm15, 1.0, %v14005_v24  ;;  %v12150_v29 = vsel %vm3334_vm15, inf, %v11970_v57 }
0x1050   :  { %9508 = vmatprep.mubr.msk.f32.mxu1 %vm1145_vm4, %v8322_v53  ;;  %v3317_v50 = vpop.xlane.xlu0 %3316  ;;  %v3543_v25 = vsel %vm1145_vm4, %v12150_v29, inf }
0x1051   :  { %v3318_v30 = vcvt.f32.s32 %v3317_v50  ;;  %3544 = vmin.xlane.f32.xlu0 %v3543_v25  ;;  %9509 = vmatmul.mubr.msk.f32.gmra.mrb[52].mxu1 %vm1145_vm4, %v8323_v5  ;;  %vm3328_vm7 = vcmp.eq.s32.totalorder %v11023_v54, %v3306_v9 }
0x1052   :  { %vm3336_vm0 = vmand %vm3192_vm10, %vm3328_vm7 }
0x1053   :  { %v3321_v57 = vadd.s32 %v3320_v33, %v3318_v30  ;;  %v8324_v38 = vsel %vm3336_vm0, 1.0, %v14005_v24  ;;  %v12165_v7 = vsel %vm3336_vm0, inf, %v11974_v51 }
0x1054   :  { %9511 = vmatprep.mubr.msk.f32.mxu1 %vm1145_vm4, %v8324_v38  ;;  %v3549_v52 = vsel %vm1145_vm4, %v12165_v7, inf }
0x1055   :  { %3550 = vmin.xlane.f32.xlu0 %v3549_v52  ;;  %vm3329_vm8 = vcmp.eq.s32.totalorder %v11023_v54, %v3321_v57 }
0x1056   :  { %vm3337_vm5 = vmand %vm3193_vm12, %vm3329_vm8 }
0x1057   :  { %v8325_v37 = vsel %vm3337_vm5, 1.0, %v14005_v24  ;;  %v12176_v17 = vsel %vm3337_vm5, inf, %v11978_v47 }
0x1058   :  { %9512 = vmatmul.mubr.msk.f32.gmra.mrb[54].mxu1 %vm1145_vm4, %v8325_v37  ;;  %v3552_v51 = vsel %vm1145_vm4, %v12176_v17, inf }
0x1059   :  { %3553 = vmin.xlane.f32.xlu1 %v3552_v51 }
0x10ca   :  { %v12181_v62 = vpop.xlane.xlu0 %3535 }
0x10cb   :  { %vm3556_vm10 = vcmp.eq.f32.partialorder %v12071_v34, %v12181_v62 }
0x10cc   :  { %v3564_v13 = vsel %vm3556_vm10, %v11023_v54, 64 }
0x10cd   :  { %v12190_v44 = vsel %vm1145_vm4, %v3564_v13, 2147483647 }
0x10ce   :  { %v12192_v47 = vpop.xlane.xlu0 %3532  ;;  %v3588_v14 = vshra.s32 %v12190_v44, 16 }
0x10cf   :  { %vm3555_vm12 = vcmp.eq.f32.partialorder %v12081_v18, %v12192_v47 }
0x10d0   :  { %v3563_v20 = vsel %vm3555_vm12, %v11023_v54, 64  ;;  %v3590_v43 = vcvt.s32.f32 %v3588_v14 }
0x10d1   :  { %v12202_v8 = vsel %vm1145_vm4, %v3563_v20, 2147483647 }
0x10d2   :  { %3591 = vmin.xlane.f32.xlu1 %v3590_v43  ;;  %v12204_v19 = vpop.xlane.xlu0 %3541  ;;  %v3573_v63 = vshra.s32 %v12202_v8, 16 }
0x10d3   :  { %vm3558_vm14 = vcmp.eq.f32.partialorder %v12102_v2, %v12204_v19 }
0x10d4   :  { %v3566_v28 = vsel %vm3558_vm14, %v11023_v54, 64  ;;  %v3575_v35 = vcvt.s32.f32 %v3573_v63 }
0x10d5   :  { %v3616_v46 = vsel %vm1145_vm4, %v3566_v28, 2147483647 }
0x10d6   :  { %3576 = vmin.xlane.f32.xlu0 %v3575_v35  ;;  %v12214_v32 = vpop.xlane.xlu0 %3538  ;;  %v3618_v26 = vshra.s32 %v3616_v46, 16  ;;  %v3617_v59 = vand.u32 65535, %v3616_v46 }
0x10d7   :  { %vm3557_vm9 = vcmp.eq.f32.partialorder %v12115_v49, %v12214_v32 }
0x10d8   :  { %v3565_v10 = vsel %vm3557_vm9, %v11023_v54, 64  ;;  %v3620_v15 = vcvt.s32.f32 %v3618_v26  ;;  %v3619_v23 = vcvt.s32.f32 %v3617_v59 }
0x10d9   :  { %v3601_v12 = vsel %vm1145_vm4, %v3565_v10, 2147483647 }
0x10da   :  { %3621 = vmin.xlane.f32.xlu1 %v3620_v15  ;;  %v12223_v1 = vpop.xlane.xlu0 %3547  ;;  %v3603_v16 = vshra.s32 %v3601_v12, 16  ;;  %v3602_v48 = vand.u32 65535, %v3601_v12 }
0x10db   :  { %vm3560_vm6 = vcmp.eq.f32.partialorder %v12138_v36, %v12223_v1 }
0x10dc   :  { %v3568_v40 = vsel %vm3560_vm6, %v11023_v54, 64  ;;  %v3605_v61 = vcvt.s32.f32 %v3603_v16  ;;  %v3604_v31 = vcvt.s32.f32 %v3602_v48 }
0x10dd   :  { %v3646_v56 = vsel %vm1145_vm4, %v3568_v40, 2147483647 }
0x10de   :  { %3606 = vmin.xlane.f32.xlu0 %v3605_v61  ;;  %v12232_v27 = vpop.xlane.xlu0 %3544  ;;  %v3648_v9 = vshra.s32 %v3646_v56, 16 }
0x10df   :  { %vm3559_vm13 = vcmp.eq.f32.partialorder %v12150_v29, %v12232_v27 }
0x10e0   :  { %v3567_v53 = vsel %vm3559_vm13, %v11023_v54, 64  ;;  %v3650_v50 = vcvt.s32.f32 %v3648_v9 }
0x10e1   :  { %v3631_v25 = vsel %vm1145_vm4, %v3567_v53, 2147483647 }
0x10e2   :  { %3651 = vmin.xlane.f32.xlu1 %v3650_v50  ;;  %v12241_v5 = vpop.xlane.xlu0 %3550  ;;  %v3633_v33 = vshra.s32 %v3631_v25, 16 }
0x10e3   :  { %vm3561_vm11 = vcmp.eq.f32.partialorder %v12165_v7, %v12241_v5 }
0x10e4   :  { %v3569_v30 = vsel %vm3561_vm11, %v11023_v54, 64  ;;  %v3635_v57 = vcvt.s32.f32 %v3633_v33 }
0x10e5   :  { %v3661_v38 = vsel %vm1145_vm4, %v3569_v30, 2147483647  ;;  %v3587_v30 = vand.u32 65535, %v12190_v44 }
0x10e6   :  { %v12250_v52 = vpop.xlane.xlu1 %3553  ;;  %3636 = vmin.xlane.f32.xlu0 %v3635_v57  ;;  %v3663_v37 = vshra.s32 %v3661_v38, 16 }
0x10e7   :  { %vm3562_vm15 = vcmp.eq.f32.partialorder %v12176_v17, %v12250_v52 }
0x10e8   :  { %v3570_v51 = vsel %vm3562_vm15, %v11023_v54, 64  ;;  %v3665_v13 = vcvt.s32.f32 %v3663_v37 }
0x10e9   :  { %v3676_v14 = vsel %vm1145_vm4, %v3570_v51, 2147483647  ;;  %v3589_v51 = vcvt.s32.f32 %v3587_v30  ;;  %v3647_v30 = vand.u32 65535, %v3646_v56 }
0x10ea   :  { %3666 = vmin.xlane.f32.xlu0 %v3665_v13  ;;  %v3678_v20 = vshra.s32 %v3676_v14, 16 }
0x10ec   :  { %v3680_v63 = vcvt.s32.f32 %v3678_v20  ;;  %v3572_v20 = vand.u32 65535, %v12202_v8 }
0x10ee   :  { %3681 = vmin.xlane.f32.xlu1 %v3680_v63  ;;  %v3574_v6 = vcvt.s32.f32 %v3572_v20 }
0x1114   :  { %v12259_v28 = vpop.f32.mrb[48].mxu1 }
0x1115   :  { %v12261_v26 = vpop.f32.mrb[49].mxu1 }
0x111c   :  { %v12263_v10 = vpop.f32.mrb[50].mxu1 }
0x111d   :  { %v12265_v16 = vpop.f32.mrb[51].mxu1 }
0x1124   :  { %v12267_v40 = vpop.f32.mrb[52].mxu1 }
0x1125   :  { %v12269_v9 = vpop.f32.mrb[53].mxu1 }
0x112b   :  { %v12271_v53 = vpop.f32.mrb[54].mxu1 }
0x112c   :  { %v12273_v33 = vpop.f32.mrb[55].mxu1 }
0x115f   :  { %v3592_v37 = vpop.xlane.xlu1 %3591 }
0x1160   :  { %vm3593_vm7 = vcmp.eq.f32.partialorder %v3590_v43, %v3592_v37  ;;  %v3598_v56 = vcvt.f32.s32 %v3592_v37 }
0x1161   :  { %v3594_v60 = vsel %vm3593_vm7, %v3589_v51, inf  ;;  %v3632_v51 = vand.u32 65535, %v3631_v25 }
0x1162   :  { %3595 = vmin.xlane.f32.xlu1 %v3594_v60  ;;  %v3649_v60 = vcvt.s32.f32 %v3647_v30  ;;  %v3599_v25 = vshll.u32 %v3598_v56, 16 }
0x1163   :  { %v3577_v22 = vpop.xlane.xlu0 %3576  ;;  %v3634_v59 = vcvt.s32.f32 %v3632_v51 }
0x1164   :  { %vm3578_vm0 = vcmp.eq.f32.partialorder %v3575_v35, %v3577_v22  ;;  %v3662_v35 = vand.u32 65535, %v3661_v38 }
0x1165   :  { %v3579_v21 = vsel %vm3578_vm0, %v3574_v6, inf }
0x1166   :  { %3580 = vmin.xlane.f32.xlu0 %v3579_v21 }
0x1167   :  { %v3622_v55 = vpop.xlane.xlu1 %3621 }
0x1168   :  { %vm3623_vm8 = vcmp.eq.f32.partialorder %v3620_v15, %v3622_v55 }
0x1169   :  { %v3624_v0 = vsel %vm3623_vm8, %v3619_v23, inf  ;;  %v3677_v23 = vand.u32 65535, %v3676_v14  ;;  %v3628_v14 = vcvt.f32.s32 %v3622_v55 }
0x116a   :  { %3625 = vmin.xlane.f32.xlu1 %v3624_v0 }
0x116b   :  { %v3607_v44 = vpop.xlane.xlu0 %3606  ;;  %v3679_v12 = vcvt.s32.f32 %v3677_v23  ;;  %v3629_v51 = vshll.u32 %v3628_v14, 16 }
0x116c   :  { %vm3608_vm5 = vcmp.eq.f32.partialorder %v3605_v61, %v3607_v44 }
0x116d   :  { %v3609_v8 = vsel %vm3608_vm5, %v3604_v31, inf  ;;  %v3664_v31 = vcvt.s32.f32 %v3662_v35 }
0x116e   :  { %3610 = vmin.xlane.f32.xlu0 %v3609_v8 }
0x116f   :  { %v12277_v43 = vpop.xlane.xlu1 %3651 }
0x1170   :  { %vm3653_vm7 = vcmp.eq.f32.partialorder %v3650_v50, %v12277_v43 }
0x1171   :  { %v3654_v6 = vsel %vm3653_vm7, %v3649_v60, inf }
0x1172   :  { %3655 = vmin.xlane.f32.xlu1 %v3654_v6  ;;  %v3613_v6 = vcvt.f32.s32 %v3607_v44 }
0x1173   :  { %v12280_v21 = vpop.xlane.xlu0 %3636 }
0x1174   :  { %vm3638_vm0 = vcmp.eq.f32.partialorder %v3635_v57, %v12280_v21  ;;  %v3583_v57 = vcvt.f32.s32 %v3577_v22  ;;  %v3614_v23 = vshll.u32 %v3613_v6, 16 }
0x1175   :  { %v3639_v0 = vsel %vm3638_vm0, %v3634_v59, inf }
0x1176   :  { %3640 = vmin.xlane.f32.xlu0 %v3639_v0  ;;  %v3584_v8 = vshll.u32 %v3583_v57, 16  ;;  %v3643_v57 = vcvt.f32.s32 %v12280_v21 }
0x1177   :  { %v12283_v48 = vpop.xlane.xlu0 %3666 }
0x1178   :  { %vm3668_vm8 = vcmp.eq.f32.partialorder %v3665_v13, %v12283_v48 }
0x1179   :  { %v3669_v46 = vsel %vm3668_vm8, %v3664_v31, inf }
0x117a   :  { %3670 = vmin.xlane.f32.xlu0 %v3669_v46  ;;  %v3658_v46 = vcvt.f32.s32 %v12277_v43 }
0x117b   :  { %v12286_v15 = vpop.xlane.xlu1 %3681 }
0x117c   :  { %vm3683_vm5 = vcmp.eq.f32.partialorder %v3680_v63, %v12286_v15 }
0x117d   :  { %v3684_v61 = vsel %vm3683_vm5, %v3679_v12, inf }
0x117e   :  { %3685 = vmin.xlane.f32.xlu1 %v3684_v61 }
0x11ef   :  { %v3596_v50 = vpop.xlane.xlu1 %3595 }
0x11f0   :  { %v3597_v38 = vcvt.f32.s32 %v3596_v50 }
0x11f2   :  { %v3600_v20 = vadd.s32 %v3599_v25, %v3597_v38  ;;  %v3659_v25 = vshll.u32 %v3658_v46, 16 }
0x11f3   :  { %v3581_v30 = vpop.xlane.xlu0 %3580 }
0x11f4   :  { %v3582_v60 = vcvt.f32.s32 %v3581_v30  ;;  %vm3692_vm7 = vcmp.eq.s32.totalorder %v11023_v54, %v3600_v20 }
0x11f5   :  { %vm3700_vm0 = vmand %vm3556_vm10, %vm3692_vm7 }
0x11f6   :  { %v3585_v13 = vadd.s32 %v3584_v8, %v3582_v60  ;;  %v12294_v63 = vsel %vm3700_vm0, inf, %v12071_v34  ;;  %v8335_v0 = vsel %vm3700_vm0, 1.0, %v14005_v24  ;;  %v3644_v60 = vshll.u32 %v3643_v57, 16 }
0x11f7   :  { %v3626_v37 = vpop.xlane.xlu1 %3625  ;;  %v3911_v22 = vsel %vm1145_vm4, %v12294_v63, inf }
0x11f8   :  { %vm3691_vm8 = vcmp.eq.s32.totalorder %v11023_v54, %v3585_v13  ;;  %v3627_v55 = vcvt.f32.s32 %v3626_v37  ;;  %3912 = vmin.xlane.f32.xlu1 %v3911_v22  ;;  %v3673_v13 = vcvt.f32.s32 %v12283_v48 }
0x11f9   :  { %vm3699_vm5 = vmand %vm3555_vm12, %vm3691_vm8 }
0x11fa   :  { %v3630_v59 = vadd.s32 %v3629_v51, %v3627_v55  ;;  %v8334_v35 = vsel %vm3699_vm5, 1.0, %v14005_v24  ;;  %v12304_v34 = vsel %vm3699_vm5, inf, %v12081_v18  ;;  %v3674_v55 = vshll.u32 %v3673_v13, 16 }
0x11fb   :  { %9530 = vmatprep.mubr.msk.f32.mxu1 %vm1145_vm4, %v8334_v35  ;;  %v3611_v31 = vpop.xlane.xlu0 %3610  ;;  %v3908_v44 = vsel %vm1145_vm4, %v12304_v34, inf }
0x11fc   :  { %v3612_v12 = vcvt.f32.s32 %v3611_v31  ;;  %3909 = vmin.xlane.f32.xlu0 %v3908_v44  ;;  %9531 = vmatmul.mubr.msk.f32.vlgmr.msra.gmra.mrb[56].mxu1 %vm1145_vm4, %v8335_v0  ;;  %vm3694_vm10 = vcmp.eq.s32.totalorder %v11023_v54, %v3630_v59  ;;  %v3688_v59 = vcvt.f32.s32 %v12286_v15 }
0x11fd   :  { %vm12316_vm12 = vmand %vm3558_vm14, %vm3694_vm10 }
0x11fe   :  { %v3615_v61 = vadd.s32 %v3614_v23, %v3612_v12  ;;  %v12323_v56 = vsel %vm12316_vm12, inf, %v12102_v2  ;;  %v8337_v14 = vsel %vm12316_vm12, 1.0, %v14005_v24  ;;  %v3689_v46 = vshll.u32 %v3688_v59, 16 }
0x11ff   :  { %v3656_v43 = vpop.xlane.xlu1 %3655  ;;  %v3917_v50 = vsel %vm1145_vm4, %v12323_v56, inf }
0x1200   :  { %vm3693_vm7 = vcmp.eq.s32.totalorder %v11023_v54, %v3615_v61  ;;  %v3657_v38 = vcvt.f32.s32 %v3656_v43  ;;  %3918 = vmin.xlane.f32.xlu1 %v3917_v50 }
0x1201   :  { %vm3701_vm14 = vmand %vm3557_vm9, %vm3693_vm7 }
0x1202   :  { %v3660_v20 = vadd.s32 %v3659_v25, %v3657_v38  ;;  %v8336_v30 = vsel %vm3701_vm14, 1.0, %v14005_v24  ;;  %v12334_v2 = vsel %vm3701_vm14, inf, %v12115_v49 }
0x1203   :  { %9533 = vmatprep.mubr.msk.f32.mxu1 %vm1145_vm4, %v8336_v30  ;;  %v3641_v8 = vpop.xlane.xlu0 %3640  ;;  %v3914_v21 = vsel %vm1145_vm4, %v12334_v2, inf }
0x1204   :  { %v3642_v37 = vcvt.f32.s32 %v3641_v8  ;;  %3915 = vmin.xlane.f32.xlu0 %v3914_v21  ;;  %9534 = vmatmul.mubr.msk.f32.gmra.mrb[58].mxu1 %vm1145_vm4, %v8337_v14  ;;  %vm3696_vm9 = vcmp.eq.s32.totalorder %v11023_v54, %v3660_v20 }
0x1205   :  { %vm12348_vm0 = vmand %vm3560_vm6, %vm3696_vm9 }
0x1206   :  { %v3645_v22 = vadd.s32 %v3644_v60, %v3642_v37  ;;  %v12355_v51 = vsel %vm12348_vm0, inf, %v12138_v36  ;;  %v8339_v23 = vsel %vm12348_vm0, 1.0, %v14005_v24 }
0x1207   :  { %v3671_v48 = vpop.xlane.xlu0 %3670  ;;  %v3923_v6 = vsel %vm1145_vm4, %v12355_v51, inf }
0x1208   :  { %vm3695_vm8 = vcmp.eq.s32.totalorder %v11023_v54, %v3645_v22  ;;  %v3672_v35 = vcvt.f32.s32 %v3671_v48  ;;  %3924 = vmin.xlane.f32.xlu1 %v3923_v6 }
0x1209   :  { %vm3703_vm6 = vmand %vm3559_vm13, %vm3695_vm8 }
0x120a   :  { %v3675_v0 = vadd.s32 %v3674_v55, %v3672_v35  ;;  %v8338_v31 = vsel %vm3703_vm6, 1.0, %v14005_v24  ;;  %v12366_v36 = vsel %vm3703_vm6, inf, %v12150_v29 }
0x120b   :  { %14055 = vst [vmem:[#allocation7_spill] sm:$0xff] %v12366_v36  ;;  %v3686_v44 = vpop.xlane.xlu1 %3685  ;;  %9536 = vmatprep.mubr.msk.f32.mxu1 %vm1145_vm4, %v8338_v31  ;;  %v3920_v15 = vsel %vm1145_vm4, %v12366_v36, inf }
0x120c   :  { %vm3697_vm5 = vcmp.eq.s32.totalorder %v11023_v54, %v3675_v0  ;;  %v3687_v12 = vcvt.f32.s32 %v3686_v44  ;;  %3921 = vmin.xlane.f32.xlu0 %v3920_v15  ;;  %9537 = vmatmul.mubr.msk.f32.gmra.mrb[60].mxu1 %vm1145_vm4, %v8339_v23 }
0x120d   :  { %vm3705_vm13 = vmand %vm3561_vm11, %vm3697_vm5 }
0x120e   :  { %v3690_v29 = vadd.s32 %v3689_v46, %v3687_v12  ;;  %v8340_v18 = vsel %vm3705_vm13, 1.0, %v14005_v24  ;;  %v12381_v61 = vsel %vm3705_vm13, inf, %v12165_v7 }
0x120f   :  { %14056 = vst [vmem:[#allocation8_spill] sm:$0xff] %v12381_v61  ;;  %9539 = vmatprep.mubr.msk.f32.mxu1 %vm1145_vm4, %v8340_v18  ;;  %v3926_v43 = vsel %vm1145_vm4, %v12381_v61, inf }
0x1210   :  { %3927 = vmin.xlane.f32.xlu0 %v3926_v43  ;;  %vm3698_vm10 = vcmp.eq.s32.totalorder %v11023_v54, %v3690_v29 }
0x1211   :  { %vm3706_vm12 = vmand %vm3562_vm15, %vm3698_vm10 }
0x1212   :  { %v8341_v50 = vsel %vm3706_vm12, 1.0, %v14005_v24  ;;  %v12392_v25 = vsel %vm3706_vm12, inf, %v12176_v17 }
0x1213   :  { %14057 = vst [vmem:[#allocation9_spill] sm:$0xff] %v12392_v25  ;;  %9540 = vmatmul.mubr.msk.f32.gmra.mrb[62].mxu1 %vm1145_vm4, %v8341_v50  ;;  %v3929_v7 = vsel %vm1145_vm4, %v12392_v25, inf }
0x1214   :  { %3930 = vmin.xlane.f32.xlu1 %v3929_v7 }
0x1285   :  { %v12397_v57 = vpop.xlane.xlu1 %3912 }
0x1286   :  { %vm3933_vm11 = vcmp.eq.f32.partialorder %v12294_v63, %v12397_v57 }
0x1287   :  { %v3941_v38 = vsel %vm3933_vm11, %v11023_v54, 64 }
0x1288   :  { %v12406_v20 = vsel %vm1145_vm4, %v3941_v38, 2147483647 }
0x1289   :  { %v12408_v17 = vpop.xlane.xlu0 %3909  ;;  %v3965_v30 = vshra.s32 %v12406_v20, 16 }
0x128a   :  { %vm3932_vm15 = vcmp.eq.f32.partialorder %v12304_v34, %v12408_v17 }
0x128b   :  { %v3940_v8 = vsel %vm3932_vm15, %v11023_v54, 64  ;;  %v12417_v21 = vcvt.s32.f32 %v3965_v30 }
0x128c   :  { %v12420_v14 = vsel %vm1145_vm4, %v3940_v8, 2147483647 }
0x128d   :  { %3968 = vmin.xlane.f32.xlu1 %v12417_v21  ;;  %v12423_v60 = vpop.xlane.xlu1 %3918  ;;  %v3950_v13 = vshra.s32 %v12420_v14, 16 }
0x128e   :  { %vm3935_vm7 = vcmp.eq.f32.partialorder %v12323_v56, %v12423_v60 }
0x128f   :  { %v3943_v37 = vsel %vm3935_vm7, %v11023_v54, 64  ;;  %v12432_v49 = vcvt.s32.f32 %v3950_v13 }
0x1290   :  { %v12435_v22 = vsel %vm1145_vm4, %v3943_v37, 2147483647 }
0x1291   :  { %3953 = vmin.xlane.f32.xlu0 %v12432_v49  ;;  %v12438_v48 = vpop.xlane.xlu0 %3915  ;;  %v3995_v6 = vshra.s32 %v12435_v22, 16 }
0x1292   :  { %vm3934_vm14 = vcmp.eq.f32.partialorder %v12334_v2, %v12438_v48 }
0x1293   :  { %v3942_v55 = vsel %vm3934_vm14, %v11023_v54, 64  ;;  %v12447_v59 = vcvt.s32.f32 %v3995_v6 }
0x1294   :  { %v12450_v35 = vsel %vm1145_vm4, %v3942_v55, 2147483647 }
0x1295   :  { %3998 = vmin.xlane.f32.xlu1 %v12447_v59  ;;  %v12453_v0 = vpop.xlane.xlu1 %3924  ;;  %v3980_v31 = vshra.s32 %v12450_v35, 16 }
0x1296   :  { %vm3937_vm9 = vcmp.eq.f32.partialorder %v12355_v51, %v12453_v0 }
0x1297   :  { %v3945_v44 = vsel %vm3937_vm9, %v11023_v54, 64  ;;  %v12462_v15 = vcvt.s32.f32 %v3980_v31 }
0x1298   :  { %v12465_v23 = vsel %vm1145_vm4, %v3945_v44, 2147483647 }
0x1299   :  { %3983 = vmin.xlane.f32.xlu0 %v12462_v15  ;;  %v12468_v46 = vpop.xlane.xlu0 %3921  ;;  %v4025_v12 = vshra.s32 %v12465_v23, 16 }
0x129a   :  { %14058 = vst [vmem:[#allocation10_spill] sm:$0xff] %v12468_v46  ;;  %vm3936_vm0 = vcmp.eq.f32.partialorder %v12366_v36, %v12468_v46  ;;  %v3855_v46 = vmul.f32 -10.0, %v12204_v19  ;;  %v3856_v19 = vmul.f32 -10.0, %v12232_v27 }
0x129b   :  { %v3944_v29 = vsel %vm3936_vm0, %v11023_v54, 64  ;;  %v12477_v18 = vcvt.s32.f32 %v4025_v12 }
0x129c   :  { %v12480_v43 = vsel %vm1145_vm4, %v3944_v29, 2147483647  ;;  %v3484_v29 = vmul.f32 -10.0, %v11982_v45  ;;  %v3854_v45 = vmul.f32 -10.0, %v12214_v32  ;;  %v3866_v36 = vmul.f32 1.442695, %v3855_v46 }
0x129d   :  { %4028 = vmin.xlane.f32.xlu1 %v12477_v18  ;;  %v12483_v50 = vpop.xlane.xlu0 %3927  ;;  %v4010_v7 = vshra.s32 %v12480_v43, 16  ;;  %v3868_v27 = vmul.f32 1.442695, %v3856_v19 }
0x129e   :  { %14059 = vst [vmem:[#allocation11_spill] sm:$0xff] %v12483_v50  ;;  %vm3938_vm8 = vcmp.eq.f32.partialorder %v12381_v61, %v12483_v50  ;;  %v3486_v61 = vmul.f32 -10.0, %v12000_v42 }
0x129f   :  { %v3946_v38 = vsel %vm3938_vm8, %v11023_v54, 64  ;;  %v12492_v30 = vcvt.s32.f32 %v4010_v7  ;;  %v3483_v7 = vmul.f32 -10.0, %v11991_v3 }
0x12a0   :  { %v12495_v8 = vsel %vm1145_vm4, %v3946_v38, 2147483647  ;;  %v3853_v38 = vmul.f32 -10.0, %v12181_v62  ;;  %v3497_v3 = vmul.f32 1.442695, %v3486_v61 }
0x12a1   :  { %v12497_v13 = vpop.xlane.xlu1 %3930  ;;  %4013 = vmin.xlane.f32.xlu0 %v12492_v30  ;;  %v4040_v37 = vshra.s32 %v12495_v8, 16 }
0x12a2   :  { %14060 = vst [vmem:[#allocation12_spill] sm:$0xff] %v12497_v13  ;;  %vm3939_vm6 = vcmp.eq.f32.partialorder %v12392_v25, %v12497_v13  ;;  %v3493_v13 = vmul.f32 1.442695, %v3484_v29  ;;  %v3491_v25 = vmul.f32 1.442695, %v3483_v7  ;;  %v3488_v29 = vmul.f32 -10.0, %v12018_v39 }
0x12a3   :  { %v3947_v6 = vsel %vm3939_vm6, %v11023_v54, 64  ;;  %v12507_v55 = vcvt.s32.f32 %v4040_v37  ;;  %v3852_v37 = vmul.f32 -10.0, %v12192_v47  ;;  %v3864_v47 = vmul.f32 1.442695, %v3854_v45 }
0x12a4   :  { %v12510_v31 = vsel %vm1145_vm4, %v3947_v6, 2147483647  ;;  %v3862_v6 = vmul.f32 1.442695, %v3853_v38  ;;  %10644 = vpow2.f32 %v3493_v13  ;;  %v3487_v13 = vmul.f32 -10.0, %v12027_v4 }
0x12a5   :  { %4043 = vmin.xlane.f32.xlu0 %v12507_v55  ;;  %v4055_v44 = vshra.s32 %v12510_v31, 16  ;;  %v3860_v50 = vmul.f32 1.442695, %v3852_v37  ;;  %10646 = vpow2.f32 %v3491_v25  ;;  %v3501_v32 = vmul.f32 1.442695, %v3488_v29 }
0x12a6   :  { %10648 = vpow2.f32 %v3862_v6  ;;  %v3499_v46 = vmul.f32 1.442695, %v3487_v13  ;;  %v3489_v6 = vmul.f32 -10.0, %v12036_v11  ;;  %v3490_v45 = vmul.f32 -10.0, %v12045_v58 }
0x12a7   :  { %v12514_v12 = vcvt.s32.f32 %v4055_v44  ;;  %v3485_v44 = vmul.f32 -10.0, %v12009_v41  ;;  %10650 = vpow2.f32 %v3860_v50  ;;  %v3857_v41 = vmul.f32 -10.0, %v12223_v1 }
0x12a8   :  { %10652 = vpow2.f32 %v3497_v3  ;;  %v3859_v11 = vmul.f32 -10.0, %v12250_v52  ;;  %v3503_v13 = vmul.f32 1.442695, %v3489_v6 }
0x12a9   :  { %4058 = vmin.xlane.f32.xlu1 %v12514_v12  ;;  %v3495_v62 = vmul.f32 1.442695, %v3485_v44  ;;  %v3870_v4 = vmul.f32 1.442695, %v3857_v41  ;;  %v3505_v41 = vmul.f32 1.442695, %v3490_v45 }
0x12aa   :  { %v3874_v19 = vmul.f32 1.442695, %v3859_v11 }
0x12ab   :  { %10654 = vpow2.f32 %v3495_v62 }
0x12ac   :  { %10656 = vpow2.f32 %v3866_v36 }
0x12ad   :  { %10658 = vpow2.f32 %v3864_v47  ;;  %v3858_v47 = vmul.f32 -10.0, %v12241_v5 }
0x12ae   :  { %v10645_v42 = vpop.eup %10644  ;;  %10660 = vpow2.f32 %v3501_v32 }
0x12af   :  { %v10647_v25 = vpop.eup %10646  ;;  %v12530_v38 = vmul.f32 %v10645_v42, %v12259_v28  ;;  %10662 = vpow2.f32 %v3499_v46 }
0x12b0   :  { %v10649_v50 = vpop.eup %10648  ;;  %v12535_v36 = vmul.f32 %v10647_v25, %v12261_v26  ;;  %10664 = vpow2.f32 %v3870_v4 }
0x12b1   :  { %v10651_v7 = vpop.eup %10650  ;;  %10666 = vpow2.f32 %v3868_v27 }
0x12b2   :  { %v10653_v62 = vpop.eup %10652  ;;  %10668 = vpow2.f32 %v3503_v13 }
0x12b3   :  { %10670 = vpow2.f32 %v3505_v41 }
0x12b4   :  { %10672 = vpow2.f32 %v3874_v19 }
0x12b5   :  { %v10655_v29 = vpop.eup %10654 }
0x12b6   :  { %v10657_v42 = vpop.eup %10656  ;;  %v12561_v52 = vmul.f32 %v10655_v29, %v12265_v16 }
0x12b7   :  { %v10659_v25 = vpop.eup %10658 }
0x12b8   :  { %v10661_v16 = vpop.eup %10660 }
0x12b9   :  { %v10663_v6 = vpop.eup %10662 }
0x12ba   :  { %v10665_v27 = vpop.eup %10664  ;;  %v12583_v13 = vmul.f32 %v10663_v6, %v12269_v9 }
0x12bb   :  { %v10667_v11 = vpop.eup %10666 }
0x12bc   :  { %v10669_v19 = vpop.eup %10668 }
0x12cf   :  { %v9532_v61 = vpop.f32.mrb[56].mxu1 }
0x12d0   :  { %v12532_v39 = vmul.f32 %v10649_v50, %v9532_v61  ;;  %v3813_v37 = vpop.f32.mrb[57].mxu1  ;;  %v12556_v50 = vmul.f32 %v10653_v62, %v12263_v10  ;;  %v12578_v62 = vmul.f32 %v10661_v16, %v12267_v40  ;;  %v3994_v40 = vand.u32 65535, %v12435_v22 }
0x12d1   :  { %v12537_v1 = vmul.f32 %v10651_v7, %v3813_v37  ;;  %v3872_v7 = vmul.f32 1.442695, %v3858_v47 }
0x12d2   :  { %v12542_v44 = vadd.f32 %v12532_v39, %v12530_v38  ;;  %v3893_v28 = vmax.f32 %v12530_v38, %v12532_v39 }
0x12d3   :  { %v12549_v3 = vadd.f32 %v12537_v1, %v12535_v36  ;;  %10674 = vpow2.f32 %v3872_v7 }
0x12d7   :  { %v9535_v58 = vpop.f32.mrb[58].mxu1 }
0x12d8   :  { %v12558_v32 = vmul.f32 %v10657_v42, %v9535_v58  ;;  %v3823_v61 = vpop.f32.mrb[59].mxu1 }
0x12d9   :  { %v12563_v46 = vmul.f32 %v10659_v25, %v3823_v61  ;;  %v10671_v61 = vpop.eup %10670 }
0x12da   :  { %v12567_v5 = vadd.f32 %v12558_v32, %v12556_v50  ;;  %v10673_v9 = vpop.eup %10672  ;;  %v12600_v6 = vmul.f32 %v10671_v61, %v12271_v53  ;;  %v3964_v61 = vand.u32 65535, %v12406_v20  ;;  %v3996_v53 = vcvt.s32.f32 %v3994_v40 }
0x12db   :  { %v12573_v10 = vadd.f32 %v12563_v46, %v12561_v52  ;;  %v3979_v20 = vand.u32 65535, %v12450_v35 }
0x12dd   :  { %v10675_v16 = vpop.eup %10674 }
0x12df   :  { %v9538_v45 = vpop.f32.mrb[60].mxu1 }
0x12e0   :  { %v12580_v47 = vmul.f32 %v10665_v27, %v9538_v45  ;;  %v3833_v29 = vpop.f32.mrb[61].mxu1 }
0x12e1   :  { %v12585_v42 = vmul.f32 %v10667_v11, %v3833_v29  ;;  %v12605_v11 = vmul.f32 %v10669_v19, %v12273_v33  ;;  %v3966_v19 = vcvt.s32.f32 %v3964_v61 }
0x12e2   :  { %v12589_v41 = vadd.f32 %v12580_v47, %v12578_v62 }
0x12e3   :  { %v12595_v25 = vadd.f32 %v12585_v42, %v12583_v13 }
0x12e6   :  { %v9541_v7 = vpop.f32.mrb[62].mxu1 }
0x12e7   :  { %v12602_v27 = vmul.f32 %v10673_v9, %v9541_v7  ;;  %v3843_v45 = vpop.f32.mrb[63].mxu1  ;;  %v3949_v9 = vand.u32 65535, %v12420_v14 }
0x12e8   :  { %v12607_v29 = vmul.f32 %v10675_v16, %v3843_v45 }
0x12e9   :  { %v12611_v58 = vadd.f32 %v12602_v27, %v12600_v6  ;;  %v3951_v45 = vcvt.s32.f32 %v3949_v9 }
0x12ea   :  { %v12617_v4 = vadd.f32 %v12607_v29, %v12605_v11 }
0x131a   :  { %v3969_v33 = vpop.xlane.xlu1 %3968 }
0x131b   :  { %vm3970_vm5 = vcmp.eq.f32.partialorder %v12417_v21, %v3969_v33  ;;  %v3981_v21 = vcvt.s32.f32 %v3979_v20 }
0x131c   :  { %v3971_v7 = vsel %vm3970_vm5, %v3966_v19, inf  ;;  %v4024_v19 = vand.u32 65535, %v12465_v23 }
0x131d   :  { %3972 = vmin.xlane.f32.xlu1 %v3971_v7 }
0x131e   :  { %v3954_v16 = vpop.xlane.xlu0 %3953 }
0x131f   :  { %vm3955_vm13 = vcmp.eq.f32.partialorder %v12432_v49, %v3954_v16  ;;  %v4026_v49 = vcvt.s32.f32 %v4024_v19  ;;  %v3960_v19 = vcvt.f32.s32 %v3954_v16 }
0x1320   :  { %v3956_v37 = vsel %vm3955_vm13, %v3951_v45, inf  ;;  %v4054_v45 = vand.u32 65535, %v12510_v31 }
0x1321   :  { %3957 = vmin.xlane.f32.xlu0 %v3956_v37  ;;  %v4009_v37 = vand.u32 65535, %v12480_v43  ;;  %v3961_v31 = vshll.u32 %v3960_v19, 16 }
0x1322   :  { %v3999_v26 = vpop.xlane.xlu1 %3998 }
0x1323   :  { %vm4000_vm10 = vcmp.eq.f32.partialorder %v12447_v59, %v3999_v26  ;;  %v4011_v59 = vcvt.s32.f32 %v4009_v37 }
0x1324   :  { %v4001_v61 = vsel %vm4000_vm10, %v3996_v53, inf  ;;  %v4039_v53 = vand.u32 65535, %v12495_v8  ;;  %v3975_v8 = vcvt.f32.s32 %v3969_v33 }
0x1325   :  { %4002 = vmin.xlane.f32.xlu1 %v4001_v61 }
0x1326   :  { %v3984_v14 = vpop.xlane.xlu0 %3983 }
0x1327   :  { %vm3985_vm12 = vcmp.eq.f32.partialorder %v12462_v15, %v3984_v14  ;;  %v4041_v15 = vcvt.s32.f32 %v4039_v53 }
0x1328   :  { %v3986_v9 = vsel %vm3985_vm12, %v3981_v21, inf  ;;  %v3976_v21 = vshll.u32 %v3975_v8, 16 }
0x1329   :  { %3987 = vmin.xlane.f32.xlu0 %v3986_v9 }
0x132a   :  { %v4029_v22 = vpop.xlane.xlu1 %4028 }
0x132b   :  { %vm4030_vm5 = vcmp.eq.f32.partialorder %v12477_v18, %v4029_v22  ;;  %v4056_v18 = vcvt.s32.f32 %v4054_v45 }
0x132c   :  { %v4031_v40 = vsel %vm4030_vm5, %v4026_v49, inf }
0x132d   :  { %4032 = vmin.xlane.f32.xlu1 %v4031_v40  ;;  %v4005_v40 = vcvt.f32.s32 %v3999_v26 }
0x132e   :  { %v4014_v35 = vpop.xlane.xlu0 %4013 }
0x132f   :  { %vm4015_vm13 = vcmp.eq.f32.partialorder %v12492_v30, %v4014_v35  ;;  %v4020_v34 = vcvt.f32.s32 %v4014_v35 }
0x1330   :  { %v4016_v7 = vsel %vm4015_vm13, %v4011_v59, inf }
0x1331   :  { %4017 = vmin.xlane.f32.xlu0 %v4016_v7  ;;  %v4006_v7 = vshll.u32 %v4005_v40, 16  ;;  %v4021_v35 = vshll.u32 %v4020_v34, 16  ;;  %v2684_v34 = vld [vmem:[#allocation2 + $0x1c0] sm:$0xff] }
0x1332   :  { %v4044_v23 = vpop.xlane.xlu0 %4043 }
0x1333   :  { %vm4045_vm10 = vcmp.eq.f32.partialorder %v12507_v55, %v4044_v23 }
0x1334   :  { %v4046_v20 = vsel %vm4045_vm10, %v4041_v15, inf  ;;  %v3990_v15 = vcvt.f32.s32 %v3984_v14 }
0x1335   :  { %4047 = vmin.xlane.f32.xlu0 %v4046_v20  ;;  %v4035_v20 = vcvt.f32.s32 %v4029_v22 }
0x1336   :  { %v12636_v43 = vpop.xlane.xlu1 %4058  ;;  %v3991_v14 = vshll.u32 %v3990_v15, 16 }
0x1337   :  { %vm4060_vm12 = vcmp.eq.f32.partialorder %v12514_v12, %v12636_v43  ;;  %v4036_v8 = vshll.u32 %v4035_v20, 16  ;;  %v4065_v2 = vcvt.f32.s32 %v12636_v43  ;;  %v14066_v20 = vld [vmem:[#allocation12_spill] sm:$0xff] }
0x1338   :  { %v4061_v61 = vsel %vm4060_vm12, %v4056_v18, inf }
0x1339   :  { %4062 = vmin.xlane.f32.xlu1 %v4061_v61  ;;  %v4066_v43 = vshll.u32 %v4065_v2, 16 }
0x13aa   :  { %v3973_v30 = vpop.xlane.xlu1 %3972 }
0x13ab   :  { %v3974_v9 = vcvt.f32.s32 %v3973_v30 }
0x13ad   :  { %v3977_v49 = vadd.s32 %v3976_v21, %v3974_v9 }
0x13ae   :  { %v3958_v37 = vpop.xlane.xlu0 %3957 }
0x13af   :  { %v3959_v55 = vcvt.f32.s32 %v3958_v37  ;;  %vm4069_vm5 = vcmp.eq.s32.totalorder %v11023_v54, %v3977_v49  ;;  %v4050_v49 = vcvt.f32.s32 %v4044_v23 }
0x13b0   :  { %vm4077_vm13 = vmand %vm3933_vm11, %vm4069_vm5 }
0x13b1   :  { %v3962_v59 = vadd.s32 %v3961_v31, %v3959_v55  ;;  %v8351_v16 = vsel %vm4077_vm13, 1.0, %v14005_v24  ;;  %v4051_v40 = vshll.u32 %v4050_v49, 16  ;;  %v4685_v49 = vld [vmem:[#allocation2 + $0x200] sm:$0xff] }
0x13b2   :  { %v4003_v53 = vpop.xlane.xlu1 %4002 }
0x13b3   :  { %vm4068_vm10 = vcmp.eq.s32.totalorder %v11023_v54, %v3962_v59  ;;  %v4004_v12 = vcvt.f32.s32 %v4003_v53  ;;  %v14062_v53 = vld [vmem:[#allocation10_spill] sm:$0xff]  ;;  %v4231_v59 = vmul.f32 -10.0, %v12438_v48 }
0x13b4   :  { %vm4076_vm12 = vmand %vm3932_vm15, %vm4068_vm10 }
0x13b5   :  { %v4007_v33 = vadd.s32 %v4006_v7, %v4004_v12  ;;  %v8350_v26 = vsel %vm4076_vm12, 1.0, %v14005_v24 }
0x13b6   :  { %9558 = vmatprep.mubr.msk.f32.mxu0 %vm1145_vm4, %v8350_v26  ;;  %v3988_v45 = vpop.xlane.xlu0 %3987  ;;  %v14064_v26 = vld [vmem:[#allocation11_spill] sm:$0xff] }
0x13b7   :  { %v3989_v18 = vcvt.f32.s32 %v3988_v45  ;;  %9559 = vmatmul.mubr.msk.f32.vlgmr.msra.gmra.mrb[64].mxu0 %vm1145_vm4, %v8351_v16  ;;  %vm4071_vm11 = vcmp.eq.s32.totalorder %v11023_v54, %v4007_v33 }
0x13b8   :  { %vm4079_vm5 = vmand %vm3935_vm7, %vm4071_vm11 }
0x13b9   :  { %v3992_v63 = vadd.s32 %v3991_v14, %v3989_v18  ;;  %v8353_v9 = vsel %vm4079_vm5, 1.0, %v14005_v24 }
0x13ba   :  { %v4033_v61 = vpop.xlane.xlu1 %4032 }
0x13bb   :  { %vm4070_vm15 = vcmp.eq.s32.totalorder %v11023_v54, %v3992_v63  ;;  %v4034_v30 = vcvt.f32.s32 %v4033_v61  ;;  %v2682_v63 = vld [vmem:[#allocation2 + $0x1b0] sm:$0xff]  ;;  %v2683_v61 = vld [vmem:[#allocation2 + $0x1b8] sm:$0xff] }
0x13bc   :  { %vm4078_vm13 = vmand %vm3934_vm14, %vm4070_vm15 }
0x13bd   :  { %v4037_v22 = vadd.s32 %v4036_v8, %v4034_v30  ;;  %v8352_v21 = vsel %vm4078_vm13, 1.0, %v14005_v24  ;;  %v10284_v8 = vpack.c.bf16 %v2683_v61, %v2682_v63  ;;  %v2685_v30 = vld [vmem:[#allocation2 + $0x1c8] sm:$0xff]  ;;  %v2680_v63 = vld [vmem:[#allocation2 + $0x1a0] sm:$0xff] }
0x13be   :  { %9561 = vmatprep.mubr.msk.f32.mxu0 %vm1145_vm4, %v8352_v21  ;;  %v4018_v19 = vpop.xlane.xlu0 %4017  ;;  %v2678_v21 = vld [vmem:[#allocation2 + $0x190] sm:$0xff]  ;;  %v2681_v61 = vld [vmem:[#allocation2 + $0x1a8] sm:$0xff] }
0x13bf   :  { %v4019_v37 = vcvt.f32.s32 %v4018_v19  ;;  %9562 = vmatmul.mubr.msk.f32.gmra.mrb[66].mxu0 %vm1145_vm4, %v8353_v9  ;;  %vm4073_vm10 = vcmp.eq.s32.totalorder %v11023_v54, %v4037_v22  ;;  %10285 = vmatprep.subr.bf16.mxu1 %v10284_v8  ;;  %v10288_v22 = vpack.c.bf16 %v2685_v30, %v2684_v34  ;;  %v2679_v19 = vld [vmem:[#allocation2 + $0x198] sm:$0xff]  ;;  %v4235_v34 = vmul.f32 -10.0, %v14064_v26 }
0x13c0   :  { %vm4081_vm14 = vmand %vm3937_vm9, %vm4073_vm10  ;;  %10287 = vmatpush3.bf16.msra.mxu1 %v10284_v8  ;;  %v10292_v9 = vpack.c.bf16 %v2679_v19, %v2678_v21  ;;  %v4236_v8 = vmul.f32 -10.0, %v14066_v20  ;;  %v10296_v38 = vpack.c.bf16 %v2681_v61, %v2680_v63  ;;  %v2688_v63 = vld [vmem:[#allocation2 + $0x1e0] sm:$0xff]  ;;  %v2689_v61 = vld [vmem:[#allocation2 + $0x1e8] sm:$0xff] }
0x13c1   :  { %v4022_v56 = vadd.s32 %v4021_v35, %v4019_v37  ;;  %v8355_v12 = vsel %vm4081_vm14, 1.0, %v14005_v24  ;;  %10289 = vmatprep.subr.bf16.mxu1 %v10288_v22  ;;  %v4684_v35 = vld [vmem:[#allocation2 + $0x1f8] sm:$0xff]  ;;  %v4249_v20 = vmul.f32 1.442695, %v4235_v34 }
0x13c2   :  { %v4048_v31 = vpop.xlane.xlu0 %4047  ;;  %v10308_v37 = vpack.c.bf16 %v4685_v49, %v4684_v35  ;;  %v14068_v49 = vmax.f32 %v12556_v50, %v12558_v32  ;;  %v14080_v34 = vld [vmem:[#allocation5_spill] sm:$0xff] }
0x13c3   :  { %vm4072_vm7 = vcmp.eq.s32.totalorder %v11023_v54, %v4022_v56  ;;  %v4049_v55 = vcvt.f32.s32 %v4048_v31  ;;  %v4230_v56 = vmul.f32 -10.0, %v12397_v57  ;;  %v4229_v31 = vmul.f32 -10.0, %v12408_v17 }
0x13c4   :  { %vm4080_vm12 = vmand %vm3936_vm0, %vm4072_vm7  ;;  %10291 = vmatpush3.bf16.msra.mxu1 %v10288_v22  ;;  %10309 = vmatprep.subr.bf16.mxu0 %v10308_v37  ;;  %v2687_v22 = vld [vmem:[#allocation2 + $0x1d8] sm:$0xff] }
0x13c5   :  { %v4052_v23 = vadd.s32 %v4051_v40, %v4049_v55  ;;  %v8354_v7 = vsel %vm4080_vm12, 1.0, %v14005_v24  ;;  %10293 = vmatprep.subr.bf16.mxu1 %v10292_v9  ;;  %10311 = vmatpush3.bf16.msra.mxu0 %v10308_v37  ;;  %v4239_v40 = vmul.f32 1.442695, %v4230_v56  ;;  %v4237_v2 = vmul.f32 1.442695, %v4229_v31 }
0x13c6   :  { %v4063_v15 = vpop.xlane.xlu1 %4062  ;;  %9564 = vmatprep.mubr.msk.f32.mxu0 %vm1145_vm4, %v8354_v7  ;;  %v4232_v55 = vmul.f32 -10.0, %v12423_v60  ;;  %v4241_v7 = vmul.f32 1.442695, %v4231_v59 }
0x13c7   :  { %vm4074_vm11 = vcmp.eq.s32.totalorder %v11023_v54, %v4052_v23  ;;  %v4064_v33 = vcvt.f32.s32 %v4063_v15  ;;  %9565 = vmatmul.mubr.msk.f32.gmra.mrb[68].mxu0 %vm1145_vm4, %v8355_v12  ;;  %10676 = vpow2.f32 %v4239_v40  ;;  %v4234_v15 = vmul.f32 -10.0, %v12453_v0 }
0x13c8   :  { %vm4082_vm9 = vmand %vm3938_vm8, %vm4074_vm11  ;;  %10678 = vpow2.f32 %v4237_v2  ;;  %v4243_v23 = vmul.f32 1.442695, %v4232_v55  ;;  %v4233_v12 = vmul.f32 -10.0, %v14062_v53  ;;  %v14067_v53 = vmax.f32 %v12535_v36, %v12537_v1 }
0x13c9   :  { %v4067_v16 = vadd.s32 %v4066_v43, %v4064_v33  ;;  %v8356_v45 = vsel %vm4082_vm9, 1.0, %v14005_v24  ;;  %v4251_v1 = vmul.f32 1.442695, %v4236_v8  ;;  %v14069_v40 = vmax.f32 %v12561_v52, %v12563_v46  ;;  %v14074_v8 = vld [vmem:[#allocation15_spill] sm:$0xff] }
0x13ca   :  { %9567 = vmatprep.mubr.msk.f32.mxu0 %vm1145_vm4, %v8356_v45  ;;  %10680 = vpow2.f32 %v4243_v23  ;;  %v4245_v14 = vmul.f32 1.442695, %v4233_v12  ;;  %v14070_v52 = vmax.f32 %v12578_v62, %v12580_v47  ;;  %v14071_v12 = vmax.f32 %v12583_v13, %v12585_v42 }
0x13cb   :  { %vm4075_vm0 = vcmp.eq.s32.totalorder %v11023_v54, %v4067_v16  ;;  %10682 = vpow2.f32 %v4241_v7  ;;  %v4247_v16 = vmul.f32 1.442695, %v4234_v15  ;;  %v14072_v47 = vmax.f32 %v12600_v6, %v12602_v27  ;;  %v14075_v6 = vld [vmem:[#allocation18_spill] sm:$0xff]  ;;  %v14077_v27 = vld [vmem:[#allocation19_spill] sm:$0xff] }
0x13cc   :  { %vm4083_vm15 = vmand %vm3939_vm6, %vm4075_vm0  ;;  %v14073_v42 = vmax.f32 %v12605_v11, %v12607_v29  ;;  %v14078_v11 = vld [vmem:[#allocation17_spill] sm:$0xff]  ;;  %v14079_v29 = vld [vmem:[#allocation20_spill] sm:$0xff] }
0x13cd   :  { %v8357_v18 = vsel %vm4083_vm15, 1.0, %v14005_v24  ;;  %10684 = vpow2.f32 %v4247_v16 }
0x13ce   :  { %9568 = vmatmul.mubr.msk.f32.gmra.mrb[70].mxu0 %vm1145_vm4, %v8357_v18  ;;  %10686 = vpow2.f32 %v4245_v14 }
0x13cf   :  { %10688 = vpow2.f32 %v4251_v1 }
0x13d0   :  { %10690 = vpow2.f32 %v4249_v20 }
0x13d1   :  { %v10677_v43 = vpop.eup %10676 }
0x13d2   :  { %v10679_v33 = vpop.eup %10678 }
0x13d4   :  { %v10681_v39 = vpop.eup %10680 }
0x13d5   :  { %v10683_v36 = vpop.eup %10682 }
0x148a   :  { %v9560_v57 = vpop.f32.mrb[64].mxu0 }
0x148b   :  { %v4254_v17 = vmul.f32 %v10677_v43, %v9560_v57  ;;  %v4190_v51 = vpop.f32.mrb[65].mxu0 }
0x148c   :  { %v4253_v45 = vmul.f32 %v10679_v33, %v4190_v51 }
0x148d   :  { %v4262_v60 = vadd.f32 %v4254_v17, %v12542_v44  ;;  %v12699_v48 = vmax.f32 %v3893_v28, %v4254_v17 }
0x148e   :  { %v4261_v0 = vadd.f32 %v4253_v45, %v12549_v3  ;;  %v12705_v18 = vmax.f32 %v14067_v53, %v4253_v45  ;;  %v2686_v3 = vld [vmem:[#allocation2 + $0x1d0] sm:$0xff] }
0x148f   :  { %v4278_v30 = vmul.f32 0.33333334, %v4262_v60  ;;  %v10300_v56 = vpack.c.bf16 %v2687_v22, %v2686_v3  ;;  %v8390_v3 = vld [vmem:[#allocation2 + $0x1f0] ss:$0 sm:$0xff] }
0x1490   :  { %v4277_v44 = vmul.f32 0.33333334, %v4261_v0 }
0x1492   :  { %v9563_v28 = vpop.f32.mrb[66].mxu0  ;;  %9578 = vmatprep.mubr.msk.f32.mxu1 %vm194_vm1, %v4277_v44  ;;  %v14081_v44 = vld [vmem:[#allocation6_spill] sm:$0xff] }
0x1493   :  { %v4256_v21 = vmul.f32 %v10681_v39, %v9563_v28  ;;  %v4200_v19 = vpop.f32.mrb[67].mxu0  ;;  %9579 = vmatmul.mubr.msk.f32.vlgmr.msra.gmra.mrb[64].mxu1 %vm194_vm1, %v4278_v30  ;;  %v4686_v30 = vld [vmem:[#allocation2 + $0x208] sm:$0xff] }
0x1494   :  { %v4255_v35 = vmul.f32 %v10683_v36, %v4200_v19  ;;  %10295 = vmatpush3.bf16.msra.mxu1 %v10292_v9  ;;  %v10685_v9 = vpop.eup %10684  ;;  %v4690_v28 = vld [vmem:[#allocation2 + $0x228] sm:$0xff] }
0x1495   :  { %v4264_v26 = vadd.f32 %v4256_v21, %v12567_v5  ;;  %v4272_v37 = vmax.f32 %v14068_v49, %v4256_v21  ;;  %10297 = vmatprep.subr.bf16.mxu1 %v10296_v38  ;;  %v10687_v50 = vpop.eup %10686  ;;  %v4692_v49 = vld [vmem:[#allocation2 + $0x238] sm:$0xff] }
0x1496   :  { %v4263_v31 = vadd.f32 %v4255_v35, %v12573_v10  ;;  %v4271_v2 = vmax.f32 %v14069_v40, %v4255_v35  ;;  %v10689_v33 = vpop.eup %10688 }
0x1497   :  { %v4280_v59 = vmul.f32 0.33333334, %v4264_v26  ;;  %v10691_v16 = vpop.eup %10690  ;;  %v4691_v26 = vld [vmem:[#allocation2 + $0x230] sm:$0xff] }
0x1498   :  { %v4279_v55 = vmul.f32 0.33333334, %v4263_v31  ;;  %10299 = vmatpush3.bf16.msra.mxu1 %v10296_v38  ;;  %v4687_v38 = vld [vmem:[#allocation2 + $0x210] sm:$0xff] }
0x1499   :  { %10301 = vmatprep.subr.bf16.mxu1 %v10300_v56  ;;  %v10312_v39 = vpack.c.bf16 %v4687_v38, %v4686_v30 }
0x149a   :  { %v9566_v5 = vpop.f32.mrb[68].mxu0  ;;  %9581 = vmatprep.mubr.msk.f32.mxu1 %vm194_vm1, %v4279_v55 }
0x149b   :  { %v4258_v32 = vmul.f32 %v10685_v9, %v9566_v5  ;;  %v4210_v23 = vpop.f32.mrb[69].mxu0  ;;  %9582 = vmatmul.mubr.msk.f32.gmra.mrb[66].mxu1 %vm194_vm1, %v4280_v59  ;;  %10313 = vmatprep.subr.bf16.mxu0 %v10312_v39  ;;  %v10320_v59 = vpack.c.bf16 %v4692_v49, %v4691_v26 }
0x149c   :  { %v4257_v10 = vmul.f32 %v10687_v50, %v4210_v23  ;;  %10315 = vmatpush3.bf16.msra.mxu0 %v10312_v39 }
0x149d   :  { %v4266_v7 = vadd.f32 %v4258_v32, %v12589_v41  ;;  %v4274_v46 = vmax.f32 %v14070_v52, %v4258_v32 }
0x149e   :  { %v4265_v15 = vadd.f32 %v4257_v10, %v12595_v25  ;;  %v4273_v43 = vmax.f32 %v14071_v12, %v4257_v10 }
0x149f   :  { %v4282_v17 = vmul.f32 0.33333334, %v4266_v7 }
0x14a0   :  { %v4281_v57 = vmul.f32 0.33333334, %v4265_v15 }
0x14a1   :  { %v9569_v51 = vpop.f32.mrb[70].mxu0 }
0x14a2   :  { %v4260_v45 = vmul.f32 %v10689_v33, %v9569_v51  ;;  %v4220_v14 = vpop.f32.mrb[71].mxu0  ;;  %9584 = vmatprep.mubr.msk.f32.mxu1 %vm194_vm1, %v4281_v57 }
0x14a3   :  { %v4259_v41 = vmul.f32 %v10691_v16, %v4220_v14  ;;  %9585 = vmatmul.mubr.msk.f32.gmra.mrb[68].mxu1 %vm194_vm1, %v4282_v17 }
0x14a4   :  { %v4268_v62 = vadd.f32 %v4260_v45, %v12611_v58  ;;  %v4276_v25 = vmax.f32 %v14072_v47, %v4260_v45  ;;  %v10304_v58 = vpack.c.bf16 %v2689_v61, %v2688_v63 }
0x14a5   :  { %v4267_v13 = vadd.f32 %v4259_v41, %v12617_v4  ;;  %v4275_v60 = vmax.f32 %v14073_v42, %v4259_v41  ;;  %v14076_v4 = vld [vmem:[#allocation16_spill] sm:$0xff]  ;;  %v8391_v41 = vld [vmem:[#allocation2 + $0x218] ss:$0 sm:$0xff] }
0x14a6   :  { %v4284_v53 = vmul.f32 0.33333334, %v4268_v62 }
0x14a7   :  { %v4283_v0 = vmul.f32 0.33333334, %v4267_v13 }
0x14a9   :  { %9587 = vmatprep.mubr.msk.f32.mxu1 %vm194_vm1, %v4283_v0 }
0x14aa   :  { %9588 = vmatmul.mubr.msk.f32.gmra.mrb[70].mxu1 %vm194_vm1, %v4284_v53 }
0x14ab   :  { %9598 = vmatprep.mubr.msk.f32.mxu1 %vm194_vm1, %v14074_v8 }
0x14ae   :  { %9599 = vmatmul.mubr.msk.f32.vlgmr.msra.gmra.mrb[64].mxu1 %vm194_vm1, %v14075_v6 }
0x14af   :  { %10303 = vmatpush3.bf16.msra.mxu1 %v10300_v56  ;;  %9601 = vmatprep.mubr.msk.f32.mxu1 %vm194_vm1, %v14076_v4 }
0x14b0   :  { %10305 = vmatprep.subr.bf16.mxu1 %v10304_v58 }
0x14b2   :  { %9602 = vmatmul.mubr.msk.f32.gmra.mrb[66].mxu1 %vm194_vm1, %v14077_v27 }
0x14b3   :  { %9604 = vmatprep.mubr.msk.f32.mxu1 %vm194_vm1, %v14078_v11  ;;  %10307 = vmatpush3.bf16.msra.mxu1 %v10304_v58 }
0x14b6   :  { %9605 = vmatmul.mubr.msk.f32.gmra.mrb[68].mxu1 %vm194_vm1, %v14079_v29 }
0x14b7   :  { %9607 = vmatprep.mubr.msk.f32.mxu1 %vm194_vm1, %v14080_v34 }
0x14ba   :  { %9608 = vmatmul.mubr.msk.f32.gmra.mrb[70].mxu1 %vm194_vm1, %v14081_v44 }
0x14bb   :  { %9618 = vmatprep.mubr.msk.f32.mxu1 %vm194_vm1, %v12705_v18  ;;  %v4689_v18 = vld [vmem:[#allocation2 + $0x220] sm:$0xff] }
0x14be   :  { %9619 = vmatmul.mubr.msk.f32.vlgmr.msra.gmra.mrb[64].mxu1 %vm194_vm1, %v12699_v48  ;;  %v10316_v48 = vpack.c.bf16 %v4690_v28, %v4689_v18 }
0x14bf   :  { %9621 = vmatprep.mubr.msk.f32.mxu1 %vm194_vm1, %v4271_v2 }
0x14c0   :  { %10317 = vmatprep.subr.bf16.mxu0 %v10316_v48 }
0x14c2   :  { %9622 = vmatmul.mubr.msk.f32.gmra.mrb[66].mxu1 %vm194_vm1, %v4272_v37 }
0x14c3   :  { %9624 = vmatprep.mubr.msk.f32.mxu1 %vm194_vm1, %v4273_v43 }
0x14c6   :  { %9625 = vmatmul.mubr.msk.f32.gmra.mrb[68].mxu1 %vm194_vm1, %v4274_v46 }
0x14c7   :  { %9627 = vmatprep.mubr.msk.f32.mxu1 %vm194_vm1, %v4275_v60 }
0x14ca   :  { %9628 = vmatmul.mubr.msk.f32.gmra.mrb[70].mxu1 %vm194_vm1, %v4276_v25 }
0x1591   :  { %v9620_v22 = vpop.f32.mrb[64].mxu1 }
0x1592   :  { %v4661_v36 = vadd.f32 %v9620_v22, %v8390_v3  ;;  %v4609_v1 = vpop.f32.mrb[65].mxu1 }
0x1593   :  { %v4660_v21 = vadd.f32 %v8390_v3, %v4609_v1 }
0x1594   :  { %v4669_v19 = vmul.f32 0.01, %v4661_v36 }
0x1595   :  { %v4668_v20 = vmul.f32 0.01, %v4660_v21  ;;  %v9623_v35 = vpop.f32.mrb[66].mxu1 }
0x1596   :  { %v4663_v37 = vadd.f32 %v9623_v35, %v8390_v3  ;;  %v4619_v56 = vpop.f32.mrb[67].mxu1  ;;  %v12769_v2 = vmax.f32 %v4661_v36, %v4669_v19  ;;  %v8400_v35 = vld [vmem:[#allocation2 + $0x240] ss:$0 sm:$0xff] }
0x1597   :  { %v12767_v31 = vmax.f32 %v4660_v21, %v4668_v20  ;;  %v4662_v40 = vadd.f32 %v8390_v3, %v4619_v56 }
0x1598   :  { %14083 = vst [vmem:[#allocation10_spill] sm:$0xff] %v12769_v2  ;;  %v4671_v55 = vmul.f32 0.01, %v4663_v37 }
0x1599   :  { %14082 = vst [vmem:[#allocation7_spill] sm:$0xff] %v12767_v31  ;;  %v4670_v9 = vmul.f32 0.01, %v4662_v40  ;;  %v9626_v5 = vpop.f32.mrb[68].mxu1  ;;  %9638 = vmatprep.mubr.msk.f32.mxu0 %vm194_vm1, %v12767_v31 }
0x159a   :  { %v4665_v50 = vadd.f32 %v9626_v5, %v8390_v3  ;;  %v4629_v32 = vpop.f32.mrb[69].mxu1  ;;  %9639 = vmatmul.mubr.msk.f32.vlgmr.msra.gmra.mrb[72].mxu0 %vm194_vm1, %v12769_v2  ;;  %v12777_v7 = vmax.f32 %v4663_v37, %v4671_v55 }
0x159b   :  { %v12775_v23 = vmax.f32 %v4662_v40, %v4670_v9  ;;  %v4664_v10 = vadd.f32 %v8390_v3, %v4629_v32  ;;  %10319 = vmatpush3.bf16.msra.mxu0 %v10316_v48 }
0x159c   :  { %14085 = vst [vmem:[#allocation11_spill] sm:$0xff] %v12777_v7  ;;  %v4673_v52 = vmul.f32 0.01, %v4665_v50  ;;  %10321 = vmatprep.subr.bf16.mxu0 %v10320_v59 }
0x159d   :  { %14084 = vst [vmem:[#allocation8_spill] sm:$0xff] %v12775_v23  ;;  %v4672_v46 = vmul.f32 0.01, %v4664_v10  ;;  %v9629_v15 = vpop.f32.mrb[70].mxu1  ;;  %9641 = vmatprep.mubr.msk.f32.mxu0 %vm194_vm1, %v12775_v23 }
0x159e   :  { %v4667_v12 = vadd.f32 %v9629_v15, %v8390_v3  ;;  %v4639_v43 = vpop.f32.mrb[71].mxu1  ;;  %9642 = vmatmul.mubr.msk.f32.gmra.mrb[74].mxu0 %vm194_vm1, %v12777_v7  ;;  %v12785_v17 = vmax.f32 %v4665_v50, %v4673_v52 }
0x159f   :  { %v12783_v57 = vmax.f32 %v4664_v10, %v4672_v46  ;;  %v4666_v33 = vadd.f32 %v8390_v3, %v4639_v43  ;;  %10323 = vmatpush3.bf16.msra.mxu0 %v10320_v59 }
0x15a0   :  { %14087 = vst [vmem:[#allocation12_spill] sm:$0xff] %v12785_v17  ;;  %v4675_v51 = vmul.f32 0.01, %v4667_v12 }
0x15a1   :  { %14086 = vst [vmem:[#allocation9_spill] sm:$0xff] %v12783_v57  ;;  %v4674_v16 = vmul.f32 0.01, %v4666_v33  ;;  %9644 = vmatprep.mubr.msk.f32.mxu0 %vm194_vm1, %v12783_v57 }
0x15a2   :  { %9645 = vmatmul.mubr.msk.f32.gmra.mrb[76].mxu0 %vm194_vm1, %v12785_v17  ;;  %v12793_v14 = vmax.f32 %v4667_v12, %v4675_v51 }
0x15a3   :  { %v12791_v45 = vmax.f32 %v4666_v33, %v4674_v16 }
0x15a4   :  { %14089 = vst [vmem:[#allocation18_spill] sm:$0xff] %v12793_v14 }
0x15a5   :  { %14088 = vst [vmem:[#allocation15_spill] sm:$0xff] %v12791_v45  ;;  %9647 = vmatprep.mubr.msk.f32.mxu0 %vm194_vm1, %v12791_v45 }
0x15a6   :  { %9648 = vmatmul.mubr.msk.f32.gmra.mrb[78].mxu0 %vm194_vm1, %v12793_v14 }
0x15a7   :  { %9658 = vmatprep.mubr.msk.f32.mxu0 %vm194_vm1, %v12767_v31 }
0x15aa   :  { %9659 = vmatmul.mubr.msk.f32.vlgmr.msra.gmra.mrb[80].mxu0 %vm194_vm1, %v12769_v2 }
0x15ab   :  { %9661 = vmatprep.mubr.msk.f32.mxu0 %vm194_vm1, %v12775_v23 }
0x15ae   :  { %9662 = vmatmul.mubr.msk.f32.gmra.mrb[82].mxu0 %vm194_vm1, %v12777_v7 }
0x15af   :  { %9664 = vmatprep.mubr.msk.f32.mxu0 %vm194_vm1, %v12783_v57 }
0x15b2   :  { %9665 = vmatmul.mubr.msk.f32.gmra.mrb[84].mxu0 %vm194_vm1, %v12785_v17 }
0x15b3   :  { %9667 = vmatprep.mubr.msk.f32.mxu0 %vm194_vm1, %v12791_v45 }
0x15b6   :  { %9668 = vmatmul.mubr.msk.f32.gmra.mrb[86].mxu0 %vm194_vm1, %v12793_v14 }
0x166d   :  { %v9640_v62 = vpop.f32.mrb[72].mxu0 }
0x166e   :  { %v12815_v47 = vadd.f32 %v9640_v62, %v8391_v41  ;;  %v4801_v25 = vpop.f32.mrb[73].mxu0 }
0x166f   :  { %v4802_v13 = vadd.f32 %v8391_v41, %v4801_v25 }
0x1670   :  { %v4950_v42 = vmul.f32 %v12815_v47, %v12815_v47 }
0x1671   :  { %v10324_v60 = vpack.c.bf16 %v12815_v47, %v4802_v13  ;;  %v9643_v0 = vpop.f32.mrb[74].mxu0  ;;  %9686 = vmatprep.mubr.msk.f32.mxu0 %vm921_vm2, %v4802_v13  ;;  %v4949_v53 = vmul.f32 %v4802_v13, %v4802_v13 }
0x1672   :  { %v12821_v63 = vadd.f32 %v9643_v0, %v8391_v41  ;;  %v4811_v61 = vpop.f32.mrb[75].mxu0  ;;  %v4960_v8 = vsel %vm921_vm2, %v4950_v42, 0.0 }
0x1673   :  { %v12824_v58 = vadd.f32 %v8391_v41, %v4811_v61  ;;  %4961 = vadd.xlane.f32.xlu1 %v4960_v8  ;;  %10326 = vmatprep.subr.msk.bf16.mxu0 %vm10911_vm3, %v10324_v60  ;;  %v4957_v4 = vsel %vm921_vm2, %v4949_v53, 0.0 }
0x1674   :  { %4958 = vadd.xlane.f32.xlu0 %v4957_v4  ;;  %10329 = vmatpush3.bf16.xpose.msk.msra.mxu0 %vm10911_vm3, %v10324_v60  ;;  %v4952_v27 = vmul.f32 %v12821_v63, %v12821_v63 }
0x1675   :  { %v10330_v11 = vpack.c.bf16 %v12821_v63, %v12824_v58  ;;  %v9646_v29 = vpop.f32.mrb[76].mxu0  ;;  %v4951_v34 = vmul.f32 %v12824_v58, %v12824_v58 }
0x1676   :  { %v12837_v44 = vadd.f32 %v9646_v29, %v8391_v41  ;;  %v4821_v30 = vpop.f32.mrb[77].mxu0  ;;  %v4966_v38 = vsel %vm921_vm2, %v4952_v27, 0.0 }
0x1677   :  { %v12840_v39 = vadd.f32 %v8391_v41, %v4821_v30  ;;  %4967 = vadd.xlane.f32.xlu1 %v4966_v38  ;;  %10332 = vmatprep.subr.msk.bf16.mxu0 %vm10911_vm3, %v10330_v11  ;;  %v4963_v18 = vsel %vm921_vm2, %v4951_v34, 0.0 }
0x1678   :  { %4964 = vadd.xlane.f32.xlu0 %v4963_v18  ;;  %v4954_v28 = vmul.f32 %v12837_v44, %v12837_v44 }
0x1679   :  { %v10336_v48 = vpack.c.bf16 %v12837_v44, %v12840_v39  ;;  %v9649_v3 = vpop.f32.mrb[78].mxu0  ;;  %v4953_v22 = vmul.f32 %v12840_v39, %v12840_v39 }
0x167a   :  { %v4837_v36 = vadd.f32 %v9649_v3, %v8391_v41  ;;  %v4831_v1 = vpop.f32.mrb[79].mxu0  ;;  %v4972_v21 = vsel %vm921_vm2, %v4954_v28, 0.0 }
0x167b   :  { %v4832_v19 = vadd.f32 %v8391_v41, %v4831_v1  ;;  %4973 = vadd.xlane.f32.xlu1 %v4972_v21  ;;  %v4969_v20 = vsel %vm921_vm2, %v4953_v22, 0.0 }
0x167c   :  { %4970 = vadd.xlane.f32.xlu0 %v4969_v20  ;;  %10335 = vmatpush3.bf16.xpose.msk.msra.mxu0 %vm10911_vm3, %v10330_v11  ;;  %v4956_v26 = vmul.f32 %v4837_v36, %v4837_v36 }
0x167d   :  { %v10342_v49 = vpack.c.bf16 %v4837_v36, %v4832_v19  ;;  %v9660_v37 = vpop.f32.mrb[80].mxu0  ;;  %10338 = vmatprep.subr.msk.bf16.mxu0 %vm10911_vm3, %v10336_v48  ;;  %v4955_v56 = vmul.f32 %v4832_v19, %v4832_v19 }
0x167e   :  { %v4916_v40 = vadd.f32 %v9660_v37, %v8400_v35  ;;  %v4910_v55 = vpop.f32.mrb[81].mxu0  ;;  %v4978_v59 = vsel %vm921_vm2, %v4956_v26, 0.0 }
0x167f   :  { %v4911_v9 = vadd.f32 %v8400_v35, %v4910_v55  ;;  %4979 = vadd.xlane.f32.xlu1 %v4978_v59  ;;  %v4975_v5 = vsel %vm921_vm2, %v4955_v56, 0.0 }
0x1680   :  { %4976 = vadd.xlane.f32.xlu0 %v4975_v5 }
0x1681   :  { %v12859_v50 = vpack.c.bf16 %v4916_v40, %v4911_v9  ;;  %v9663_v32 = vpop.f32.mrb[82].mxu0 }
0x1682   :  { %v4926_v10 = vadd.f32 %v9663_v32, %v8400_v35  ;;  %v4920_v52 = vpop.f32.mrb[83].mxu0 }
0x1683   :  { %v4921_v46 = vadd.f32 %v8400_v35, %v4920_v52  ;;  %10349 = vmatprep.subr.bf16.mxu1 %v12859_v50 }
0x1684   :  { %10341 = vmatpush3.bf16.xpose.msk.msra.mxu0 %vm10911_vm3, %v10336_v48  ;;  %10351 = vmatpush3.bf16.msra.mxu1 %v12859_v50 }
0x1685   :  { %v12865_v15 = vpack.c.bf16 %v4926_v10, %v4921_v46  ;;  %v9666_v12 = vpop.f32.mrb[84].mxu0  ;;  %10344 = vmatprep.subr.msk.bf16.mxu0 %vm10911_vm3, %v10342_v49 }
0x1686   :  { %v4936_v43 = vadd.f32 %v9666_v12, %v8400_v35  ;;  %v4930_v33 = vpop.f32.mrb[85].mxu0 }
0x1687   :  { %v4931_v51 = vadd.f32 %v8400_v35, %v4930_v33  ;;  %10353 = vmatprep.subr.bf16.mxu1 %v12865_v15 }
0x1688   :  { %10355 = vmatpush3.bf16.msra.mxu1 %v12865_v15 }
0x1689   :  { %v12871_v16 = vpack.c.bf16 %v4936_v43, %v4931_v51  ;;  %v9669_v41 = vpop.f32.mrb[86].mxu0 }
0x168a   :  { %v4946_v62 = vadd.f32 %v9669_v41, %v8400_v35  ;;  %v4940_v25 = vpop.f32.mrb[87].mxu0 }
0x168b   :  { %v4941_v13 = vadd.f32 %v8400_v35, %v4940_v25  ;;  %10357 = vmatprep.subr.bf16.mxu1 %v12871_v16 }
0x168c   :  { %10347 = vmatpush3.bf16.xpose.msk.msra.mxu0 %vm10911_vm3, %v10342_v49  ;;  %10359 = vmatpush3.bf16.msra.mxu1 %v12871_v16 }
0x168d   :  { %v12877_v42 = vpack.c.bf16 %v4946_v62, %v4941_v13  ;;  %10381 = vmatprep.subr.bf16.mxu0 %v12859_v50 }
0x168f   :  { %10361 = vmatprep.subr.bf16.mxu1 %v12877_v42 }
0x1690   :  { %10363 = vmatpush3.bf16.msra.mxu1 %v12877_v42 }
0x1691   :  { %10365 = vmatprep.subr.bf16.mxu1 %v12859_v50 }
0x1693   :  { %9687 = vmatmul.mubr.msk.f32.vlgmr.msra.gmra.mrb[88].mxu0 %vm921_vm2, %v12815_v47 }
0x1694   :  { %9689 = vmatprep.mubr.msk.f32.mxu0 %vm921_vm2, %v12824_v58  ;;  %10383 = vmatpush3.bf16.msra.mxu0 %v12859_v50 }
0x1695   :  { %10385 = vmatprep.subr.bf16.mxu0 %v12865_v15 }
0x1697   :  { %9690 = vmatmul.mubr.msk.f32.gmra.mrb[90].mxu0 %vm921_vm2, %v12821_v63 }
0x1698   :  { %9692 = vmatprep.mubr.msk.f32.mxu0 %vm921_vm2, %v12840_v39  ;;  %10387 = vmatpush3.bf16.msra.mxu0 %v12865_v15  ;;  %v14091_v39 = vld [vmem:[#allocation14_spill] sm:$0xff] }
0x1699   :  { %10389 = vmatprep.subr.bf16.mxu0 %v12871_v16 }
0x169b   :  { %9693 = vmatmul.mubr.msk.f32.gmra.mrb[92].mxu0 %vm921_vm2, %v12837_v44 }
0x169c   :  { %9695 = vmatprep.mubr.msk.f32.mxu0 %vm921_vm2, %v4832_v19  ;;  %10391 = vmatpush3.bf16.msra.mxu0 %v12871_v16 }
0x169d   :  { %10393 = vmatprep.subr.bf16.mxu0 %v12877_v42 }
0x169f   :  { %9696 = vmatmul.mubr.msk.f32.gmra.mrb[94].mxu0 %vm921_vm2, %v4837_v36 }
0x16a0   :  { %10395 = vmatpush3.bf16.msra.mxu0 %v12877_v42 }
0x1700   :  { %v4962_v60 = vpop.xlane.xlu1 %4961 }
0x1701   :  { %v4959_v47 = vpop.xlane.xlu0 %4958 }
0x1702   :  { %5110 = vxpose.xlu0.b32.start [1/8] (short) (narrow) %v4959_v47, 8 }
0x1704   :  { %v4968_v53 = vpop.xlane.xlu1 %4967 }
0x1705   :  { %v4965_v0 = vpop.xlane.xlu0 %4964 }
0x1706   :  { %5111 = vxpose.xlu0.b32.cont [2/8] (short) (narrow) %v4962_v60, 8 }
0x1708   :  { %v4974_v61 = vpop.xlane.xlu1 %4973 }
0x1709   :  { %v4971_v63 = vpop.xlane.xlu0 %4970 }
0x170a   :  { %5112 = vxpose.xlu0.b32.cont [3/8] (short) (narrow) %v4965_v0, 8 }
0x170c   :  { %v4980_v58 = vpop.xlane.xlu1 %4979 }
0x170d   :  { %v4977_v8 = vpop.xlane.xlu0 %4976 }
0x170e   :  { %5113 = vxpose.xlu0.b32.cont [4/8] (short) (narrow) %v4968_v53, 8 }
0x1712   :  { %5114 = vxpose.xlu0.b32.cont [5/8] (short) (narrow) %v4971_v63, 8 }
0x1716   :  { %5115 = vxpose.xlu0.b32.cont [6/8] (short) (narrow) %v4974_v61, 8 }
0x171a   :  { %5116 = vxpose.xlu0.b32.cont [7/8] (short) (narrow) %v4977_v8, 8 }
0x171e   :  { %5117 = vxpose.xlu0.b32.end [8/8] (short) (narrow) %v4980_v58, 8 }
0x1766   :  { %v9688_v6 = vpop.f32.mrb[88].mxu0 }
0x1767   :  { %v5071_v4 = vpop.f32.mrb[89].mxu0  ;;  %v5155_v28 = vmul.f32 2.0, %v9688_v6 }
0x1768   :  { %v5154_v48 = vmul.f32 2.0, %v5071_v4 }
0x176a   :  { %v9691_v27 = vpop.f32.mrb[90].mxu0 }
0x176b   :  { %v5081_v11 = vpop.f32.mrb[91].mxu0  ;;  %v5157_v19 = vmul.f32 2.0, %v9691_v27 }
0x176c   :  { %v5156_v56 = vmul.f32 2.0, %v5081_v11 }
0x176e   :  { %v9694_v29 = vpop.f32.mrb[92].mxu0 }
0x176f   :  { %v5091_v34 = vpop.f32.mrb[93].mxu0  ;;  %v5159_v5 = vmul.f32 2.0, %v9694_v29 }
0x1770   :  { %v5158_v12 = vmul.f32 2.0, %v5091_v34 }
0x1772   :  { %v9697_v44 = vpop.f32.mrb[94].mxu0 }
0x1773   :  { %v5101_v30 = vpop.f32.mrb[95].mxu0 }
0x1774   :  { %v5160_v62 = vmul.f32 2.0, %v5101_v30 }
0x1782   :  { %v5126_v38 = vpop.trf.xlu0 }
0x1783   :  { %v5145_v18 = vrot.slane %v5126_v38, %v14091_v39 }
0x1785   :  { %v5147_v3 = vadd.f32 %v5145_v18, %v4962_v60  ;;  %v5146_v22 = vadd.f32 %v5145_v18, %v4959_v47  ;;  %v5149_v21 = vadd.f32 %v5145_v18, %v4968_v53  ;;  %v5148_v37 = vadd.f32 %v5145_v18, %v4965_v0 }
0x1786   :  { %v5151_v9 = vadd.f32 %v5145_v18, %v4974_v61  ;;  %v5150_v46 = vadd.f32 %v5145_v18, %v4971_v63  ;;  %v5152_v41 = vadd.f32 %v5145_v18, %v4977_v8  ;;  %v5153_v60 = vadd.f32 %v5145_v18, %v4980_v58 }
0x1787   :  { %v5163_v36 = vsub.f32 %v5147_v3, %v5155_v28  ;;  %v5162_v1 = vsub.f32 %v5146_v22, %v5154_v48  ;;  %v5165_v49 = vsub.f32 %v5149_v21, %v5157_v19  ;;  %v5164_v59 = vsub.f32 %v5148_v37, %v5156_v56 }
0x1788   :  { %v5167_v52 = vsub.f32 %v5151_v9, %v5159_v5  ;;  %v5166_v51 = vsub.f32 %v5150_v46, %v5158_v12  ;;  %v5168_v47 = vsub.f32 %v5152_v41, %v5160_v62  ;;  %v5161_v0 = vmul.f32 2.0, %v9697_v44 }
0x1789   :  { %v12903_v20 = vmax.f32 %v5163_v36, 0.0  ;;  %v12907_v26 = vmax.f32 %v5162_v1, 0.0  ;;  %v12911_v55 = vmax.f32 %v5165_v49, 0.0  ;;  %v12915_v10 = vmax.f32 %v5164_v59, 0.0 }
0x178a   :  { %v12919_v33 = vmax.f32 %v5167_v52, 0.0  ;;  %v12923_v13 = vmax.f32 %v5166_v51, 0.0  ;;  %v12927_v63 = vmax.f32 %v5168_v47, 0.0  ;;  %v5169_v61 = vsub.f32 %v5153_v60, %v5161_v0 }
0x178b   :  { %v5181_v35 = vsel %vm1145_vm4, %v12903_v20, inf  ;;  %v5178_v40 = vsel %vm1145_vm4, %v12907_v26, inf  ;;  %v5187_v32 = vsel %vm1145_vm4, %v12911_v55, inf  ;;  %v5184_v43 = vsel %vm1145_vm4, %v12915_v10, inf }
0x178c   :  { %5182 = vmin.xlane.f32.xlu1 %v5181_v35  ;;  %v5193_v25 = vsel %vm1145_vm4, %v12919_v33, inf  ;;  %v5190_v53 = vsel %vm1145_vm4, %v12923_v13, inf  ;;  %v5196_v8 = vsel %vm1145_vm4, %v12927_v63, inf  ;;  %v12931_v6 = vmax.f32 %v5169_v61, 0.0 }
0x178e   :  { %v5199_v4 = vsel %vm1145_vm4, %v12931_v6, inf }
0x1790   :  { %5179 = vmin.xlane.f32.xlu1 %v5178_v40 }
0x1794   :  { %5188 = vmin.xlane.f32.xlu1 %v5187_v32 }
0x1798   :  { %5185 = vmin.xlane.f32.xlu1 %v5184_v43 }
0x179c   :  { %5194 = vmin.xlane.f32.xlu1 %v5193_v25 }
0x17a0   :  { %5191 = vmin.xlane.f32.xlu1 %v5190_v53 }
0x17a4   :  { %5197 = vmin.xlane.f32.xlu1 %v5196_v8 }
0x17a8   :  { %5200 = vmin.xlane.f32.xlu1 %v5199_v4 }
0x1819   :  { %v12935_v58 = vpop.xlane.xlu1 %5182 }
0x181a   :  { %vm5203_vm2 = vcmp.eq.f32.partialorder %v12903_v20, %v12935_v58 }
0x181b   :  { %v5211_v27 = vsel %vm5203_vm2, %v11023_v54, 64 }
0x181c   :  { %v5233_v11 = vsel %vm1145_vm4, %v5211_v27, 2147483647 }
0x181d   :  { %v12944_v29 = vpop.xlane.xlu1 %5179  ;;  %v5235_v34 = vshra.s32 %v5233_v11, 16  ;;  %v5234_v8 = vand.u32 65535, %v5233_v11 }
0x181e   :  { %vm5202_vm3 = vcmp.eq.f32.partialorder %v12907_v26, %v12944_v29 }
0x181f   :  { %v5210_v44 = vsel %vm5202_vm3, %v11023_v54, 64  ;;  %v5237_v30 = vcvt.s32.f32 %v5235_v34  ;;  %v5236_v27 = vcvt.s32.f32 %v5234_v8 }
0x1820   :  { %v5218_v38 = vsel %vm1145_vm4, %v5210_v44, 2147483647 }
0x1821   :  { %5238 = vmin.xlane.f32.xlu1 %v5237_v30  ;;  %v12953_v39 = vpop.xlane.xlu1 %5188  ;;  %v5220_v18 = vshra.s32 %v5218_v38, 16  ;;  %v5219_v34 = vand.u32 65535, %v5218_v38 }
0x1822   :  { %vm5205_vm8 = vcmp.eq.f32.partialorder %v12911_v55, %v12953_v39 }
0x1823   :  { %v5213_v28 = vsel %vm5205_vm8, %v11023_v54, 64  ;;  %v5222_v48 = vcvt.s32.f32 %v5220_v18 }
0x1824   :  { %v5263_v3 = vsel %vm1145_vm4, %v5213_v28, 2147483647  ;;  %v5221_v28 = vcvt.s32.f32 %v5219_v34 }
0x1825   :  { %5223 = vmin.xlane.f32.xlu1 %v5222_v48  ;;  %v12962_v22 = vpop.xlane.xlu1 %5185  ;;  %v5265_v36 = vshra.s32 %v5263_v3, 16 }
0x1826   :  { %vm5204_vm6 = vcmp.eq.f32.partialorder %v12915_v10, %v12962_v22 }
0x1827   :  { %v5212_v1 = vsel %vm5204_vm6, %v11023_v54, 64  ;;  %v5267_v21 = vcvt.s32.f32 %v5265_v36  ;;  %v5264_v36 = vand.u32 65535, %v5263_v3 }
0x1828   :  { %v5248_v19 = vsel %vm1145_vm4, %v5212_v1, 2147483647 }
0x1829   :  { %5268 = vmin.xlane.f32.xlu1 %v5267_v21  ;;  %v12971_v35 = vpop.xlane.xlu1 %5194  ;;  %v5250_v49 = vshra.s32 %v5248_v19, 16 }
0x182a   :  { %vm5207_vm5 = vcmp.eq.f32.partialorder %v12919_v33, %v12971_v35 }
0x182b   :  { %v5215_v37 = vsel %vm5207_vm5, %v11023_v54, 64  ;;  %v5252_v56 = vcvt.s32.f32 %v5250_v49 }
0x182c   :  { %v5293_v40 = vsel %vm1145_vm4, %v5215_v37, 2147483647  ;;  %v5266_v37 = vcvt.s32.f32 %v5264_v36 }
0x182d   :  { %5253 = vmin.xlane.f32.xlu1 %v5252_v56  ;;  %v12980_v59 = vpop.xlane.xlu1 %5191  ;;  %v5295_v9 = vshra.s32 %v5293_v40, 16 }
0x182e   :  { %vm5206_vm13 = vcmp.eq.f32.partialorder %v12923_v13, %v12980_v59 }
0x182f   :  { %v5214_v5 = vsel %vm5206_vm13, %v11023_v54, 64  ;;  %v5297_v32 = vcvt.s32.f32 %v5295_v9  ;;  %v5249_v9 = vand.u32 65535, %v5248_v19 }
0x1830   :  { %v5278_v52 = vsel %vm1145_vm4, %v5214_v5, 2147483647 }
0x1831   :  { %5298 = vmin.xlane.f32.xlu1 %v5297_v32  ;;  %v12989_v46 = vpop.xlane.xlu1 %5197  ;;  %v5280_v12 = vshra.s32 %v5278_v52, 16  ;;  %v5251_v11 = vcvt.s32.f32 %v5249_v9 }
0x1832   :  { %vm5208_vm10 = vcmp.eq.f32.partialorder %v12927_v63, %v12989_v46 }
0x1833   :  { %v5216_v43 = vsel %vm5208_vm10, %v11023_v54, 64  ;;  %v5282_v51 = vcvt.s32.f32 %v5280_v12 }
0x1834   :  { %v5308_v41 = vsel %vm1145_vm4, %v5216_v43, 2147483647  ;;  %v5294_v43 = vand.u32 65535, %v5293_v40 }
0x1835   :  { %5283 = vmin.xlane.f32.xlu1 %v5282_v51  ;;  %v12998_v62 = vpop.xlane.xlu1 %5200  ;;  %v5310_v25 = vshra.s32 %v5308_v41, 16 }
0x1836   :  { %vm5209_vm7 = vcmp.eq.f32.partialorder %v12931_v6, %v12998_v62 }
0x1837   :  { %v5217_v47 = vsel %vm5209_vm7, %v11023_v54, 64  ;;  %v5312_v60 = vcvt.s32.f32 %v5310_v25  ;;  %v5296_v25 = vcvt.s32.f32 %v5294_v43 }
0x1838   :  { %v5323_v0 = vsel %vm1145_vm4, %v5217_v47, 2147483647  ;;  %v5279_v47 = vand.u32 65535, %v5278_v52 }
0x1839   :  { %5313 = vmin.xlane.f32.xlu1 %v5312_v60  ;;  %v5325_v53 = vshra.s32 %v5323_v0, 16  ;;  %v5324_v8 = vand.u32 65535, %v5323_v0 }
0x183a   :  { %v5281_v19 = vcvt.s32.f32 %v5279_v47 }
0x183b   :  { %v5327_v61 = vcvt.s32.f32 %v5325_v53 }
0x183d   :  { %5328 = vmin.xlane.f32.xlu1 %v5327_v61 }
0x18ae   :  { %v5239_v4 = vpop.xlane.xlu1 %5238 }
0x18af   :  { %vm5240_vm14 = vcmp.eq.f32.partialorder %v5237_v30, %v5239_v4 }
0x18b0   :  { %v5241_v44 = vsel %vm5240_vm14, %v5236_v27, inf }
0x18b1   :  { %5242 = vmin.xlane.f32.xlu1 %v5241_v44 }
0x18b2   :  { %v5224_v18 = vpop.xlane.xlu1 %5223 }
0x18b3   :  { %vm5225_vm12 = vcmp.eq.f32.partialorder %v5222_v48, %v5224_v18 }
0x18b4   :  { %v5226_v1 = vsel %vm5225_vm12, %v5221_v28, inf  ;;  %v5230_v28 = vcvt.f32.s32 %v5224_v18 }
0x18b5   :  { %5227 = vmin.xlane.f32.xlu1 %v5226_v1 }
0x18b6   :  { %v5269_v49 = vpop.xlane.xlu1 %5268  ;;  %v5231_v9 = vshll.u32 %v5230_v28, 16 }
0x18b7   :  { %vm5270_vm11 = vcmp.eq.f32.partialorder %v5267_v21, %v5269_v49  ;;  %v5309_v21 = vand.u32 65535, %v5308_v41  ;;  %v5245_v41 = vcvt.f32.s32 %v5239_v4  ;;  %v5275_v0 = vcvt.f32.s32 %v5269_v49 }
0x18b8   :  { %v5271_v5 = vsel %vm5270_vm11, %v5266_v37, inf }
0x18b9   :  { %5272 = vmin.xlane.f32.xlu0 %v5271_v5 }
0x18ba   :  { %v5254_v12 = vpop.xlane.xlu1 %5253 }
0x18bb   :  { %vm5255_vm9 = vcmp.eq.f32.partialorder %v5252_v56, %v5254_v12  ;;  %v5311_v56 = vcvt.s32.f32 %v5309_v21  ;;  %v5260_v43 = vcvt.f32.s32 %v5254_v12 }
0x18bc   :  { %v5256_v38 = vsel %vm5255_vm9, %v5251_v11, inf  ;;  %v5276_v11 = vshll.u32 %v5275_v0, 16 }
0x18bd   :  { %5257 = vmin.xlane.f32.xlu1 %v5256_v38 }
0x18be   :  { %v13007_v30 = vpop.xlane.xlu1 %5298 }
0x18bf   :  { %vm5300_vm0 = vcmp.eq.f32.partialorder %v5297_v32, %v13007_v30  ;;  %v5326_v32 = vcvt.s32.f32 %v5324_v8  ;;  %v5305_v21 = vcvt.f32.s32 %v13007_v30 }
0x18c0   :  { %v5301_v48 = vsel %vm5300_vm0, %v5296_v25, inf }
0x18c1   :  { %5302 = vmin.xlane.f32.xlu1 %v5301_v48 }
0x18c2   :  { %v13010_v3 = vpop.xlane.xlu1 %5283 }
0x18c3   :  { %vm5285_vm15 = vcmp.eq.f32.partialorder %v5282_v51, %v13010_v3  ;;  %v5246_v51 = vshll.u32 %v5245_v41, 16 }
0x18c4   :  { %v5286_v53 = vsel %vm5285_vm15, %v5281_v19, inf  ;;  %v5261_v19 = vshll.u32 %v5260_v43, 16 }
0x18c5   :  { %5287 = vmin.xlane.f32.xlu1 %v5286_v53 }
0x18c6   :  { %v13013_v40 = vpop.xlane.xlu1 %5313 }
0x18c7   :  { %vm5315_vm14 = vcmp.eq.f32.partialorder %v5312_v60, %v13013_v40 }
0x18c8   :  { %v5316_v27 = vsel %vm5315_vm14, %v5311_v56, inf }
0x18c9   :  { %5317 = vmin.xlane.f32.xlu1 %v5316_v27 }
0x18ca   :  { %v13016_v52 = vpop.xlane.xlu1 %5328 }
0x18cb   :  { %vm5330_vm12 = vcmp.eq.f32.partialorder %v5327_v61, %v13016_v52 }
0x18cc   :  { %v5331_v34 = vsel %vm5330_vm12, %v5326_v32, inf  ;;  %v5290_v32 = vcvt.f32.s32 %v13010_v3 }
0x18cd   :  { %5332 = vmin.xlane.f32.xlu1 %v5331_v34 }
0x18ce   :  { %v5291_v28 = vshll.u32 %v5290_v32, 16 }
0x193e   :  { %v5243_v44 = vpop.xlane.xlu1 %5242 }
0x193f   :  { %v5244_v36 = vcvt.f32.s32 %v5243_v44 }
0x1941   :  { %v5247_v1 = vadd.s32 %v5246_v51, %v5244_v36  ;;  %v5320_v36 = vcvt.f32.s32 %v13013_v40 }
0x1942   :  { %v5228_v37 = vpop.xlane.xlu1 %5227 }
0x1943   :  { %vm5339_vm11 = vcmp.eq.s32.totalorder %v11023_v54, %v5247_v1  ;;  %v5229_v60 = vcvt.f32.s32 %v5228_v37 }
0x1944   :  { %vm5347_vm9 = vmand %vm5203_vm2, %vm5339_vm11 }
0x1945   :  { %v5232_v5 = vadd.s32 %v5231_v9, %v5229_v60  ;;  %v13024_v61 = vsel %vm5347_vm9, inf, %v12903_v20  ;;  %v8426_v47 = vsel %vm5347_vm9, 1.0, %v14005_v24  ;;  %v5335_v60 = vcvt.f32.s32 %v13016_v52 }
0x1946   :  { %v5273_v4 = vpop.xlane.xlu0 %5272  ;;  %v5550_v18 = vsel %vm1145_vm4, %v13024_v61, inf }
0x1947   :  { %vm5338_vm0 = vcmp.eq.s32.totalorder %v11023_v54, %v5232_v5  ;;  %v5274_v49 = vcvt.f32.s32 %v5273_v4  ;;  %5551 = vmin.xlane.f32.xlu1 %v5550_v18  ;;  %v5336_v43 = vshll.u32 %v5335_v60, 16 }
0x1948   :  { %vm5346_vm15 = vmand %vm5202_vm3, %vm5338_vm0 }
0x1949   :  { %v5277_v38 = vadd.s32 %v5276_v11, %v5274_v49  ;;  %v8425_v25 = vsel %vm5346_vm15, 1.0, %v14005_v24  ;;  %v13034_v20 = vsel %vm5346_vm15, inf, %v12907_v26 }
0x194a   :  { %9714 = vmatprep.mubr.msk.f32.mxu1 %vm1145_vm4, %v8425_v25  ;;  %v5258_v48 = vpop.xlane.xlu1 %5257  ;;  %v5547_v12 = vsel %vm1145_vm4, %v13034_v20, inf }
0x194b   :  { %vm5341_vm2 = vcmp.eq.s32.totalorder %v11023_v54, %v5277_v38  ;;  %v5259_v53 = vcvt.f32.s32 %v5258_v48  ;;  %5548 = vmin.xlane.f32.xlu1 %v5547_v12  ;;  %9715 = vmatmul.mubr.msk.f32.vlgmr.msra.gmra.mrb[72].mxu1 %vm1145_vm4, %v8426_v47 }
0x194c   :  { %10367 = vmatpush3.bf16.msra.mxu1 %v12859_v50  ;;  %vm13047_vm3 = vmand %vm5205_vm8, %vm5341_vm2  ;;  %v5306_v50 = vshll.u32 %v5305_v21, 16 }
0x194d   :  { %v5262_v56 = vadd.s32 %v5261_v19, %v5259_v53  ;;  %10369 = vmatprep.subr.bf16.mxu1 %v12865_v15  ;;  %v13055_v30 = vsel %vm13047_vm3, inf, %v12911_v55 }
0x194e   :  { %v5303_v8 = vpop.xlane.xlu1 %5302  ;;  %v5556_v27 = vsel %vm1145_vm4, %v13055_v30, inf }
0x194f   :  { %vm5340_vm8 = vcmp.eq.s32.totalorder %v11023_v54, %v5262_v56  ;;  %v5304_v34 = vcvt.f32.s32 %v5303_v8  ;;  %5557 = vmin.xlane.f32.xlu1 %v5556_v27 }
0x1950   :  { %10371 = vmatpush3.bf16.msra.mxu1 %v12865_v15  ;;  %vm5348_vm14 = vmand %vm5204_vm6, %vm5340_vm8  ;;  %v8428_v15 = vsel %vm13047_vm3, 1.0, %v14005_v24 }
0x1951   :  { %v5307_v41 = vadd.s32 %v5306_v50, %v5304_v34  ;;  %10373 = vmatprep.subr.bf16.mxu1 %v12871_v16  ;;  %v8427_v55 = vsel %vm5348_vm14, 1.0, %v14005_v24  ;;  %v13068_v44 = vsel %vm5348_vm14, inf, %v12915_v10 }
0x1952   :  { %9717 = vmatprep.mubr.msk.f32.mxu1 %vm1145_vm4, %v8427_v55  ;;  %v5288_v3 = vpop.xlane.xlu1 %5287  ;;  %v5553_v51 = vsel %vm1145_vm4, %v13068_v44, inf }
0x1953   :  { %vm5343_vm6 = vcmp.eq.s32.totalorder %v11023_v54, %v5307_v41  ;;  %v5289_v1 = vcvt.f32.s32 %v5288_v3  ;;  %5554 = vmin.xlane.f32.xlu1 %v5553_v51  ;;  %9718 = vmatmul.mubr.msk.f32.gmra.mrb[74].mxu1 %vm1145_vm4, %v8428_v15 }
0x1954   :  { %10375 = vmatpush3.bf16.msra.mxu1 %v12871_v16  ;;  %vm13083_vm12 = vmand %vm5207_vm5, %vm5343_vm6  ;;  %v5321_v16 = vshll.u32 %v5320_v36, 16 }
0x1955   :  { %v5292_v37 = vadd.s32 %v5291_v28, %v5289_v1  ;;  %10377 = vmatprep.subr.bf16.mxu1 %v12877_v42  ;;  %v13091_v40 = vsel %vm13083_vm12, inf, %v12919_v33 }
0x1956   :  { %v5318_v9 = vpop.xlane.xlu1 %5317  ;;  %v5562_v0 = vsel %vm1145_vm4, %v13091_v40, inf }
0x1957   :  { %vm5342_vm5 = vcmp.eq.s32.totalorder %v11023_v54, %v5292_v37  ;;  %v5319_v5 = vcvt.f32.s32 %v5318_v9  ;;  %5563 = vmin.xlane.f32.xlu1 %v5562_v0 }
0x1958   :  { %10379 = vmatpush3.bf16.msra.mxu1 %v12877_v42  ;;  %vm5350_vm11 = vmand %vm5206_vm13, %vm5342_vm5  ;;  %v8430_v42 = vsel %vm13083_vm12, 1.0, %v14005_v24 }
0x1959   :  { %v5322_v4 = vadd.s32 %v5321_v16, %v5319_v5  ;;  %v8429_v33 = vsel %vm5350_vm11, 1.0, %v14005_v24  ;;  %v13103_v18 = vsel %vm5350_vm11, inf, %v12923_v13 }
0x195a   :  { %9720 = vmatprep.mubr.msk.f32.mxu1 %vm1145_vm4, %v8429_v33  ;;  %v5333_v11 = vpop.xlane.xlu1 %5332  ;;  %v5559_v52 = vsel %vm1145_vm4, %v13103_v18, inf }
0x195b   :  { %vm5344_vm9 = vcmp.eq.s32.totalorder %v11023_v54, %v5322_v4  ;;  %v5334_v49 = vcvt.f32.s32 %v5333_v11  ;;  %5560 = vmin.xlane.f32.xlu1 %v5559_v52  ;;  %9721 = vmatmul.mubr.msk.f32.gmra.mrb[76].mxu1 %vm1145_vm4, %v8430_v42 }
0x195c   :  { %vm5352_vm13 = vmand %vm5208_vm10, %vm5344_vm9 }
0x195d   :  { %v5337_v13 = vadd.s32 %v5336_v43, %v5334_v49  ;;  %v8431_v38 = vsel %vm5352_vm13, 1.0, %v14005_v24  ;;  %v13118_v25 = vsel %vm5352_vm13, inf, %v12927_v63 }
0x195e   :  { %9723 = vmatprep.mubr.msk.f32.mxu1 %vm1145_vm4, %v8431_v38  ;;  %v5565_v47 = vsel %vm1145_vm4, %v13118_v25, inf }
0x195f   :  { %vm5345_vm0 = vcmp.eq.s32.totalorder %v11023_v54, %v5337_v13  ;;  %5566 = vmin.xlane.f32.xlu1 %v5565_v47 }
0x1960   :  { %vm5353_vm15 = vmand %vm5209_vm7, %vm5345_vm0 }
0x1961   :  { %v8432_v48 = vsel %vm5353_vm15, 1.0, %v14005_v24  ;;  %v13129_v12 = vsel %vm5353_vm15, inf, %v12931_v6 }
0x1962   :  { %9724 = vmatmul.mubr.msk.f32.gmra.mrb[78].mxu1 %vm1145_vm4, %v8432_v48  ;;  %v5568_v63 = vsel %vm1145_vm4, %v13129_v12, inf }
0x1963   :  { %5569 = vmin.xlane.f32.xlu0 %v5568_v63 }
0x19d4   :  { %v13134_v19 = vpop.xlane.xlu1 %5551 }
0x19d5   :  { %vm5572_vm10 = vcmp.eq.f32.partialorder %v13024_v61, %v13134_v19  ;;  %v5869_v14 = vmul.f32 -10.0, %v13134_v19 }
0x19d6   :  { %v5580_v21 = vsel %vm5572_vm10, %v11023_v54, 64 }
0x19d7   :  { %v13143_v53 = vsel %vm1145_vm4, %v5580_v21, 2147483647 }
0x19d8   :  { %v13145_v6 = vpop.xlane.xlu1 %5548  ;;  %v5604_v26 = vshra.s32 %v13143_v53, 16 }
0x19d9   :  { %vm5571_vm7 = vcmp.eq.f32.partialorder %v13034_v20, %v13145_v6  ;;  %v5868_v45 = vmul.f32 -10.0, %v13145_v6 }
0x19da   :  { %v5579_v56 = vsel %vm5571_vm7, %v11023_v54, 64  ;;  %v13154_v8 = vcvt.s32.f32 %v5604_v26 }
0x19db   :  { %v13157_v27 = vsel %vm1145_vm4, %v5579_v56, 2147483647  ;;  %v5499_v56 = vmul.f32 -10.0, %v12944_v29  ;;  %v5876_v57 = vmul.f32 1.442695, %v5868_v45 }
0x19dc   :  { %5607 = vmin.xlane.f32.xlu0 %v13154_v8  ;;  %v13160_v50 = vpop.xlane.xlu1 %5557  ;;  %v5589_v32 = vshra.s32 %v13157_v27, 16 }
0x19dd   :  { %vm5574_vm2 = vcmp.eq.f32.partialorder %v13055_v30, %v13160_v50 }
0x19de   :  { %v5582_v34 = vsel %vm5574_vm2, %v11023_v54, 64  ;;  %v13169_v41 = vcvt.s32.f32 %v5589_v32  ;;  %v5507_v32 = vmul.f32 1.442695, %v5499_v56 }
0x19df   :  { %v13172_v55 = vsel %vm1145_vm4, %v5582_v34, 2147483647  ;;  %v5502_v34 = vmul.f32 -10.0, %v12953_v39  ;;  %v5505_v39 = vmul.f32 -10.0, %v12989_v46 }
0x19e0   :  { %5592 = vmin.xlane.f32.xlu1 %v13169_v41  ;;  %v13175_v3 = vpop.xlane.xlu1 %5554  ;;  %v5634_v51 = vshra.s32 %v13172_v55, 16  ;;  %10692 = vpow2.f32 %v5507_v32 }
0x19e1   :  { %vm5573_vm3 = vcmp.eq.f32.partialorder %v13068_v44, %v13175_v3  ;;  %v5870_v7 = vmul.f32 -10.0, %v13175_v3 }
0x19e2   :  { %v5581_v15 = vsel %vm5573_vm3, %v11023_v54, 64  ;;  %v13184_v28 = vcvt.s32.f32 %v5634_v51  ;;  %v5501_v51 = vmul.f32 -10.0, %v12962_v22 }
0x19e3   :  { %v13187_v36 = vsel %vm1145_vm4, %v5581_v15, 2147483647  ;;  %v5513_v15 = vmul.f32 1.442695, %v5502_v34  ;;  %v5519_v34 = vmul.f32 1.442695, %v5505_v39 }
0x19e4   :  { %5637 = vmin.xlane.f32.xlu0 %v13184_v28  ;;  %v13190_v1 = vpop.xlane.xlu1 %5563  ;;  %v5619_v10 = vshra.s32 %v13187_v36, 16  ;;  %v5880_v23 = vmul.f32 1.442695, %v5870_v7 }
0x19e5   :  { %vm5576_vm8 = vcmp.eq.f32.partialorder %v13091_v40, %v13190_v1  ;;  %10694 = vpow2.f32 %v5513_v15  ;;  %v5873_v2 = vmul.f32 -10.0, %v13190_v1 }
0x19e6   :  { %v5584_v37 = vsel %vm5576_vm8, %v11023_v54, 64  ;;  %v13199_v9 = vcvt.s32.f32 %v5619_v10  ;;  %v5511_v10 = vmul.f32 1.442695, %v5501_v51 }
0x19e7   :  { %v13202_v0 = vsel %vm1145_vm4, %v5584_v37, 2147483647  ;;  %v5504_v37 = vmul.f32 -10.0, %v12971_v35 }
0x19e8   :  { %5622 = vmin.xlane.f32.xlu1 %v13199_v9  ;;  %v13205_v16 = vpop.xlane.xlu1 %5560  ;;  %v5664_v60 = vshra.s32 %v13202_v0, 16  ;;  %10696 = vpow2.f32 %v5511_v10 }
0x19e9   :  { %vm5575_vm14 = vcmp.eq.f32.partialorder %v13103_v18, %v13205_v16  ;;  %v5872_v19 = vmul.f32 -10.0, %v13205_v16  ;;  %v5506_v16 = vmul.f32 -10.0, %v12998_v62 }
0x19ea   :  { %v5583_v5 = vsel %vm5575_vm14, %v11023_v54, 64  ;;  %v13214_v4 = vcvt.s32.f32 %v5664_v60  ;;  %v5503_v60 = vmul.f32 -10.0, %v12980_v59 }
0x19eb   :  { %v13217_v33 = vsel %vm1145_vm4, %v5583_v5, 2147483647  ;;  %v5884_v7 = vmul.f32 1.442695, %v5872_v19 }
0x19ec   :  { %5667 = vmin.xlane.f32.xlu0 %v13214_v4  ;;  %v13220_v11 = vpop.xlane.xlu1 %5566  ;;  %v5649_v52 = vshra.s32 %v13217_v33, 16 }
0x19ed   :  { %vm5577_vm6 = vcmp.eq.f32.partialorder %v13118_v25, %v13220_v11 }
0x19ee   :  { %v5585_v42 = vsel %vm5577_vm6, %v11023_v54, 64  ;;  %v13229_v43 = vcvt.s32.f32 %v5649_v52  ;;  %v10693_v52 = vpop.eup %10692 }
0x19ef   :  { %v13232_v49 = vsel %vm1145_vm4, %v5585_v42, 2147483647  ;;  %v10695_v22 = vpop.eup %10694 }
0x19f0   :  { %v13234_v13 = vpop.xlane.xlu0 %5569  ;;  %5652 = vmin.xlane.f32.xlu1 %v13229_v43  ;;  %v5679_v38 = vshra.s32 %v13232_v49, 16 }
0x19f1   :  { %vm5578_vm12 = vcmp.eq.f32.partialorder %v13129_v12, %v13234_v13 }
0x19f2   :  { %v5586_v47 = vsel %vm5578_vm12, %v11023_v54, 64  ;;  %v13244_v48 = vcvt.s32.f32 %v5679_v38  ;;  %v5517_v38 = vmul.f32 1.442695, %v5504_v37  ;;  %v10697_v56 = vpop.eup %10696 }
0x19f3   :  { %v13247_v63 = vsel %vm1145_vm4, %v5586_v47, 2147483647  ;;  %v5515_v47 = vmul.f32 1.442695, %v5503_v60 }
0x19f4   :  { %5682 = vmin.xlane.f32.xlu1 %v13244_v48  ;;  %v5694_v21 = vshra.s32 %v13247_v63, 16  ;;  %10698 = vpow2.f32 %v5517_v38 }
0x19f5   :  { %10700 = vpow2.f32 %v5515_v47 }
0x19f6   :  { %v13251_v26 = vcvt.s32.f32 %v5694_v21  ;;  %10702 = vpow2.f32 %v5519_v34 }
0x19f8   :  { %5697 = vmin.xlane.f32.xlu0 %v13251_v26 }
0x19fe   :  { %v10699_v51 = vpop.eup %10698 }
0x19ff   :  { %v10701_v10 = vpop.eup %10700 }
0x1a1e   :  { %v13259_v5 = vpop.f32.mrb[72].mxu1 }
0x1a1f   :  { %v5460_v42 = vpop.f32.mrb[73].mxu1 }
0x1a20   :  { %v13261_v29 = vmul.f32 %v10693_v52, %v5460_v42  ;;  %v10703_v42 = vpop.eup %10702 }
0x1a26   :  { %v9719_v21 = vpop.f32.mrb[74].mxu1 }
0x1a27   :  { %v13264_v32 = vmul.f32 %v10695_v22, %v9719_v21  ;;  %v5470_v35 = vpop.f32.mrb[75].mxu1  ;;  %v5603_v22 = vand.u32 65535, %v13143_v53  ;;  %v5618_v53 = vand.u32 65535, %v13187_v36 }
0x1a28   :  { %v13266_v59 = vmul.f32 %v10697_v56, %v5470_v35  ;;  %v5588_v56 = vand.u32 65535, %v13157_v27 }
0x1a29   :  { %v5605_v21 = vcvt.s32.f32 %v5603_v22  ;;  %v5663_v22 = vand.u32 65535, %v13202_v0 }
0x1a2e   :  { %v9722_v15 = vpop.f32.mrb[76].mxu1 }
0x1a2f   :  { %v13268_v37 = vmul.f32 %v10699_v51, %v9722_v15  ;;  %v5480_v60 = vpop.f32.mrb[77].mxu1  ;;  %v5590_v51 = vcvt.s32.f32 %v5588_v56  ;;  %v5633_v15 = vand.u32 65535, %v13172_v55  ;;  %v5648_v56 = vand.u32 65535, %v13217_v33 }
0x1a30   :  { %v13270_v52 = vmul.f32 %v10701_v10, %v5480_v60  ;;  %v5693_v33 = vand.u32 65535, %v13247_v63 }
0x1a35   :  { %v13272_v46 = vpop.f32.mrb[78].mxu1 }
0x1a36   :  { %v5490_v38 = vpop.f32.mrb[79].mxu1 }
0x1a37   :  { %v13274_v47 = vmul.f32 %v10703_v42, %v5490_v38  ;;  %v5635_v42 = vcvt.s32.f32 %v5633_v15 }
0x1a69   :  { %v5608_v39 = vpop.xlane.xlu0 %5607 }
0x1a6a   :  { %vm5609_vm5 = vcmp.eq.f32.partialorder %v13154_v8, %v5608_v39  ;;  %v5620_v8 = vcvt.s32.f32 %v5618_v53 }
0x1a6b   :  { %v5610_v35 = vsel %vm5609_vm5, %v5605_v21, inf }
0x1a6c   :  { %5611 = vmin.xlane.f32.xlu0 %v5610_v35  ;;  %v5650_v35 = vcvt.s32.f32 %v5648_v56 }
0x1a6d   :  { %v5593_v34 = vpop.xlane.xlu1 %5592 }
0x1a6e   :  { %vm5594_vm11 = vcmp.eq.f32.partialorder %v13169_v41, %v5593_v34  ;;  %v5665_v41 = vcvt.s32.f32 %v5663_v22 }
0x1a6f   :  { %v5595_v10 = vsel %vm5594_vm11, %v5590_v51, inf  ;;  %v5678_v51 = vand.u32 65535, %v13232_v49 }
0x1a70   :  { %5596 = vmin.xlane.f32.xlu1 %v5595_v10 }
0x1a71   :  { %v5638_v60 = vpop.xlane.xlu0 %5637  ;;  %v5680_v15 = vcvt.s32.f32 %v5678_v51 }
0x1a72   :  { %vm5639_vm9 = vcmp.eq.f32.partialorder %v13184_v28, %v5638_v60  ;;  %v5644_v56 = vcvt.f32.s32 %v5638_v60 }
0x1a73   :  { %v5640_v38 = vsel %vm5639_vm9, %v5635_v42, inf  ;;  %v5695_v42 = vcvt.s32.f32 %v5693_v33 }
0x1a74   :  { %5641 = vmin.xlane.f32.xlu0 %v5640_v38 }
0x1a75   :  { %v5623_v27 = vpop.xlane.xlu1 %5622 }
0x1a76   :  { %vm5624_vm13 = vcmp.eq.f32.partialorder %v13199_v9, %v5623_v27  ;;  %v5629_v51 = vcvt.f32.s32 %v5623_v27 }
0x1a77   :  { %v5625_v21 = vsel %vm5624_vm13, %v5620_v8, inf  ;;  %v5599_v8 = vcvt.f32.s32 %v5593_v34 }
0x1a78   :  { %5626 = vmin.xlane.f32.xlu1 %v5625_v21 }
0x1a79   :  { %v13285_v55 = vpop.xlane.xlu0 %5667 }
0x1a7a   :  { %vm5669_vm0 = vcmp.eq.f32.partialorder %v13214_v4, %v13285_v55 }
0x1a7b   :  { %v5670_v36 = vsel %vm5669_vm0, %v5665_v41, inf  ;;  %v5600_v41 = vshll.u32 %v5599_v8, 16 }
0x1a7c   :  { %5671 = vmin.xlane.f32.xlu0 %v5670_v36 }
0x1a7d   :  { %v13290_v28 = vpop.xlane.xlu1 %5652 }
0x1a7e   :  { %vm5654_vm15 = vcmp.eq.f32.partialorder %v13229_v43, %v13290_v28  ;;  %v5614_v43 = vcvt.f32.s32 %v5608_v39 }
0x1a7f   :  { %v5655_v9 = vsel %vm5654_vm15, %v5650_v35, inf  ;;  %v5645_v35 = vshll.u32 %v5644_v56, 16 }
0x1a80   :  { %5656 = vmin.xlane.f32.xlu1 %v5655_v9  ;;  %v5615_v38 = vshll.u32 %v5614_v43, 16 }
0x1a81   :  { %v13295_v0 = vpop.xlane.xlu1 %5682 }
0x1a82   :  { %vm5684_vm5 = vcmp.eq.f32.partialorder %v13244_v48, %v13295_v0 }
0x1a83   :  { %v5685_v4 = vsel %vm5684_vm5, %v5680_v15, inf }
0x1a84   :  { %5686 = vmin.xlane.f32.xlu1 %v5685_v4 }
0x1a85   :  { %v13300_v10 = vpop.xlane.xlu0 %5697 }
0x1a86   :  { %vm5699_vm11 = vcmp.eq.f32.partialorder %v13251_v26, %v13300_v10 }
0x1a87   :  { %v5700_v49 = vsel %vm5699_vm11, %v5695_v42, inf  ;;  %v5630_v42 = vshll.u32 %v5629_v51, 16 }
0x1a88   :  { %5701 = vmin.xlane.f32.xlu0 %v5700_v49  ;;  %v5674_v49 = vcvt.f32.s32 %v13285_v55 }
0x1af9   :  { %v5612_v53 = vpop.xlane.xlu0 %5611 }
0x1afa   :  { %v5613_v22 = vcvt.f32.s32 %v5612_v53 }
0x1afc   :  { %v5616_v21 = vadd.s32 %v5615_v38, %v5613_v22  ;;  %v5675_v22 = vshll.u32 %v5674_v49, 16 }
0x1afd   :  { %v5597_v63 = vpop.xlane.xlu1 %5596 }
0x1afe   :  { %vm5708_vm9 = vcmp.eq.s32.totalorder %v11023_v54, %v5616_v21  ;;  %v5598_v48 = vcvt.f32.s32 %v5597_v63  ;;  %v5659_v21 = vcvt.f32.s32 %v13290_v28 }
0x1aff   :  { %vm5716_vm13 = vmand %vm5572_vm10, %vm5708_vm9 }
0x1b00   :  { %v5601_v36 = vadd.s32 %v5600_v41, %v5598_v48  ;;  %v13309_v26 = vsel %vm5716_vm13, inf, %v13024_v61  ;;  %v8442_v33 = vsel %vm5716_vm13, 1.0, %v14005_v24 }
0x1b01   :  { %v5642_v39 = vpop.xlane.xlu0 %5641  ;;  %v5927_v34 = vsel %vm1145_vm4, %v13309_v26, inf }
0x1b02   :  { %vm5707_vm0 = vcmp.eq.s32.totalorder %v11023_v54, %v5601_v36  ;;  %v5643_v60 = vcvt.f32.s32 %v5642_v39  ;;  %5928 = vmin.xlane.f32.xlu0 %v5927_v34  ;;  %v5660_v39 = vshll.u32 %v5659_v21, 16  ;;  %v5689_v34 = vcvt.f32.s32 %v13295_v0 }
0x1b03   :  { %vm5715_vm15 = vmand %vm5571_vm7, %vm5707_vm0 }
0x1b04   :  { %v5646_v9 = vadd.s32 %v5645_v35, %v5643_v60  ;;  %v8441_v15 = vsel %vm5715_vm15, 1.0, %v14005_v24  ;;  %v13319_v61 = vsel %vm5715_vm15, inf, %v13034_v20 }
0x1b05   :  { %9742 = vmatprep.mubr.msk.f32.mxu1 %vm1145_vm4, %v8441_v15  ;;  %v5627_v4 = vpop.xlane.xlu1 %5626  ;;  %v5924_v27 = vsel %vm1145_vm4, %v13319_v61, inf  ;;  %v5690_v15 = vshll.u32 %v5689_v34, 16 }
0x1b06   :  { %vm5710_vm10 = vcmp.eq.s32.totalorder %v11023_v54, %v5646_v9  ;;  %v5628_v43 = vcvt.f32.s32 %v5627_v4  ;;  %5925 = vmin.xlane.f32.xlu1 %v5924_v27  ;;  %9743 = vmatmul.mubr.msk.f32.vlgmr.msra.gmra.mrb[80].mxu1 %vm1145_vm4, %v8442_v33  ;;  %v5704_v33 = vcvt.f32.s32 %v13300_v10 }
0x1b07   :  { %vm13331_vm7 = vmand %vm5574_vm2, %vm5710_vm10 }
0x1b08   :  { %v5631_v53 = vadd.s32 %v5630_v42, %v5628_v43  ;;  %v13338_v38 = vsel %vm13331_vm7, inf, %v13055_v30  ;;  %v8444_v36 = vsel %vm13331_vm7, 1.0, %v14005_v24  ;;  %v5705_v20 = vshll.u32 %v5704_v33, 16 }
0x1b09   :  { %v5672_v55 = vpop.xlane.xlu0 %5671  ;;  %v5933_v8 = vsel %vm1145_vm4, %v13338_v38, inf }
0x1b0a   :  { %vm5709_vm5 = vcmp.eq.s32.totalorder %v11023_v54, %v5631_v53  ;;  %v5673_v63 = vcvt.f32.s32 %v5672_v55  ;;  %5934 = vmin.xlane.f32.xlu0 %v5933_v8 }
0x1b0b   :  { %vm5717_vm2 = vmand %vm5573_vm3, %vm5709_vm5 }
0x1b0c   :  { %v5676_v41 = vadd.s32 %v5675_v22, %v5673_v63  ;;  %v8443_v56 = vsel %vm5717_vm2, 1.0, %v14005_v24  ;;  %v13349_v30 = vsel %vm5717_vm2, inf, %v13068_v44 }
0x1b0d   :  { %9745 = vmatprep.mubr.msk.f32.mxu1 %vm1145_vm4, %v8443_v56  ;;  %v5657_v48 = vpop.xlane.xlu1 %5656  ;;  %v5930_v28 = vsel %vm1145_vm4, %v13349_v30, inf }
0x1b0e   :  { %vm5712_vm3 = vcmp.eq.s32.totalorder %v11023_v54, %v5676_v41  ;;  %v5658_v35 = vcvt.f32.s32 %v5657_v48  ;;  %5931 = vmin.xlane.f32.xlu1 %v5930_v28  ;;  %9746 = vmatmul.mubr.msk.f32.gmra.mrb[82].mxu1 %vm1145_vm4, %v8444_v36 }
0x1b0f   :  { %vm13363_vm11 = vmand %vm5576_vm8, %vm5712_vm3 }
0x1b10   :  { %v5661_v51 = vadd.s32 %v5660_v39, %v5658_v35  ;;  %v13370_v60 = vsel %vm13363_vm11, inf, %v13091_v40  ;;  %v8446_v43 = vsel %vm13363_vm11, 1.0, %v14005_v24 }
0x1b11   :  { %v5687_v0 = vpop.xlane.xlu1 %5686  ;;  %v5939_v9 = vsel %vm1145_vm4, %v13370_v60, inf }
0x1b12   :  { %vm5711_vm9 = vcmp.eq.s32.totalorder %v11023_v54, %v5661_v51  ;;  %v5688_v4 = vcvt.f32.s32 %v5687_v0  ;;  %5940 = vmin.xlane.f32.xlu0 %v5939_v9 }
0x1b13   :  { %vm5719_vm8 = vmand %vm5575_vm14, %vm5711_vm9 }
0x1b14   :  { %v5691_v27 = vadd.s32 %v5690_v15, %v5688_v4  ;;  %v8445_v42 = vsel %vm5719_vm8, 1.0, %v14005_v24  ;;  %v13381_v40 = vsel %vm5719_vm8, inf, %v13103_v18 }
0x1b15   :  { %v5702_v49 = vpop.xlane.xlu0 %5701  ;;  %9748 = vmatprep.mubr.msk.f32.mxu1 %vm1145_vm4, %v8445_v42  ;;  %v5936_v10 = vsel %vm1145_vm4, %v13381_v40, inf }
0x1b16   :  { %vm5713_vm13 = vcmp.eq.s32.totalorder %v11023_v54, %v5691_v27  ;;  %v5703_v53 = vcvt.f32.s32 %v5702_v49  ;;  %5937 = vmin.xlane.f32.xlu1 %v5936_v10  ;;  %9749 = vmatmul.mubr.msk.f32.gmra.mrb[84].mxu1 %vm1145_vm4, %v8446_v43 }
0x1b17   :  { %vm5721_vm14 = vmand %vm5577_vm6, %vm5713_vm13 }
0x1b18   :  { %v5706_v18 = vadd.s32 %v5705_v20, %v5703_v53  ;;  %v8447_v55 = vsel %vm5721_vm14, 1.0, %v14005_v24  ;;  %v13396_v8 = vsel %vm5721_vm14, inf, %v13118_v25 }
0x1b19   :  { %9751 = vmatprep.mubr.msk.f32.mxu1 %vm1145_vm4, %v8447_v55  ;;  %v5942_v22 = vsel %vm1145_vm4, %v13396_v8, inf }
0x1b1a   :  { %vm5714_vm0 = vcmp.eq.s32.totalorder %v11023_v54, %v5706_v18  ;;  %5943 = vmin.xlane.f32.xlu1 %v5942_v22 }
0x1b1b   :  { %vm5722_vm15 = vmand %vm5578_vm12, %vm5714_vm0 }
0x1b1c   :  { %v8448_v21 = vsel %vm5722_vm15, 1.0, %v14005_v24  ;;  %v13407_v63 = vsel %vm5722_vm15, inf, %v13129_v12 }
0x1b1d   :  { %9752 = vmatmul.mubr.msk.f32.gmra.mrb[86].mxu1 %vm1145_vm4, %v8448_v21  ;;  %v5945_v25 = vsel %vm1145_vm4, %v13407_v63, inf }
0x1b1e   :  { %5946 = vmin.xlane.f32.xlu0 %v5945_v25 }
0x1b8f   :  { %v13412_v41 = vpop.xlane.xlu0 %5928 }
0x1b90   :  { %vm5949_vm6 = vcmp.eq.f32.partialorder %v13309_v26, %v13412_v41 }
0x1b91   :  { %v5957_v56 = vsel %vm5949_vm6, %v11023_v54, 64 }
0x1b92   :  { %v13421_v48 = vsel %vm1145_vm4, %v5957_v56, 2147483647 }
0x1b93   :  { %v13423_v12 = vpop.xlane.xlu1 %5925  ;;  %v5981_v28 = vshra.s32 %v13421_v48, 16 }
0x1b94   :  { %vm5948_vm12 = vcmp.eq.f32.partialorder %v13319_v61, %v13423_v12 }
0x1b95   :  { %v5956_v36 = vsel %vm5948_vm12, %v11023_v54, 64  ;;  %v13432_v39 = vcvt.s32.f32 %v5981_v28 }
0x1b96   :  { %v13435_v34 = vsel %vm1145_vm4, %v5956_v36, 2147483647 }
0x1b97   :  { %5984 = vmin.xlane.f32.xlu0 %v13432_v39  ;;  %v13438_v35 = vpop.xlane.xlu0 %5934  ;;  %v5966_v44 = vshra.s32 %v13435_v34, 16 }
0x1b98   :  { %vm5951_vm10 = vcmp.eq.f32.partialorder %v13338_v38, %v13438_v35 }
0x1b99   :  { %v5959_v51 = vsel %vm5951_vm10, %v11023_v54, 64  ;;  %v13447_v0 = vcvt.s32.f32 %v5966_v44 }
0x1b9a   :  { %v13450_v9 = vsel %vm1145_vm4, %v5959_v51, 2147483647 }
0x1b9b   :  { %5969 = vmin.xlane.f32.xlu1 %v13447_v0  ;;  %v13453_v15 = vpop.xlane.xlu1 %5931  ;;  %v6011_v33 = vshra.s32 %v13450_v9, 16 }
0x1b9c   :  { %vm5950_vm7 = vcmp.eq.f32.partialorder %v13349_v30, %v13453_v15 }
0x1b9d   :  { %v5958_v4 = vsel %vm5950_vm7, %v11023_v54, 64  ;;  %v13462_v27 = vcvt.s32.f32 %v6011_v33 }
0x1b9e   :  { %v13465_v42 = vsel %vm1145_vm4, %v5958_v4, 2147483647 }
0x1b9f   :  { %6014 = vmin.xlane.f32.xlu0 %v13462_v27  ;;  %v13468_v49 = vpop.xlane.xlu0 %5940  ;;  %v5996_v10 = vshra.s32 %v13465_v42, 16 }
0x1ba0   :  { %vm5953_vm5 = vcmp.eq.f32.partialorder %v13370_v60, %v13468_v49 }
0x1ba1   :  { %v5961_v43 = vsel %vm5953_vm5, %v11023_v54, 64  ;;  %v13477_v20 = vcvt.s32.f32 %v5996_v10 }
0x1ba2   :  { %v13480_v53 = vsel %vm1145_vm4, %v5961_v43, 2147483647 }
0x1ba3   :  { %5999 = vmin.xlane.f32.xlu1 %v13477_v20  ;;  %v13483_v18 = vpop.xlane.xlu1 %5937  ;;  %v6041_v55 = vshra.s32 %v13480_v53, 16 }
0x1ba4   :  { %vm5952_vm2 = vcmp.eq.f32.partialorder %v13381_v40, %v13483_v18 }
0x1ba5   :  { %v5960_v22 = vsel %vm5952_vm2, %v11023_v54, 64  ;;  %v13492_v21 = vcvt.s32.f32 %v6041_v55 }
0x1ba6   :  { %v13495_v25 = vsel %vm1145_vm4, %v5960_v22, 2147483647 }
0x1ba7   :  { %6044 = vmin.xlane.f32.xlu0 %v13492_v21  ;;  %v13498_v56 = vpop.xlane.xlu1 %5943  ;;  %v6026_v28 = vshra.s32 %v13495_v25, 16 }
0x1ba8   :  { %vm5954_vm3 = vcmp.eq.f32.partialorder %v13396_v8, %v13498_v56  ;;  %v4700_v8 = vld [vmem:[#allocation2 + $0x278] sm:$0xff] }
0x1ba9   :  { %v5962_v36 = vsel %vm5954_vm3, %v11023_v54, 64  ;;  %v13507_v44 = vcvt.s32.f32 %v6026_v28 }
0x1baa   :  { %v13510_v51 = vsel %vm1145_vm4, %v5962_v36, 2147483647  ;;  %v5500_v36 = vmul.f32 -10.0, %v12935_v58 }
0x1bab   :  { %v13512_v33 = vpop.xlane.xlu0 %5946  ;;  %6029 = vmin.xlane.f32.xlu1 %v13507_v44  ;;  %v6056_v4 = vshra.s32 %v13510_v51, 16 }
0x1bac   :  { %vm5955_vm11 = vcmp.eq.f32.partialorder %v13407_v63, %v13512_v33  ;;  %v5509_v17 = vmul.f32 1.442695, %v5500_v36  ;;  %v6700_v63 = vld [vmem:[#allocation2 + $0x2b0] sm:$0xff] }
0x1bad   :  { %v5963_v10 = vsel %vm5955_vm11, %v11023_v54, 64  ;;  %v13522_v43 = vcvt.s32.f32 %v6056_v4  ;;  %v5878_v4 = vmul.f32 1.442695, %v5869_v14 }
0x1bae   :  { %v13525_v55 = vsel %vm1145_vm4, %v5963_v10, 2147483647  ;;  %10704 = vpow2.f32 %v5509_v17  ;;  %v5871_v10 = vmul.f32 -10.0, %v13160_v50  ;;  %v5886_v50 = vmul.f32 1.442695, %v5873_v2 }
0x1baf   :  { %6059 = vmin.xlane.f32.xlu1 %v13522_v43  ;;  %v6071_v22 = vshra.s32 %v13525_v55, 16  ;;  %10706 = vpow2.f32 %v5878_v4  ;;  %v5875_v2 = vmul.f32 -10.0, %v13234_v13 }
0x1bb0   :  { %10708 = vpow2.f32 %v5876_v57 }
0x1bb1   :  { %v13529_v28 = vcvt.s32.f32 %v6071_v22  ;;  %v5882_v22 = vmul.f32 1.442695, %v5871_v10  ;;  %v5874_v10 = vmul.f32 -10.0, %v13220_v11 }
0x1bb3   :  { %6074 = vmin.xlane.f32.xlu0 %v13529_v28  ;;  %10710 = vpow2.f32 %v5882_v22 }
0x1bb4   :  { %10712 = vpow2.f32 %v5880_v23 }
0x1bb5   :  { %10714 = vpow2.f32 %v5886_v50 }
0x1bb6   :  { %10716 = vpow2.f32 %v5884_v7 }
0x1bb8   :  { %v10705_v58 = vpop.eup %10704 }
0x1bb9   :  { %v10707_v6 = vpop.eup %10706  ;;  %v13540_v17 = vmul.f32 %v10705_v58, %v13259_v5  ;;  %v5521_v58 = vmul.f32 1.442695, %v5506_v16 }
0x1bba   :  { %v10709_v14 = vpop.eup %10708 }
0x1bbb   :  { %10718 = vpow2.f32 %v5521_v58 }
0x1bbd   :  { %v10711_v22 = vpop.eup %10710 }
0x1bd9   :  { %v9744_v36 = vpop.f32.mrb[80].mxu1 }
0x1bda   :  { %v13542_v45 = vmul.f32 %v10707_v6, %v9744_v36  ;;  %v5829_v57 = vpop.f32.mrb[81].mxu1  ;;  %v10713_v6 = vpop.eup %10712  ;;  %v5890_v36 = vmul.f32 1.442695, %v5875_v2 }
0x1bdb   :  { %v13544_v3 = vmul.f32 %v10709_v14, %v5829_v57  ;;  %v5888_v57 = vmul.f32 1.442695, %v5874_v10  ;;  %v10715_v7 = vpop.eup %10714 }
0x1bdc   :  { %v13548_v1 = vadd.f32 %v13542_v45, %v13540_v17  ;;  %10720 = vpow2.f32 %v5890_v36  ;;  %v10717_v2 = vpop.eup %10716 }
0x1bdd   :  { %v13555_v5 = vadd.f32 %v13544_v3, %v13261_v29  ;;  %10722 = vpow2.f32 %v5888_v57  ;;  %v10719_v57 = vpop.eup %10718 }
0x1be1   :  { %v9747_v19 = vpop.f32.mrb[82].mxu1 }
0x1be2   :  { %v13561_v14 = vmul.f32 %v10711_v22, %v9747_v19  ;;  %v5839_v62 = vpop.f32.mrb[83].mxu1 }
0x1be3   :  { %v13563_v23 = vmul.f32 %v10713_v6, %v5839_v62 }
0x1be4   :  { %v13567_v4 = vadd.f32 %v13561_v14, %v13264_v32 }
0x1be5   :  { %v13573_v11 = vadd.f32 %v13563_v23, %v13266_v59 }
0x1be9   :  { %v9750_v16 = vpop.f32.mrb[84].mxu1 }
0x1bea   :  { %v13577_v10 = vmul.f32 %v10715_v7, %v9750_v16  ;;  %v5849_v22 = vpop.f32.mrb[85].mxu1  ;;  %v10721_v7 = vpop.eup %10720 }
0x1beb   :  { %v13579_v19 = vmul.f32 %v10717_v2, %v5849_v22  ;;  %v10723_v50 = vpop.eup %10722  ;;  %v13594_v2 = vmul.f32 %v10719_v57, %v13272_v46  ;;  %v5980_v57 = vand.u32 65535, %v13421_v48  ;;  %v5995_v48 = vand.u32 65535, %v13465_v42 }
0x1bec   :  { %v13583_v58 = vadd.f32 %v13577_v10, %v13268_v37 }
0x1bed   :  { %14100 = vst [vmem:[#allocation16_spill] sm:$0xff] %v13579_v19  ;;  %v13589_v62 = vadd.f32 %v13579_v19, %v13270_v52 }
0x1bef   :  { %14101 = vst [vmem:[#allocation19_spill] sm:$0xff] %v13589_v62  ;;  %v6010_v62 = vand.u32 65535, %v13450_v9 }
0x1bf0   :  { %v9753_v16 = vpop.f32.mrb[86].mxu1 }
0x1bf1   :  { %v13596_v22 = vmul.f32 %v10721_v7, %v9753_v16  ;;  %v5859_v13 = vpop.f32.mrb[87].mxu1  ;;  %v5982_v16 = vcvt.s32.f32 %v5980_v57  ;;  %v6012_v46 = vcvt.s32.f32 %v6010_v62 }
0x1bf2   :  { %v13598_v31 = vmul.f32 %v10723_v50, %v5859_v13  ;;  %v5965_v13 = vand.u32 65535, %v13435_v34 }
0x1bf3   :  { %14102 = vst [vmem:[#allocation17_spill] sm:$0xff] %v13596_v22  ;;  %v13602_v6 = vadd.f32 %v13596_v22, %v13594_v2 }
0x1bf4   :  { %v13608_v36 = vadd.f32 %v13598_v31, %v13274_v47  ;;  %v5967_v19 = vcvt.s32.f32 %v5965_v13 }
0x1bf5   :  { %14103 = vst [vmem:[#allocation20_spill] sm:$0xff] %v13602_v6 }
0x1bf6   :  { %14104 = vst [vmem:[#allocation5_spill] sm:$0xff] %v13608_v36 }
0x1c24   :  { %v5985_v7 = vpop.xlane.xlu0 %5984 }
0x1c25   :  { %vm5986_vm9 = vcmp.eq.f32.partialorder %v13432_v39, %v5985_v7  ;;  %v5997_v39 = vcvt.s32.f32 %v5995_v48 }
0x1c26   :  { %v5987_v50 = vsel %vm5986_vm9, %v5982_v16, inf  ;;  %v6040_v16 = vand.u32 65535, %v13480_v53 }
0x1c27   :  { %5988 = vmin.xlane.f32.xlu0 %v5987_v50  ;;  %v6070_v50 = vand.u32 65535, %v13525_v55 }
0x1c28   :  { %v5970_v6 = vpop.xlane.xlu1 %5969 }
0x1c29   :  { %vm5971_vm8 = vcmp.eq.f32.partialorder %v13447_v0, %v5970_v6  ;;  %v6042_v0 = vcvt.s32.f32 %v6040_v16  ;;  %v5976_v16 = vcvt.f32.s32 %v5970_v6 }
0x1c2a   :  { %v5972_v36 = vsel %vm5971_vm8, %v5967_v19, inf  ;;  %v6025_v19 = vand.u32 65535, %v13495_v25 }
0x1c2b   :  { %5973 = vmin.xlane.f32.xlu1 %v5972_v36  ;;  %v6055_v36 = vand.u32 65535, %v13510_v51  ;;  %v5991_v51 = vcvt.f32.s32 %v5985_v7  ;;  %v5977_v55 = vshll.u32 %v5976_v16, 16 }
0x1c2c   :  { %v6015_v22 = vpop.xlane.xlu0 %6014 }
0x1c2d   :  { %vm6016_vm13 = vcmp.eq.f32.partialorder %v13462_v27, %v6015_v22  ;;  %v6027_v27 = vcvt.s32.f32 %v6025_v19 }
0x1c2e   :  { %v6017_v57 = vsel %vm6016_vm13, %v6012_v46, inf }
0x1c2f   :  { %6018 = vmin.xlane.f32.xlu0 %v6017_v57 }
0x1c30   :  { %v6000_v34 = vpop.xlane.xlu1 %5999 }
0x1c31   :  { %vm6001_vm14 = vcmp.eq.f32.partialorder %v13477_v20, %v6000_v34  ;;  %v6057_v20 = vcvt.s32.f32 %v6055_v36 }
0x1c32   :  { %v6002_v13 = vsel %vm6001_vm14, %v5997_v39, inf  ;;  %v5992_v39 = vshll.u32 %v5991_v51, 16 }
0x1c33   :  { %6003 = vmin.xlane.f32.xlu1 %v6002_v13 }
0x1c34   :  { %v6045_v9 = vpop.xlane.xlu0 %6044 }
0x1c35   :  { %vm6046_vm0 = vcmp.eq.f32.partialorder %v13492_v21, %v6045_v9  ;;  %v6072_v21 = vcvt.s32.f32 %v6070_v50 }
0x1c36   :  { %v6047_v62 = vsel %vm6046_vm0, %v6042_v0, inf }
0x1c37   :  { %6048 = vmin.xlane.f32.xlu0 %v6047_v62  ;;  %v6021_v62 = vcvt.f32.s32 %v6015_v22 }
0x1c38   :  { %v6030_v42 = vpop.xlane.xlu1 %6029 }
0x1c39   :  { %vm6031_vm15 = vcmp.eq.f32.partialorder %v13507_v44, %v6030_v42  ;;  %v6036_v61 = vcvt.f32.s32 %v6030_v42 }
0x1c3a   :  { %v6032_v46 = vsel %vm6031_vm15, %v6027_v27, inf }
0x1c3b   :  { %6033 = vmin.xlane.f32.xlu1 %v6032_v46  ;;  %v6022_v46 = vshll.u32 %v6021_v62, 16  ;;  %v6037_v42 = vshll.u32 %v6036_v61, 16 }
0x1c3c   :  { %v6060_v53 = vpop.xlane.xlu1 %6059 }
0x1c3d   :  { %vm6061_vm9 = vcmp.eq.f32.partialorder %v13522_v43, %v6060_v53 }
0x1c3e   :  { %v6062_v48 = vsel %vm6061_vm9, %v6057_v20, inf  ;;  %v6006_v20 = vcvt.f32.s32 %v6000_v34 }
0x1c3f   :  { %6063 = vmin.xlane.f32.xlu1 %v6062_v48  ;;  %v6051_v48 = vcvt.f32.s32 %v6045_v9 }
0x1c40   :  { %v13627_v25 = vpop.xlane.xlu0 %6074  ;;  %v6007_v34 = vshll.u32 %v6006_v20, 16 }
0x1c41   :  { %vm6076_vm8 = vcmp.eq.f32.partialorder %v13529_v28, %v13627_v25  ;;  %v6052_v51 = vshll.u32 %v6051_v48, 16  ;;  %v6081_v30 = vcvt.f32.s32 %v13627_v25  ;;  %v4694_v48 = vld [vmem:[#allocation2 + $0x248] sm:$0xff] }
0x1c42   :  { %v6077_v57 = vsel %vm6076_vm8, %v6072_v21, inf }
0x1c43   :  { %6078 = vmin.xlane.f32.xlu0 %v6077_v57  ;;  %v6082_v25 = vshll.u32 %v6081_v30, 16 }
0x1cb4   :  { %v5989_v44 = vpop.xlane.xlu0 %5988 }
0x1cb5   :  { %v5990_v13 = vcvt.f32.s32 %v5989_v44 }
0x1cb7   :  { %v5993_v0 = vadd.s32 %v5992_v39, %v5990_v13 }
0x1cb8   :  { %v5974_v19 = vpop.xlane.xlu1 %5973 }
0x1cb9   :  { %v5975_v43 = vcvt.f32.s32 %v5974_v19  ;;  %vm6085_vm13 = vcmp.eq.s32.totalorder %v11023_v54, %v5993_v0  ;;  %v6066_v0 = vcvt.f32.s32 %v6060_v53 }
0x1cba   :  { %vm6093_vm14 = vmand %vm5949_vm6, %vm6085_vm13 }
0x1cbb   :  { %v5978_v27 = vadd.s32 %v5977_v55, %v5975_v43  ;;  %v8458_v7 = vsel %vm6093_vm14, 1.0, %v14005_v24  ;;  %v6067_v62 = vshll.u32 %v6066_v0, 16  ;;  %v6249_v0 = vmul.f32 -10.0, %v13483_v18 }
0x1cbc   :  { %v6019_v36 = vpop.xlane.xlu0 %6018  ;;  %v14106_v18 = vmax.f32 %v13261_v29, %v13544_v3 }
0x1cbd   :  { %vm6084_vm0 = vcmp.eq.s32.totalorder %v11023_v54, %v5978_v27  ;;  %v6020_v28 = vcvt.f32.s32 %v6019_v36 }
0x1cbe   :  { %vm6092_vm15 = vmand %vm5948_vm12, %vm6084_vm0 }
0x1cbf   :  { %v6023_v6 = vadd.s32 %v6022_v46, %v6020_v28  ;;  %v8457_v22 = vsel %vm6092_vm15, 1.0, %v14005_v24 }
0x1cc0   :  { %9770 = vmatprep.mubr.msk.f32.mxu0 %vm1145_vm4, %v8457_v22  ;;  %v6004_v50 = vpop.xlane.xlu1 %6003  ;;  %v4699_v22 = vld [vmem:[#allocation2 + $0x270] sm:$0xff] }
0x1cc1   :  { %v6005_v21 = vcvt.f32.s32 %v6004_v50  ;;  %9771 = vmatmul.mubr.msk.f32.vlgmr.msra.gmra.mrb[96].mxu0 %vm1145_vm4, %v8458_v7  ;;  %vm6087_vm6 = vcmp.eq.s32.totalorder %v11023_v54, %v6023_v6  ;;  %v4698_v6 = vld [vmem:[#allocation2 + $0x268] sm:$0xff]  ;;  %v4701_v50 = vld [vmem:[#allocation2 + $0x280] sm:$0xff] }
0x1cc2   :  { %vm6095_vm9 = vmand %vm5951_vm10, %vm6087_vm6  ;;  %v10396_v7 = vpack.c.bf16 %v4699_v22, %v4698_v6 }
0x1cc3   :  { %v6008_v26 = vadd.s32 %v6007_v34, %v6005_v21  ;;  %v8460_v13 = vsel %vm6095_vm9, 1.0, %v14005_v24  ;;  %v10400_v34 = vpack.c.bf16 %v4701_v50, %v4700_v8  ;;  %v14107_v8 = vmax.f32 %v13264_v32, %v13561_v14 }
0x1cc4   :  { %v6049_v57 = vpop.xlane.xlu0 %6048  ;;  %10397 = vmatprep.subr.bf16.mxu1 %v10396_v7 }
0x1cc5   :  { %vm6086_vm12 = vcmp.eq.s32.totalorder %v11023_v54, %v6008_v26  ;;  %v6050_v44 = vcvt.f32.s32 %v6049_v57  ;;  %10399 = vmatpush3.bf16.msra.mxu1 %v10396_v7  ;;  %v6701_v26 = vld [vmem:[#allocation2 + $0x2b8] sm:$0xff] }
0x1cc6   :  { %vm6094_vm8 = vmand %vm5950_vm7, %vm6086_vm12  ;;  %10401 = vmatprep.subr.bf16.mxu1 %v10400_v34  ;;  %v10420_v57 = vpack.c.bf16 %v6701_v26, %v6700_v63 }
0x1cc7   :  { %v6053_v9 = vadd.s32 %v6052_v51, %v6050_v44  ;;  %v8459_v39 = vsel %vm6094_vm8, 1.0, %v14005_v24  ;;  %v6245_v51 = vmul.f32 -10.0, %v13423_v12 }
0x1cc8   :  { %9773 = vmatprep.mubr.msk.f32.mxu0 %vm1145_vm4, %v8459_v39  ;;  %v6034_v16 = vpop.xlane.xlu1 %6033  ;;  %10421 = vmatprep.subr.bf16.mxu0 %v10420_v57  ;;  %v6247_v39 = vmul.f32 -10.0, %v13453_v15  ;;  %v14105_v15 = vmax.f32 %v13540_v17, %v13542_v45 }
0x1cc9   :  { %v6035_v19 = vcvt.f32.s32 %v6034_v16  ;;  %9774 = vmatmul.mubr.msk.f32.gmra.mrb[98].mxu0 %vm1145_vm4, %v8460_v13  ;;  %vm6089_vm13 = vcmp.eq.s32.totalorder %v11023_v54, %v6053_v9  ;;  %10403 = vmatpush3.bf16.msra.mxu1 %v10400_v34  ;;  %v6253_v44 = vmul.f32 1.442695, %v6245_v51  ;;  %v6248_v9 = vmul.f32 -10.0, %v13438_v35 }
0x1cca   :  { %vm6097_vm7 = vmand %vm5953_vm5, %vm6089_vm13  ;;  %10423 = vmatpush3.bf16.msra.mxu0 %v10420_v57  ;;  %v6257_v13 = vmul.f32 1.442695, %v6247_v39 }
0x1ccb   :  { %v6038_v38 = vadd.s32 %v6037_v42, %v6035_v19  ;;  %v8462_v46 = vsel %vm6097_vm7, 1.0, %v14005_v24  ;;  %v6259_v16 = vmul.f32 1.442695, %v6248_v9  ;;  %v6250_v42 = vmul.f32 -10.0, %v13468_v49  ;;  %v14111_v9 = vld [vmem:[#allocation16_spill] sm:$0xff] }
0x1ccc   :  { %v6064_v55 = vpop.xlane.xlu1 %6063  ;;  %v14112_v39 = vmax.f32 %v13270_v52, %v14111_v9  ;;  %v14116_v52 = vld [vmem:[#allocation5_spill] sm:$0xff] }
0x1ccd   :  { %vm6088_vm10 = vcmp.eq.s32.totalorder %v11023_v54, %v6038_v38  ;;  %v6065_v43 = vcvt.f32.s32 %v6064_v55 }
0x1cce   :  { %vm6096_vm14 = vmand %vm5952_vm2, %vm6088_vm10 }
0x1ccf   :  { %v6068_v53 = vadd.s32 %v6067_v62, %v6065_v43  ;;  %v8461_v27 = vsel %vm6096_vm14, 1.0, %v14005_v24  ;;  %v6263_v62 = vmul.f32 1.442695, %v6250_v42  ;;  %v6261_v43 = vmul.f32 1.442695, %v6249_v0 }
0x1cd0   :  { %v6079_v36 = vpop.xlane.xlu0 %6078  ;;  %9776 = vmatprep.mubr.msk.f32.mxu0 %vm1145_vm4, %v8461_v27 }
0x1cd1   :  { %vm6090_vm0 = vcmp.eq.s32.totalorder %v11023_v54, %v6068_v53  ;;  %v6080_v20 = vcvt.f32.s32 %v6079_v36  ;;  %9777 = vmatmul.mubr.msk.f32.gmra.mrb[100].mxu0 %vm1145_vm4, %v8462_v46  ;;  %v4696_v36 = vld [vmem:[#allocation2 + $0x258] sm:$0xff]  ;;  %v4697_v46 = vld [vmem:[#allocation2 + $0x260] sm:$0xff] }
0x1cd2   :  { %vm6098_vm5 = vmand %vm5954_vm3, %vm6090_vm0  ;;  %v10408_v17 = vpack.c.bf16 %v4697_v46, %v4696_v36  ;;  %v4704_v36 = vld [vmem:[#allocation2 + $0x298] sm:$0xff]  ;;  %v4705_v46 = vld [vmem:[#allocation2 + $0x2a0] sm:$0xff] }
0x1cd3   :  { %v6083_v60 = vadd.s32 %v6082_v25, %v6080_v20  ;;  %v8463_v40 = vsel %vm6098_vm5, 1.0, %v14005_v24  ;;  %v6252_v25 = vmul.f32 -10.0, %v13512_v33  ;;  %v6251_v20 = vmul.f32 -10.0, %v13498_v56 }
0x1cd4   :  { %9779 = vmatprep.mubr.msk.f32.mxu0 %vm1145_vm4, %v8463_v40 }
0x1cd5   :  { %vm6091_vm2 = vcmp.eq.s32.totalorder %v11023_v54, %v6083_v60  ;;  %v4695_v54 = vld [vmem:[#allocation2 + $0x250] sm:$0xff]  ;;  %v6267_v3 = vmul.f32 1.442695, %v6252_v25  ;;  %v6265_v33 = vmul.f32 1.442695, %v6251_v20  ;;  %v14118_v25 = vld [vmem:[#allocation7_spill] sm:$0xff]  ;;  %v10416_v20 = vpack.c.bf16 %v4705_v46, %v4704_v36 }
0x1cd6   :  { %vm6099_vm15 = vmand %vm5955_vm11, %vm6091_vm2  ;;  %v10404_v21 = vpack.c.bf16 %v4695_v54, %v4694_v48  ;;  %v14108_v54 = vmax.f32 %v13266_v59, %v13563_v23  ;;  %v14109_v59 = vmax.f32 %v13268_v37, %v13577_v10  ;;  %v14113_v37 = vld [vmem:[#allocation20_spill] sm:$0xff] }
0x1cd7   :  { %v8464_v28 = vsel %vm6099_vm15, 1.0, %v14005_v24  ;;  %v6246_v24 = vmul.f32 -10.0, %v13412_v41 }
0x1cd8   :  { %9780 = vmatmul.mubr.msk.f32.gmra.mrb[102].mxu0 %vm1145_vm4, %v8464_v28  ;;  %10405 = vmatprep.subr.bf16.mxu1 %v10404_v21  ;;  %v4703_v28 = vld [vmem:[#allocation2 + $0x290] sm:$0xff]  ;;  %vm14126_vm4 = vcmask 64512  }
0x1cd9   :  { %v6255_v61 = vmul.f32 1.442695, %v6246_v24  ;;  %vm14127_vm3 = vmmov %vm14126_vm4 }
0x1cda   :  { %vm14128_vm11 = vmmov %vm14127_vm3 }
0x1cdb   :  { %10724 = vpow2.f32 %v6255_v61  ;;  %v14110_v61 = vld [vmem:[#allocation19_spill] sm:$0xff] }
0x1cdc   :  { %10726 = vpow2.f32 %v6253_v44 }
0x1cdd   :  { %10728 = vpow2.f32 %v6259_v16 }
0x1cde   :  { %10730 = vpow2.f32 %v6257_v13 }
0x1cdf   :  { %10732 = vpow2.f32 %v6263_v62 }
0x1ce0   :  { %10734 = vpow2.f32 %v6261_v43 }
0x1ce1   :  { %10736 = vpow2.f32 %v6267_v3  ;;  %v8497_v3 = vld [vmem:[#allocation2 + $0x2a8] ss:$0 sm:$0xff] }
0x1ce2   :  { %10738 = vpow2.f32 %v6265_v33 }
0x1ce5   :  { %v10725_v19 = vpop.eup %10724 }
0x1ce6   :  { %v10727_v38 = vpop.eup %10726 }
0x1ce7   :  { %v10729_v45 = vpop.eup %10728 }
0x1ce8   :  { %v10731_v29 = vpop.eup %10730 }
0x1d94   :  { %v9772_v41 = vpop.f32.mrb[96].mxu0 }
0x1d95   :  { %v6270_v12 = vmul.f32 %v10725_v19, %v9772_v41  ;;  %v6206_v55 = vpop.f32.mrb[97].mxu0 }
0x1d96   :  { %v6269_v30 = vmul.f32 %v10727_v38, %v6206_v55  ;;  %v14114_v55 = vld [vmem:[#allocation17_spill] sm:$0xff] }
0x1d97   :  { %v6278_v35 = vadd.f32 %v6270_v12, %v13548_v1  ;;  %v13690_v53 = vmax.f32 %v14105_v15, %v6270_v12  ;;  %v14115_v62 = vmax.f32 %v13594_v2, %v14114_v55  ;;  %v14119_v2 = vld [vmem:[#allocation10_spill] sm:$0xff] }
0x1d98   :  { %v6277_v49 = vadd.f32 %v6269_v30, %v13555_v5  ;;  %v13696_v27 = vmax.f32 %v14106_v18, %v6269_v30  ;;  %v4702_v5 = vld [vmem:[#allocation2 + $0x288] sm:$0xff] }
0x1d99   :  { %v6294_v60 = vmul.f32 0.33333334, %v6278_v35  ;;  %v10412_v34 = vpack.c.bf16 %v4703_v28, %v4702_v5  ;;  %v14117_v35 = vmax.f32 %v13274_v47, %v13598_v31  ;;  %v14121_v31 = vld [vmem:[#allocation11_spill] sm:$0xff]  ;;  %v14122_v47 = vld [vmem:[#allocation9_spill] sm:$0xff] }
0x1d9a   :  { %v6293_v1 = vmul.f32 0.33333334, %v6277_v49  ;;  %v6703_v5 = vld [vmem:[#allocation2 + $0x2c8] sm:$0xff] }
0x1d9c   :  { %v9775_v40 = vpop.f32.mrb[98].mxu0  ;;  %9790 = vmatprep.mubr.msk.f32.mxu1 %vm194_vm1, %v6293_v1  ;;  %v14120_v1 = vld [vmem:[#allocation8_spill] sm:$0xff] }
0x1d9d   :  { %v6272_v6 = vmul.f32 %v10729_v45, %v9775_v40  ;;  %v6216_v22 = vpop.f32.mrb[99].mxu0  ;;  %9791 = vmatmul.mubr.msk.f32.vlgmr.msra.gmra.mrb[88].mxu1 %vm194_vm1, %v6294_v60  ;;  %v14123_v60 = vld [vmem:[#allocation12_spill] sm:$0xff]  ;;  %v14125_v45 = vld [vmem:[#allocation18_spill] sm:$0xff] }
0x1d9e   :  { %v6271_v7 = vmul.f32 %v10731_v29, %v6216_v22  ;;  %10407 = vmatpush3.bf16.msra.mxu1 %v10404_v21  ;;  %v10733_v21 = vpop.eup %10732  ;;  %v6702_v40 = vld [vmem:[#allocation2 + $0x2c0] sm:$0xff] }
0x1d9f   :  { %v6280_v56 = vadd.f32 %v6272_v6, %v13567_v4  ;;  %v6288_v50 = vmax.f32 %v14107_v8, %v6272_v6  ;;  %10409 = vmatprep.subr.bf16.mxu1 %v10408_v17  ;;  %v10735_v32 = vpop.eup %10734  ;;  %v10424_v28 = vpack.c.bf16 %v6703_v5, %v6702_v40  ;;  %v6855_v29 = vld [vmem:[#allocation2 + $0x2e0] sm:$0xff] }
0x1da0   :  { %v6279_v48 = vadd.f32 %v6271_v7, %v13573_v11  ;;  %v6287_v63 = vmax.f32 %v14108_v54, %v6271_v7  ;;  %v10737_v42 = vpop.eup %10736 }
0x1da1   :  { %v6296_v57 = vmul.f32 0.33333334, %v6280_v56  ;;  %v10739_v41 = vpop.eup %10738  ;;  %10425 = vmatprep.subr.bf16.mxu0 %v10424_v28 }
0x1da2   :  { %v6295_v26 = vmul.f32 0.33333334, %v6279_v48  ;;  %10411 = vmatpush3.bf16.msra.mxu1 %v10408_v17  ;;  %v14124_v17 = vld [vmem:[#allocation15_spill] sm:$0xff]  ;;  %10427 = vmatpush3.bf16.msra.mxu0 %v10424_v28 }
0x1da3   :  { %10413 = vmatprep.subr.bf16.mxu1 %v10412_v34 }
0x1da4   :  { %v9778_v4 = vpop.f32.mrb[100].mxu0  ;;  %9793 = vmatprep.mubr.msk.f32.mxu1 %vm194_vm1, %v6295_v26 }
0x1da5   :  { %v6274_v14 = vmul.f32 %v10733_v21, %v9778_v4  ;;  %v6226_v24 = vpop.f32.mrb[101].mxu0  ;;  %9794 = vmatmul.mubr.msk.f32.gmra.mrb[90].mxu1 %vm194_vm1, %v6296_v57 }
0x1da6   :  { %v6273_v11 = vmul.f32 %v10735_v32, %v6226_v24 }
0x1da7   :  { %v6282_v51 = vadd.f32 %v6274_v14, %v13583_v58  ;;  %v6290_v23 = vmax.f32 %v14109_v59, %v6274_v14 }
0x1da8   :  { %v6281_v44 = vadd.f32 %v6273_v11, %v14110_v61  ;;  %v6289_v16 = vmax.f32 %v14112_v39, %v6273_v11 }
0x1da9   :  { %v6298_v0 = vmul.f32 0.33333334, %v6282_v51 }
0x1daa   :  { %v6297_v13 = vmul.f32 0.33333334, %v6281_v44 }
0x1dab   :  { %v9781_v19 = vpop.f32.mrb[102].mxu0 }
0x1dac   :  { %v6276_v38 = vmul.f32 %v10737_v42, %v9781_v19  ;;  %v6236_v12 = vpop.f32.mrb[103].mxu0  ;;  %9796 = vmatprep.mubr.msk.f32.mxu1 %vm194_vm1, %v6297_v13 }
0x1dad   :  { %v6275_v58 = vmul.f32 %v10739_v41, %v6236_v12  ;;  %9797 = vmatmul.mubr.msk.f32.gmra.mrb[92].mxu1 %vm194_vm1, %v6298_v0  ;;  %v6857_v12 = vld [vmem:[#allocation2 + $0x2f0] sm:$0xff] }
0x1dae   :  { %v6284_v10 = vadd.f32 %v6276_v38, %v14113_v37  ;;  %v6292_v30 = vmax.f32 %v14115_v62, %v6276_v38  ;;  %v6856_v38 = vld [vmem:[#allocation2 + $0x2e8] sm:$0xff]  ;;  %v7008_v37 = vld [vmem:[#allocation2 + $0x300] sm:$0xff]  ;;  %v8498_v62 = vld [vmem:[#allocation2 + $0x2d0] ss:$0 sm:$0xff] }
0x1daf   :  { %v6283_v43 = vadd.f32 %v6275_v58, %v14116_v52  ;;  %v6291_v15 = vmax.f32 %v14117_v35, %v6275_v58  ;;  %v10432_v58 = vpack.c.bf16 %v6857_v12, %v6856_v38 }
0x1db0   :  { %v6300_v18 = vmul.f32 0.33333334, %v6284_v10  ;;  %v7009_v10 = vld [vmem:[#allocation2 + $0x308] sm:$0xff] }
0x1db1   :  { %v6299_v49 = vmul.f32 0.33333334, %v6283_v43  ;;  %v10436_v55 = vpack.c.bf16 %v7009_v10, %v7008_v37 }
0x1db3   :  { %9799 = vmatprep.mubr.msk.f32.mxu1 %vm194_vm1, %v6299_v49 }
0x1db4   :  { %9800 = vmatmul.mubr.msk.f32.gmra.mrb[94].mxu1 %vm194_vm1, %v6300_v18 }
0x1db5   :  { %9810 = vmatprep.mubr.msk.f32.mxu1 %vm194_vm1, %v14118_v25 }
0x1db8   :  { %9811 = vmatmul.mubr.msk.f32.vlgmr.msra.gmra.mrb[88].mxu1 %vm194_vm1, %v14119_v2 }
0x1db9   :  { %10415 = vmatpush3.bf16.msra.mxu1 %v10412_v34  ;;  %9813 = vmatprep.mubr.msk.f32.mxu1 %vm194_vm1, %v14120_v1 }
0x1dba   :  { %10417 = vmatprep.subr.bf16.mxu1 %v10416_v20 }
0x1dbc   :  { %9814 = vmatmul.mubr.msk.f32.gmra.mrb[90].mxu1 %vm194_vm1, %v14121_v31 }
0x1dbd   :  { %9816 = vmatprep.mubr.msk.f32.mxu1 %vm194_vm1, %v14122_v47  ;;  %10419 = vmatpush3.bf16.msra.mxu1 %v10416_v20 }
0x1dc0   :  { %9817 = vmatmul.mubr.msk.f32.gmra.mrb[92].mxu1 %vm194_vm1, %v14123_v60 }
0x1dc1   :  { %9819 = vmatprep.mubr.msk.f32.mxu1 %vm194_vm1, %v14124_v17 }
0x1dc4   :  { %9820 = vmatmul.mubr.msk.f32.gmra.mrb[94].mxu1 %vm194_vm1, %v14125_v45 }
0x1dc5   :  { %9830 = vmatprep.mubr.msk.f32.mxu1 %vm194_vm1, %v13696_v27  ;;  %v6854_v27 = vld [vmem:[#allocation2 + $0x2d8] sm:$0xff] }
0x1dc8   :  { %9831 = vmatmul.mubr.msk.f32.vlgmr.msra.gmra.mrb[88].mxu1 %vm194_vm1, %v13690_v53  ;;  %v10428_v53 = vpack.c.bf16 %v6855_v29, %v6854_v27 }
0x1dc9   :  { %9833 = vmatprep.mubr.msk.f32.mxu1 %vm194_vm1, %v6287_v63 }
0x1dca   :  { %10429 = vmatprep.subr.bf16.mxu0 %v10428_v53 }
0x1dcc   :  { %9834 = vmatmul.mubr.msk.f32.gmra.mrb[90].mxu1 %vm194_vm1, %v6288_v50 }
0x1dcd   :  { %9836 = vmatprep.mubr.msk.f32.mxu1 %vm194_vm1, %v6289_v16 }
0x1dd0   :  { %9837 = vmatmul.mubr.msk.f32.gmra.mrb[92].mxu1 %vm194_vm1, %v6290_v23 }
0x1dd1   :  { %9839 = vmatprep.mubr.msk.f32.mxu1 %vm194_vm1, %v6291_v15 }
0x1dd4   :  { %9840 = vmatmul.mubr.msk.f32.gmra.mrb[94].mxu1 %vm194_vm1, %v6292_v30 }
0x1e9b   :  { %v9832_v6 = vpop.f32.mrb[88].mxu1 }
0x1e9c   :  { %v6677_v22 = vadd.f32 %v9832_v6, %v8497_v3  ;;  %v6625_v33 = vpop.f32.mrb[89].mxu1 }
0x1e9d   :  { %v6676_v7 = vadd.f32 %v8497_v3, %v6625_v33 }
0x1e9e   :  { %v6685_v56 = vmul.f32 0.01, %v6677_v22 }
0x1e9f   :  { %v6684_v8 = vmul.f32 0.01, %v6676_v7  ;;  %v9835_v50 = vpop.f32.mrb[90].mxu1 }
0x1ea0   :  { %v6679_v34 = vadd.f32 %v9835_v50, %v8497_v3  ;;  %v6635_v48 = vpop.f32.mrb[91].mxu1  ;;  %v13760_v26 = vmax.f32 %v6677_v22, %v6685_v56 }
0x1ea1   :  { %v13758_v54 = vmax.f32 %v6676_v7, %v6684_v8  ;;  %v6678_v63 = vadd.f32 %v8497_v3, %v6635_v48  ;;  %v7011_v48 = vld [vmem:[#allocation2 + $0x318] sm:$0xff] }
0x1ea2   :  { %v6687_v57 = vmul.f32 0.01, %v6679_v34 }
0x1ea3   :  { %v6686_v21 = vmul.f32 0.01, %v6678_v63  ;;  %v9838_v4 = vpop.f32.mrb[92].mxu1  ;;  %9850 = vmatprep.mubr.msk.f32.mxu0 %vm194_vm1, %v13758_v54 }
0x1ea4   :  { %v6681_v32 = vadd.f32 %v9838_v4, %v8497_v3  ;;  %v6645_v14 = vpop.f32.mrb[93].mxu1  ;;  %9851 = vmatmul.mubr.msk.f32.vlgmr.msra.gmra.mrb[104].mxu0 %vm194_vm1, %v13760_v26  ;;  %v13768_v51 = vmax.f32 %v6679_v34, %v6687_v57  ;;  %v7010_v34 = vld [vmem:[#allocation2 + $0x310] sm:$0xff]  ;;  %v7162_v57 = vld [vmem:[#allocation2 + $0x328] sm:$0xff] }
0x1ea5   :  { %v13766_v24 = vmax.f32 %v6678_v63, %v6686_v21  ;;  %v6680_v11 = vadd.f32 %v8497_v3, %v6645_v14  ;;  %10431 = vmatpush3.bf16.msra.mxu0 %v10428_v53  ;;  %v10440_v63 = vpack.c.bf16 %v7011_v48, %v7010_v34  ;;  %v7163_v21 = vld [vmem:[#allocation2 + $0x330] sm:$0xff]  ;;  %v7314_v48 = vld [vmem:[#allocation2 + $0x3c0] sm:$0xff] }
0x1ea6   :  { %v6689_v59 = vmul.f32 0.01, %v6681_v32  ;;  %10433 = vmatprep.subr.bf16.mxu0 %v10432_v58  ;;  %v10444_v4 = vpack.c.bf16 %v7163_v21, %v7162_v57  ;;  %v7316_v21 = vld [vmem:[#allocation2 + $0x3d0] sm:$0xff] }
0x1ea7   :  { %v6688_v23 = vmul.f32 0.01, %v6680_v11  ;;  %v9841_v61 = vpop.f32.mrb[94].mxu1  ;;  %9853 = vmatprep.mubr.msk.f32.mxu0 %vm194_vm1, %v13766_v24 }
0x1ea8   :  { %v6683_v44 = vadd.f32 %v9841_v61, %v8497_v3  ;;  %v6655_v9 = vpop.f32.mrb[95].mxu1  ;;  %9854 = vmatmul.mubr.msk.f32.gmra.mrb[106].mxu0 %vm194_vm1, %v13768_v51  ;;  %v13776_v13 = vmax.f32 %v6681_v32, %v6689_v59  ;;  %10445 = vmatprep.subr.bf16.mxu1 %v10444_v4  ;;  %v8507_v32 = vld [vmem:[#allocation2 + $0x2f8] ss:$0 sm:$0xff] }
0x1ea9   :  { %v13774_v39 = vmax.f32 %v6680_v11, %v6688_v23  ;;  %v6682_v16 = vadd.f32 %v8497_v3, %v6655_v9  ;;  %10435 = vmatpush3.bf16.msra.mxu0 %v10432_v58  ;;  %10447 = vmatpush3.bf16.msra.mxu1 %v10444_v4  ;;  %v7317_v4 = vld [vmem:[#allocation2 + $0x3d8] sm:$0xff] }
0x1eaa   :  { %v6691_v42 = vmul.f32 0.01, %v6683_v44  ;;  %10437 = vmatprep.subr.bf16.mxu0 %v10436_v55 }
0x1eab   :  { %v6690_v0 = vmul.f32 0.01, %v6682_v16  ;;  %9856 = vmatprep.mubr.msk.f32.mxu0 %vm194_vm1, %v13774_v39 }
0x1eac   :  { %9857 = vmatmul.mubr.msk.f32.gmra.mrb[108].mxu0 %vm194_vm1, %v13776_v13  ;;  %v13784_v41 = vmax.f32 %v6683_v44, %v6691_v42 }
0x1ead   :  { %v13782_v19 = vmax.f32 %v6682_v16, %v6690_v0 }
0x1eaf   :  { %9859 = vmatprep.mubr.msk.f32.mxu0 %vm194_vm1, %v13782_v19 }
0x1eb0   :  { %9860 = vmatmul.mubr.msk.f32.gmra.mrb[110].mxu0 %vm194_vm1, %v13784_v41 }
0x1f77   :  { %v9852_v30 = vpop.f32.mrb[104].mxu0 }
0x1f78   :  { %v6805_v52 = vadd.f32 %v9852_v30, %v8498_v62  ;;  %v6799_v43 = vpop.f32.mrb[105].mxu0 }
0x1f79   :  { %v6800_v35 = vadd.f32 %v8498_v62, %v6799_v43 }
0x1f7a   :  { %v6839_v15 = vmul.f32 0.01, %v6805_v52 }
0x1f7b   :  { %v6838_v49 = vmul.f32 0.01, %v6800_v35  ;;  %v9855_v18 = vpop.f32.mrb[106].mxu0 }
0x1f7c   :  { %v6815_v36 = vadd.f32 %v9855_v18, %v8498_v62  ;;  %v6809_v46 = vpop.f32.mrb[107].mxu0  ;;  %v6847_v2 = vmax.f32 %v6805_v52, %v6839_v15 }
0x1f7d   :  { %v6846_v25 = vmax.f32 %v6800_v35, %v6838_v49  ;;  %v6810_v20 = vadd.f32 %v8498_v62, %v6809_v46 }
0x1f7e   :  { %v6841_v1 = vmul.f32 0.01, %v6815_v36 }
0x1f7f   :  { %v6840_v31 = vmul.f32 0.01, %v6810_v20  ;;  %v9858_v47 = vpop.f32.mrb[108].mxu0  ;;  %9870 = vmatprep.mubr.msk.f32.mxu0 %vm194_vm1, %v6846_v25 }
0x1f80   :  { %v6825_v60 = vadd.f32 %v9858_v47, %v8498_v62  ;;  %v6819_v17 = vpop.f32.mrb[109].mxu0  ;;  %9871 = vmatmul.mubr.msk.f32.vlgmr.msra.gmra.mrb[112].mxu0 %vm194_vm1, %v6847_v2  ;;  %v6849_v5 = vmax.f32 %v6815_v36, %v6841_v1 }
0x1f81   :  { %v6848_v45 = vmax.f32 %v6810_v20, %v6840_v31  ;;  %v6820_v40 = vadd.f32 %v8498_v62, %v6819_v17  ;;  %10439 = vmatpush3.bf16.msra.mxu0 %v10436_v55  ;;  %v7165_v17 = vld [vmem:[#allocation2 + $0x340] sm:$0xff] }
0x1f82   :  { %v6843_v28 = vmul.f32 0.01, %v6825_v60  ;;  %10441 = vmatprep.subr.bf16.mxu0 %v10440_v63 }
0x1f83   :  { %v6842_v27 = vmul.f32 0.01, %v6820_v40  ;;  %v9861_v29 = vpop.f32.mrb[110].mxu0  ;;  %9873 = vmatprep.mubr.msk.f32.mxu0 %vm194_vm1, %v6848_v45 }
0x1f84   :  { %v6835_v53 = vadd.f32 %v9861_v29, %v8498_v62  ;;  %v6829_v3 = vpop.f32.mrb[111].mxu0  ;;  %9874 = vmatmul.mubr.msk.f32.gmra.mrb[114].mxu0 %vm194_vm1, %v6849_v5  ;;  %v6851_v33 = vmax.f32 %v6825_v60, %v6843_v28  ;;  %v7164_v60 = vld [vmem:[#allocation2 + $0x338] sm:$0xff]  ;;  %v7306_v28 = vld [vmem:[#allocation2 + $0x380] sm:$0xff]  ;;  %v7307_v29 = vld [vmem:[#allocation2 + $0x388] sm:$0xff] }
0x1f85   :  { %v6850_v6 = vmax.f32 %v6820_v40, %v6842_v27  ;;  %v6830_v22 = vadd.f32 %v8498_v62, %v6829_v3  ;;  %10443 = vmatpush3.bf16.msra.mxu0 %v10440_v63  ;;  %v10448_v45 = vpack.c.bf16 %v7165_v17, %v7164_v60  ;;  %v7304_v40 = vld [vmem:[#allocation2 + $0x370] sm:$0xff]  ;;  %v7305_v5 = vld [vmem:[#allocation2 + $0x378] sm:$0xff]  ;;  %v7315_v63 = vld [vmem:[#allocation2 + $0x3c8] sm:$0xff] }
0x1f86   :  { %v6845_v7 = vmul.f32 0.01, %v6835_v53  ;;  %v10452_v27 = vpack.c.bf16 %v7305_v5, %v7304_v40  ;;  %v7308_v3 = vld [vmem:[#allocation2 + $0x390] sm:$0xff]  ;;  %v10472_v57 = vpack.c.bf16 %v7315_v63, %v7314_v48  ;;  %v7318_v17 = vld [vmem:[#allocation2 + $0x3e0] sm:$0xff] }
0x1f87   :  { %v6844_v56 = vmul.f32 0.01, %v6830_v22  ;;  %9876 = vmatprep.mubr.msk.f32.mxu0 %vm194_vm1, %v6850_v6  ;;  %10449 = vmatprep.subr.bf16.mxu1 %v10448_v45  ;;  %v7309_v6 = vld [vmem:[#allocation2 + $0x398] sm:$0xff]  ;;  %v7300_v5 = vld [vmem:[#allocation2 + $0x350] sm:$0xff] }
0x1f88   :  { %9877 = vmatmul.mubr.msk.f32.gmra.mrb[116].mxu0 %vm194_vm1, %v6851_v33  ;;  %v6853_v50 = vmax.f32 %v6835_v53, %v6845_v7  ;;  %10451 = vmatpush3.bf16.msra.mxu1 %v10448_v45  ;;  %v10456_v53 = vpack.c.bf16 %v7307_v29, %v7306_v28  ;;  %v7310_v33 = vld [vmem:[#allocation2 + $0x3a0] sm:$0xff]  ;;  %v7311_v7 = vld [vmem:[#allocation2 + $0x3a8] sm:$0xff]  ;;  %v7301_v28 = vld [vmem:[#allocation2 + $0x358] sm:$0xff] }
0x1f89   :  { %v6852_v8 = vmax.f32 %v6830_v22, %v6844_v56  ;;  %10453 = vmatprep.subr.bf16.mxu0 %v10452_v27  ;;  %v10460_v22 = vpack.c.bf16 %v7309_v6, %v7308_v3  ;;  %v10464_v56 = vpack.c.bf16 %v7311_v7, %v7310_v33  ;;  %v7319_v45 = vld [vmem:[#allocation2 + $0x3e8] sm:$0xff]  ;;  %v7559_v29 = vld [vmem:[#allocation2 + $0x3f8] sm:$0xff]  ;;  %v7302_v33 = vld [vmem:[#allocation2 + $0x360] sm:$0xff] }
0x1f8a   :  { %v10480_v40 = vpack.c.bf16 %v7319_v45, %v7318_v17  ;;  %v8525_v6 = vld [vmem:[#allocation2 + $0x348] ss:$0 sm:$0xff] }
0x1f8b   :  { %9879 = vmatprep.mubr.msk.f32.mxu0 %vm194_vm1, %v6852_v8  ;;  %v7312_v8 = vld [vmem:[#allocation2 + $0x3b0] sm:$0xff]  ;;  %v7303_v7 = vld [vmem:[#allocation2 + $0x368] sm:$0xff] }
0x1f8c   :  { %9880 = vmatmul.mubr.msk.f32.gmra.mrb[118].mxu0 %vm194_vm1, %v6853_v50  ;;  %v7313_v50 = vld [vmem:[#allocation2 + $0x3b8] sm:$0xff] }
0x1f8d   :  { %v10468_v34 = vpack.c.bf16 %v7313_v50, %v7312_v8 }
0x2053   :  { %v9872_v14 = vpop.f32.mrb[112].mxu0 }
0x2054   :  { %v6959_v11 = vadd.f32 %v9872_v14, %v8507_v32  ;;  %v6953_v59 = vpop.f32.mrb[113].mxu0  ;;  %v8516_v14 = vld [vmem:[#allocation2 + $0x320] ss:$0 sm:$0xff] }
0x2055   :  { %v6954_v23 = vadd.f32 %v8507_v32, %v6953_v59 }
0x2056   :  { %v6993_v61 = vmul.f32 0.01, %v6959_v11 }
0x2057   :  { %v6992_v44 = vmul.f32 0.01, %v6954_v23  ;;  %v9875_v9 = vpop.f32.mrb[114].mxu0 }
0x2058   :  { %v6969_v16 = vadd.f32 %v9875_v9, %v8507_v32  ;;  %v6963_v42 = vpop.f32.mrb[115].mxu0  ;;  %v7001_v12 = vmax.f32 %v6959_v11, %v6993_v61 }
0x2059   :  { %v7000_v0 = vmax.f32 %v6954_v23, %v6992_v44  ;;  %v6964_v38 = vadd.f32 %v8507_v32, %v6963_v42 }
0x205a   :  { %v6995_v58 = vmul.f32 0.01, %v6969_v16 }
0x205b   :  { %v6994_v37 = vmul.f32 0.01, %v6964_v38  ;;  %v9878_v10 = vpop.f32.mrb[116].mxu0  ;;  %9890 = vmatprep.mubr.msk.f32.mxu0 %vm194_vm1, %v7000_v0 }
0x205c   :  { %v6979_v55 = vadd.f32 %v9878_v10, %v8507_v32  ;;  %v6973_v62 = vpop.f32.mrb[117].mxu0  ;;  %9891 = vmatmul.mubr.msk.f32.vlgmr.msra.gmra.mrb[120].mxu0 %vm194_vm1, %v7001_v12  ;;  %v7003_v43 = vmax.f32 %v6969_v16, %v6995_v58 }
0x205d   :  { %v7002_v30 = vmax.f32 %v6964_v38, %v6994_v37  ;;  %v6974_v52 = vadd.f32 %v8507_v32, %v6973_v62  ;;  %10455 = vmatpush3.bf16.msra.mxu0 %v10452_v27  ;;  %v10484_v27 = vpack.c.bf16 %v7301_v28, %v7300_v5  ;;  %v7715_v28 = vld [vmem:[#allocation2 + $0x430] sm:$0xff] }
0x205e   :  { %v6997_v35 = vmul.f32 0.01, %v6979_v55  ;;  %10457 = vmatprep.subr.bf16.mxu0 %v10456_v53 }
0x205f   :  { %v6996_v15 = vmul.f32 0.01, %v6974_v52  ;;  %v9881_v49 = vpop.f32.mrb[118].mxu0  ;;  %9893 = vmatprep.mubr.msk.f32.mxu0 %vm194_vm1, %v7002_v30 }
0x2060   :  { %v6989_v18 = vadd.f32 %v9881_v49, %v8507_v32  ;;  %v6983_v36 = vpop.f32.mrb[119].mxu0  ;;  %9894 = vmatmul.mubr.msk.f32.gmra.mrb[122].mxu0 %vm194_vm1, %v7003_v43  ;;  %v7005_v20 = vmax.f32 %v6979_v55, %v6997_v35 }
0x2061   :  { %v7004_v46 = vmax.f32 %v6974_v52, %v6996_v15  ;;  %v6984_v25 = vadd.f32 %v8507_v32, %v6983_v36  ;;  %10459 = vmatpush3.bf16.msra.mxu0 %v10456_v53  ;;  %v10476_v32 = vpack.c.bf16 %v7317_v4, %v7316_v21  ;;  %v7560_v53 = vld [vmem:[#allocation2 + $0x400] sm:$0xff] }
0x2062   :  { %v6999_v2 = vmul.f32 0.01, %v6989_v18  ;;  %10461 = vmatprep.subr.bf16.mxu0 %v10460_v22  ;;  %v10492_v3 = vpack.c.bf16 %v7560_v53, %v7559_v29  ;;  %v8543_v53 = vld [vmem:[#allocation2 + $0x418] ss:$0 sm:$0xff] }
0x2063   :  { %v6998_v1 = vmul.f32 0.01, %v6984_v25  ;;  %9896 = vmatprep.mubr.msk.f32.mxu0 %vm194_vm1, %v7004_v46 }
0x2064   :  { %9897 = vmatmul.mubr.msk.f32.gmra.mrb[124].mxu0 %vm194_vm1, %v7005_v20  ;;  %v7007_v47 = vmax.f32 %v6989_v18, %v6999_v2  ;;  %10493 = vmatprep.subr.bf16.mxu1 %v10492_v3 }
0x2065   :  { %v7006_v31 = vmax.f32 %v6984_v25, %v6998_v1  ;;  %10463 = vmatpush3.bf16.msra.mxu0 %v10460_v22 }
0x2066   :  { %10465 = vmatprep.subr.bf16.mxu0 %v10464_v56 }
0x2067   :  { %9899 = vmatprep.mubr.msk.f32.mxu0 %vm194_vm1, %v7006_v31 }
0x2068   :  { %9900 = vmatmul.mubr.msk.f32.gmra.mrb[126].mxu0 %vm194_vm1, %v7007_v47 }
0x2069   :  { %10467 = vmatpush3.bf16.msra.mxu0 %v10464_v56 }
0x206a   :  { %10469 = vmatprep.subr.bf16.mxu0 %v10468_v34 }
0x206d   :  { %10471 = vmatpush3.bf16.msra.mxu0 %v10468_v34  ;;  %v10488_v34 = vpack.c.bf16 %v7303_v7, %v7302_v33 }
0x206e   :  { %10473 = vmatprep.subr.bf16.mxu0 %v10472_v57 }
0x2071   :  { %10475 = vmatpush3.bf16.msra.mxu0 %v10472_v57 }
0x2072   :  { %10477 = vmatprep.subr.bf16.mxu0 %v10476_v32 }
0x2075   :  { %10479 = vmatpush3.bf16.msra.mxu0 %v10476_v32 }
0x2076   :  { %10481 = vmatprep.subr.bf16.mxu0 %v10480_v40 }
0x2079   :  { %10483 = vmatpush3.bf16.msra.mxu0 %v10480_v40 }
0x207a   :  { %10485 = vmatprep.subr.bf16.mxu0 %v10484_v27 }
0x212f   :  { %v9892_v11 = vpop.f32.mrb[120].mxu0 }
0x2130   :  { %v7113_v59 = vadd.f32 %v9892_v11, %v8516_v14  ;;  %v7107_v23 = vpop.f32.mrb[121].mxu0 }
0x2131   :  { %v7108_v61 = vadd.f32 %v8516_v14, %v7107_v23 }
0x2132   :  { %v7147_v44 = vmul.f32 0.01, %v7113_v59 }
0x2133   :  { %v7146_v9 = vmul.f32 0.01, %v7108_v61  ;;  %v9895_v16 = vpop.f32.mrb[122].mxu0 }
0x2134   :  { %v7123_v42 = vadd.f32 %v9895_v16, %v8516_v14  ;;  %v7117_v0 = vpop.f32.mrb[123].mxu0  ;;  %v7155_v58 = vmax.f32 %v7113_v59, %v7147_v44  ;;  %v7714_v16 = vld [vmem:[#allocation2 + $0x428] sm:$0xff] }
0x2135   :  { %v7154_v38 = vmax.f32 %v7108_v61, %v7146_v9  ;;  %v7118_v12 = vadd.f32 %v8516_v14, %v7117_v0 }
0x2136   :  { %v7149_v37 = vmul.f32 0.01, %v7123_v42 }
0x2137   :  { %v7148_v10 = vmul.f32 0.01, %v7118_v12  ;;  %v9898_v55 = vpop.f32.mrb[124].mxu0  ;;  %9910 = vmatprep.mubr.msk.f32.mxu1 %vm194_vm1, %v7154_v38 }
0x2138   :  { %v7133_v62 = vadd.f32 %v9898_v55, %v8516_v14  ;;  %v7127_v30 = vpop.f32.mrb[125].mxu0  ;;  %9911 = vmatmul.mubr.msk.f32.vlgmr.msra.gmra.mrb[96].mxu1 %vm194_vm1, %v7155_v58  ;;  %v7157_v35 = vmax.f32 %v7123_v42, %v7149_v37  ;;  %v8542_v42 = vld [vmem:[#allocation2 + $0x3f0] ss:$0 sm:$0xff] }
0x2139   :  { %v7156_v52 = vmax.f32 %v7118_v12, %v7148_v10  ;;  %v7128_v43 = vadd.f32 %v8516_v14, %v7127_v30  ;;  %10495 = vmatpush3.bf16.msra.mxu1 %v10492_v3 }
0x213a   :  { %v7151_v15 = vmul.f32 0.01, %v7133_v62 }
0x213b   :  { %v7150_v49 = vmul.f32 0.01, %v7128_v43  ;;  %v9901_v18 = vpop.f32.mrb[126].mxu0  ;;  %9913 = vmatprep.mubr.msk.f32.mxu1 %vm194_vm1, %v7156_v52 }
0x213c   :  { %v7143_v36 = vadd.f32 %v9901_v18, %v8516_v14  ;;  %v7137_v46 = vpop.f32.mrb[127].mxu0  ;;  %9914 = vmatmul.mubr.msk.f32.gmra.mrb[98].mxu1 %vm194_vm1, %v7157_v35  ;;  %v7159_v2 = vmax.f32 %v7133_v62, %v7151_v15 }
0x213d   :  { %v7158_v25 = vmax.f32 %v7128_v43, %v7150_v49  ;;  %v7138_v20 = vadd.f32 %v8516_v14, %v7137_v46 }
0x213e   :  { %v7153_v1 = vmul.f32 0.01, %v7143_v36 }
0x213f   :  { %v7152_v31 = vmul.f32 0.01, %v7138_v20  ;;  %9916 = vmatprep.mubr.msk.f32.mxu1 %vm194_vm1, %v7158_v25 }
0x2140   :  { %9917 = vmatmul.mubr.msk.f32.gmra.mrb[100].mxu1 %vm194_vm1, %v7159_v2  ;;  %v7161_v60 = vmax.f32 %v7143_v36, %v7153_v1 }
0x2141   :  { %v7160_v47 = vmax.f32 %v7138_v20, %v7152_v31 }
0x2143   :  { %9919 = vmatprep.mubr.msk.f32.mxu1 %vm194_vm1, %v7160_v47 }
0x2144   :  { %9920 = vmatmul.mubr.msk.f32.gmra.mrb[102].mxu1 %vm194_vm1, %v7161_v60 }
0x220b   :  { %v9912_v22 = vpop.f32.mrb[96].mxu1 }
0x220c   :  { %v7267_v56 = vadd.f32 %v9912_v22, %v8525_v6  ;;  %v7261_v8 = vpop.f32.mrb[97].mxu1 }
0x220d   :  { %v7262_v50 = vadd.f32 %v8525_v6, %v7261_v8 }
0x220e   :  { %8120 = vst [vmem:[%s13936_s2 + $0x8] sm:$0xff] %v7267_v56 }
0x220f   :  { %8119 = vst [vmem:[%s13936_s2] sm:$0xff] %v7262_v50  ;;  %v9915_v48 = vpop.f32.mrb[98].mxu1  ;;  %9954 = vmatprep.mubr.f32.mxu0 %v7262_v50 }
0x2210   :  { %v7277_v63 = vadd.f32 %v9915_v48, %v8525_v6  ;;  %v7271_v57 = vpop.f32.mrb[99].mxu1  ;;  %9955 = vmatmul.mubr.f32.vlgmr.msra.gmra.mrb[128].mxu0 %v7267_v56 }
0x2211   :  { %v7272_v21 = vadd.f32 %v8525_v6, %v7271_v57  ;;  %10487 = vmatpush3.bf16.msra.mxu0 %v10484_v27  ;;  %v7716_v27 = vld [vmem:[#allocation2 + $0x438] sm:$0xff] }
0x2212   :  { %8122 = vst [vmem:[%s13936_s2 + $0x18] sm:$0xff] %v7277_v63  ;;  %10489 = vmatprep.subr.bf16.mxu0 %v10488_v34  ;;  %v10504_v29 = vpack.c.bf16 %v7716_v27, %v7715_v28 }
0x2213   :  { %8121 = vst [vmem:[%s13936_s2 + $0x10] sm:$0xff] %v7272_v21  ;;  %v9918_v4 = vpop.f32.mrb[100].mxu1  ;;  %9957 = vmatprep.mubr.f32.mxu0 %v7272_v21 }
0x2214   :  { %v7287_v32 = vadd.f32 %v9918_v4, %v8525_v6  ;;  %v7281_v14 = vpop.f32.mrb[101].mxu1  ;;  %9958 = vmatmul.mubr.f32.gmra.mrb[130].mxu0 %v7277_v63 }
0x2215   :  { %v7282_v11 = vadd.f32 %v8525_v6, %v7281_v14  ;;  %10491 = vmatpush3.bf16.msra.mxu0 %v10488_v34 }
0x2216   :  { %8124 = vst [vmem:[%s13936_s2 + $0x28] sm:$0xff] %v7287_v32 }
0x2217   :  { %8123 = vst [vmem:[%s13936_s2 + $0x20] sm:$0xff] %v7282_v11  ;;  %v9921_v59 = vpop.f32.mrb[102].mxu1  ;;  %9960 = vmatprep.mubr.f32.mxu0 %v7282_v11 }
0x2218   :  { %v7297_v23 = vadd.f32 %v9921_v59, %v8525_v6  ;;  %v7291_v61 = vpop.f32.mrb[103].mxu1  ;;  %9961 = vmatmul.mubr.f32.gmra.mrb[132].mxu0 %v7287_v32 }
0x2219   :  { %v7292_v44 = vadd.f32 %v8525_v6, %v7291_v61 }
0x221a   :  { %8126 = vst [vmem:[%s13936_s2 + $0x38] sm:$0xff] %v7297_v23 }
0x221b   :  { %8125 = vst [vmem:[%s13936_s2 + $0x30] sm:$0xff] %v7292_v44  ;;  %9963 = vmatprep.mubr.f32.mxu0 %v7292_v44 }
0x221c   :  { %9964 = vmatmul.mubr.f32.gmra.mrb[134].mxu0 %v7297_v23 }
0x221d   :  { %9974 = vmatprep.mubr.msk.f32.mxu0 %vm194_vm1, %v13758_v54  ;;  %v7561_v54 = vld [vmem:[#allocation2 + $0x408] sm:$0xff] }
0x2220   :  { %9975 = vmatmul.mubr.msk.f32.vlgmr.msra.gmra.mrb[128].mxu0 %vm194_vm1, %v13760_v26  ;;  %v7562_v26 = vld [vmem:[#allocation2 + $0x410] sm:$0xff] }
0x2221   :  { %9977 = vmatprep.mubr.msk.f32.mxu0 %vm194_vm1, %v13766_v24  ;;  %v10496_v9 = vpack.c.bf16 %v7562_v26, %v7561_v54  ;;  %v7713_v24 = vld [vmem:[#allocation2 + $0x420] sm:$0xff] }
0x2223   :  { %10497 = vmatprep.subr.bf16.mxu1 %v10496_v9 }
0x2224   :  { %9978 = vmatmul.mubr.msk.f32.gmra.mrb[130].mxu0 %vm194_vm1, %v13768_v51  ;;  %10499 = vmatpush3.bf16.msra.mxu1 %v10496_v9  ;;  %v10500_v51 = vpack.c.bf16 %v7714_v16, %v7713_v24 }
0x2225   :  { %9980 = vmatprep.mubr.msk.f32.mxu0 %vm194_vm1, %v13774_v39 }
0x2226   :  { %10501 = vmatprep.subr.bf16.mxu1 %v10500_v51 }
0x2228   :  { %9981 = vmatmul.mubr.msk.f32.gmra.mrb[132].mxu0 %vm194_vm1, %v13776_v13 }
0x2229   :  { %9983 = vmatprep.mubr.msk.f32.mxu0 %vm194_vm1, %v13782_v19 }
0x222c   :  { %9984 = vmatmul.mubr.msk.f32.gmra.mrb[134].mxu0 %vm194_vm1, %v13784_v41 }
0x22f3   :  { %v9976_v39 = vpop.f32.mrb[128].mxu0 }
0x22f4   :  { %v7536_v0 = vadd.f32 %v9976_v39, %v8542_v42  ;;  %v7491_v38 = vpop.f32.mrb[129].mxu0 }
0x22f5   :  { %v7535_v13 = vadd.f32 %v8542_v42, %v7491_v38 }
0x22f6   :  { %v7544_v12 = vmul.f32 0.01, %v7536_v0 }
0x22f7   :  { %v7543_v58 = vmul.f32 0.01, %v7535_v13  ;;  %v9979_v19 = vpop.f32.mrb[130].mxu0 }
0x22f8   :  { %v7538_v37 = vadd.f32 %v9979_v19, %v8542_v42  ;;  %v7501_v10 = vpop.f32.mrb[131].mxu0  ;;  %v7552_v62 = vmax.f32 %v7536_v0, %v7544_v12  ;;  %v7867_v12 = vld [vmem:[#allocation2 + $0x448] sm:$0xff] }
0x22f9   :  { %v7551_v41 = vmax.f32 %v7535_v13, %v7543_v58  ;;  %v7537_v55 = vadd.f32 %v8542_v42, %v7501_v10  ;;  %v7868_v58 = vld [vmem:[#allocation2 + $0x450] sm:$0xff]  ;;  %v7870_v10 = vld [vmem:[#allocation2 + $0x460] sm:$0xff] }
0x22fa   :  { %v7546_v30 = vmul.f32 0.01, %v7538_v37  ;;  %v10508_v19 = vpack.c.bf16 %v7868_v58, %v7867_v12 }
0x22fb   :  { %v7545_v52 = vmul.f32 0.01, %v7537_v55  ;;  %v9982_v43 = vpop.f32.mrb[132].mxu0  ;;  %9994 = vmatprep.mubr.msk.f32.mxu1 %vm194_vm1, %v7551_v41 }
0x22fc   :  { %v7540_v35 = vadd.f32 %v9982_v43, %v8542_v42  ;;  %v7511_v15 = vpop.f32.mrb[133].mxu0  ;;  %9995 = vmatmul.mubr.msk.f32.vlgmr.msra.gmra.mrb[104].mxu1 %vm194_vm1, %v7552_v62  ;;  %v7554_v36 = vmax.f32 %v7538_v37, %v7546_v30  ;;  %10509 = vmatprep.subr.bf16.mxu0 %v10508_v19  ;;  %v7869_v37 = vld [vmem:[#allocation2 + $0x458] sm:$0xff]  ;;  %v8552_v62 = vld [vmem:[#allocation2 + $0x440] ss:$0 sm:$0xff] }
0x22fd   :  { %v7553_v49 = vmax.f32 %v7537_v55, %v7545_v52  ;;  %v7539_v18 = vadd.f32 %v8542_v42, %v7511_v15  ;;  %10503 = vmatpush3.bf16.msra.mxu1 %v10500_v51  ;;  %10511 = vmatpush3.bf16.msra.mxu0 %v10508_v19  ;;  %v10512_v41 = vpack.c.bf16 %v7870_v10, %v7869_v37  ;;  %v8005_v55 = vld [vmem:[#allocation2 + $0x470] sm:$0xff] }
0x22fe   :  { %v7548_v46 = vmul.f32 0.01, %v7540_v35  ;;  %10505 = vmatprep.subr.bf16.mxu1 %v10504_v29 }
0x22ff   :  { %v7547_v25 = vmul.f32 0.01, %v7539_v18  ;;  %v9985_v20 = vpop.f32.mrb[134].mxu0  ;;  %9997 = vmatprep.mubr.msk.f32.mxu1 %vm194_vm1, %v7553_v49  ;;  %10513 = vmatprep.subr.bf16.mxu0 %v10512_v41 }
0x2300   :  { %v7542_v2 = vadd.f32 %v9985_v20, %v8542_v42  ;;  %v7521_v1 = vpop.f32.mrb[135].mxu0  ;;  %9998 = vmatmul.mubr.msk.f32.gmra.mrb[106].mxu1 %vm194_vm1, %v7554_v36  ;;  %v7556_v60 = vmax.f32 %v7540_v35, %v7548_v46 }
0x2301   :  { %v7555_v31 = vmax.f32 %v7539_v18, %v7547_v25  ;;  %v7541_v47 = vadd.f32 %v8542_v42, %v7521_v1  ;;  %10507 = vmatpush3.bf16.msra.mxu1 %v10504_v29  ;;  %10515 = vmatpush3.bf16.msra.mxu0 %v10512_v41 }
0x2302   :  { %v7550_v17 = vmul.f32 0.01, %v7542_v2  ;;  %10516 = vmatprep.subr.bf16.mxu1 %v10508_v19 }
0x2303   :  { %v7549_v45 = vmul.f32 0.01, %v7541_v47  ;;  %10000 = vmatprep.mubr.msk.f32.mxu1 %vm194_vm1, %v7555_v31 }
0x2304   :  { %10001 = vmatmul.mubr.msk.f32.gmra.mrb[108].mxu1 %vm194_vm1, %v7556_v60  ;;  %v7558_v5 = vmax.f32 %v7542_v2, %v7550_v17 }
0x2305   :  { %v7557_v40 = vmax.f32 %v7541_v47, %v7549_v45 }
0x2307   :  { %10003 = vmatprep.mubr.msk.f32.mxu1 %vm194_vm1, %v7557_v40 }
0x2308   :  { %10004 = vmatmul.mubr.msk.f32.gmra.mrb[110].mxu1 %vm194_vm1, %v7558_v5 }
0x23cf   :  { %v9996_v3 = vpop.f32.mrb[104].mxu1 }
0x23d0   :  { %v7664_v6 = vadd.f32 %v9996_v3, %v8543_v53  ;;  %v7658_v22 = vpop.f32.mrb[105].mxu1 }
0x23d1   :  { %v7659_v33 = vadd.f32 %v8543_v53, %v7658_v22 }
0x23d2   :  { %v7698_v7 = vmul.f32 0.01, %v7664_v6 }
0x23d3   :  { %v7697_v56 = vmul.f32 0.01, %v7659_v33  ;;  %v9999_v8 = vpop.f32.mrb[106].mxu1 }
0x23d4   :  { %v7674_v50 = vadd.f32 %v9999_v8, %v8543_v53  ;;  %v7668_v34 = vpop.f32.mrb[107].mxu1  ;;  %v7706_v57 = vmax.f32 %v7664_v6, %v7698_v7 }
0x23d5   :  { %v7705_v48 = vmax.f32 %v7659_v33, %v7697_v56  ;;  %v7669_v63 = vadd.f32 %v8543_v53, %v7668_v34  ;;  %v10740_v34 = vld [vmem:[%s13934_s0] sm:$0xff] }
0x23d6   :  { %v7700_v21 = vmul.f32 0.01, %v7674_v50 }
0x23d7   :  { %v7699_v4 = vmul.f32 0.01, %v7669_v63  ;;  %v10002_v32 = vpop.f32.mrb[108].mxu1  ;;  %10014 = vmatprep.mubr.msk.f32.mxu1 %vm194_vm1, %v7705_v48  ;;  %v10741_v48 = vld [vmem:[%s13934_s0 + $0x8] sm:$0xff] }
0x23d8   :  { %v7684_v14 = vadd.f32 %v10002_v32, %v8543_v53  ;;  %v7678_v11 = vpop.f32.mrb[109].mxu1  ;;  %10015 = vmatmul.mubr.msk.f32.vlgmr.msra.gmra.mrb[112].mxu1 %vm194_vm1, %v7706_v57  ;;  %v7708_v61 = vmax.f32 %v7674_v50, %v7700_v21  ;;  %v10743_v57 = vld [vmem:[%s13934_s0 + $0x18] sm:$0xff]  ;;  %v10744_v21 = vld [vmem:[%s13934_s0 + $0x20] sm:$0xff]  ;;  %v10746_v32 = vld [vmem:[%s13934_s0 + $0x30] sm:$0xff] }
0x23d9   :  { %v7707_v59 = vmax.f32 %v7669_v63, %v7699_v4  ;;  %v7679_v23 = vadd.f32 %v8543_v53, %v7678_v11  ;;  %10518 = vmatpush3.bf16.msra.mxu1 %v10508_v19  ;;  %v10742_v63 = vld [vmem:[%s13934_s0 + $0x10] sm:$0xff]  ;;  %v10745_v4 = vld [vmem:[%s13934_s0 + $0x28] sm:$0xff] }
0x23da   :  { %v7702_v44 = vmul.f32 0.01, %v7684_v14  ;;  %10517 = vmatprep.subr.bf16.mxu1 %v10512_v41 }
0x23db   :  { %v7701_v54 = vmul.f32 0.01, %v7679_v23  ;;  %v10005_v26 = vpop.f32.mrb[110].mxu1  ;;  %10017 = vmatprep.mubr.msk.f32.mxu1 %vm194_vm1, %v7707_v59 }
0x23dc   :  { %v7694_v9 = vadd.f32 %v10005_v26, %v8543_v53  ;;  %v7688_v24 = vpop.f32.mrb[111].mxu1  ;;  %10018 = vmatmul.mubr.msk.f32.gmra.mrb[114].mxu1 %vm194_vm1, %v7708_v61  ;;  %v7710_v42 = vmax.f32 %v7684_v14, %v7702_v44  ;;  %v10747_v14 = vld [vmem:[%s13934_s0 + $0x38] sm:$0xff]  ;;  %v8561_v26 = vld [vmem:[#allocation2 + $0x468] ss:$0 sm:$0xff] }
0x23dd   :  { %v7709_v16 = vmax.f32 %v7679_v23, %v7701_v54  ;;  %v7689_v51 = vadd.f32 %v8543_v53, %v7688_v24  ;;  %10519 = vmatpush3.bf16.msra.mxu1 %v10512_v41 }
0x23de   :  { %v7704_v39 = vmul.f32 0.01, %v7694_v9  ;;  %10046 = vmatprep.subr.mxu1 %v8005_v55 }
0x23df   :  { %v7703_v0 = vmul.f32 0.01, %v7689_v51  ;;  %10020 = vmatprep.mubr.msk.f32.mxu1 %vm194_vm1, %v7709_v16 }
0x23e0   :  { %10021 = vmatmul.mubr.msk.f32.gmra.mrb[116].mxu1 %vm194_vm1, %v7710_v42  ;;  %v7712_v13 = vmax.f32 %v7694_v9, %v7704_v39 }
0x23e1   :  { %v7711_v38 = vmax.f32 %v7689_v51, %v7703_v0 }
0x23e3   :  { %10023 = vmatprep.mubr.msk.f32.mxu1 %vm194_vm1, %v7711_v38 }
0x23e4   :  { %10024 = vmatmul.mubr.msk.f32.gmra.mrb[118].mxu1 %vm194_vm1, %v7712_v13 }
0x24ab   :  { %v10016_v30 = vpop.f32.mrb[112].mxu1 }
0x24ac   :  { %v7818_v52 = vadd.f32 %v10016_v30, %v8552_v62  ;;  %v7812_v43 = vpop.f32.mrb[113].mxu1 }
0x24ad   :  { %v7813_v35 = vadd.f32 %v8552_v62, %v7812_v43 }
0x24ae   :  { %v7852_v15 = vmul.f32 0.01, %v7818_v52 }
0x24af   :  { %v7851_v49 = vmul.f32 0.01, %v7813_v35  ;;  %v10019_v18 = vpop.f32.mrb[114].mxu1 }
0x24b0   :  { %v7828_v36 = vadd.f32 %v10019_v18, %v8552_v62  ;;  %v7822_v46 = vpop.f32.mrb[115].mxu1  ;;  %v7860_v2 = vmax.f32 %v7818_v52, %v7852_v15 }
0x24b1   :  { %v7859_v25 = vmax.f32 %v7813_v35, %v7851_v49  ;;  %v7823_v20 = vadd.f32 %v8552_v62, %v7822_v46 }
0x24b2   :  { %v7854_v1 = vmul.f32 0.01, %v7828_v36 }
0x24b3   :  { %v7853_v31 = vmul.f32 0.01, %v7823_v20  ;;  %v10022_v47 = vpop.f32.mrb[116].mxu1  ;;  %10034 = vmatprep.mubr.msk.f32.mxu0 %vm194_vm1, %v7859_v25 }
0x24b4   :  { %v7838_v60 = vadd.f32 %v10022_v47, %v8552_v62  ;;  %v7832_v17 = vpop.f32.mrb[117].mxu1  ;;  %10035 = vmatmul.mubr.msk.f32.vlgmr.msra.gmra.mrb[136].mxu0 %vm194_vm1, %v7860_v2  ;;  %v7862_v5 = vmax.f32 %v7828_v36, %v7854_v1 }
0x24b5   :  { %v7861_v45 = vmax.f32 %v7823_v20, %v7853_v31  ;;  %v7833_v40 = vadd.f32 %v8552_v62, %v7832_v17 }
0x24b6   :  { %v7856_v28 = vmul.f32 0.01, %v7838_v60 }
0x24b7   :  { %v7855_v27 = vmul.f32 0.01, %v7833_v40  ;;  %v10025_v29 = vpop.f32.mrb[118].mxu1  ;;  %10037 = vmatprep.mubr.msk.f32.mxu0 %vm194_vm1, %v7861_v45 }
0x24b8   :  { %v7848_v53 = vadd.f32 %v10025_v29, %v8552_v62  ;;  %v7842_v3 = vpop.f32.mrb[119].mxu1  ;;  %10038 = vmatmul.mubr.msk.f32.gmra.mrb[138].mxu0 %vm194_vm1, %v7862_v5  ;;  %v7864_v33 = vmax.f32 %v7838_v60, %v7856_v28 }
0x24b9   :  { %v7863_v6 = vmax.f32 %v7833_v40, %v7855_v27  ;;  %v7843_v22 = vadd.f32 %v8552_v62, %v7842_v3 }
0x24ba   :  { %v7858_v7 = vmul.f32 0.01, %v7848_v53 }
0x24bb   :  { %v7857_v56 = vmul.f32 0.01, %v7843_v22  ;;  %10040 = vmatprep.mubr.msk.f32.mxu0 %vm194_vm1, %v7863_v6 }
0x24bc   :  { %10041 = vmatmul.mubr.msk.f32.gmra.mrb[140].mxu0 %vm194_vm1, %v7864_v33  ;;  %v7866_v50 = vmax.f32 %v7848_v53, %v7858_v7 }
0x24bd   :  { %v7865_v8 = vmax.f32 %v7843_v22, %v7857_v56 }
0x24bf   :  { %10043 = vmatprep.mubr.msk.f32.mxu1 %vm194_vm1, %v7865_v8 }
0x24c0   :  { %10044 = vmatmul.mubr.msk.f32.vlgmr.msra.gmra.mrb[120].mxu1 %vm194_vm1, %v7866_v50  ;;  %vm14129_vm1 = vmmov %vm14127_vm3 }
0x24c1   :  { %10047 = vmatpush3.msra.mxu1 %v8005_v55  ;;  %10048 = vmatprep.mubr.msk.f32.mxu1 %vm14126_vm4, %v10740_v34  ;;  %vm14130_vm6 = vmmov %vm14129_vm1 }
0x24c2   :  { %vm14131_vm12 = vmmov %vm14129_vm1 }
0x24c3   :  { %vm14132_vm9 = vmmov %vm14129_vm1 }
0x24c4   :  { %10049 = vmatmul.mubr.msk.f32.vlgmr.msra.gmra.mrb[122].mxu1 %vm14127_vm3, %v10741_v48  ;;  %vm14133_vm8 = vmmov %vm14129_vm1 }
0x24c5   :  { %10051 = vmatprep.mubr.msk.f32.mxu1 %vm14128_vm11, %v10742_v63 }
0x24c8   :  { %10052 = vmatmul.mubr.msk.f32.gmra.mrb[124].mxu1 %vm14129_vm1, %v10743_v57 }
0x24c9   :  { %10054 = vmatprep.mubr.msk.f32.mxu1 %vm14130_vm6, %v10744_v21 }
0x24cc   :  { %10055 = vmatmul.mubr.msk.f32.gmra.mrb[126].mxu1 %vm14131_vm12, %v10745_v4 }
0x24cd   :  { %10057 = vmatprep.mubr.msk.f32.mxu1 %vm14132_vm9, %v10746_v32 }
0x24d0   :  { %10058 = vmatmul.mubr.msk.f32.gmra.mrb[120].mxu1 %vm14133_vm8, %v10747_v14 }
0x2587   :  { %v10036_v11 = vpop.f32.mrb[136].mxu0 }
0x2588   :  { %v7966_v59 = vpop.f32.mrb[137].mxu0  ;;  %v7972_v9 = vadd.f32 %v10036_v11, %v8561_v26 }
0x2589   :  { %v7967_v24 = vadd.f32 %v8561_v26, %v7966_v59 }
0x258b   :  { %v10039_v23 = vpop.f32.mrb[138].mxu0 }
0x258c   :  { %v7976_v61 = vpop.f32.mrb[139].mxu0  ;;  %v7982_v0 = vadd.f32 %v10039_v23, %v8561_v26 }
0x258d   :  { %v7977_v38 = vadd.f32 %v8561_v26, %v7976_v61 }
0x258f   :  { %v10042_v44 = vpop.f32.mrb[140].mxu0 }
0x2590   :  { %v7986_v54 = vpop.f32.mrb[141].mxu0  ;;  %v7992_v37 = vadd.f32 %v10042_v44, %v8561_v26 }
0x2591   :  { %v7987_v10 = vadd.f32 %v8561_v26, %v7986_v54 }
0x2597   :  { %v10050_v16 = vpop.f32.mrb[122].mxu1 }
0x2598   :  { %v8112_v51 = vadd.f32 %v10050_v16, %v7972_v9  ;;  %v8072_v42 = vpop.f32.mrb[123].mxu1 }
0x2599   :  { %v8111_v39 = vadd.f32 %v8072_v42, %v7967_v24 }
0x259a   :  { %8579 = vst [vmem:[%s13936_s2 + $0x48] sm:$0xff] %v8112_v51 }
0x259b   :  { %8578 = vst [vmem:[%s13936_s2 + $0x40] sm:$0xff] %v8111_v39  ;;  %v10053_v13 = vpop.f32.mrb[124].mxu1 }
0x259c   :  { %v8114_v12 = vadd.f32 %v10053_v13, %v7982_v0  ;;  %v8082_v58 = vpop.f32.mrb[125].mxu1 }
0x259d   :  { %v8113_v19 = vadd.f32 %v8082_v58, %v7977_v38 }
0x259e   :  { %8581 = vst [vmem:[%s13936_s2 + $0x58] sm:$0xff] %v8114_v12 }
0x259f   :  { %8580 = vst [vmem:[%s13936_s2 + $0x50] sm:$0xff] %v8113_v19  ;;  %v10056_v41 = vpop.f32.mrb[126].mxu1 }
0x25a0   :  { %v8116_v55 = vadd.f32 %v10056_v41, %v7992_v37  ;;  %v8092_v62 = vpop.f32.mrb[127].mxu1 }
0x25a1   :  { %v8115_v30 = vadd.f32 %v8092_v62, %v7987_v10 }
0x25a2   :  { %8583 = vst [vmem:[%s13936_s2 + $0x68] sm:$0xff] %v8116_v55 }
0x25a3   :  { %8582 = vst [vmem:[%s13936_s2 + $0x60] sm:$0xff] %v8115_v30  ;;  %v10059_v52 = vpop.f32.mrb[120].mxu1 }
0x25a4   :  { %v10532_v43 = vadd.f32 %v10059_v52, %v8561_v26  ;;  %v8102_v35 = vpop.f32.mrb[121].mxu1 }
0x25a5   :  { %v10533_v15 = vadd.f32 %v8561_v26, %v8102_v35 }
0x25a6   :  { %8585 = vst [vmem:[%s13936_s2 + $0x78] sm:$0xff] %v10532_v43 }
0x25a7   :  { %8584 = vst [vmem:[%s13936_s2 + $0x70] sm:$0xff] %v10533_v15 }
0x25a8   :  { %8140 = vsyncpa [#allocation3], 1 }

</bundles_post_ra>
